<compile_context>
chip_gen: v5e
topology: v5e:2x2
jax: 0.10.0
libtpu: 0.0.40
codegen_flags: <defaults>
</compile_context>

<pallas_src>
import math

import jax
import jax.numpy as jnp
from jax.experimental import pallas as pl
from jax.experimental.pallas import tpu as pltpu

HALO = 8          # sublane-aligned halo (max conv padding in the network is 4)
C4 = 128          # conv4 output channels padded 96 -> 128 (lane-tile aligned)
CR3 = 64          # rec conv3 output channels padded 50 -> 64


# ----------------------------------------------------------------------------
# In-kernel building blocks
# ----------------------------------------------------------------------------
def _conv_taps(padbuf, wk, bias, K, cin, cout):
    """Same-padded conv1d + bias + ReLU over the zero-halo VMEM scratch buffer.

    padbuf : f32 scratch ref (B, Lc + 2*HALO, Cmax); valid activation lives at
             rows [HALO, HALO+L) and channels [0, cin); halo rows are zero.
    wk     : k -> (cin, cout) bf16 weight tap (ref load)
    bias   : (1, cout) f32
    Returns (B, Lc, cout) f32; rows >= L are computed on zero padding and are
    discarded by the caller (they only keep reshapes 8-aligned).
    """
    B = padbuf.shape[0]
    Lc = padbuf.shape[1] - 2 * HALO            # compute length, multiple of 8
    p = (K - 1) // 2
    off = HALO - p
    acc = jnp.broadcast_to(bias, (B * Lc, cout)).astype(jnp.float32)  # bias-init
    for k in range(K):                         # static unroll: one MXU push / tap
        xs = padbuf[:, off + k: off + k + Lc, 0:cin].reshape(B * Lc, cin)
        acc = acc + jnp.dot(xs.astype(jnp.bfloat16), wk(k),
                            preferred_element_type=jnp.float32)
    return jnp.maximum(acc, 0.0).reshape(B, Lc, cout)


def _zero_halo(padbuf, L):
    """Zero only the halo rows (head + tail); valid rows are always rewritten."""
    B, rows, C = padbuf.shape
    padbuf[:, 0:HALO, :] = jnp.zeros((B, HALO, C), padbuf.dtype)
    tail = rows - HALO - L
    padbuf[:, HALO + L:rows, :] = jnp.zeros((B, tail, C), padbuf.dtype)


def meter_kernel(xcol_ref,
                 w1_ref, b1_ref, w2_ref, b2_ref, w3_ref, b3_ref, w4_ref, b4_ref,
                 wd1_ref, bd1_ref, wd2_ref, bd2_ref,
                 out_ref, padbuf, d1in):
    """Fused GeneratorB for one meter (one grid step): 4 convs + 2 dense."""
    B, Lc, K1 = xcol_ref.shape
    L = wd1_ref.shape[1] // C4                 # true sequence length

    _zero_halo(padbuf, L)

    # conv1 (Cin=1): single im2col matmul, contraction depth 9.
    xs = xcol_ref[...].reshape(B * Lc, K1).astype(jnp.bfloat16)
    h = jnp.broadcast_to(b1_ref[0], (B * Lc, 24)).astype(jnp.float32)
    h = h + jnp.dot(xs, w1_ref[0], preferred_element_type=jnp.float32)
    h = jnp.maximum(h, 0.0).reshape(B, Lc, 24)
    padbuf[:, HALO:HALO + L, 0:24] = h[:, 0:L, :]

    # conv2..conv4: per-tap matmuls, activations resident in VMEM scratch.
    h = _conv_taps(padbuf, lambda k: w2_ref[0, k], b2_ref[0], 7, 24, 48)
    padbuf[:, HALO:HALO + L, 0:48] = h[:, 0:L, :]
    h = _conv_taps(padbuf, lambda k: w3_ref[0, k], b3_ref[0], 5, 48, 72)
    padbuf[:, HALO:HALO + L, 0:72] = h[:, 0:L, :]
    h = _conv_taps(padbuf, lambda k: w4_ref[0, k], b4_ref[0], 3, 72, C4)  # (B,Lc,128)

    # dense1: position-major flatten (PyTorch's view(-1, 96*L) with the
    # (C,L)->(L,C) permutation folded into the weight layout) assembled into a
    # (B, L*128) scratch via 128-aligned lane stores, then ONE deep-K matmul.
    for l in range(L):
        d1in[:, l * C4:(l + 1) * C4] = h[:, l, :]
    d1 = jnp.dot(d1in[...].astype(jnp.bfloat16), wd1_ref[0],
                 preferred_element_type=jnp.float32) + bd1_ref[0]
    d1 = jnp.maximum(d1, 0.0)

    # dense2 -> (B, 35)
    out_ref[0] = (jnp.dot(d1.astype(jnp.bfloat16), wd2_ref[0],
                          preferred_element_type=jnp.float32) + bd2_ref[0])


def rec_kernel(x_ref,
               w1_ref, b1_ref, w2_ref, b2_ref, w3_ref, b3_ref,
               wd1_ref, bd1_ref, wd2_ref, bd2_ref,
               out_ref, padbuf, d1in):
    """Fused Generator_rec: 3 convs + 2 dense, all activations in VMEM."""
    B, Lr, M = x_ref.shape                     # (B, 35, num_meters) channels-last

    _zero_halo(padbuf, Lr)
    padbuf[:, HALO:HALO + Lr, 0:M] = x_ref[...]

    h = _conv_taps(padbuf, lambda k: w1_ref[k], b1_ref[...], 9, M, 30)
    padbuf[:, HALO:HALO + Lr, 0:30] = h[:, 0:Lr, :]
    h = _conv_taps(padbuf, lambda k: w2_ref[k], b2_ref[...], 7, 30, 40)
    padbuf[:, HALO:HALO + Lr, 0:40] = h[:, 0:Lr, :]
    h = _conv_taps(padbuf, lambda k: w3_ref[k], b3_ref[...], 5, 40, CR3)  # (B,Lcr,64)

    # dense1: assemble (B, 35*64) with half-tile-aligned lane stores, one matmul.
    for l in range(Lr):
        d1in[:, l * CR3:(l + 1) * CR3] = h[:, l, :]
    d1 = jnp.dot(d1in[...].astype(jnp.bfloat16), wd1_ref[...],
                 preferred_element_type=jnp.float32) + bd1_ref[...]
    d1 = jnp.maximum(d1, 0.0)
    out_ref[...] = (jnp.dot(d1.astype(jnp.bfloat16), wd2_ref[...],
                            preferred_element_type=jnp.float32) + bd2_ref[...])


# ----------------------------------------------------------------------------
# Parameter init (PyTorch-default-style uniform bounds).  Weights are stacked
# per meter, pre-laid-out for the fused kernels and stored in bfloat16
# (biases stay f32 since they initialise the f32 accumulators).
# NOTE for porting real PyTorch weights: conv weights map as
# W_ours[k, cin, cout] = W_pt[cout, cin, k]; dense1 rows must be permuted from
# PyTorch's channel-major flatten (c*L + l) into this position-major layout
# (l*Cpad + c), with zero rows for the pad channels.
# ----------------------------------------------------------------------------
def init_generator_params(key, appliance_length, num_meters):
    L = appliance_length
    d1_out = 6 * L
    M = num_meters

    def u(k, shape, fan_in):
        b = 1.0 / math.sqrt(fan_in)
        return jax.random.uniform(k, shape, jnp.float32, -b, b)

    W = jnp.bfloat16
    ks = iter(jax.random.split(key, 32))
    p = {}
    # GeneratorB (stacked over meters)
    p["w1"] = u(next(ks), (M, 9, 24), 1 * 9).astype(W)
    p["b1"] = u(next(ks), (M, 1, 24), 1 * 9)
    p["w2"] = u(next(ks), (M, 7, 24, 48), 24 * 7).astype(W)
    p["b2"] = u(next(ks), (M, 1, 48), 24 * 7)
    p["w3"] = u(next(ks), (M, 5, 48, 72), 48 * 5).astype(W)
    p["b3"] = u(next(ks), (M, 1, 72), 48 * 5)
    w4 = u(next(ks), (M, 3, 72, 96), 72 * 3)                  # pad cout 96 -> 128
    p["w4"] = jnp.pad(w4, ((0, 0), (0, 0), (0, 0), (0, C4 - 96))).astype(W)
    b4 = u(next(ks), (M, 1, 96), 72 * 3)
    p["b4"] = jnp.pad(b4, ((0, 0), (0, 0), (0, C4 - 96)))
    wd1 = u(next(ks), (M, L, 96, d1_out), 96 * L)             # position-major pack
    wd1 = jnp.pad(wd1, ((0, 0), (0, 0), (0, C4 - 96), (0, 0)))
    p["wd1"] = wd1.reshape(M, L * C4, d1_out).astype(W)
    p["bd1"] = u(next(ks), (M, 1, d1_out), 96 * L)
    p["wd2"] = u(next(ks), (M, d1_out, 35), d1_out).astype(W)
    p["bd2"] = u(next(ks), (M, 1, 35), d1_out)
    # Generator_rec
    p["rw1"] = u(next(ks), (9, M, 30), M * 9).astype(W)
    p["rb1"] = u(next(ks), (1, 30), M * 9)
    p["rw2"] = u(next(ks), (7, 30, 40), 30 * 7).astype(W)
    p["rb2"] = u(next(ks), (1, 40), 30 * 7)
    rw3 = u(next(ks), (5, 40, 50), 40 * 5)                    # pad cout 50 -> 64
    p["rw3"] = jnp.pad(rw3, ((0, 0), (0, 0), (0, CR3 - 50))).astype(W)
    rb3 = u(next(ks), (1, 50), 40 * 5)
    p["rb3"] = jnp.pad(rb3, ((0, 0), (0, CR3 - 50)))
    rwd1 = u(next(ks), (35, 50, 5 * 35), 50 * 35)             # position-major pack
    rwd1 = jnp.pad(rwd1, ((0, 0), (0, CR3 - 50), (0, 0)))
    p["rwd1"] = rwd1.reshape(35 * CR3, 5 * 35).astype(W)
    p["rbd1"] = u(next(ks), (1, 5 * 35), 50 * 35)
    p["rwd2"] = u(next(ks), (5 * 35, 1), 5 * 35).astype(W)
    p["rbd2"] = u(next(ks), (1, 1), 5 * 35)
    return p


# ----------------------------------------------------------------------------
# Forward pass (mirrors Generator.forward): two pallas_call launches total.
# ----------------------------------------------------------------------------
def generator_forward(x, params):
    """x: (B, 1, mains_length), matching the PyTorch NCW input layout."""
    p = params
    B = x.shape[0]
    L = x.shape[2]
    num_meters = p["w1"].shape[0]
    d1_out = p["wd1"].shape[2]
    Lc = ((L + 7) // 8) * 8                   # sublane-aligned compute length
    Lr = 35
    Lcr = ((Lr + 7) // 8) * 8

    # Input prep (tiny, one-time): zero-pad + im2col patches for the Cin=1 conv1.
    P1 = 4                                    # conv1 "same" padding
    xp = jnp.pad(x[:, 0, :], ((0, 0), (P1, P1 + (Lc - L))))
    xcol = jnp.stack([xp[:, k:k + Lc] for k in range(9)], axis=-1)   # (B, Lc, 9)

    def shared(shape):
        n = len(shape)
        return pl.BlockSpec(shape, lambda m, n=n: (0,) * n)

    def per_meter(shape):
        n = len(shape)
        return pl.BlockSpec((1,) + shape, lambda m, n=n: (m,) + (0,) * n)

    meter_out = pl.pallas_call(
        meter_kernel,
        out_shape=jax.ShapeDtypeStruct((num_meters, B, 35), jnp.float32),
        grid_spec=pltpu.PrefetchScalarGridSpec(
            num_scalar_prefetch=0,
            grid=(num_meters,),
            in_specs=[
                shared((B, Lc, 9)),
                per_meter((9, 24)), per_meter((1, 24)),
                per_meter((7, 24, 48)), per_meter((1, 48)),
                per_meter((5, 48, 72)), per_meter((1, 72)),
                per_meter((3, 72, C4)), per_meter((1, C4)),
                per_meter((L * C4, d1_out)), per_meter((1, d1_out)),
                per_meter((d1_out, 35)), per_meter((1, 35)),
            ],
            out_specs=pl.BlockSpec((1, B, 35), lambda m: (m, 0, 0)),
            scratch_shapes=[pltpu.VMEM((B, Lc + 2 * HALO, 72), jnp.float32),
                            pltpu.VMEM((B, L * C4), jnp.float32)],
        ),
        compiler_params=pltpu.CompilerParams(
            # v7x: independent meters are split across both TensorCores.  The
            # 3-step grid splits 2+1; pad to an even meter count or add a
            # batch-split parallel axis to balance once B >= 16 rows.
            dimension_semantics=("parallel",),
        ),
    )(xcol, p["w1"], p["b1"], p["w2"], p["b2"], p["w3"], p["b3"],
      p["w4"], p["b4"], p["wd1"], p["bd1"], p["wd2"], p["bd2"])

    # Generator_rec input: torch.cat along the channel dim -> channels-last (B, 35, M).
    rec_in = jnp.transpose(meter_out, (1, 2, 0))

    vmem = pl.BlockSpec(memory_space=pltpu.MemorySpace.VMEM)
    rec_out = pl.pallas_call(
        rec_kernel,
        out_shape=jax.ShapeDtypeStruct((B, 1), jnp.float32),
        in_specs=[vmem] * 11,
        out_specs=vmem,
        scratch_shapes=[pltpu.VMEM((B, Lcr + 2 * HALO, 40), jnp.float32),
                        pltpu.VMEM((B, Lr * CR3), jnp.float32)],
    )(rec_in, p["rw1"], p["rb1"], p["rw2"], p["rb2"], p["rw3"], p["rb3"],
      p["rwd1"], p["rbd1"], p["rwd2"], p["rbd2"])

    return tuple(meter_out[m] for m in range(num_meters)) + (rec_out,)


# ----------------------------------------------------------------------------
# Pure-JAX reference (same math, same bf16 rounding of matmul inputs) used only
# for the self-check in __main__.
# ----------------------------------------------------------------------------
def reference_forward(x, p):
    f32 = jnp.float32
    bf = lambda a: a.astype(jnp.bfloat16).astype(f32)

    def conv_same(h, w, b):
        K = w.shape[0]
        pd = (K - 1) // 2
        hp = jnp.pad(h, ((0, 0), (pd, pd), (0, 0)))
        Lh = h.shape[1]
        out = jnp.zeros((h.shape[0], Lh, w.shape[2]), f32) + b.reshape(1, 1, -1)
        for k in range(K):
            out = out + jnp.einsum("blc,co->blo", bf(hp[:, k:k + Lh, :]),
                                   w[k].astype(f32))
        return jnp.maximum(out, 0.0)

    B, _, L = x.shape
    M = p["w1"].shape[0]
    meter_refs = []
    h0 = x[:, 0, :, None]                                    # (B, L, 1)
    for m in range(M):
        h = conv_same(h0, p["w1"][m][:, None, :], p["b1"][m, 0])
        h = conv_same(h, p["w2"][m], p["b2"][m, 0])
        h = conv_same(h, p["w3"][m], p["b3"][m, 0])
        h = conv_same(h, p["w4"][m], p["b4"][m, 0])          # (B, L, 128)
        d1 = jnp.maximum(bf(h.reshape(B, L * C4)) @ p["wd1"][m].astype(f32)
                         + p["bd1"][m, 0], 0.0)
        meter_refs.append(bf(d1) @ p["wd2"][m].astype(f32) + p["bd2"][m, 0])
    rec_in = jnp.stack(meter_refs, axis=-1)                   # (B, 35, M)
    h = conv_same(rec_in, p["rw1"], p["rb1"][0])
    h = conv_same(h, p["rw2"], p["rb2"][0])
    h = conv_same(h, p["rw3"], p["rb3"][0])                   # (B, 35, 64)
    d1 = jnp.maximum(bf(h.reshape(B, 35 * CR3)) @ p["rwd1"].astype(f32)
                     + p["rbd1"][0], 0.0)
    rec = bf(d1) @ p["rwd2"].astype(f32) + p["rbd2"][0]
    return meter_refs, rec


# ----------------------------------------------------------------------------
if __name__ == "__main__":
    B = 2
    mains_length = 16
    appliance_length = 16     # must equal mains_length (PyTorch .view() constraint)
    num_meters = 3

    key = jax.random.PRNGKey(0)
    k_params, k_x = jax.random.split(key)
    params = init_generator_params(k_params, appliance_length, num_meters)
    x = jax.random.normal(k_x, (B, 1, mains_length), jnp.float32)

    fwd = jax.jit(generator_forward)
    outs = fwd(x, params)
    outs = jax.block_until_ready(outs)

    assert len(outs) == num_meters + 1
    for o in outs[:num_meters]:
        assert o.shape == (B, 35), o.shape
    assert outs[-1].shape == (B, 1), outs[-1].shape
    assert all(bool(jnp.isfinite(o).all()) for o in outs)

    # Numerical self-check against a pure-JAX reference with identical
    # bf16-weight / bf16-activation rounding (so the only differences are
    # f32 accumulation order).
    ref_meters, ref_rec = reference_forward(x, params)
    for m in range(num_meters):
        err = float(jnp.max(jnp.abs(outs[m] - ref_meters[m])))
        assert err < 1e-2, (m, err)
    err = float(jnp.max(jnp.abs(outs[-1] - ref_rec)))
    assert err < 2e-2, err

    print("KERNEL_OK")
</pallas_src>

<mosaic_0001>
module attributes {stable_mosaic.version = 11 : i64} {
  func.func @rec_kernel(%arg0: memref<2x35x3xf32, #tpu.memory_space<vmem>>, %arg1: memref<9x3x30xbf16, #tpu.memory_space<vmem>>, %arg2: memref<1x30xf32, #tpu.memory_space<vmem>>, %arg3: memref<7x30x40xbf16, #tpu.memory_space<vmem>>, %arg4: memref<1x40xf32, #tpu.memory_space<vmem>>, %arg5: memref<5x40x64xbf16, #tpu.memory_space<vmem>>, %arg6: memref<1x64xf32, #tpu.memory_space<vmem>>, %arg7: memref<2240x175xbf16, #tpu.memory_space<vmem>>, %arg8: memref<1x175xf32, #tpu.memory_space<vmem>>, %arg9: memref<175x1xbf16, #tpu.memory_space<vmem>>, %arg10: memref<1x1xf32, #tpu.memory_space<vmem>>, %arg11: memref<2x1xf32, #tpu.memory_space<vmem>>, %arg12: memref<2x56x40xf32, #tpu.memory_space<vmem>>, %arg13: memref<2x2240xf32, #tpu.memory_space<vmem>>) attributes {dimension_semantics = [], scalar_prefetch = 0 : i64, scratch_operands = 2 : i64, tpu.core_type = #tpu.core_type<tc>} {
    %cst = arith.constant 0.000000e+00 : f32
    %0 = vector.broadcast %cst : f32 to vector<2x8x40xf32>
    %c0 = arith.constant 0 : index
    %c0_0 = arith.constant 0 : index
    %c0_1 = arith.constant 0 : index
    %1 = vector.load %arg12[%c0, %c0_0, %c0_1] : memref<2x56x40xf32, #tpu.memory_space<vmem>>, vector<2x8x40xf32>
    tpu.vector_store %arg12[%c0, %c0_0, %c0_1], %0 {strides = array<i32>} : memref<2x56x40xf32, #tpu.memory_space<vmem>>, vector<2x8x40xf32>,
    %cst_2 = arith.constant 0.000000e+00 : f32
    %2 = vector.broadcast %cst_2 : f32 to vector<2x13x40xf32>
    %c0_3 = arith.constant 0 : index
    %c43 = arith.constant 43 : index
    %c0_4 = arith.constant 0 : index
    %3 = vector.load %arg12[%c0_3, %c43, %c0_4] : memref<2x56x40xf32, #tpu.memory_space<vmem>>, vector<2x13x40xf32>
    tpu.vector_store %arg12[%c0_3, %c43, %c0_4], %2 {strides = array<i32>} : memref<2x56x40xf32, #tpu.memory_space<vmem>>, vector<2x13x40xf32>,
    %c0_5 = arith.constant 0 : index
    %c0_6 = arith.constant 0 : index
    %c0_7 = arith.constant 0 : index
    %4 = vector.load %arg0[%c0_5, %c0_6, %c0_7] : memref<2x35x3xf32, #tpu.memory_space<vmem>>, vector<2x35x3xf32>
    %c0_8 = arith.constant 0 : index
    %c8 = arith.constant 8 : index
    %c0_9 = arith.constant 0 : index
    %5 = vector.load %arg12[%c0_8, %c8, %c0_9] : memref<2x56x40xf32, #tpu.memory_space<vmem>>, vector<2x35x3xf32>
    tpu.vector_store %arg12[%c0_8, %c8, %c0_9], %4 {strides = array<i32>} : memref<2x56x40xf32, #tpu.memory_space<vmem>>, vector<2x35x3xf32>,
    %c0_10 = arith.constant 0 : index
    %c0_11 = arith.constant 0 : index
    %6 = vector.load %arg2[%c0_10, %c0_11] : memref<1x30xf32, #tpu.memory_space<vmem>>, vector<1x30xf32>
    %7 = vector.shape_cast %6 : vector<1x30xf32> to vector<1x30xf32>
    %8 = vector.broadcast %7 : vector<1x30xf32> to vector<80x30xf32>
    %c0_12 = arith.constant 0 : index
    %c4 = arith.constant 4 : index
    %c0_13 = arith.constant 0 : index
    %9 = vector.load %arg12[%c0_12, %c4, %c0_13] : memref<2x56x40xf32, #tpu.memory_space<vmem>>, vector<2x40x3xf32>
    %10 = vector.shape_cast %9 : vector<2x40x3xf32> to vector<80x3xf32>
    %11 = arith.truncf %10 : vector<80x3xf32> to vector<80x3xbf16>
    %c0_14 = arith.constant 0 : index
    %c0_15 = arith.constant 0 : index
    %c0_16 = arith.constant 0 : index
    %12 = vector.load %arg1[%c0_14, %c0_15, %c0_16] : memref<9x3x30xbf16, #tpu.memory_space<vmem>>, vector<1x3x30xbf16>
    %13 = vector.shape_cast %12 : vector<1x3x30xbf16> to vector<3x30xbf16>
    %cst_17 = arith.constant dense<0.000000e+00> : vector<80x30xf32>
    %14 = tpu.matmul %11, %13, %cst_17 {dimension_numbers = #tpu.dot_dimension_numbers<[1], [0], [0], [1], [0, 0, 1, 1], [], []>} : vector<80x3xbf16>, vector<3x30xbf16>, vector<80x30xf32> -> vector<80x30xf32>
    %15 = arith.addf %8, %14 : vector<80x30xf32>
    %c0_18 = arith.constant 0 : index
    %c5 = arith.constant 5 : index
    %c0_19 = arith.constant 0 : index
    %16 = vector.load %arg12[%c0_18, %c5, %c0_19] : memref<2x56x40xf32, #tpu.memory_space<vmem>>, vector<2x40x3xf32>
    %17 = vector.shape_cast %16 : vector<2x40x3xf32> to vector<80x3xf32>
    %18 = arith.truncf %17 : vector<80x3xf32> to vector<80x3xbf16>
    %c1 = arith.constant 1 : index
    %c0_20 = arith.constant 0 : index
    %c0_21 = arith.constant 0 : index
    %19 = vector.load %arg1[%c1, %c0_20, %c0_21] : memref<9x3x30xbf16, #tpu.memory_space<vmem>>, vector<1x3x30xbf16>
    %20 = vector.shape_cast %19 : vector<1x3x30xbf16> to vector<3x30xbf16>
    %cst_22 = arith.constant dense<0.000000e+00> : vector<80x30xf32>
    %21 = tpu.matmul %18, %20, %cst_22 {dimension_numbers = #tpu.dot_dimension_numbers<[1], [0], [0], [1], [0, 0, 1, 1], [], []>} : vector<80x3xbf16>, vector<3x30xbf16>, vector<80x30xf32> -> vector<80x30xf32>
    %22 = arith.addf %15, %21 : vector<80x30xf32>
    %c0_23 = arith.constant 0 : index
    %c6 = arith.constant 6 : index
    %c0_24 = arith.constant 0 : index
    %23 = vector.load %arg12[%c0_23, %c6, %c0_24] : memref<2x56x40xf32, #tpu.memory_space<vmem>>, vector<2x40x3xf32>
    %24 = vector.shape_cast %23 : vector<2x40x3xf32> to vector<80x3xf32>
    %25 = arith.truncf %24 : vector<80x3xf32> to vector<80x3xbf16>
    %c2 = arith.constant 2 : index
    %c0_25 = arith.constant 0 : index
    %c0_26 = arith.constant 0 : index
    %26 = vector.load %arg1[%c2, %c0_25, %c0_26] : memref<9x3x30xbf16, #tpu.memory_space<vmem>>, vector<1x3x30xbf16>
    %27 = vector.shape_cast %26 : vector<1x3x30xbf16> to vector<3x30xbf16>
    %cst_27 = arith.constant dense<0.000000e+00> : vector<80x30xf32>
    %28 = tpu.matmul %25, %27, %cst_27 {dimension_numbers = #tpu.dot_dimension_numbers<[1], [0], [0], [1], [0, 0, 1, 1], [], []>} : vector<80x3xbf16>, vector<3x30xbf16>, vector<80x30xf32> -> vector<80x30xf32>
    %29 = arith.addf %22, %28 : vector<80x30xf32>
    %c0_28 = arith.constant 0 : index
    %c7 = arith.constant 7 : index
    %c0_29 = arith.constant 0 : index
    %30 = vector.load %arg12[%c0_28, %c7, %c0_29] : memref<2x56x40xf32, #tpu.memory_space<vmem>>, vector<2x40x3xf32>
    %31 = vector.shape_cast %30 : vector<2x40x3xf32> to vector<80x3xf32>
    %32 = arith.truncf %31 : vector<80x3xf32> to vector<80x3xbf16>
    %c3 = arith.constant 3 : index
    %c0_30 = arith.constant 0 : index
    %c0_31 = arith.constant 0 : index
    %33 = vector.load %arg1[%c3, %c0_30, %c0_31] : memref<9x3x30xbf16, #tpu.memory_space<vmem>>, vector<1x3x30xbf16>
    %34 = vector.shape_cast %33 : vector<1x3x30xbf16> to vector<3x30xbf16>
    %cst_32 = arith.constant dense<0.000000e+00> : vector<80x30xf32>
    %35 = tpu.matmul %32, %34, %cst_32 {dimension_numbers = #tpu.dot_dimension_numbers<[1], [0], [0], [1], [0, 0, 1, 1], [], []>} : vector<80x3xbf16>, vector<3x30xbf16>, vector<80x30xf32> -> vector<80x30xf32>
    %36 = arith.addf %29, %35 : vector<80x30xf32>
    %c0_33 = arith.constant 0 : index
    %c8_34 = arith.constant 8 : index
    %c0_35 = arith.constant 0 : index
    %37 = vector.load %arg12[%c0_33, %c8_34, %c0_35] : memref<2x56x40xf32, #tpu.memory_space<vmem>>, vector<2x40x3xf32>
    %38 = vector.shape_cast %37 : vector<2x40x3xf32> to vector<80x3xf32>
    %39 = arith.truncf %38 : vector<80x3xf32> to vector<80x3xbf16>
    %c4_36 = arith.constant 4 : index
    %c0_37 = arith.constant 0 : index
    %c0_38 = arith.constant 0 : index
    %40 = vector.load %arg1[%c4_36, %c0_37, %c0_38] : memref<9x3x30xbf16, #tpu.memory_space<vmem>>, vector<1x3x30xbf16>
    %41 = vector.shape_cast %40 : vector<1x3x30xbf16> to vector<3x30xbf16>
    %cst_39 = arith.constant dense<0.000000e+00> : vector<80x30xf32>
    %42 = tpu.matmul %39, %41, %cst_39 {dimension_numbers = #tpu.dot_dimension_numbers<[1], [0], [0], [1], [0, 0, 1, 1], [], []>} : vector<80x3xbf16>, vector<3x30xbf16>, vector<80x30xf32> -> vector<80x30xf32>
    %43 = arith.addf %36, %42 : vector<80x30xf32>
    %c0_40 = arith.constant 0 : index
    %c9 = arith.constant 9 : index
    %c0_41 = arith.constant 0 : index
    %44 = vector.load %arg12[%c0_40, %c9, %c0_41] : memref<2x56x40xf32, #tpu.memory_space<vmem>>, vector<2x40x3xf32>
    %45 = vector.shape_cast %44 : vector<2x40x3xf32> to vector<80x3xf32>
    %46 = arith.truncf %45 : vector<80x3xf32> to vector<80x3xbf16>
    %c5_42 = arith.constant 5 : index
    %c0_43 = arith.constant 0 : index
    %c0_44 = arith.constant 0 : index
    %47 = vector.load %arg1[%c5_42, %c0_43, %c0_44] : memref<9x3x30xbf16, #tpu.memory_space<vmem>>, vector<1x3x30xbf16>
    %48 = vector.shape_cast %47 : vector<1x3x30xbf16> to vector<3x30xbf16>
    %cst_45 = arith.constant dense<0.000000e+00> : vector<80x30xf32>
    %49 = tpu.matmul %46, %48, %cst_45 {dimension_numbers = #tpu.dot_dimension_numbers<[1], [0], [0], [1], [0, 0, 1, 1], [], []>} : vector<80x3xbf16>, vector<3x30xbf16>, vector<80x30xf32> -> vector<80x30xf32>
    %50 = arith.addf %43, %49 : vector<80x30xf32>
    %c0_46 = arith.constant 0 : index
    %c10 = arith.constant 10 : index
    %c0_47 = arith.constant 0 : index
    %51 = vector.load %arg12[%c0_46, %c10, %c0_47] : memref<2x56x40xf32, #tpu.memory_space<vmem>>, vector<2x40x3xf32>
    %52 = vector.shape_cast %51 : vector<2x40x3xf32> to vector<80x3xf32>
    %53 = arith.truncf %52 : vector<80x3xf32> to vector<80x3xbf16>
    %c6_48 = arith.constant 6 : index
    %c0_49 = arith.constant 0 : index
    %c0_50 = arith.constant 0 : index
    %54 = vector.load %arg1[%c6_48, %c0_49, %c0_50] : memref<9x3x30xbf16, #tpu.memory_space<vmem>>, vector<1x3x30xbf16>
    %55 = vector.shape_cast %54 : vector<1x3x30xbf16> to vector<3x30xbf16>
    %cst_51 = arith.constant dense<0.000000e+00> : vector<80x30xf32>
    %56 = tpu.matmul %53, %55, %cst_51 {dimension_numbers = #tpu.dot_dimension_numbers<[1], [0], [0], [1], [0, 0, 1, 1], [], []>} : vector<80x3xbf16>, vector<3x30xbf16>, vector<80x30xf32> -> vector<80x30xf32>
    %57 = arith.addf %50, %56 : vector<80x30xf32>
    %c0_52 = arith.constant 0 : index
    %c11 = arith.constant 11 : index
    %c0_53 = arith.constant 0 : index
    %58 = vector.load %arg12[%c0_52, %c11, %c0_53] : memref<2x56x40xf32, #tpu.memory_space<vmem>>, vector<2x40x3xf32>
    %59 = vector.shape_cast %58 : vector<2x40x3xf32> to vector<80x3xf32>
    %60 = arith.truncf %59 : vector<80x3xf32> to vector<80x3xbf16>
    %c7_54 = arith.constant 7 : index
    %c0_55 = arith.constant 0 : index
    %c0_56 = arith.constant 0 : index
    %61 = vector.load %arg1[%c7_54, %c0_55, %c0_56] : memref<9x3x30xbf16, #tpu.memory_space<vmem>>, vector<1x3x30xbf16>
    %62 = vector.shape_cast %61 : vector<1x3x30xbf16> to vector<3x30xbf16>
    %cst_57 = arith.constant dense<0.000000e+00> : vector<80x30xf32>
    %63 = tpu.matmul %60, %62, %cst_57 {dimension_numbers = #tpu.dot_dimension_numbers<[1], [0], [0], [1], [0, 0, 1, 1], [], []>} : vector<80x3xbf16>, vector<3x30xbf16>, vector<80x30xf32> -> vector<80x30xf32>
    %64 = arith.addf %57, %63 : vector<80x30xf32>
    %c0_58 = arith.constant 0 : index
    %c12 = arith.constant 12 : index
    %c0_59 = arith.constant 0 : index
    %65 = vector.load %arg12[%c0_58, %c12, %c0_59] : memref<2x56x40xf32, #tpu.memory_space<vmem>>, vector<2x40x3xf32>
    %66 = vector.shape_cast %65 : vector<2x40x3xf32> to vector<80x3xf32>
    %67 = arith.truncf %66 : vector<80x3xf32> to vector<80x3xbf16>
    %c8_60 = arith.constant 8 : index
    %c0_61 = arith.constant 0 : index
    %c0_62 = arith.constant 0 : index
    %68 = vector.load %arg1[%c8_60, %c0_61, %c0_62] : memref<9x3x30xbf16, #tpu.memory_space<vmem>>, vector<1x3x30xbf16>
    %69 = vector.shape_cast %68 : vector<1x3x30xbf16> to vector<3x30xbf16>
    %cst_63 = arith.constant dense<0.000000e+00> : vector<80x30xf32>
    %70 = tpu.matmul %67, %69, %cst_63 {dimension_numbers = #tpu.dot_dimension_numbers<[1], [0], [0], [1], [0, 0, 1, 1], [], []>} : vector<80x3xbf16>, vector<3x30xbf16>, vector<80x30xf32> -> vector<80x30xf32>
    %71 = arith.addf %64, %70 : vector<80x30xf32>
    %cst_64 = arith.constant 0.000000e+00 : f32
    %72 = vector.broadcast %cst_64 : f32 to vector<80x30xf32>
    %73 = arith.maximumf %71, %72 : vector<80x30xf32>
    %74 = vector.shape_cast %73 : vector<80x30xf32> to vector<2x40x30xf32>
    %75 = vector.extract_strided_slice %74 {offsets = [0, 0, 0], sizes = [2, 35, 30], strides = [1, 1, 1]} : vector<2x40x30xf32> to vector<2x35x30xf32>
    %c0_65 = arith.constant 0 : index
    %c8_66 = arith.constant 8 : index
    %c0_67 = arith.constant 0 : index
    %76 = vector.load %arg12[%c0_65, %c8_66, %c0_67] : memref<2x56x40xf32, #tpu.memory_space<vmem>>, vector<2x35x30xf32>
    tpu.vector_store %arg12[%c0_65, %c8_66, %c0_67], %75 {strides = array<i32>} : memref<2x56x40xf32, #tpu.memory_space<vmem>>, vector<2x35x30xf32>,
    %c0_68 = arith.constant 0 : index
    %c0_69 = arith.constant 0 : index
    %77 = vector.load %arg4[%c0_68, %c0_69] : memref<1x40xf32, #tpu.memory_space<vmem>>, vector<1x40xf32>
    %78 = vector.shape_cast %77 : vector<1x40xf32> to vector<1x40xf32>
    %79 = vector.broadcast %78 : vector<1x40xf32> to vector<80x40xf32>
    %c0_70 = arith.constant 0 : index
    %c5_71 = arith.constant 5 : index
    %c0_72 = arith.constant 0 : index
    %80 = vector.load %arg12[%c0_70, %c5_71, %c0_72] : memref<2x56x40xf32, #tpu.memory_space<vmem>>, vector<2x40x30xf32>
    %81 = vector.shape_cast %80 : vector<2x40x30xf32> to vector<80x30xf32>
    %82 = arith.truncf %81 : vector<80x30xf32> to vector<80x30xbf16>
    %c0_73 = arith.constant 0 : index
    %c0_74 = arith.constant 0 : index
    %c0_75 = arith.constant 0 : index
    %83 = vector.load %arg3[%c0_73, %c0_74, %c0_75] : memref<7x30x40xbf16, #tpu.memory_space<vmem>>, vector<1x30x40xbf16>
    %84 = vector.shape_cast %83 : vector<1x30x40xbf16> to vector<30x40xbf16>
    %cst_76 = arith.constant dense<0.000000e+00> : vector<80x40xf32>
    %85 = tpu.matmul %82, %84, %cst_76 {dimension_numbers = #tpu.dot_dimension_numbers<[1], [0], [0], [1], [0, 0, 1, 1], [], []>} : vector<80x30xbf16>, vector<30x40xbf16>, vector<80x40xf32> -> vector<80x40xf32>
    %86 = arith.addf %79, %85 : vector<80x40xf32>
    %c0_77 = arith.constant 0 : index
    %c6_78 = arith.constant 6 : index
    %c0_79 = arith.constant 0 : index
    %87 = vector.load %arg12[%c0_77, %c6_78, %c0_79] : memref<2x56x40xf32, #tpu.memory_space<vmem>>, vector<2x40x30xf32>
    %88 = vector.shape_cast %87 : vector<2x40x30xf32> to vector<80x30xf32>
    %89 = arith.truncf %88 : vector<80x30xf32> to vector<80x30xbf16>
    %c1_80 = arith.constant 1 : index
    %c0_81 = arith.constant 0 : index
    %c0_82 = arith.constant 0 : index
    %90 = vector.load %arg3[%c1_80, %c0_81, %c0_82] : memref<7x30x40xbf16, #tpu.memory_space<vmem>>, vector<1x30x40xbf16>
    %91 = vector.shape_cast %90 : vector<1x30x40xbf16> to vector<30x40xbf16>
    %cst_83 = arith.constant dense<0.000000e+00> : vector<80x40xf32>
    %92 = tpu.matmul %89, %91, %cst_83 {dimension_numbers = #tpu.dot_dimension_numbers<[1], [0], [0], [1], [0, 0, 1, 1], [], []>} : vector<80x30xbf16>, vector<30x40xbf16>, vector<80x40xf32> -> vector<80x40xf32>
    %93 = arith.addf %86, %92 : vector<80x40xf32>
    %c0_84 = arith.constant 0 : index
    %c7_85 = arith.constant 7 : index
    %c0_86 = arith.constant 0 : index
    %94 = vector.load %arg12[%c0_84, %c7_85, %c0_86] : memref<2x56x40xf32, #tpu.memory_space<vmem>>, vector<2x40x30xf32>
    %95 = vector.shape_cast %94 : vector<2x40x30xf32> to vector<80x30xf32>
    %96 = arith.truncf %95 : vector<80x30xf32> to vector<80x30xbf16>
    %c2_87 = arith.constant 2 : index
    %c0_88 = arith.constant 0 : index
    %c0_89 = arith.constant 0 : index
    %97 = vector.load %arg3[%c2_87, %c0_88, %c0_89] : memref<7x30x40xbf16, #tpu.memory_space<vmem>>, vector<1x30x40xbf16>
    %98 = vector.shape_cast %97 : vector<1x30x40xbf16> to vector<30x40xbf16>
    %cst_90 = arith.constant dense<0.000000e+00> : vector<80x40xf32>
    %99 = tpu.matmul %96, %98, %cst_90 {dimension_numbers = #tpu.dot_dimension_numbers<[1], [0], [0], [1], [0, 0, 1, 1], [], []>} : vector<80x30xbf16>, vector<30x40xbf16>, vector<80x40xf32> -> vector<80x40xf32>
    %100 = arith.addf %93, %99 : vector<80x40xf32>
    %c0_91 = arith.constant 0 : index
    %c8_92 = arith.constant 8 : index
    %c0_93 = arith.constant 0 : index
    %101 = vector.load %arg12[%c0_91, %c8_92, %c0_93] : memref<2x56x40xf32, #tpu.memory_space<vmem>>, vector<2x40x30xf32>
    %102 = vector.shape_cast %101 : vector<2x40x30xf32> to vector<80x30xf32>
    %103 = arith.truncf %102 : vector<80x30xf32> to vector<80x30xbf16>
    %c3_94 = arith.constant 3 : index
    %c0_95 = arith.constant 0 : index
    %c0_96 = arith.constant 0 : index
    %104 = vector.load %arg3[%c3_94, %c0_95, %c0_96] : memref<7x30x40xbf16, #tpu.memory_space<vmem>>, vector<1x30x40xbf16>
    %105 = vector.shape_cast %104 : vector<1x30x40xbf16> to vector<30x40xbf16>
    %cst_97 = arith.constant dense<0.000000e+00> : vector<80x40xf32>
    %106 = tpu.matmul %103, %105, %cst_97 {dimension_numbers = #tpu.dot_dimension_numbers<[1], [0], [0], [1], [0, 0, 1, 1], [], []>} : vector<80x30xbf16>, vector<30x40xbf16>, vector<80x40xf32> -> vector<80x40xf32>
    %107 = arith.addf %100, %106 : vector<80x40xf32>
    %c0_98 = arith.constant 0 : index
    %c9_99 = arith.constant 9 : index
    %c0_100 = arith.constant 0 : index
    %108 = vector.load %arg12[%c0_98, %c9_99, %c0_100] : memref<2x56x40xf32, #tpu.memory_space<vmem>>, vector<2x40x30xf32>
    %109 = vector.shape_cast %108 : vector<2x40x30xf32> to vector<80x30xf32>
    %110 = arith.truncf %109 : vector<80x30xf32> to vector<80x30xbf16>
    %c4_101 = arith.constant 4 : index
    %c0_102 = arith.constant 0 : index
    %c0_103 = arith.constant 0 : index
    %111 = vector.load %arg3[%c4_101, %c0_102, %c0_103] : memref<7x30x40xbf16, #tpu.memory_space<vmem>>, vector<1x30x40xbf16>
    %112 = vector.shape_cast %111 : vector<1x30x40xbf16> to vector<30x40xbf16>
    %cst_104 = arith.constant dense<0.000000e+00> : vector<80x40xf32>
    %113 = tpu.matmul %110, %112, %cst_104 {dimension_numbers = #tpu.dot_dimension_numbers<[1], [0], [0], [1], [0, 0, 1, 1], [], []>} : vector<80x30xbf16>, vector<30x40xbf16>, vector<80x40xf32> -> vector<80x40xf32>
    %114 = arith.addf %107, %113 : vector<80x40xf32>
    %c0_105 = arith.constant 0 : index
    %c10_106 = arith.constant 10 : index
    %c0_107 = arith.constant 0 : index
    %115 = vector.load %arg12[%c0_105, %c10_106, %c0_107] : memref<2x56x40xf32, #tpu.memory_space<vmem>>, vector<2x40x30xf32>
    %116 = vector.shape_cast %115 : vector<2x40x30xf32> to vector<80x30xf32>
    %117 = arith.truncf %116 : vector<80x30xf32> to vector<80x30xbf16>
    %c5_108 = arith.constant 5 : index
    %c0_109 = arith.constant 0 : index
    %c0_110 = arith.constant 0 : index
    %118 = vector.load %arg3[%c5_108, %c0_109, %c0_110] : memref<7x30x40xbf16, #tpu.memory_space<vmem>>, vector<1x30x40xbf16>
    %119 = vector.shape_cast %118 : vector<1x30x40xbf16> to vector<30x40xbf16>
    %cst_111 = arith.constant dense<0.000000e+00> : vector<80x40xf32>
    %120 = tpu.matmul %117, %119, %cst_111 {dimension_numbers = #tpu.dot_dimension_numbers<[1], [0], [0], [1], [0, 0, 1, 1], [], []>} : vector<80x30xbf16>, vector<30x40xbf16>, vector<80x40xf32> -> vector<80x40xf32>
    %121 = arith.addf %114, %120 : vector<80x40xf32>
    %c0_112 = arith.constant 0 : index
    %c11_113 = arith.constant 11 : index
    %c0_114 = arith.constant 0 : index
    %122 = vector.load %arg12[%c0_112, %c11_113, %c0_114] : memref<2x56x40xf32, #tpu.memory_space<vmem>>, vector<2x40x30xf32>
    %123 = vector.shape_cast %122 : vector<2x40x30xf32> to vector<80x30xf32>
    %124 = arith.truncf %123 : vector<80x30xf32> to vector<80x30xbf16>
    %c6_115 = arith.constant 6 : index
    %c0_116 = arith.constant 0 : index
    %c0_117 = arith.constant 0 : index
    %125 = vector.load %arg3[%c6_115, %c0_116, %c0_117] : memref<7x30x40xbf16, #tpu.memory_space<vmem>>, vector<1x30x40xbf16>
    %126 = vector.shape_cast %125 : vector<1x30x40xbf16> to vector<30x40xbf16>
    %cst_118 = arith.constant dense<0.000000e+00> : vector<80x40xf32>
    %127 = tpu.matmul %124, %126, %cst_118 {dimension_numbers = #tpu.dot_dimension_numbers<[1], [0], [0], [1], [0, 0, 1, 1], [], []>} : vector<80x30xbf16>, vector<30x40xbf16>, vector<80x40xf32> -> vector<80x40xf32>
    %128 = arith.addf %121, %127 : vector<80x40xf32>
    %cst_119 = arith.constant 0.000000e+00 : f32
    %129 = vector.broadcast %cst_119 : f32 to vector<80x40xf32>
    %130 = arith.maximumf %128, %129 : vector<80x40xf32>
    %131 = vector.shape_cast %130 : vector<80x40xf32> to vector<2x40x40xf32>
    %132 = vector.extract_strided_slice %131 {offsets = [0, 0, 0], sizes = [2, 35, 40], strides = [1, 1, 1]} : vector<2x40x40xf32> to vector<2x35x40xf32>
    %c0_120 = arith.constant 0 : index
    %c8_121 = arith.constant 8 : index
    %c0_122 = arith.constant 0 : index
    %133 = vector.load %arg12[%c0_120, %c8_121, %c0_122] : memref<2x56x40xf32, #tpu.memory_space<vmem>>, vector<2x35x40xf32>
    tpu.vector_store %arg12[%c0_120, %c8_121, %c0_122], %132 {strides = array<i32>} : memref<2x56x40xf32, #tpu.memory_space<vmem>>, vector<2x35x40xf32>,
    %c0_123 = arith.constant 0 : index
    %c0_124 = arith.constant 0 : index
    %134 = vector.load %arg6[%c0_123, %c0_124] : memref<1x64xf32, #tpu.memory_space<vmem>>, vector<1x64xf32>
    %135 = vector.shape_cast %134 : vector<1x64xf32> to vector<1x64xf32>
    %136 = vector.broadcast %135 : vector<1x64xf32> to vector<80x64xf32>
    %c0_125 = arith.constant 0 : index
    %c6_126 = arith.constant 6 : index
    %c0_127 = arith.constant 0 : index
    %137 = vector.load %arg12[%c0_125, %c6_126, %c0_127] : memref<2x56x40xf32, #tpu.memory_space<vmem>>, vector<2x40x40xf32>
    %138 = vector.shape_cast %137 : vector<2x40x40xf32> to vector<80x40xf32>
    %139 = arith.truncf %138 : vector<80x40xf32> to vector<80x40xbf16>
    %c0_128 = arith.constant 0 : index
    %c0_129 = arith.constant 0 : index
    %c0_130 = arith.constant 0 : index
    %140 = vector.load %arg5[%c0_128, %c0_129, %c0_130] : memref<5x40x64xbf16, #tpu.memory_space<vmem>>, vector<1x40x64xbf16>
    %141 = vector.shape_cast %140 : vector<1x40x64xbf16> to vector<40x64xbf16>
    %cst_131 = arith.constant dense<0.000000e+00> : vector<80x64xf32>
    %142 = tpu.matmul %139, %141, %cst_131 {dimension_numbers = #tpu.dot_dimension_numbers<[1], [0], [0], [1], [0, 0, 1, 1], [], []>} : vector<80x40xbf16>, vector<40x64xbf16>, vector<80x64xf32> -> vector<80x64xf32>
    %143 = arith.addf %136, %142 : vector<80x64xf32>
    %c0_132 = arith.constant 0 : index
    %c7_133 = arith.constant 7 : index
    %c0_134 = arith.constant 0 : index
    %144 = vector.load %arg12[%c0_132, %c7_133, %c0_134] : memref<2x56x40xf32, #tpu.memory_space<vmem>>, vector<2x40x40xf32>
    %145 = vector.shape_cast %144 : vector<2x40x40xf32> to vector<80x40xf32>
    %146 = arith.truncf %145 : vector<80x40xf32> to vector<80x40xbf16>
    %c1_135 = arith.constant 1 : index
    %c0_136 = arith.constant 0 : index
    %c0_137 = arith.constant 0 : index
    %147 = vector.load %arg5[%c1_135, %c0_136, %c0_137] : memref<5x40x64xbf16, #tpu.memory_space<vmem>>, vector<1x40x64xbf16>
    %148 = vector.shape_cast %147 : vector<1x40x64xbf16> to vector<40x64xbf16>
    %cst_138 = arith.constant dense<0.000000e+00> : vector<80x64xf32>
    %149 = tpu.matmul %146, %148, %cst_138 {dimension_numbers = #tpu.dot_dimension_numbers<[1], [0], [0], [1], [0, 0, 1, 1], [], []>} : vector<80x40xbf16>, vector<40x64xbf16>, vector<80x64xf32> -> vector<80x64xf32>
    %150 = arith.addf %143, %149 : vector<80x64xf32>
    %c0_139 = arith.constant 0 : index
    %c8_140 = arith.constant 8 : index
    %c0_141 = arith.constant 0 : index
    %151 = vector.load %arg12[%c0_139, %c8_140, %c0_141] : memref<2x56x40xf32, #tpu.memory_space<vmem>>, vector<2x40x40xf32>
    %152 = vector.shape_cast %151 : vector<2x40x40xf32> to vector<80x40xf32>
    %153 = arith.truncf %152 : vector<80x40xf32> to vector<80x40xbf16>
    %c2_142 = arith.constant 2 : index
    %c0_143 = arith.constant 0 : index
    %c0_144 = arith.constant 0 : index
    %154 = vector.load %arg5[%c2_142, %c0_143, %c0_144] : memref<5x40x64xbf16, #tpu.memory_space<vmem>>, vector<1x40x64xbf16>
    %155 = vector.shape_cast %154 : vector<1x40x64xbf16> to vector<40x64xbf16>
    %cst_145 = arith.constant dense<0.000000e+00> : vector<80x64xf32>
    %156 = tpu.matmul %153, %155, %cst_145 {dimension_numbers = #tpu.dot_dimension_numbers<[1], [0], [0], [1], [0, 0, 1, 1], [], []>} : vector<80x40xbf16>, vector<40x64xbf16>, vector<80x64xf32> -> vector<80x64xf32>
    %157 = arith.addf %150, %156 : vector<80x64xf32>
    %c0_146 = arith.constant 0 : index
    %c9_147 = arith.constant 9 : index
    %c0_148 = arith.constant 0 : index
    %158 = vector.load %arg12[%c0_146, %c9_147, %c0_148] : memref<2x56x40xf32, #tpu.memory_space<vmem>>, vector<2x40x40xf32>
    %159 = vector.shape_cast %158 : vector<2x40x40xf32> to vector<80x40xf32>
    %160 = arith.truncf %159 : vector<80x40xf32> to vector<80x40xbf16>
    %c3_149 = arith.constant 3 : index
    %c0_150 = arith.constant 0 : index
    %c0_151 = arith.constant 0 : index
    %161 = vector.load %arg5[%c3_149, %c0_150, %c0_151] : memref<5x40x64xbf16, #tpu.memory_space<vmem>>, vector<1x40x64xbf16>
    %162 = vector.shape_cast %161 : vector<1x40x64xbf16> to vector<40x64xbf16>
    %cst_152 = arith.constant dense<0.000000e+00> : vector<80x64xf32>
    %163 = tpu.matmul %160, %162, %cst_152 {dimension_numbers = #tpu.dot_dimension_numbers<[1], [0], [0], [1], [0, 0, 1, 1], [], []>} : vector<80x40xbf16>, vector<40x64xbf16>, vector<80x64xf32> -> vector<80x64xf32>
    %164 = arith.addf %157, %163 : vector<80x64xf32>
    %c0_153 = arith.constant 0 : index
    %c10_154 = arith.constant 10 : index
    %c0_155 = arith.constant 0 : index
    %165 = vector.load %arg12[%c0_153, %c10_154, %c0_155] : memref<2x56x40xf32, #tpu.memory_space<vmem>>, vector<2x40x40xf32>
    %166 = vector.shape_cast %165 : vector<2x40x40xf32> to vector<80x40xf32>
    %167 = arith.truncf %166 : vector<80x40xf32> to vector<80x40xbf16>
    %c4_156 = arith.constant 4 : index
    %c0_157 = arith.constant 0 : index
    %c0_158 = arith.constant 0 : index
    %168 = vector.load %arg5[%c4_156, %c0_157, %c0_158] : memref<5x40x64xbf16, #tpu.memory_space<vmem>>, vector<1x40x64xbf16>
    %169 = vector.shape_cast %168 : vector<1x40x64xbf16> to vector<40x64xbf16>
    %cst_159 = arith.constant dense<0.000000e+00> : vector<80x64xf32>
    %170 = tpu.matmul %167, %169, %cst_159 {dimension_numbers = #tpu.dot_dimension_numbers<[1], [0], [0], [1], [0, 0, 1, 1], [], []>} : vector<80x40xbf16>, vector<40x64xbf16>, vector<80x64xf32> -> vector<80x64xf32>
    %171 = arith.addf %164, %170 : vector<80x64xf32>
    %cst_160 = arith.constant 0.000000e+00 : f32
    %172 = vector.broadcast %cst_160 : f32 to vector<80x64xf32>
    %173 = arith.maximumf %171, %172 : vector<80x64xf32>
    %174 = vector.shape_cast %173 : vector<80x64xf32> to vector<2x40x64xf32>
    %175 = vector.extract_strided_slice %174 {offsets = [0, 0, 0], sizes = [2, 1, 64], strides = [1, 1, 1]} : vector<2x40x64xf32> to vector<2x1x64xf32>
    %176 = vector.shape_cast %175 : vector<2x1x64xf32> to vector<2x64xf32>
    %c0_161 = arith.constant 0 : index
    %c0_162 = arith.constant 0 : index
    %177 = vector.load %arg13[%c0_161, %c0_162] : memref<2x2240xf32, #tpu.memory_space<vmem>>, vector<2x64xf32>
    tpu.vector_store %arg13[%c0_161, %c0_162], %176 {strides = array<i32>} : memref<2x2240xf32, #tpu.memory_space<vmem>>, vector<2x64xf32>,
    %178 = vector.extract_strided_slice %174 {offsets = [0, 1, 0], sizes = [2, 1, 64], strides = [1, 1, 1]} : vector<2x40x64xf32> to vector<2x1x64xf32>
    %179 = vector.shape_cast %178 : vector<2x1x64xf32> to vector<2x64xf32>
    %c0_163 = arith.constant 0 : index
    %c64 = arith.constant 64 : index
    %180 = vector.load %arg13[%c0_163, %c64] : memref<2x2240xf32, #tpu.memory_space<vmem>>, vector<2x64xf32>
    tpu.vector_store %arg13[%c0_163, %c64], %179 {strides = array<i32>} : memref<2x2240xf32, #tpu.memory_space<vmem>>, vector<2x64xf32>,
    %181 = vector.extract_strided_slice %174 {offsets = [0, 2, 0], sizes = [2, 1, 64], strides = [1, 1, 1]} : vector<2x40x64xf32> to vector<2x1x64xf32>
    %182 = vector.shape_cast %181 : vector<2x1x64xf32> to vector<2x64xf32>
    %c0_164 = arith.constant 0 : index
    %c128 = arith.constant 128 : index
    %183 = vector.load %arg13[%c0_164, %c128] : memref<2x2240xf32, #tpu.memory_space<vmem>>, vector<2x64xf32>
    tpu.vector_store %arg13[%c0_164, %c128], %182 {strides = array<i32>} : memref<2x2240xf32, #tpu.memory_space<vmem>>, vector<2x64xf32>,
    %184 = vector.extract_strided_slice %174 {offsets = [0, 3, 0], sizes = [2, 1, 64], strides = [1, 1, 1]} : vector<2x40x64xf32> to vector<2x1x64xf32>
    %185 = vector.shape_cast %184 : vector<2x1x64xf32> to vector<2x64xf32>
    %c0_165 = arith.constant 0 : index
    %c192 = arith.constant 192 : index
    %186 = vector.load %arg13[%c0_165, %c192] : memref<2x2240xf32, #tpu.memory_space<vmem>>, vector<2x64xf32>
    tpu.vector_store %arg13[%c0_165, %c192], %185 {strides = array<i32>} : memref<2x2240xf32, #tpu.memory_space<vmem>>, vector<2x64xf32>,
    %187 = vector.extract_strided_slice %174 {offsets = [0, 4, 0], sizes = [2, 1, 64], strides = [1, 1, 1]} : vector<2x40x64xf32> to vector<2x1x64xf32>
    %188 = vector.shape_cast %187 : vector<2x1x64xf32> to vector<2x64xf32>
    %c0_166 = arith.constant 0 : index
    %c256 = arith.constant 256 : index
    %189 = vector.load %arg13[%c0_166, %c256] : memref<2x2240xf32, #tpu.memory_space<vmem>>, vector<2x64xf32>
    tpu.vector_store %arg13[%c0_166, %c256], %188 {strides = array<i32>} : memref<2x2240xf32, #tpu.memory_space<vmem>>, vector<2x64xf32>,
    %190 = vector.extract_strided_slice %174 {offsets = [0, 5, 0], sizes = [2, 1, 64], strides = [1, 1, 1]} : vector<2x40x64xf32> to vector<2x1x64xf32>
    %191 = vector.shape_cast %190 : vector<2x1x64xf32> to vector<2x64xf32>
    %c0_167 = arith.constant 0 : index
    %c320 = arith.constant 320 : index
    %192 = vector.load %arg13[%c0_167, %c320] : memref<2x2240xf32, #tpu.memory_space<vmem>>, vector<2x64xf32>
    tpu.vector_store %arg13[%c0_167, %c320], %191 {strides = array<i32>} : memref<2x2240xf32, #tpu.memory_space<vmem>>, vector<2x64xf32>,
    %193 = vector.extract_strided_slice %174 {offsets = [0, 6, 0], sizes = [2, 1, 64], strides = [1, 1, 1]} : vector<2x40x64xf32> to vector<2x1x64xf32>
    %194 = vector.shape_cast %193 : vector<2x1x64xf32> to vector<2x64xf32>
    %c0_168 = arith.constant 0 : index
    %c384 = arith.constant 384 : index
    %195 = vector.load %arg13[%c0_168, %c384] : memref<2x2240xf32, #tpu.memory_space<vmem>>, vector<2x64xf32>
    tpu.vector_store %arg13[%c0_168, %c384], %194 {strides = array<i32>} : memref<2x2240xf32, #tpu.memory_space<vmem>>, vector<2x64xf32>,
    %196 = vector.extract_strided_slice %174 {offsets = [0, 7, 0], sizes = [2, 1, 64], strides = [1, 1, 1]} : vector<2x40x64xf32> to vector<2x1x64xf32>
    %197 = vector.shape_cast %196 : vector<2x1x64xf32> to vector<2x64xf32>
    %c0_169 = arith.constant 0 : index
    %c448 = arith.constant 448 : index
    %198 = vector.load %arg13[%c0_169, %c448] : memref<2x2240xf32, #tpu.memory_space<vmem>>, vector<2x64xf32>
    tpu.vector_store %arg13[%c0_169, %c448], %197 {strides = array<i32>} : memref<2x2240xf32, #tpu.memory_space<vmem>>, vector<2x64xf32>,
    %199 = vector.extract_strided_slice %174 {offsets = [0, 8, 0], sizes = [2, 1, 64], strides = [1, 1, 1]} : vector<2x40x64xf32> to vector<2x1x64xf32>
    %200 = vector.shape_cast %199 : vector<2x1x64xf32> to vector<2x64xf32>
    %c0_170 = arith.constant 0 : index
    %c512 = arith.constant 512 : index
    %201 = vector.load %arg13[%c0_170, %c512] : memref<2x2240xf32, #tpu.memory_space<vmem>>, vector<2x64xf32>
    tpu.vector_store %arg13[%c0_170, %c512], %200 {strides = array<i32>} : memref<2x2240xf32, #tpu.memory_space<vmem>>, vector<2x64xf32>,
    %202 = vector.extract_strided_slice %174 {offsets = [0, 9, 0], sizes = [2, 1, 64], strides = [1, 1, 1]} : vector<2x40x64xf32> to vector<2x1x64xf32>
    %203 = vector.shape_cast %202 : vector<2x1x64xf32> to vector<2x64xf32>
    %c0_171 = arith.constant 0 : index
    %c576 = arith.constant 576 : index
    %204 = vector.load %arg13[%c0_171, %c576] : memref<2x2240xf32, #tpu.memory_space<vmem>>, vector<2x64xf32>
    tpu.vector_store %arg13[%c0_171, %c576], %203 {strides = array<i32>} : memref<2x2240xf32, #tpu.memory_space<vmem>>, vector<2x64xf32>,
    %205 = vector.extract_strided_slice %174 {offsets = [0, 10, 0], sizes = [2, 1, 64], strides = [1, 1, 1]} : vector<2x40x64xf32> to vector<2x1x64xf32>
    %206 = vector.shape_cast %205 : vector<2x1x64xf32> to vector<2x64xf32>
    %c0_172 = arith.constant 0 : index
    %c640 = arith.constant 640 : index
    %207 = vector.load %arg13[%c0_172, %c640] : memref<2x2240xf32, #tpu.memory_space<vmem>>, vector<2x64xf32>
    tpu.vector_store %arg13[%c0_172, %c640], %206 {strides = array<i32>} : memref<2x2240xf32, #tpu.memory_space<vmem>>, vector<2x64xf32>,
    %208 = vector.extract_strided_slice %174 {offsets = [0, 11, 0], sizes = [2, 1, 64], strides = [1, 1, 1]} : vector<2x40x64xf32> to vector<2x1x64xf32>
    %209 = vector.shape_cast %208 : vector<2x1x64xf32> to vector<2x64xf32>
    %c0_173 = arith.constant 0 : index
    %c704 = arith.constant 704 : index
    %210 = vector.load %arg13[%c0_173, %c704] : memref<2x2240xf32, #tpu.memory_space<vmem>>, vector<2x64xf32>
    tpu.vector_store %arg13[%c0_173, %c704], %209 {strides = array<i32>} : memref<2x2240xf32, #tpu.memory_space<vmem>>, vector<2x64xf32>,
    %211 = vector.extract_strided_slice %174 {offsets = [0, 12, 0], sizes = [2, 1, 64], strides = [1, 1, 1]} : vector<2x40x64xf32> to vector<2x1x64xf32>
    %212 = vector.shape_cast %211 : vector<2x1x64xf32> to vector<2x64xf32>
    %c0_174 = arith.constant 0 : index
    %c768 = arith.constant 768 : index
    %213 = vector.load %arg13[%c0_174, %c768] : memref<2x2240xf32, #tpu.memory_space<vmem>>, vector<2x64xf32>
    tpu.vector_store %arg13[%c0_174, %c768], %212 {strides = array<i32>} : memref<2x2240xf32, #tpu.memory_space<vmem>>, vector<2x64xf32>,
    %214 = vector.extract_strided_slice %174 {offsets = [0, 13, 0], sizes = [2, 1, 64], strides = [1, 1, 1]} : vector<2x40x64xf32> to vector<2x1x64xf32>
    %215 = vector.shape_cast %214 : vector<2x1x64xf32> to vector<2x64xf32>
    %c0_175 = arith.constant 0 : index
    %c832 = arith.constant 832 : index
    %216 = vector.load %arg13[%c0_175, %c832] : memref<2x2240xf32, #tpu.memory_space<vmem>>, vector<2x64xf32>
    tpu.vector_store %arg13[%c0_175, %c832], %215 {strides = array<i32>} : memref<2x2240xf32, #tpu.memory_space<vmem>>, vector<2x64xf32>,
    %217 = vector.extract_strided_slice %174 {offsets = [0, 14, 0], sizes = [2, 1, 64], strides = [1, 1, 1]} : vector<2x40x64xf32> to vector<2x1x64xf32>
    %218 = vector.shape_cast %217 : vector<2x1x64xf32> to vector<2x64xf32>
    %c0_176 = arith.constant 0 : index
    %c896 = arith.constant 896 : index
    %219 = vector.load %arg13[%c0_176, %c896] : memref<2x2240xf32, #tpu.memory_space<vmem>>, vector<2x64xf32>
    tpu.vector_store %arg13[%c0_176, %c896], %218 {strides = array<i32>} : memref<2x2240xf32, #tpu.memory_space<vmem>>, vector<2x64xf32>,
    %220 = vector.extract_strided_slice %174 {offsets = [0, 15, 0], sizes = [2, 1, 64], strides = [1, 1, 1]} : vector<2x40x64xf32> to vector<2x1x64xf32>
    %221 = vector.shape_cast %220 : vector<2x1x64xf32> to vector<2x64xf32>
    %c0_177 = arith.constant 0 : index
    %c960 = arith.constant 960 : index
    %222 = vector.load %arg13[%c0_177, %c960] : memref<2x2240xf32, #tpu.memory_space<vmem>>, vector<2x64xf32>
    tpu.vector_store %arg13[%c0_177, %c960], %221 {strides = array<i32>} : memref<2x2240xf32, #tpu.memory_space<vmem>>, vector<2x64xf32>,
    %223 = vector.extract_strided_slice %174 {offsets = [0, 16, 0], sizes = [2, 1, 64], strides = [1, 1, 1]} : vector<2x40x64xf32> to vector<2x1x64xf32>
    %224 = vector.shape_cast %223 : vector<2x1x64xf32> to vector<2x64xf32>
    %c0_178 = arith.constant 0 : index
    %c1024 = arith.constant 1024 : index
    %225 = vector.load %arg13[%c0_178, %c1024] : memref<2x2240xf32, #tpu.memory_space<vmem>>, vector<2x64xf32>
    tpu.vector_store %arg13[%c0_178, %c1024], %224 {strides = array<i32>} : memref<2x2240xf32, #tpu.memory_space<vmem>>, vector<2x64xf32>,
    %226 = vector.extract_strided_slice %174 {offsets = [0, 17, 0], sizes = [2, 1, 64], strides = [1, 1, 1]} : vector<2x40x64xf32> to vector<2x1x64xf32>
    %227 = vector.shape_cast %226 : vector<2x1x64xf32> to vector<2x64xf32>
    %c0_179 = arith.constant 0 : index
    %c1088 = arith.constant 1088 : index
    %228 = vector.load %arg13[%c0_179, %c1088] : memref<2x2240xf32, #tpu.memory_space<vmem>>, vector<2x64xf32>
    tpu.vector_store %arg13[%c0_179, %c1088], %227 {strides = array<i32>} : memref<2x2240xf32, #tpu.memory_space<vmem>>, vector<2x64xf32>,
    %229 = vector.extract_strided_slice %174 {offsets = [0, 18, 0], sizes = [2, 1, 64], strides = [1, 1, 1]} : vector<2x40x64xf32> to vector<2x1x64xf32>
    %230 = vector.shape_cast %229 : vector<2x1x64xf32> to vector<2x64xf32>
    %c0_180 = arith.constant 0 : index
    %c1152 = arith.constant 1152 : index
    %231 = vector.load %arg13[%c0_180, %c1152] : memref<2x2240xf32, #tpu.memory_space<vmem>>, vector<2x64xf32>
    tpu.vector_store %arg13[%c0_180, %c1152], %230 {strides = array<i32>} : memref<2x2240xf32, #tpu.memory_space<vmem>>, vector<2x64xf32>,
    %232 = vector.extract_strided_slice %174 {offsets = [0, 19, 0], sizes = [2, 1, 64], strides = [1, 1, 1]} : vector<2x40x64xf32> to vector<2x1x64xf32>
    %233 = vector.shape_cast %232 : vector<2x1x64xf32> to vector<2x64xf32>
    %c0_181 = arith.constant 0 : index
    %c1216 = arith.constant 1216 : index
    %234 = vector.load %arg13[%c0_181, %c1216] : memref<2x2240xf32, #tpu.memory_space<vmem>>, vector<2x64xf32>
    tpu.vector_store %arg13[%c0_181, %c1216], %233 {strides = array<i32>} : memref<2x2240xf32, #tpu.memory_space<vmem>>, vector<2x64xf32>,
    %235 = vector.extract_strided_slice %174 {offsets = [0, 20, 0], sizes = [2, 1, 64], strides = [1, 1, 1]} : vector<2x40x64xf32> to vector<2x1x64xf32>
    %236 = vector.shape_cast %235 : vector<2x1x64xf32> to vector<2x64xf32>
    %c0_182 = arith.constant 0 : index
    %c1280 = arith.constant 1280 : index
    %237 = vector.load %arg13[%c0_182, %c1280] : memref<2x2240xf32, #tpu.memory_space<vmem>>, vector<2x64xf32>
    tpu.vector_store %arg13[%c0_182, %c1280], %236 {strides = array<i32>} : memref<2x2240xf32, #tpu.memory_space<vmem>>, vector<2x64xf32>,
    %238 = vector.extract_strided_slice %174 {offsets = [0, 21, 0], sizes = [2, 1, 64], strides = [1, 1, 1]} : vector<2x40x64xf32> to vector<2x1x64xf32>
    %239 = vector.shape_cast %238 : vector<2x1x64xf32> to vector<2x64xf32>
    %c0_183 = arith.constant 0 : index
    %c1344 = arith.constant 1344 : index
    %240 = vector.load %arg13[%c0_183, %c1344] : memref<2x2240xf32, #tpu.memory_space<vmem>>, vector<2x64xf32>
    tpu.vector_store %arg13[%c0_183, %c1344], %239 {strides = array<i32>} : memref<2x2240xf32, #tpu.memory_space<vmem>>, vector<2x64xf32>,
    %241 = vector.extract_strided_slice %174 {offsets = [0, 22, 0], sizes = [2, 1, 64], strides = [1, 1, 1]} : vector<2x40x64xf32> to vector<2x1x64xf32>
    %242 = vector.shape_cast %241 : vector<2x1x64xf32> to vector<2x64xf32>
    %c0_184 = arith.constant 0 : index
    %c1408 = arith.constant 1408 : index
    %243 = vector.load %arg13[%c0_184, %c1408] : memref<2x2240xf32, #tpu.memory_space<vmem>>, vector<2x64xf32>
    tpu.vector_store %arg13[%c0_184, %c1408], %242 {strides = array<i32>} : memref<2x2240xf32, #tpu.memory_space<vmem>>, vector<2x64xf32>,
    %244 = vector.extract_strided_slice %174 {offsets = [0, 23, 0], sizes = [2, 1, 64], strides = [1, 1, 1]} : vector<2x40x64xf32> to vector<2x1x64xf32>
    %245 = vector.shape_cast %244 : vector<2x1x64xf32> to vector<2x64xf32>
    %c0_185 = arith.constant 0 : index
    %c1472 = arith.constant 1472 : index
    %246 = vector.load %arg13[%c0_185, %c1472] : memref<2x2240xf32, #tpu.memory_space<vmem>>, vector<2x64xf32>
    tpu.vector_store %arg13[%c0_185, %c1472], %245 {strides = array<i32>} : memref<2x2240xf32, #tpu.memory_space<vmem>>, vector<2x64xf32>,
    %247 = vector.extract_strided_slice %174 {offsets = [0, 24, 0], sizes = [2, 1, 64], strides = [1, 1, 1]} : vector<2x40x64xf32> to vector<2x1x64xf32>
    %248 = vector.shape_cast %247 : vector<2x1x64xf32> to vector<2x64xf32>
    %c0_186 = arith.constant 0 : index
    %c1536 = arith.constant 1536 : index
    %249 = vector.load %arg13[%c0_186, %c1536] : memref<2x2240xf32, #tpu.memory_space<vmem>>, vector<2x64xf32>
    tpu.vector_store %arg13[%c0_186, %c1536], %248 {strides = array<i32>} : memref<2x2240xf32, #tpu.memory_space<vmem>>, vector<2x64xf32>,
    %250 = vector.extract_strided_slice %174 {offsets = [0, 25, 0], sizes = [2, 1, 64], strides = [1, 1, 1]} : vector<2x40x64xf32> to vector<2x1x64xf32>
    %251 = vector.shape_cast %250 : vector<2x1x64xf32> to vector<2x64xf32>
    %c0_187 = arith.constant 0 : index
    %c1600 = arith.constant 1600 : index
    %252 = vector.load %arg13[%c0_187, %c1600] : memref<2x2240xf32, #tpu.memory_space<vmem>>, vector<2x64xf32>
    tpu.vector_store %arg13[%c0_187, %c1600], %251 {strides = array<i32>} : memref<2x2240xf32, #tpu.memory_space<vmem>>, vector<2x64xf32>,
    %253 = vector.extract_strided_slice %174 {offsets = [0, 26, 0], sizes = [2, 1, 64], strides = [1, 1, 1]} : vector<2x40x64xf32> to vector<2x1x64xf32>
    %254 = vector.shape_cast %253 : vector<2x1x64xf32> to vector<2x64xf32>
    %c0_188 = arith.constant 0 : index
    %c1664 = arith.constant 1664 : index
    %255 = vector.load %arg13[%c0_188, %c1664] : memref<2x2240xf32, #tpu.memory_space<vmem>>, vector<2x64xf32>
    tpu.vector_store %arg13[%c0_188, %c1664], %254 {strides = array<i32>} : memref<2x2240xf32, #tpu.memory_space<vmem>>, vector<2x64xf32>,
    %256 = vector.extract_strided_slice %174 {offsets = [0, 27, 0], sizes = [2, 1, 64], strides = [1, 1, 1]} : vector<2x40x64xf32> to vector<2x1x64xf32>
    %257 = vector.shape_cast %256 : vector<2x1x64xf32> to vector<2x64xf32>
    %c0_189 = arith.constant 0 : index
    %c1728 = arith.constant 1728 : index
    %258 = vector.load %arg13[%c0_189, %c1728] : memref<2x2240xf32, #tpu.memory_space<vmem>>, vector<2x64xf32>
    tpu.vector_store %arg13[%c0_189, %c1728], %257 {strides = array<i32>} : memref<2x2240xf32, #tpu.memory_space<vmem>>, vector<2x64xf32>,
    %259 = vector.extract_strided_slice %174 {offsets = [0, 28, 0], sizes = [2, 1, 64], strides = [1, 1, 1]} : vector<2x40x64xf32> to vector<2x1x64xf32>
    %260 = vector.shape_cast %259 : vector<2x1x64xf32> to vector<2x64xf32>
    %c0_190 = arith.constant 0 : index
    %c1792 = arith.constant 1792 : index
    %261 = vector.load %arg13[%c0_190, %c1792] : memref<2x2240xf32, #tpu.memory_space<vmem>>, vector<2x64xf32>
    tpu.vector_store %arg13[%c0_190, %c1792], %260 {strides = array<i32>} : memref<2x2240xf32, #tpu.memory_space<vmem>>, vector<2x64xf32>,
    %262 = vector.extract_strided_slice %174 {offsets = [0, 29, 0], sizes = [2, 1, 64], strides = [1, 1, 1]} : vector<2x40x64xf32> to vector<2x1x64xf32>
    %263 = vector.shape_cast %262 : vector<2x1x64xf32> to vector<2x64xf32>
    %c0_191 = arith.constant 0 : index
    %c1856 = arith.constant 1856 : index
    %264 = vector.load %arg13[%c0_191, %c1856] : memref<2x2240xf32, #tpu.memory_space<vmem>>, vector<2x64xf32>
    tpu.vector_store %arg13[%c0_191, %c1856], %263 {strides = array<i32>} : memref<2x2240xf32, #tpu.memory_space<vmem>>, vector<2x64xf32>,
    %265 = vector.extract_strided_slice %174 {offsets = [0, 30, 0], sizes = [2, 1, 64], strides = [1, 1, 1]} : vector<2x40x64xf32> to vector<2x1x64xf32>
    %266 = vector.shape_cast %265 : vector<2x1x64xf32> to vector<2x64xf32>
    %c0_192 = arith.constant 0 : index
    %c1920 = arith.constant 1920 : index
    %267 = vector.load %arg13[%c0_192, %c1920] : memref<2x2240xf32, #tpu.memory_space<vmem>>, vector<2x64xf32>
    tpu.vector_store %arg13[%c0_192, %c1920], %266 {strides = array<i32>} : memref<2x2240xf32, #tpu.memory_space<vmem>>, vector<2x64xf32>,
    %268 = vector.extract_strided_slice %174 {offsets = [0, 31, 0], sizes = [2, 1, 64], strides = [1, 1, 1]} : vector<2x40x64xf32> to vector<2x1x64xf32>
    %269 = vector.shape_cast %268 : vector<2x1x64xf32> to vector<2x64xf32>
    %c0_193 = arith.constant 0 : index
    %c1984 = arith.constant 1984 : index
    %270 = vector.load %arg13[%c0_193, %c1984] : memref<2x2240xf32, #tpu.memory_space<vmem>>, vector<2x64xf32>
    tpu.vector_store %arg13[%c0_193, %c1984], %269 {strides = array<i32>} : memref<2x2240xf32, #tpu.memory_space<vmem>>, vector<2x64xf32>,
    %271 = vector.extract_strided_slice %174 {offsets = [0, 32, 0], sizes = [2, 1, 64], strides = [1, 1, 1]} : vector<2x40x64xf32> to vector<2x1x64xf32>
    %272 = vector.shape_cast %271 : vector<2x1x64xf32> to vector<2x64xf32>
    %c0_194 = arith.constant 0 : index
    %c2048 = arith.constant 2048 : index
    %273 = vector.load %arg13[%c0_194, %c2048] : memref<2x2240xf32, #tpu.memory_space<vmem>>, vector<2x64xf32>
    tpu.vector_store %arg13[%c0_194, %c2048], %272 {strides = array<i32>} : memref<2x2240xf32, #tpu.memory_space<vmem>>, vector<2x64xf32>,
    %274 = vector.extract_strided_slice %174 {offsets = [0, 33, 0], sizes = [2, 1, 64], strides = [1, 1, 1]} : vector<2x40x64xf32> to vector<2x1x64xf32>
    %275 = vector.shape_cast %274 : vector<2x1x64xf32> to vector<2x64xf32>
    %c0_195 = arith.constant 0 : index
    %c2112 = arith.constant 2112 : index
    %276 = vector.load %arg13[%c0_195, %c2112] : memref<2x2240xf32, #tpu.memory_space<vmem>>, vector<2x64xf32>
    tpu.vector_store %arg13[%c0_195, %c2112], %275 {strides = array<i32>} : memref<2x2240xf32, #tpu.memory_space<vmem>>, vector<2x64xf32>,
    %277 = vector.extract_strided_slice %174 {offsets = [0, 34, 0], sizes = [2, 1, 64], strides = [1, 1, 1]} : vector<2x40x64xf32> to vector<2x1x64xf32>
    %278 = vector.shape_cast %277 : vector<2x1x64xf32> to vector<2x64xf32>
    %c0_196 = arith.constant 0 : index
    %c2176 = arith.constant 2176 : index
    %279 = vector.load %arg13[%c0_196, %c2176] : memref<2x2240xf32, #tpu.memory_space<vmem>>, vector<2x64xf32>
    tpu.vector_store %arg13[%c0_196, %c2176], %278 {strides = array<i32>} : memref<2x2240xf32, #tpu.memory_space<vmem>>, vector<2x64xf32>,
    %c0_197 = arith.constant 0 : index
    %c0_198 = arith.constant 0 : index
    %280 = vector.load %arg13[%c0_197, %c0_198] : memref<2x2240xf32, #tpu.memory_space<vmem>>, vector<2x2240xf32>
    %281 = arith.truncf %280 : vector<2x2240xf32> to vector<2x2240xbf16>
    %c0_199 = arith.constant 0 : index
    %c0_200 = arith.constant 0 : index
    %282 = vector.load %arg7[%c0_199, %c0_200] : memref<2240x175xbf16, #tpu.memory_space<vmem>>, vector<2240x175xbf16>
    %cst_201 = arith.constant dense<0.000000e+00> : vector<2x175xf32>
    %283 = tpu.matmul %281, %282, %cst_201 {dimension_numbers = #tpu.dot_dimension_numbers<[1], [0], [0], [1], [0, 0, 1, 1], [], []>} : vector<2x2240xbf16>, vector<2240x175xbf16>, vector<2x175xf32> -> vector<2x175xf32>
    %c0_202 = arith.constant 0 : index
    %c0_203 = arith.constant 0 : index
    %284 = vector.load %arg8[%c0_202, %c0_203] : memref<1x175xf32, #tpu.memory_space<vmem>>, vector<1x175xf32>
    %285 = vector.broadcast %284 : vector<1x175xf32> to vector<2x175xf32>
    %286 = arith.addf %283, %285 : vector<2x175xf32>
    %cst_204 = arith.constant 0.000000e+00 : f32
    %287 = vector.broadcast %cst_204 : f32 to vector<2x175xf32>
    %288 = arith.maximumf %286, %287 : vector<2x175xf32>
    %289 = arith.truncf %288 : vector<2x175xf32> to vector<2x175xbf16>
    %c0_205 = arith.constant 0 : index
    %c0_206 = arith.constant 0 : index
    %290 = vector.load %arg9[%c0_205, %c0_206] : memref<175x1xbf16, #tpu.memory_space<vmem>>, vector<175x1xbf16>
    %cst_207 = arith.constant dense<0.000000e+00> : vector<2x1xf32>
    %291 = tpu.matmul %289, %290, %cst_207 {dimension_numbers = #tpu.dot_dimension_numbers<[1], [0], [0], [1], [0, 0, 1, 1], [], []>} : vector<2x175xbf16>, vector<175x1xbf16>, vector<2x1xf32> -> vector<2x1xf32>
    %c0_208 = arith.constant 0 : index
    %c0_209 = arith.constant 0 : index
    %292 = vector.load %arg10[%c0_208, %c0_209] : memref<1x1xf32, #tpu.memory_space<vmem>>, vector<1x1xf32>
    %293 = vector.broadcast %292 : vector<1x1xf32> to vector<2x1xf32>
    %294 = arith.addf %291, %293 : vector<2x1xf32>
    %c0_210 = arith.constant 0 : index
    %c0_211 = arith.constant 0 : index
    %295 = vector.load %arg11[%c0_210, %c0_211] : memref<2x1xf32, #tpu.memory_space<vmem>>, vector<2x1xf32>
    tpu.vector_store %arg11[%c0_210, %c0_211], %294 {strides = array<i32>} : memref<2x1xf32, #tpu.memory_space<vmem>>, vector<2x1xf32>,
    return
  }
}

module attributes {stable_mosaic.version = 11 : i64} {
  func.func @meter_kernel(%arg0: i32, %arg1: memref<2x16x9xf32, #tpu.memory_space<vmem>>, %arg2: memref<1x9x24xbf16, #tpu.memory_space<vmem>>, %arg3: memref<1x1x24xf32, #tpu.memory_space<vmem>>, %arg4: memref<1x7x24x48xbf16, #tpu.memory_space<vmem>>, %arg5: memref<1x1x48xf32, #tpu.memory_space<vmem>>, %arg6: memref<1x5x48x72xbf16, #tpu.memory_space<vmem>>, %arg7: memref<1x1x72xf32, #tpu.memory_space<vmem>>, %arg8: memref<1x3x72x128xbf16, #tpu.memory_space<vmem>>, %arg9: memref<1x1x128xf32, #tpu.memory_space<vmem>>, %arg10: memref<1x2048x96xbf16, #tpu.memory_space<vmem>>, %arg11: memref<1x1x96xf32, #tpu.memory_space<vmem>>, %arg12: memref<1x96x35xbf16, #tpu.memory_space<vmem>>, %arg13: memref<1x1x35xf32, #tpu.memory_space<vmem>>, %arg14: memref<1x2x35xf32, #tpu.memory_space<vmem>>, %arg15: memref<2x32x72xf32, #tpu.memory_space<vmem>>, %arg16: memref<2x2048xf32, #tpu.memory_space<vmem>>) attributes {dimension_semantics = [#tpu.dimension_semantics<parallel>], iteration_bounds = array<i64: 3>, scalar_prefetch = 0 : i64, scratch_operands = 2 : i64, tpu.core_type = #tpu.core_type<tc>, window_params = [{pipeline_mode = #tpu.pipeline_mode<synchronous>, transform_indices = @transform_0, window_bounds = array<i64: 2, 16, 9>}, {transform_indices = @transform_1, window_bounds = array<i64: 1, 9, 24>}, {transform_indices = @transform_2, window_bounds = array<i64: 1, 1, 24>}, {transform_indices = @transform_3, window_bounds = array<i64: 1, 7, 24, 48>}, {transform_indices = @transform_4, window_bounds = array<i64: 1, 1, 48>}, {transform_indices = @transform_5, window_bounds = array<i64: 1, 5, 48, 72>}, {transform_indices = @transform_6, window_bounds = array<i64: 1, 1, 72>}, {transform_indices = @transform_7, window_bounds = array<i64: 1, 3, 72, 128>}, {transform_indices = @transform_8, window_bounds = array<i64: 1, 1, 128>}, {transform_indices = @transform_9, window_bounds = array<i64: 1, 2048, 96>}, {transform_indices = @transform_10, window_bounds = array<i64: 1, 1, 96>}, {transform_indices = @transform_11, window_bounds = array<i64: 1, 96, 35>}, {transform_indices = @transform_12, window_bounds = array<i64: 1, 1, 35>}, {transform_indices = @transform_13, window_bounds = array<i64: 1, 2, 35>}]} {
    %cst = arith.constant 0.000000e+00 : f32
    %0 = vector.broadcast %cst : f32 to vector<2x8x72xf32>
    %c0 = arith.constant 0 : index
    %c0_0 = arith.constant 0 : index
    %c0_1 = arith.constant 0 : index
    %1 = vector.load %arg15[%c0, %c0_0, %c0_1] : memref<2x32x72xf32, #tpu.memory_space<vmem>>, vector<2x8x72xf32>
    tpu.vector_store %arg15[%c0, %c0_0, %c0_1], %0 {strides = array<i32>} : memref<2x32x72xf32, #tpu.memory_space<vmem>>, vector<2x8x72xf32>,
    %cst_2 = arith.constant 0.000000e+00 : f32
    %2 = vector.broadcast %cst_2 : f32 to vector<2x8x72xf32>
    %c0_3 = arith.constant 0 : index
    %c24 = arith.constant 24 : index
    %c0_4 = arith.constant 0 : index
    %3 = vector.load %arg15[%c0_3, %c24, %c0_4] : memref<2x32x72xf32, #tpu.memory_space<vmem>>, vector<2x8x72xf32>
    tpu.vector_store %arg15[%c0_3, %c24, %c0_4], %2 {strides = array<i32>} : memref<2x32x72xf32, #tpu.memory_space<vmem>>, vector<2x8x72xf32>,
    %c0_5 = arith.constant 0 : index
    %c0_6 = arith.constant 0 : index
    %c0_7 = arith.constant 0 : index
    %4 = vector.load %arg1[%c0_5, %c0_6, %c0_7] : memref<2x16x9xf32, #tpu.memory_space<vmem>>, vector<2x16x9xf32>
    %5 = vector.shape_cast %4 : vector<2x16x9xf32> to vector<32x9xf32>
    %6 = arith.truncf %5 : vector<32x9xf32> to vector<32x9xbf16>
    %c0_8 = arith.constant 0 : index
    %c0_9 = arith.constant 0 : index
    %c0_10 = arith.constant 0 : index
    %7 = vector.load %arg3[%c0_8, %c0_9, %c0_10] : memref<1x1x24xf32, #tpu.memory_space<vmem>>, vector<1x1x24xf32>
    %8 = vector.shape_cast %7 : vector<1x1x24xf32> to vector<1x24xf32>
    %9 = vector.shape_cast %8 : vector<1x24xf32> to vector<1x24xf32>
    %10 = vector.broadcast %9 : vector<1x24xf32> to vector<32x24xf32>
    %c0_11 = arith.constant 0 : index
    %c0_12 = arith.constant 0 : index
    %c0_13 = arith.constant 0 : index
    %11 = vector.load %arg2[%c0_11, %c0_12, %c0_13] : memref<1x9x24xbf16, #tpu.memory_space<vmem>>, vector<1x9x24xbf16>
    %12 = vector.shape_cast %11 : vector<1x9x24xbf16> to vector<9x24xbf16>
    %cst_14 = arith.constant dense<0.000000e+00> : vector<32x24xf32>
    %13 = tpu.matmul %6, %12, %cst_14 {dimension_numbers = #tpu.dot_dimension_numbers<[1], [0], [0], [1], [0, 0, 1, 1], [], []>} : vector<32x9xbf16>, vector<9x24xbf16>, vector<32x24xf32> -> vector<32x24xf32>
    %14 = arith.addf %10, %13 : vector<32x24xf32>
    %cst_15 = arith.constant 0.000000e+00 : f32
    %15 = vector.broadcast %cst_15 : f32 to vector<32x24xf32>
    %16 = arith.maximumf %14, %15 : vector<32x24xf32>
    %17 = vector.shape_cast %16 : vector<32x24xf32> to vector<2x16x24xf32>
    %c0_16 = arith.constant 0 : index
    %c8 = arith.constant 8 : index
    %c0_17 = arith.constant 0 : index
    %18 = vector.load %arg15[%c0_16, %c8, %c0_17] : memref<2x32x72xf32, #tpu.memory_space<vmem>>, vector<2x16x24xf32>
    tpu.vector_store %arg15[%c0_16, %c8, %c0_17], %17 {strides = array<i32>} : memref<2x32x72xf32, #tpu.memory_space<vmem>>, vector<2x16x24xf32>,
    %c0_18 = arith.constant 0 : index
    %c0_19 = arith.constant 0 : index
    %c0_20 = arith.constant 0 : index
    %19 = vector.load %arg5[%c0_18, %c0_19, %c0_20] : memref<1x1x48xf32, #tpu.memory_space<vmem>>, vector<1x1x48xf32>
    %20 = vector.shape_cast %19 : vector<1x1x48xf32> to vector<1x48xf32>
    %21 = vector.shape_cast %20 : vector<1x48xf32> to vector<1x48xf32>
    %22 = vector.broadcast %21 : vector<1x48xf32> to vector<32x48xf32>
    %c0_21 = arith.constant 0 : index
    %c5 = arith.constant 5 : index
    %c0_22 = arith.constant 0 : index
    %23 = vector.load %arg15[%c0_21, %c5, %c0_22] : memref<2x32x72xf32, #tpu.memory_space<vmem>>, vector<2x16x24xf32>
    %24 = vector.shape_cast %23 : vector<2x16x24xf32> to vector<32x24xf32>
    %25 = arith.truncf %24 : vector<32x24xf32> to vector<32x24xbf16>
    %c0_23 = arith.constant 0 : index
    %c0_24 = arith.constant 0 : index
    %c0_25 = arith.constant 0 : index
    %c0_26 = arith.constant 0 : index
    %26 = vector.load %arg4[%c0_23, %c0_24, %c0_25, %c0_26] : memref<1x7x24x48xbf16, #tpu.memory_space<vmem>>, vector<1x1x24x48xbf16>
    %27 = vector.shape_cast %26 : vector<1x1x24x48xbf16> to vector<24x48xbf16>
    %cst_27 = arith.constant dense<0.000000e+00> : vector<32x48xf32>
    %28 = tpu.matmul %25, %27, %cst_27 {dimension_numbers = #tpu.dot_dimension_numbers<[1], [0], [0], [1], [0, 0, 1, 1], [], []>} : vector<32x24xbf16>, vector<24x48xbf16>, vector<32x48xf32> -> vector<32x48xf32>
    %29 = arith.addf %22, %28 : vector<32x48xf32>
    %c0_28 = arith.constant 0 : index
    %c6 = arith.constant 6 : index
    %c0_29 = arith.constant 0 : index
    %30 = vector.load %arg15[%c0_28, %c6, %c0_29] : memref<2x32x72xf32, #tpu.memory_space<vmem>>, vector<2x16x24xf32>
    %31 = vector.shape_cast %30 : vector<2x16x24xf32> to vector<32x24xf32>
    %32 = arith.truncf %31 : vector<32x24xf32> to vector<32x24xbf16>
    %c0_30 = arith.constant 0 : index
    %c1 = arith.constant 1 : index
    %c0_31 = arith.constant 0 : index
    %c0_32 = arith.constant 0 : index
    %33 = vector.load %arg4[%c0_30, %c1, %c0_31, %c0_32] : memref<1x7x24x48xbf16, #tpu.memory_space<vmem>>, vector<1x1x24x48xbf16>
    %34 = vector.shape_cast %33 : vector<1x1x24x48xbf16> to vector<24x48xbf16>
    %cst_33 = arith.constant dense<0.000000e+00> : vector<32x48xf32>
    %35 = tpu.matmul %32, %34, %cst_33 {dimension_numbers = #tpu.dot_dimension_numbers<[1], [0], [0], [1], [0, 0, 1, 1], [], []>} : vector<32x24xbf16>, vector<24x48xbf16>, vector<32x48xf32> -> vector<32x48xf32>
    %36 = arith.addf %29, %35 : vector<32x48xf32>
    %c0_34 = arith.constant 0 : index
    %c7 = arith.constant 7 : index
    %c0_35 = arith.constant 0 : index
    %37 = vector.load %arg15[%c0_34, %c7, %c0_35] : memref<2x32x72xf32, #tpu.memory_space<vmem>>, vector<2x16x24xf32>
    %38 = vector.shape_cast %37 : vector<2x16x24xf32> to vector<32x24xf32>
    %39 = arith.truncf %38 : vector<32x24xf32> to vector<32x24xbf16>
    %c0_36 = arith.constant 0 : index
    %c2 = arith.constant 2 : index
    %c0_37 = arith.constant 0 : index
    %c0_38 = arith.constant 0 : index
    %40 = vector.load %arg4[%c0_36, %c2, %c0_37, %c0_38] : memref<1x7x24x48xbf16, #tpu.memory_space<vmem>>, vector<1x1x24x48xbf16>
    %41 = vector.shape_cast %40 : vector<1x1x24x48xbf16> to vector<24x48xbf16>
    %cst_39 = arith.constant dense<0.000000e+00> : vector<32x48xf32>
    %42 = tpu.matmul %39, %41, %cst_39 {dimension_numbers = #tpu.dot_dimension_numbers<[1], [0], [0], [1], [0, 0, 1, 1], [], []>} : vector<32x24xbf16>, vector<24x48xbf16>, vector<32x48xf32> -> vector<32x48xf32>
    %43 = arith.addf %36, %42 : vector<32x48xf32>
    %c0_40 = arith.constant 0 : index
    %c8_41 = arith.constant 8 : index
    %c0_42 = arith.constant 0 : index
    %44 = vector.load %arg15[%c0_40, %c8_41, %c0_42] : memref<2x32x72xf32, #tpu.memory_space<vmem>>, vector<2x16x24xf32>
    %45 = vector.shape_cast %44 : vector<2x16x24xf32> to vector<32x24xf32>
    %46 = arith.truncf %45 : vector<32x24xf32> to vector<32x24xbf16>
    %c0_43 = arith.constant 0 : index
    %c3 = arith.constant 3 : index
    %c0_44 = arith.constant 0 : index
    %c0_45 = arith.constant 0 : index
    %47 = vector.load %arg4[%c0_43, %c3, %c0_44, %c0_45] : memref<1x7x24x48xbf16, #tpu.memory_space<vmem>>, vector<1x1x24x48xbf16>
    %48 = vector.shape_cast %47 : vector<1x1x24x48xbf16> to vector<24x48xbf16>
    %cst_46 = arith.constant dense<0.000000e+00> : vector<32x48xf32>
    %49 = tpu.matmul %46, %48, %cst_46 {dimension_numbers = #tpu.dot_dimension_numbers<[1], [0], [0], [1], [0, 0, 1, 1], [], []>} : vector<32x24xbf16>, vector<24x48xbf16>, vector<32x48xf32> -> vector<32x48xf32>
    %50 = arith.addf %43, %49 : vector<32x48xf32>
    %c0_47 = arith.constant 0 : index
    %c9 = arith.constant 9 : index
    %c0_48 = arith.constant 0 : index
    %51 = vector.load %arg15[%c0_47, %c9, %c0_48] : memref<2x32x72xf32, #tpu.memory_space<vmem>>, vector<2x16x24xf32>
    %52 = vector.shape_cast %51 : vector<2x16x24xf32> to vector<32x24xf32>
    %53 = arith.truncf %52 : vector<32x24xf32> to vector<32x24xbf16>
    %c0_49 = arith.constant 0 : index
    %c4 = arith.constant 4 : index
    %c0_50 = arith.constant 0 : index
    %c0_51 = arith.constant 0 : index
    %54 = vector.load %arg4[%c0_49, %c4, %c0_50, %c0_51] : memref<1x7x24x48xbf16, #tpu.memory_space<vmem>>, vector<1x1x24x48xbf16>
    %55 = vector.shape_cast %54 : vector<1x1x24x48xbf16> to vector<24x48xbf16>
    %cst_52 = arith.constant dense<0.000000e+00> : vector<32x48xf32>
    %56 = tpu.matmul %53, %55, %cst_52 {dimension_numbers = #tpu.dot_dimension_numbers<[1], [0], [0], [1], [0, 0, 1, 1], [], []>} : vector<32x24xbf16>, vector<24x48xbf16>, vector<32x48xf32> -> vector<32x48xf32>
    %57 = arith.addf %50, %56 : vector<32x48xf32>
    %c0_53 = arith.constant 0 : index
    %c10 = arith.constant 10 : index
    %c0_54 = arith.constant 0 : index
    %58 = vector.load %arg15[%c0_53, %c10, %c0_54] : memref<2x32x72xf32, #tpu.memory_space<vmem>>, vector<2x16x24xf32>
    %59 = vector.shape_cast %58 : vector<2x16x24xf32> to vector<32x24xf32>
    %60 = arith.truncf %59 : vector<32x24xf32> to vector<32x24xbf16>
    %c0_55 = arith.constant 0 : index
    %c5_56 = arith.constant 5 : index
    %c0_57 = arith.constant 0 : index
    %c0_58 = arith.constant 0 : index
    %61 = vector.load %arg4[%c0_55, %c5_56, %c0_57, %c0_58] : memref<1x7x24x48xbf16, #tpu.memory_space<vmem>>, vector<1x1x24x48xbf16>
    %62 = vector.shape_cast %61 : vector<1x1x24x48xbf16> to vector<24x48xbf16>
    %cst_59 = arith.constant dense<0.000000e+00> : vector<32x48xf32>
    %63 = tpu.matmul %60, %62, %cst_59 {dimension_numbers = #tpu.dot_dimension_numbers<[1], [0], [0], [1], [0, 0, 1, 1], [], []>} : vector<32x24xbf16>, vector<24x48xbf16>, vector<32x48xf32> -> vector<32x48xf32>
    %64 = arith.addf %57, %63 : vector<32x48xf32>
    %c0_60 = arith.constant 0 : index
    %c11 = arith.constant 11 : index
    %c0_61 = arith.constant 0 : index
    %65 = vector.load %arg15[%c0_60, %c11, %c0_61] : memref<2x32x72xf32, #tpu.memory_space<vmem>>, vector<2x16x24xf32>
    %66 = vector.shape_cast %65 : vector<2x16x24xf32> to vector<32x24xf32>
    %67 = arith.truncf %66 : vector<32x24xf32> to vector<32x24xbf16>
    %c0_62 = arith.constant 0 : index
    %c6_63 = arith.constant 6 : index
    %c0_64 = arith.constant 0 : index
    %c0_65 = arith.constant 0 : index
    %68 = vector.load %arg4[%c0_62, %c6_63, %c0_64, %c0_65] : memref<1x7x24x48xbf16, #tpu.memory_space<vmem>>, vector<1x1x24x48xbf16>
    %69 = vector.shape_cast %68 : vector<1x1x24x48xbf16> to vector<24x48xbf16>
    %cst_66 = arith.constant dense<0.000000e+00> : vector<32x48xf32>
    %70 = tpu.matmul %67, %69, %cst_66 {dimension_numbers = #tpu.dot_dimension_numbers<[1], [0], [0], [1], [0, 0, 1, 1], [], []>} : vector<32x24xbf16>, vector<24x48xbf16>, vector<32x48xf32> -> vector<32x48xf32>
    %71 = arith.addf %64, %70 : vector<32x48xf32>
    %cst_67 = arith.constant 0.000000e+00 : f32
    %72 = vector.broadcast %cst_67 : f32 to vector<32x48xf32>
    %73 = arith.maximumf %71, %72 : vector<32x48xf32>
    %74 = vector.shape_cast %73 : vector<32x48xf32> to vector<2x16x48xf32>
    %c0_68 = arith.constant 0 : index
    %c8_69 = arith.constant 8 : index
    %c0_70 = arith.constant 0 : index
    %75 = vector.load %arg15[%c0_68, %c8_69, %c0_70] : memref<2x32x72xf32, #tpu.memory_space<vmem>>, vector<2x16x48xf32>
    tpu.vector_store %arg15[%c0_68, %c8_69, %c0_70], %74 {strides = array<i32>} : memref<2x32x72xf32, #tpu.memory_space<vmem>>, vector<2x16x48xf32>,
    %c0_71 = arith.constant 0 : index
    %c0_72 = arith.constant 0 : index
    %c0_73 = arith.constant 0 : index
    %76 = vector.load %arg7[%c0_71, %c0_72, %c0_73] : memref<1x1x72xf32, #tpu.memory_space<vmem>>, vector<1x1x72xf32>
    %77 = vector.shape_cast %76 : vector<1x1x72xf32> to vector<1x72xf32>
    %78 = vector.shape_cast %77 : vector<1x72xf32> to vector<1x72xf32>
    %79 = vector.broadcast %78 : vector<1x72xf32> to vector<32x72xf32>
    %c0_74 = arith.constant 0 : index
    %c6_75 = arith.constant 6 : index
    %c0_76 = arith.constant 0 : index
    %80 = vector.load %arg15[%c0_74, %c6_75, %c0_76] : memref<2x32x72xf32, #tpu.memory_space<vmem>>, vector<2x16x48xf32>
    %81 = vector.shape_cast %80 : vector<2x16x48xf32> to vector<32x48xf32>
    %82 = arith.truncf %81 : vector<32x48xf32> to vector<32x48xbf16>
    %c0_77 = arith.constant 0 : index
    %c0_78 = arith.constant 0 : index
    %c0_79 = arith.constant 0 : index
    %c0_80 = arith.constant 0 : index
    %83 = vector.load %arg6[%c0_77, %c0_78, %c0_79, %c0_80] : memref<1x5x48x72xbf16, #tpu.memory_space<vmem>>, vector<1x1x48x72xbf16>
    %84 = vector.shape_cast %83 : vector<1x1x48x72xbf16> to vector<48x72xbf16>
    %cst_81 = arith.constant dense<0.000000e+00> : vector<32x72xf32>
    %85 = tpu.matmul %82, %84, %cst_81 {dimension_numbers = #tpu.dot_dimension_numbers<[1], [0], [0], [1], [0, 0, 1, 1], [], []>} : vector<32x48xbf16>, vector<48x72xbf16>, vector<32x72xf32> -> vector<32x72xf32>
    %86 = arith.addf %79, %85 : vector<32x72xf32>
    %c0_82 = arith.constant 0 : index
    %c7_83 = arith.constant 7 : index
    %c0_84 = arith.constant 0 : index
    %87 = vector.load %arg15[%c0_82, %c7_83, %c0_84] : memref<2x32x72xf32, #tpu.memory_space<vmem>>, vector<2x16x48xf32>
    %88 = vector.shape_cast %87 : vector<2x16x48xf32> to vector<32x48xf32>
    %89 = arith.truncf %88 : vector<32x48xf32> to vector<32x48xbf16>
    %c0_85 = arith.constant 0 : index
    %c1_86 = arith.constant 1 : index
    %c0_87 = arith.constant 0 : index
    %c0_88 = arith.constant 0 : index
    %90 = vector.load %arg6[%c0_85, %c1_86, %c0_87, %c0_88] : memref<1x5x48x72xbf16, #tpu.memory_space<vmem>>, vector<1x1x48x72xbf16>
    %91 = vector.shape_cast %90 : vector<1x1x48x72xbf16> to vector<48x72xbf16>
    %cst_89 = arith.constant dense<0.000000e+00> : vector<32x72xf32>
    %92 = tpu.matmul %89, %91, %cst_89 {dimension_numbers = #tpu.dot_dimension_numbers<[1], [0], [0], [1], [0, 0, 1, 1], [], []>} : vector<32x48xbf16>, vector<48x72xbf16>, vector<32x72xf32> -> vector<32x72xf32>
    %93 = arith.addf %86, %92 : vector<32x72xf32>
    %c0_90 = arith.constant 0 : index
    %c8_91 = arith.constant 8 : index
    %c0_92 = arith.constant 0 : index
    %94 = vector.load %arg15[%c0_90, %c8_91, %c0_92] : memref<2x32x72xf32, #tpu.memory_space<vmem>>, vector<2x16x48xf32>
    %95 = vector.shape_cast %94 : vector<2x16x48xf32> to vector<32x48xf32>
    %96 = arith.truncf %95 : vector<32x48xf32> to vector<32x48xbf16>
    %c0_93 = arith.constant 0 : index
    %c2_94 = arith.constant 2 : index
    %c0_95 = arith.constant 0 : index
    %c0_96 = arith.constant 0 : index
    %97 = vector.load %arg6[%c0_93, %c2_94, %c0_95, %c0_96] : memref<1x5x48x72xbf16, #tpu.memory_space<vmem>>, vector<1x1x48x72xbf16>
    %98 = vector.shape_cast %97 : vector<1x1x48x72xbf16> to vector<48x72xbf16>
    %cst_97 = arith.constant dense<0.000000e+00> : vector<32x72xf32>
    %99 = tpu.matmul %96, %98, %cst_97 {dimension_numbers = #tpu.dot_dimension_numbers<[1], [0], [0], [1], [0, 0, 1, 1], [], []>} : vector<32x48xbf16>, vector<48x72xbf16>, vector<32x72xf32> -> vector<32x72xf32>
    %100 = arith.addf %93, %99 : vector<32x72xf32>
    %c0_98 = arith.constant 0 : index
    %c9_99 = arith.constant 9 : index
    %c0_100 = arith.constant 0 : index
    %101 = vector.load %arg15[%c0_98, %c9_99, %c0_100] : memref<2x32x72xf32, #tpu.memory_space<vmem>>, vector<2x16x48xf32>
    %102 = vector.shape_cast %101 : vector<2x16x48xf32> to vector<32x48xf32>
    %103 = arith.truncf %102 : vector<32x48xf32> to vector<32x48xbf16>
    %c0_101 = arith.constant 0 : index
    %c3_102 = arith.constant 3 : index
    %c0_103 = arith.constant 0 : index
    %c0_104 = arith.constant 0 : index
    %104 = vector.load %arg6[%c0_101, %c3_102, %c0_103, %c0_104] : memref<1x5x48x72xbf16, #tpu.memory_space<vmem>>, vector<1x1x48x72xbf16>
    %105 = vector.shape_cast %104 : vector<1x1x48x72xbf16> to vector<48x72xbf16>
    %cst_105 = arith.constant dense<0.000000e+00> : vector<32x72xf32>
    %106 = tpu.matmul %103, %105, %cst_105 {dimension_numbers = #tpu.dot_dimension_numbers<[1], [0], [0], [1], [0, 0, 1, 1], [], []>} : vector<32x48xbf16>, vector<48x72xbf16>, vector<32x72xf32> -> vector<32x72xf32>
    %107 = arith.addf %100, %106 : vector<32x72xf32>
    %c0_106 = arith.constant 0 : index
    %c10_107 = arith.constant 10 : index
    %c0_108 = arith.constant 0 : index
    %108 = vector.load %arg15[%c0_106, %c10_107, %c0_108] : memref<2x32x72xf32, #tpu.memory_space<vmem>>, vector<2x16x48xf32>
    %109 = vector.shape_cast %108 : vector<2x16x48xf32> to vector<32x48xf32>
    %110 = arith.truncf %109 : vector<32x48xf32> to vector<32x48xbf16>
    %c0_109 = arith.constant 0 : index
    %c4_110 = arith.constant 4 : index
    %c0_111 = arith.constant 0 : index
    %c0_112 = arith.constant 0 : index
    %111 = vector.load %arg6[%c0_109, %c4_110, %c0_111, %c0_112] : memref<1x5x48x72xbf16, #tpu.memory_space<vmem>>, vector<1x1x48x72xbf16>
    %112 = vector.shape_cast %111 : vector<1x1x48x72xbf16> to vector<48x72xbf16>
    %cst_113 = arith.constant dense<0.000000e+00> : vector<32x72xf32>
    %113 = tpu.matmul %110, %112, %cst_113 {dimension_numbers = #tpu.dot_dimension_numbers<[1], [0], [0], [1], [0, 0, 1, 1], [], []>} : vector<32x48xbf16>, vector<48x72xbf16>, vector<32x72xf32> -> vector<32x72xf32>
    %114 = arith.addf %107, %113 : vector<32x72xf32>
    %cst_114 = arith.constant 0.000000e+00 : f32
    %115 = vector.broadcast %cst_114 : f32 to vector<32x72xf32>
    %116 = arith.maximumf %114, %115 : vector<32x72xf32>
    %117 = vector.shape_cast %116 : vector<32x72xf32> to vector<2x16x72xf32>
    %c0_115 = arith.constant 0 : index
    %c8_116 = arith.constant 8 : index
    %c0_117 = arith.constant 0 : index
    %118 = vector.load %arg15[%c0_115, %c8_116, %c0_117] : memref<2x32x72xf32, #tpu.memory_space<vmem>>, vector<2x16x72xf32>
    tpu.vector_store %arg15[%c0_115, %c8_116, %c0_117], %117 {strides = array<i32>} : memref<2x32x72xf32, #tpu.memory_space<vmem>>, vector<2x16x72xf32>,
    %c0_118 = arith.constant 0 : index
    %c0_119 = arith.constant 0 : index
    %c0_120 = arith.constant 0 : index
    %119 = vector.load %arg9[%c0_118, %c0_119, %c0_120] : memref<1x1x128xf32, #tpu.memory_space<vmem>>, vector<1x1x128xf32>
    %120 = vector.shape_cast %119 : vector<1x1x128xf32> to vector<1x128xf32>
    %121 = vector.shape_cast %120 : vector<1x128xf32> to vector<1x128xf32>
    %122 = vector.broadcast %121 : vector<1x128xf32> to vector<32x128xf32>
    %c0_121 = arith.constant 0 : index
    %c7_122 = arith.constant 7 : index
    %c0_123 = arith.constant 0 : index
    %123 = vector.load %arg15[%c0_121, %c7_122, %c0_123] : memref<2x32x72xf32, #tpu.memory_space<vmem>>, vector<2x16x72xf32>
    %124 = vector.shape_cast %123 : vector<2x16x72xf32> to vector<32x72xf32>
    %125 = arith.truncf %124 : vector<32x72xf32> to vector<32x72xbf16>
    %c0_124 = arith.constant 0 : index
    %c0_125 = arith.constant 0 : index
    %c0_126 = arith.constant 0 : index
    %c0_127 = arith.constant 0 : index
    %126 = vector.load %arg8[%c0_124, %c0_125, %c0_126, %c0_127] : memref<1x3x72x128xbf16, #tpu.memory_space<vmem>>, vector<1x1x72x128xbf16>
    %127 = vector.shape_cast %126 : vector<1x1x72x128xbf16> to vector<72x128xbf16>
    %cst_128 = arith.constant dense<0.000000e+00> : vector<32x128xf32>
    %128 = tpu.matmul %125, %127, %cst_128 {dimension_numbers = #tpu.dot_dimension_numbers<[1], [0], [0], [1], [0, 0, 1, 1], [], []>} : vector<32x72xbf16>, vector<72x128xbf16>, vector<32x128xf32> -> vector<32x128xf32>
    %129 = arith.addf %122, %128 : vector<32x128xf32>
    %c0_129 = arith.constant 0 : index
    %c8_130 = arith.constant 8 : index
    %c0_131 = arith.constant 0 : index
    %130 = vector.load %arg15[%c0_129, %c8_130, %c0_131] : memref<2x32x72xf32, #tpu.memory_space<vmem>>, vector<2x16x72xf32>
    %131 = vector.shape_cast %130 : vector<2x16x72xf32> to vector<32x72xf32>
    %132 = arith.truncf %131 : vector<32x72xf32> to vector<32x72xbf16>
    %c0_132 = arith.constant 0 : index
    %c1_133 = arith.constant 1 : index
    %c0_134 = arith.constant 0 : index
    %c0_135 = arith.constant 0 : index
    %133 = vector.load %arg8[%c0_132, %c1_133, %c0_134, %c0_135] : memref<1x3x72x128xbf16, #tpu.memory_space<vmem>>, vector<1x1x72x128xbf16>
    %134 = vector.shape_cast %133 : vector<1x1x72x128xbf16> to vector<72x128xbf16>
    %cst_136 = arith.constant dense<0.000000e+00> : vector<32x128xf32>
    %135 = tpu.matmul %132, %134, %cst_136 {dimension_numbers = #tpu.dot_dimension_numbers<[1], [0], [0], [1], [0, 0, 1, 1], [], []>} : vector<32x72xbf16>, vector<72x128xbf16>, vector<32x128xf32> -> vector<32x128xf32>
    %136 = arith.addf %129, %135 : vector<32x128xf32>
    %c0_137 = arith.constant 0 : index
    %c9_138 = arith.constant 9 : index
    %c0_139 = arith.constant 0 : index
    %137 = vector.load %arg15[%c0_137, %c9_138, %c0_139] : memref<2x32x72xf32, #tpu.memory_space<vmem>>, vector<2x16x72xf32>
    %138 = vector.shape_cast %137 : vector<2x16x72xf32> to vector<32x72xf32>
    %139 = arith.truncf %138 : vector<32x72xf32> to vector<32x72xbf16>
    %c0_140 = arith.constant 0 : index
    %c2_141 = arith.constant 2 : index
    %c0_142 = arith.constant 0 : index
    %c0_143 = arith.constant 0 : index
    %140 = vector.load %arg8[%c0_140, %c2_141, %c0_142, %c0_143] : memref<1x3x72x128xbf16, #tpu.memory_space<vmem>>, vector<1x1x72x128xbf16>
    %141 = vector.shape_cast %140 : vector<1x1x72x128xbf16> to vector<72x128xbf16>
    %cst_144 = arith.constant dense<0.000000e+00> : vector<32x128xf32>
    %142 = tpu.matmul %139, %141, %cst_144 {dimension_numbers = #tpu.dot_dimension_numbers<[1], [0], [0], [1], [0, 0, 1, 1], [], []>} : vector<32x72xbf16>, vector<72x128xbf16>, vector<32x128xf32> -> vector<32x128xf32>
    %143 = arith.addf %136, %142 : vector<32x128xf32>
    %cst_145 = arith.constant 0.000000e+00 : f32
    %144 = vector.broadcast %cst_145 : f32 to vector<32x128xf32>
    %145 = arith.maximumf %143, %144 : vector<32x128xf32>
    %146 = vector.shape_cast %145 : vector<32x128xf32> to vector<2x16x128xf32>
    %147 = vector.extract_strided_slice %146 {offsets = [0, 0, 0], sizes = [2, 1, 128], strides = [1, 1, 1]} : vector<2x16x128xf32> to vector<2x1x128xf32>
    %148 = vector.shape_cast %147 : vector<2x1x128xf32> to vector<2x128xf32>
    %c0_146 = arith.constant 0 : index
    %c0_147 = arith.constant 0 : index
    %149 = vector.load %arg16[%c0_146, %c0_147] : memref<2x2048xf32, #tpu.memory_space<vmem>>, vector<2x128xf32>
    tpu.vector_store %arg16[%c0_146, %c0_147], %148 {strides = array<i32>} : memref<2x2048xf32, #tpu.memory_space<vmem>>, vector<2x128xf32>,
    %150 = vector.extract_strided_slice %146 {offsets = [0, 1, 0], sizes = [2, 1, 128], strides = [1, 1, 1]} : vector<2x16x128xf32> to vector<2x1x128xf32>
    %151 = vector.shape_cast %150 : vector<2x1x128xf32> to vector<2x128xf32>
    %c0_148 = arith.constant 0 : index
    %c128 = arith.constant 128 : index
    %152 = vector.load %arg16[%c0_148, %c128] : memref<2x2048xf32, #tpu.memory_space<vmem>>, vector<2x128xf32>
    tpu.vector_store %arg16[%c0_148, %c128], %151 {strides = array<i32>} : memref<2x2048xf32, #tpu.memory_space<vmem>>, vector<2x128xf32>,
    %153 = vector.extract_strided_slice %146 {offsets = [0, 2, 0], sizes = [2, 1, 128], strides = [1, 1, 1]} : vector<2x16x128xf32> to vector<2x1x128xf32>
    %154 = vector.shape_cast %153 : vector<2x1x128xf32> to vector<2x128xf32>
    %c0_149 = arith.constant 0 : index
    %c256 = arith.constant 256 : index
    %155 = vector.load %arg16[%c0_149, %c256] : memref<2x2048xf32, #tpu.memory_space<vmem>>, vector<2x128xf32>
    tpu.vector_store %arg16[%c0_149, %c256], %154 {strides = array<i32>} : memref<2x2048xf32, #tpu.memory_space<vmem>>, vector<2x128xf32>,
    %156 = vector.extract_strided_slice %146 {offsets = [0, 3, 0], sizes = [2, 1, 128], strides = [1, 1, 1]} : vector<2x16x128xf32> to vector<2x1x128xf32>
    %157 = vector.shape_cast %156 : vector<2x1x128xf32> to vector<2x128xf32>
    %c0_150 = arith.constant 0 : index
    %c384 = arith.constant 384 : index
    %158 = vector.load %arg16[%c0_150, %c384] : memref<2x2048xf32, #tpu.memory_space<vmem>>, vector<2x128xf32>
    tpu.vector_store %arg16[%c0_150, %c384], %157 {strides = array<i32>} : memref<2x2048xf32, #tpu.memory_space<vmem>>, vector<2x128xf32>,
    %159 = vector.extract_strided_slice %146 {offsets = [0, 4, 0], sizes = [2, 1, 128], strides = [1, 1, 1]} : vector<2x16x128xf32> to vector<2x1x128xf32>
    %160 = vector.shape_cast %159 : vector<2x1x128xf32> to vector<2x128xf32>
    %c0_151 = arith.constant 0 : index
    %c512 = arith.constant 512 : index
    %161 = vector.load %arg16[%c0_151, %c512] : memref<2x2048xf32, #tpu.memory_space<vmem>>, vector<2x128xf32>
    tpu.vector_store %arg16[%c0_151, %c512], %160 {strides = array<i32>} : memref<2x2048xf32, #tpu.memory_space<vmem>>, vector<2x128xf32>,
    %162 = vector.extract_strided_slice %146 {offsets = [0, 5, 0], sizes = [2, 1, 128], strides = [1, 1, 1]} : vector<2x16x128xf32> to vector<2x1x128xf32>
    %163 = vector.shape_cast %162 : vector<2x1x128xf32> to vector<2x128xf32>
    %c0_152 = arith.constant 0 : index
    %c640 = arith.constant 640 : index
    %164 = vector.load %arg16[%c0_152, %c640] : memref<2x2048xf32, #tpu.memory_space<vmem>>, vector<2x128xf32>
    tpu.vector_store %arg16[%c0_152, %c640], %163 {strides = array<i32>} : memref<2x2048xf32, #tpu.memory_space<vmem>>, vector<2x128xf32>,
    %165 = vector.extract_strided_slice %146 {offsets = [0, 6, 0], sizes = [2, 1, 128], strides = [1, 1, 1]} : vector<2x16x128xf32> to vector<2x1x128xf32>
    %166 = vector.shape_cast %165 : vector<2x1x128xf32> to vector<2x128xf32>
    %c0_153 = arith.constant 0 : index
    %c768 = arith.constant 768 : index
    %167 = vector.load %arg16[%c0_153, %c768] : memref<2x2048xf32, #tpu.memory_space<vmem>>, vector<2x128xf32>
    tpu.vector_store %arg16[%c0_153, %c768], %166 {strides = array<i32>} : memref<2x2048xf32, #tpu.memory_space<vmem>>, vector<2x128xf32>,
    %168 = vector.extract_strided_slice %146 {offsets = [0, 7, 0], sizes = [2, 1, 128], strides = [1, 1, 1]} : vector<2x16x128xf32> to vector<2x1x128xf32>
    %169 = vector.shape_cast %168 : vector<2x1x128xf32> to vector<2x128xf32>
    %c0_154 = arith.constant 0 : index
    %c896 = arith.constant 896 : index
    %170 = vector.load %arg16[%c0_154, %c896] : memref<2x2048xf32, #tpu.memory_space<vmem>>, vector<2x128xf32>
    tpu.vector_store %arg16[%c0_154, %c896], %169 {strides = array<i32>} : memref<2x2048xf32, #tpu.memory_space<vmem>>, vector<2x128xf32>,
    %171 = vector.extract_strided_slice %146 {offsets = [0, 8, 0], sizes = [2, 1, 128], strides = [1, 1, 1]} : vector<2x16x128xf32> to vector<2x1x128xf32>
    %172 = vector.shape_cast %171 : vector<2x1x128xf32> to vector<2x128xf32>
    %c0_155 = arith.constant 0 : index
    %c1024 = arith.constant 1024 : index
    %173 = vector.load %arg16[%c0_155, %c1024] : memref<2x2048xf32, #tpu.memory_space<vmem>>, vector<2x128xf32>
    tpu.vector_store %arg16[%c0_155, %c1024], %172 {strides = array<i32>} : memref<2x2048xf32, #tpu.memory_space<vmem>>, vector<2x128xf32>,
    %174 = vector.extract_strided_slice %146 {offsets = [0, 9, 0], sizes = [2, 1, 128], strides = [1, 1, 1]} : vector<2x16x128xf32> to vector<2x1x128xf32>
    %175 = vector.shape_cast %174 : vector<2x1x128xf32> to vector<2x128xf32>
    %c0_156 = arith.constant 0 : index
    %c1152 = arith.constant 1152 : index
    %176 = vector.load %arg16[%c0_156, %c1152] : memref<2x2048xf32, #tpu.memory_space<vmem>>, vector<2x128xf32>
    tpu.vector_store %arg16[%c0_156, %c1152], %175 {strides = array<i32>} : memref<2x2048xf32, #tpu.memory_space<vmem>>, vector<2x128xf32>,
    %177 = vector.extract_strided_slice %146 {offsets = [0, 10, 0], sizes = [2, 1, 128], strides = [1, 1, 1]} : vector<2x16x128xf32> to vector<2x1x128xf32>
    %178 = vector.shape_cast %177 : vector<2x1x128xf32> to vector<2x128xf32>
    %c0_157 = arith.constant 0 : index
    %c1280 = arith.constant 1280 : index
    %179 = vector.load %arg16[%c0_157, %c1280] : memref<2x2048xf32, #tpu.memory_space<vmem>>, vector<2x128xf32>
    tpu.vector_store %arg16[%c0_157, %c1280], %178 {strides = array<i32>} : memref<2x2048xf32, #tpu.memory_space<vmem>>, vector<2x128xf32>,
    %180 = vector.extract_strided_slice %146 {offsets = [0, 11, 0], sizes = [2, 1, 128], strides = [1, 1, 1]} : vector<2x16x128xf32> to vector<2x1x128xf32>
    %181 = vector.shape_cast %180 : vector<2x1x128xf32> to vector<2x128xf32>
    %c0_158 = arith.constant 0 : index
    %c1408 = arith.constant 1408 : index
    %182 = vector.load %arg16[%c0_158, %c1408] : memref<2x2048xf32, #tpu.memory_space<vmem>>, vector<2x128xf32>
    tpu.vector_store %arg16[%c0_158, %c1408], %181 {strides = array<i32>} : memref<2x2048xf32, #tpu.memory_space<vmem>>, vector<2x128xf32>,
    %183 = vector.extract_strided_slice %146 {offsets = [0, 12, 0], sizes = [2, 1, 128], strides = [1, 1, 1]} : vector<2x16x128xf32> to vector<2x1x128xf32>
    %184 = vector.shape_cast %183 : vector<2x1x128xf32> to vector<2x128xf32>
    %c0_159 = arith.constant 0 : index
    %c1536 = arith.constant 1536 : index
    %185 = vector.load %arg16[%c0_159, %c1536] : memref<2x2048xf32, #tpu.memory_space<vmem>>, vector<2x128xf32>
    tpu.vector_store %arg16[%c0_159, %c1536], %184 {strides = array<i32>} : memref<2x2048xf32, #tpu.memory_space<vmem>>, vector<2x128xf32>,
    %186 = vector.extract_strided_slice %146 {offsets = [0, 13, 0], sizes = [2, 1, 128], strides = [1, 1, 1]} : vector<2x16x128xf32> to vector<2x1x128xf32>
    %187 = vector.shape_cast %186 : vector<2x1x128xf32> to vector<2x128xf32>
    %c0_160 = arith.constant 0 : index
    %c1664 = arith.constant 1664 : index
    %188 = vector.load %arg16[%c0_160, %c1664] : memref<2x2048xf32, #tpu.memory_space<vmem>>, vector<2x128xf32>
    tpu.vector_store %arg16[%c0_160, %c1664], %187 {strides = array<i32>} : memref<2x2048xf32, #tpu.memory_space<vmem>>, vector<2x128xf32>,
    %189 = vector.extract_strided_slice %146 {offsets = [0, 14, 0], sizes = [2, 1, 128], strides = [1, 1, 1]} : vector<2x16x128xf32> to vector<2x1x128xf32>
    %190 = vector.shape_cast %189 : vector<2x1x128xf32> to vector<2x128xf32>
    %c0_161 = arith.constant 0 : index
    %c1792 = arith.constant 1792 : index
    %191 = vector.load %arg16[%c0_161, %c1792] : memref<2x2048xf32, #tpu.memory_space<vmem>>, vector<2x128xf32>
    tpu.vector_store %arg16[%c0_161, %c1792], %190 {strides = array<i32>} : memref<2x2048xf32, #tpu.memory_space<vmem>>, vector<2x128xf32>,
    %192 = vector.extract_strided_slice %146 {offsets = [0, 15, 0], sizes = [2, 1, 128], strides = [1, 1, 1]} : vector<2x16x128xf32> to vector<2x1x128xf32>
    %193 = vector.shape_cast %192 : vector<2x1x128xf32> to vector<2x128xf32>
    %c0_162 = arith.constant 0 : index
    %c1920 = arith.constant 1920 : index
    %194 = vector.load %arg16[%c0_162, %c1920] : memref<2x2048xf32, #tpu.memory_space<vmem>>, vector<2x128xf32>
    tpu.vector_store %arg16[%c0_162, %c1920], %193 {strides = array<i32>} : memref<2x2048xf32, #tpu.memory_space<vmem>>, vector<2x128xf32>,
    %c0_163 = arith.constant 0 : index
    %c0_164 = arith.constant 0 : index
    %195 = vector.load %arg16[%c0_163, %c0_164] : memref<2x2048xf32, #tpu.memory_space<vmem>>, vector<2x2048xf32>
    %196 = arith.truncf %195 : vector<2x2048xf32> to vector<2x2048xbf16>
    %c0_165 = arith.constant 0 : index
    %c0_166 = arith.constant 0 : index
    %c0_167 = arith.constant 0 : index
    %197 = vector.load %arg10[%c0_165, %c0_166, %c0_167] : memref<1x2048x96xbf16, #tpu.memory_space<vmem>>, vector<1x2048x96xbf16>
    %198 = vector.shape_cast %197 : vector<1x2048x96xbf16> to vector<2048x96xbf16>
    %cst_168 = arith.constant dense<0.000000e+00> : vector<2x96xf32>
    %199 = tpu.matmul %196, %198, %cst_168 {dimension_numbers = #tpu.dot_dimension_numbers<[1], [0], [0], [1], [0, 0, 1, 1], [], []>} : vector<2x2048xbf16>, vector<2048x96xbf16>, vector<2x96xf32> -> vector<2x96xf32>
    %c0_169 = arith.constant 0 : index
    %c0_170 = arith.constant 0 : index
    %c0_171 = arith.constant 0 : index
    %200 = vector.load %arg11[%c0_169, %c0_170, %c0_171] : memref<1x1x96xf32, #tpu.memory_space<vmem>>, vector<1x1x96xf32>
    %201 = vector.shape_cast %200 : vector<1x1x96xf32> to vector<1x96xf32>
    %202 = vector.broadcast %201 : vector<1x96xf32> to vector<2x96xf32>
    %203 = arith.addf %199, %202 : vector<2x96xf32>
    %cst_172 = arith.constant 0.000000e+00 : f32
    %204 = vector.broadcast %cst_172 : f32 to vector<2x96xf32>
    %205 = arith.maximumf %203, %204 : vector<2x96xf32>
    %206 = arith.truncf %205 : vector<2x96xf32> to vector<2x96xbf16>
    %c0_173 = arith.constant 0 : index
    %c0_174 = arith.constant 0 : index
    %c0_175 = arith.constant 0 : index
    %207 = vector.load %arg12[%c0_173, %c0_174, %c0_175] : memref<1x96x35xbf16, #tpu.memory_space<vmem>>, vector<1x96x35xbf16>
    %208 = vector.shape_cast %207 : vector<1x96x35xbf16> to vector<96x35xbf16>
    %cst_176 = arith.constant dense<0.000000e+00> : vector<2x35xf32>
    %209 = tpu.matmul %206, %208, %cst_176 {dimension_numbers = #tpu.dot_dimension_numbers<[1], [0], [0], [1], [0, 0, 1, 1], [], []>} : vector<2x96xbf16>, vector<96x35xbf16>, vector<2x35xf32> -> vector<2x35xf32>
    %c0_177 = arith.constant 0 : index
    %c0_178 = arith.constant 0 : index
    %c0_179 = arith.constant 0 : index
    %210 = vector.load %arg13[%c0_177, %c0_178, %c0_179] : memref<1x1x35xf32, #tpu.memory_space<vmem>>, vector<1x1x35xf32>
    %211 = vector.shape_cast %210 : vector<1x1x35xf32> to vector<1x35xf32>
    %212 = vector.broadcast %211 : vector<1x35xf32> to vector<2x35xf32>
    %213 = arith.addf %209, %212 : vector<2x35xf32>
    %c0_180 = arith.constant 0 : index
    %c0_181 = arith.constant 0 : index
    %c0_182 = arith.constant 0 : index
    %214 = vector.load %arg14[%c0_180, %c0_181, %c0_182] : memref<1x2x35xf32, #tpu.memory_space<vmem>>, vector<1x2x35xf32>
    %215 = vector.shape_cast %214 : vector<1x2x35xf32> to vector<2x35xf32>
    %216 = vector.shape_cast %213 : vector<2x35xf32> to vector<1x2x35xf32>
    tpu.vector_store %arg14[%c0_180, %c0_181, %c0_182], %216 {strides = array<i32>} : memref<1x2x35xf32, #tpu.memory_space<vmem>>, vector<1x2x35xf32>,
    return
  }
  func.func @transform_0(%arg0: i32) -> (i32, i32, i32) {
    %c0_i32 = arith.constant 0 : i32
    %c0_i32_0 = arith.constant 0 : i32
    %c0_i32_1 = arith.constant 0 : i32
    %c0_i32_2 = arith.constant 0 : i32
    return %c0_i32, %c0_i32_0, %c0_i32_1 : i32, i32, i32
  }
  func.func @transform_1(%arg0: i32) -> (i32, i32, i32) {
    %c0_i32 = arith.constant 0 : i32
    %c0_i32_0 = arith.constant 0 : i32
    %c0_i32_1 = arith.constant 0 : i32
    return %arg0, %c0_i32, %c0_i32_0 : i32, i32, i32
  }
  func.func @transform_2(%arg0: i32) -> (i32, i32, i32) {
    %c0_i32 = arith.constant 0 : i32
    %c0_i32_0 = arith.constant 0 : i32
    %c0_i32_1 = arith.constant 0 : i32
    return %arg0, %c0_i32, %c0_i32_0 : i32, i32, i32
  }
  func.func @transform_3(%arg0: i32) -> (i32, i32, i32, i32) {
    %c0_i32 = arith.constant 0 : i32
    %c0_i32_0 = arith.constant 0 : i32
    %c0_i32_1 = arith.constant 0 : i32
    %c0_i32_2 = arith.constant 0 : i32
    return %arg0, %c0_i32, %c0_i32_0, %c0_i32_1 : i32, i32, i32, i32
  }
  func.func @transform_4(%arg0: i32) -> (i32, i32, i32) {
    %c0_i32 = arith.constant 0 : i32
    %c0_i32_0 = arith.constant 0 : i32
    %c0_i32_1 = arith.constant 0 : i32
    return %arg0, %c0_i32, %c0_i32_0 : i32, i32, i32
  }
  func.func @transform_5(%arg0: i32) -> (i32, i32, i32, i32) {
    %c0_i32 = arith.constant 0 : i32
    %c0_i32_0 = arith.constant 0 : i32
    %c0_i32_1 = arith.constant 0 : i32
    %c0_i32_2 = arith.constant 0 : i32
    return %arg0, %c0_i32, %c0_i32_0, %c0_i32_1 : i32, i32, i32, i32
  }
  func.func @transform_6(%arg0: i32) -> (i32, i32, i32) {
    %c0_i32 = arith.constant 0 : i32
    %c0_i32_0 = arith.constant 0 : i32
    %c0_i32_1 = arith.constant 0 : i32
    return %arg0, %c0_i32, %c0_i32_0 : i32, i32, i32
  }
  func.func @transform_7(%arg0: i32) -> (i32, i32, i32, i32) {
    %c0_i32 = arith.constant 0 : i32
    %c0_i32_0 = arith.constant 0 : i32
    %c0_i32_1 = arith.constant 0 : i32
    %c0_i32_2 = arith.constant 0 : i32
    return %arg0, %c0_i32, %c0_i32_0, %c0_i32_1 : i32, i32, i32, i32
  }
  func.func @transform_8(%arg0: i32) -> (i32, i32, i32) {
    %c0_i32 = arith.constant 0 : i32
    %c0_i32_0 = arith.constant 0 : i32
    %c0_i32_1 = arith.constant 0 : i32
    return %arg0, %c0_i32, %c0_i32_0 : i32, i32, i32
  }
  func.func @transform_9(%arg0: i32) -> (i32, i32, i32) {
    %c0_i32 = arith.constant 0 : i32
    %c0_i32_0 = arith.constant 0 : i32
    %c0_i32_1 = arith.constant 0 : i32
    return %arg0, %c0_i32, %c0_i32_0 : i32, i32, i32
  }
  func.func @transform_10(%arg0: i32) -> (i32, i32, i32) {
    %c0_i32 = arith.constant 0 : i32
    %c0_i32_0 = arith.constant 0 : i32
    %c0_i32_1 = arith.constant 0 : i32
    return %arg0, %c0_i32, %c0_i32_0 : i32, i32, i32
  }
  func.func @transform_11(%arg0: i32) -> (i32, i32, i32) {
    %c0_i32 = arith.constant 0 : i32
    %c0_i32_0 = arith.constant 0 : i32
    %c0_i32_1 = arith.constant 0 : i32
    return %arg0, %c0_i32, %c0_i32_0 : i32, i32, i32
  }
  func.func @transform_12(%arg0: i32) -> (i32, i32, i32) {
    %c0_i32 = arith.constant 0 : i32
    %c0_i32_0 = arith.constant 0 : i32
    %c0_i32_1 = arith.constant 0 : i32
    return %arg0, %c0_i32, %c0_i32_0 : i32, i32, i32
  }
  func.func @transform_13(%arg0: i32) -> (i32, i32, i32) {
    %c0_i32 = arith.constant 0 : i32
    %c0_i32_0 = arith.constant 0 : i32
    %c0_i32_1 = arith.constant 0 : i32
    return %arg0, %c0_i32, %c0_i32_0 : i32, i32, i32
  }
}

</mosaic_0001>

<bundles_post_ra>
// kernel: generator_forward.2
= control target key start
LH: loop header
LB: loop body
LE: loop exit
PB: predicated region body
PF: predicated region fallthrough
CT: control target
= control target key end

     0   :  { %s4424_s25 = smov 0   ;;  %s4904_s0 = inlined_call_operand.vmem [shape: f32[2,16,9], index: 0, kind: input, shape index: {}]   ;;  %s4905_s1 = inlined_call_operand.vmem [shape: bf16[3,9,24], index: 1, kind: input, shape index: {}]   ;;  %s4906_s2 = inlined_call_operand.vmem [shape: f32[3,1,24], index: 2, kind: input, shape index: {}]   ;;  %s4907_s3 = inlined_call_operand.vmem [shape: bf16[3,7,24,48], index: 3, kind: input, shape index: {}]   ;;  %s4908_s4 = inlined_call_operand.vmem [shape: f32[3,1,48], index: 4, kind: input, shape index: {}]   ;;  %s4909_s5 = inlined_call_operand.vmem [shape: bf16[3,5,48,72], index: 5, kind: input, shape index: {}]   ;;  %s4910_s6 = inlined_call_operand.vmem [shape: f32[3,1,72], index: 6, kind: input, shape index: {}]   ;;  %s4911_s7 = inlined_call_operand.vmem [shape: bf16[3,3,72,128], index: 7, kind: input, shape index: {}]   ;;  %s4912_s8 = inlined_call_operand.vmem [shape: f32[3,1,128], index: 8, kind: input, shape index: {}]   ;;  %s4913_s9 = inlined_call_operand.vmem [shape: bf16[3,2048,96], index: 9, kind: input, shape index: {}]   ;;  %s4914_s10 = inlined_call_operand.vmem [shape: f32[3,1,96], index: 10, kind: input, shape index: {}]   ;;  %s4915_s11 = inlined_call_operand.vmem [shape: bf16[3,96,35], index: 11, kind: input, shape index: {}]   ;;  %s4916_s12 = inlined_call_operand.vmem [shape: f32[3,1,35], index: 12, kind: input, shape index: {}]   ;;  %s4917_s13 = inlined_call_operand.vmem [shape: f32[3,2,35], index: 13, kind: output, shape index: {}]  }
   0x1 LB: > { %s3367_s26 = sadd.s32 4294967295, %s4350_s25   ;;  %p3371_p0 = scmp.ge.s32.totalorder %s4350_s25, 1  ;;  %s4350_s25 = sphi %s4424_s25, %s23_s25  }
   0x2   : > { %p485_p1 = scmp.lt.s32.totalorder %s4350_s25, 4 }
   0x4   : > { %p486_p2 = pnand %p3371_p0, %p485_p1 }
   0x5   : > { %p571_p3 = scmp.lt.s32.totalorder (!%p486_p2), %s3367_s26, 2 }
   0x6   : > { %489 = sbr.rel (%p486_p2) target bundleno = 1118 (0x45e), region = 72 }
   0xb   : > { %vm653_vm0 = vcmask 1043456   ;;  %s4919_s26 = smov (!%p571_p3, %s3367_s26), 2  ;;  %vm654_vm1 = vcmask 1044480   ;;  %v4352_v0 = vmov 65535   ;;  %v629_v5 = vld [vmem:[%s4904_s0] sm:$0xff]  ;;  %v630_v7 = vld [vmem:[%s4904_s0 + $0x8] sm:$0xff] }
   0xc   : > { %v655_v1 = vsel %vm653_vm0, 4294967295, %v4352_v0  ;;  %s4152_s27 = sshll.u32 %s4919_s26, 3  ;;  %s578_s30 = scalar_lea.vmem %s4906_s2, %s4919_s26  ;;  %v631_v8 = vld [vmem:[%s4904_s0 + $0x10] sm:$0xff]  ;;  %v632_v9 = vld [vmem:[%s4904_s0 + $0x18] sm:$0xff]  ;;  %v633_v11 = vpack.c.bf16 %v630_v7, %v629_v5  ;;  %vm646_vm2 = vcmask 72704   ;;  %vm624_vm3 = vcmask 588800  }
   0xd   : > { %s575_s16 = scalar_lea.vmem %s4905_s1, %s4152_s27  ;;  %v656_v4 = vsel %vm654_vm1, %v655_v1, 0  ;;  %v634_v12 = vpack.c.bf16 %v632_v9, %v631_v8  ;;  %s586_s29 = scalar_lea.vmem %s4908_s4, %s4919_s26  ;;  %v4353_v13 = vmov 0.0   ;;  %v4338_v40 = vld [vmem:[%s578_s30] ss:$0 sm:$0xff]  ;;  %vm687_vm4 = vcmask 195584  }
   0xe   : > { %v3383_v2 = vld [vmem:[%s575_s16] sm:$0xf]  ;;  %v4154_v3 = vld [vmem:[%s575_s16] sm:$0x10]  ;;  %s4324_s14 = smul.u32 84, %s4919_s26  ;;  %625 = vst.msk [vmem:[#allocation2] sm:$0xff] %vm624_vm3, %v4353_v13  ;;  %s594_s21 = scalar_lea.vmem %s4910_s6, %s4919_s26 }
   0xf   : > { %v3384_v6 = vor.u32 %v4154_v3, %v3383_v2  ;;  %626 = vst.msk [vmem:[#allocation2 + $0x20] sm:$0xff] %vm624_vm3, %v4353_v13  ;;  %s4325_s22 = smul.u32 120, %s4919_s26  ;;  %vm1056_vm5 = vcmask 392192   ;;  %s602_s16 = scalar_lea.vmem %s4912_s8, %s4919_s26  ;;  %vm1611_vm6 = vcmask 1041409   ;;  %vm1613_vm7 = vcmask 1043459  }
  0x10   : > { %s4465_s17 = scalar_lea.vmem %s4907_s3, %s4324_s14  ;;  %627 = vst.msk [vmem:[#allocation2 + $0x18] sm:$0xff] %vm624_vm3, %v4353_v13  ;;  %s4153_s24 = sshll.u32 %s4919_s26, 10  ;;  %vm1615_vm8 = vcmask 1045509   ;;  %vm1617_vm9 = vcmask 1047559   ;;  %vm3181_vm10 = vcmask 785408   ;;  %vm3198_vm11 = vcmask 279552  }
  0x11   : > { %v658_v10 = vand.u32 %v3384_v6, %v656_v4  ;;  %628 = vst.msk [vmem:[#allocation2 + $0x38] sm:$0xff] %vm624_vm3, %v4353_v13  ;;  %v704_v14 = vld [vmem:[%s4465_s17 + $0x8] sm:$0xf]  ;;  %v3395_v15 = vld [vmem:[%s4465_s17 + $0x14] sm:$0xf]  ;;  %v4155_v30 = vld [vmem:[%s4465_s17] sm:$0xff]  ;;  %s4521_s27 = scalar_lea.vmem %s4909_s5, %s4325_s22  ;;  %s4615_s14 = scalar_lea.vmem %s4913_s9, %s4153_s24 }
  0x12   : > { %v3404_v16 = vld [vmem:[%s4465_s17 + $0x20] sm:$0xf]  ;;  %v710_v17 = vunpack.c.l.b16 %v704_v14  ;;  %v761_v18 = vunpack.c.l.b16 %v3395_v15  ;;  %v3413_v20 = vld [vmem:[%s4465_s17 + $0x2c] sm:$0xf]  ;;  %v4157_v32 = vld [vmem:[%s4465_s17 + $0x18] sm:$0xff]  ;;  %s618_s19 = scalar_lea.vmem %s4916_s12, %s4919_s26 }
  0x13   : > { %667 = vmatpush.bf16.msra.mxu0 %v658_v10  ;;  %4323 = vmatpush.bf16.msra.mxu1 %v658_v10  ;;  %v812_v19 = vunpack.c.l.b16 %v3404_v16  ;;  %v863_v21 = vunpack.c.l.b16 %v3413_v20  ;;  %v4156_v31 = vld [vmem:[%s4465_s17 + $0xc] sm:$0xff]  ;;  %v4158_v33 = vld [vmem:[%s4465_s17 + $0x24] sm:$0xff]  ;;  %v3422_v51 = vld [vmem:[%s4465_s17 + $0x38] sm:$0xf] }
  0x14   : > { %v712_v22 = vpack.c.b16 %v710_v17, %v710_v17  ;;  %v763_v23 = vpack.c.b16 %v761_v18, %v761_v18  ;;  %v3431_v34 = vld [vmem:[%s4465_s17 + $0x44] sm:$0xf]  ;;  %v3440_v35 = vld [vmem:[%s4465_s17 + $0x50] sm:$0xf]  ;;  %v4160_v52 = vld [vmem:[%s4465_s17 + $0x3c] sm:$0xff]  ;;  %v914_v55 = vunpack.c.l.b16 %v3422_v51 }
  0x15   : > { %v814_v24 = vpack.c.b16 %v812_v19, %v812_v19  ;;  %v865_v25 = vpack.c.b16 %v863_v21, %v863_v21  ;;  %v965_v36 = vunpack.c.l.b16 %v3431_v34  ;;  %v1016_v37 = vunpack.c.l.b16 %v3440_v35  ;;  %v4161_v56 = vld [vmem:[%s4465_s17 + $0x48] sm:$0xff]  ;;  %v4159_v61 = vld [vmem:[%s4465_s17 + $0x30] sm:$0xff]  ;;  %v4339_v51 = vld [vmem:[%s586_s29] ss:$0 sm:$0xff]  ;;  %s4326_s17 = smul.u32 108, %s4919_s26 }
  0x16   : > { %3385 = vmatmul.msk.bf16.vlgmr.msra.gmra.mxu0 %vm646_vm2, %v633_v11  ;;  %3386 = vmatmul.msk.bf16.vlgmr.msra.gmra.mxu1 %vm646_vm2, %v634_v12  ;;  %v721_v26 = vsel %vm653_vm0, %v712_v22, 0  ;;  %v772_v27 = vsel %vm653_vm0, %v763_v23, 0  ;;  %v916_v59 = vpack.c.b16 %v914_v55, %v914_v55 }
  0x17   : > { %v823_v28 = vsel %vm653_vm0, %v814_v24, 0  ;;  %729 = vmatpush.bf16.msrb.mxu1 %v721_v26  ;;  %780 = vmatpush.bf16.msra.mxu2 %v772_v27  ;;  %v874_v29 = vsel %vm653_vm0, %v865_v25, 0  ;;  %v967_v38 = vpack.c.b16 %v965_v36, %v965_v36  ;;  %v1018_v39 = vpack.c.b16 %v1016_v37, %v1016_v37  ;;  %s4565_s30 = scalar_lea.vmem %s4911_s7, %s4326_s17 }
  0x18   : > { %831 = vmatpush.bf16.msra.mxu3 %v823_v28  ;;  %882 = vmatpush.bf16.msrb.mxu0 %v874_v29  ;;  %v925_v60 = vsel %vm653_vm0, %v916_v59, 0 }
  0x19   : > { %v976_v41 = vsel %vm653_vm0, %v967_v38, 0  ;;  %v1027_v42 = vsel %vm653_vm0, %v1018_v39, 0 }
  0x1b   : > { %730 = vmatpush.bf16.msrb.mxu1 %v4155_v30  ;;  %781 = vmatpush.bf16.msra.mxu2 %v4156_v31 }
  0x1c   : > { %832 = vmatpush.bf16.msra.mxu3 %v4157_v32  ;;  %883 = vmatpush.bf16.msrb.mxu0 %v4158_v33 }
  0x1f   : > { %984 = vmatpush.bf16.msrb.mxu2 %v976_v41  ;;  %933 = vmatpush.bf16.msra.mxu1 %v925_v60  ;;  %v4172_v60 = vld [vmem:[%s4521_s27 + $0x50] sm:$0xff] }
  0x20   : > { %1035 = vmatpush.bf16.msrb.mxu3 %v1027_v42 }
  0x23   : > { %985 = vmatpush.bf16.msrb.mxu2 %v4160_v52  ;;  %934 = vmatpush.bf16.msra.mxu1 %v4159_v61 }
  0x24   : > { %1036 = vmatpush.bf16.msrb.mxu3 %v4161_v56  ;;  %v4163_v56 = vld [vmem:[%s4521_s27 + $0x8] sm:$0xff] }
  0x93   : > { %v669_v43 = vpop.f32.mrf.mxu0  ;;  %v674_v44 = vpop.f32.mrf.mxu1 }
  0x94   : > { %v679_v45 = vadd.f32 %v4338_v40, %v669_v43  ;;  %v681_v46 = vadd.f32 %v4338_v40, %v674_v44  ;;  %v4164_v44 = vld [vmem:[%s4521_s27 + $0x10] sm:$0xff] }
  0x95   : > { %1106 = vmatpush.bf16.msra.mxu0 %v4164_v44 }
  0x96   : > { %v683_v47 = vmax.f32 %v679_v45, 0.0  ;;  %v685_v48 = vmax.f32 %v681_v46, 0.0 }
  0x98   : > { %688 = vst.msk [vmem:[#allocation2 + $0x8] sm:$0xff] %vm687_vm4, %v683_v47 }
  0x99   : > { %690 = vst.msk [vmem:[#allocation2 + $0x28] sm:$0xff] %vm687_vm4, %v685_v48  ;;  %v4167_v48 = vld [vmem:[%s4521_s27 + $0x28] sm:$0xff]  ;;  %1107 = vmatpush.bf16.msra.mxu0 %v4163_v56 }
  0x9b   : > { %v671_v49 = vpop.f32.mrf.mxu0  ;;  %v676_v50 = vpop.f32.mrf.mxu1 }
  0x9c   : > { %v680_v53 = vadd.f32 %v4338_v40, %v671_v49  ;;  %v682_v54 = vadd.f32 %v4338_v40, %v676_v50  ;;  %v4170_v49 = vld [vmem:[%s4521_s27 + $0x40] sm:$0xff]  ;;  %v4173_v50 = vld [vmem:[%s4521_s27 + $0x58] sm:$0xff] }
  0x9e   : > { %v684_v57 = vmax.f32 %v680_v53, 0.0  ;;  %v686_v58 = vmax.f32 %v682_v54, 0.0 }
  0x9f   : > { %v696_v62 = vld [vmem:[#allocation2 + $0x5] sm:$0xff] }
  0xa0   : > { %689 = vst.msk [vmem:[#allocation2 + $0x10] sm:$0xff] %vm687_vm4, %v684_v57  ;;  %v746_v63 = vld [vmem:[#allocation2 + $0x6] sm:$0xff]  ;;  %v4166_v57 = vld [vmem:[%s4521_s27 + $0x20] sm:$0xff] }
  0xa1   : > { %691 = vst.msk [vmem:[#allocation2 + $0x30] sm:$0xff] %vm687_vm4, %v686_v58  ;;  %v797_v0 = vld [vmem:[#allocation2 + $0x7] sm:$0xff]  ;;  %v4169_v58 = vld [vmem:[%s4521_s27 + $0x38] sm:$0xff] }
  0xa2   : > { %v848_v7 = vld [vmem:[#allocation2 + $0x8] sm:$0xff] }
  0xa3   : > { %v698_v10 = vld [vmem:[#allocation2 + $0x25] sm:$0xff] }
  0xa4   : > { %v748_v11 = vld [vmem:[#allocation2 + $0x26] sm:$0xff] }
  0xa5   : > { %v799_v14 = vld [vmem:[#allocation2 + $0x27] sm:$0xff] }
  0xa6   : > { %v850_v16 = vld [vmem:[#allocation2 + $0x28] sm:$0xff] }
  0xa7   : > { %v697_v1 = vld [vmem:[#allocation2 + $0xd] sm:$0xff] }
  0xa8   : > { %v747_v2 = vld [vmem:[#allocation2 + $0xe] sm:$0xff]  ;;  %v700_v4 = vpack.c.bf16 %v697_v1, %v696_v62  ;;  %v4162_v62 = vld [vmem:[%s4521_s27] sm:$0xff]  ;;  %v4171_v1 = vld [vmem:[%s4521_s27 + $0x48] sm:$0xff] }
  0xa9   : > { %v798_v3 = vld [vmem:[#allocation2 + $0xf] sm:$0xff]  ;;  %v750_v5 = vpack.c.bf16 %v747_v2, %v746_v63  ;;  %1108 = vmatpush.bf16.msra.mxu0 %v4162_v62 }
  0xaa   : > { %v801_v6 = vpack.c.bf16 %v798_v3, %v797_v0  ;;  %v849_v8 = vld [vmem:[#allocation2 + $0x10] sm:$0xff]  ;;  %3391 = vmatmul.msk.bf16.vlgmr.msrb.gmra.mxu1 %vm687_vm4, %v700_v4  ;;  %v4168_v0 = vld [vmem:[%s4521_s27 + $0x30] sm:$0xff] }
  0xab   : > { %v852_v9 = vpack.c.bf16 %v849_v8, %v848_v7  ;;  %3400 = vmatmul.msk.bf16.vlgmr.msra.gmra.mxu2 %vm687_vm4, %v750_v5  ;;  %v699_v12 = vld [vmem:[#allocation2 + $0x2d] sm:$0xff]  ;;  %1166 = vmatpush.bf16.msrb.mxu1 %v4167_v48 }
  0xac   : > { %3409 = vmatmul.msk.bf16.vlgmr.msra.gmra.mxu3 %vm687_vm4, %v801_v6  ;;  %v749_v13 = vld [vmem:[#allocation2 + $0x2e] sm:$0xff]  ;;  %v701_v18 = vpack.c.bf16 %v699_v12, %v698_v10  ;;  %1226 = vmatpush.bf16.msra.mxu2 %v4170_v49 }
  0xad   : > { %3418 = vmatmul.msk.bf16.vlgmr.msrb.gmra.mxu0 %vm687_vm4, %v852_v9  ;;  %v800_v15 = vld [vmem:[#allocation2 + $0x2f] sm:$0xff]  ;;  %v751_v19 = vpack.c.bf16 %v749_v13, %v748_v11  ;;  %1286 = vmatpush.bf16.msra.mxu3 %v4173_v50 }
  0xae   : > { %v851_v17 = vld [vmem:[#allocation2 + $0x30] sm:$0xff]  ;;  %v802_v20 = vpack.c.bf16 %v800_v15, %v799_v14  ;;  %v4176_v10 = vld [vmem:[%s4521_s27 + $0x70] sm:$0xff] }
  0xaf   : > { %v853_v21 = vpack.c.bf16 %v851_v17, %v850_v16  ;;  %v899_v22 = vld [vmem:[#allocation2 + $0x9] sm:$0xff]  ;;  %v900_v23 = vld [vmem:[#allocation2 + $0x11] sm:$0xff]  ;;  %1167 = vmatpush.bf16.msrb.mxu1 %v4166_v57  ;;  %1346 = vmatpush.bf16.msrb.mxu0 %v4176_v10 }
  0xb0   : > { %v950_v24 = vld [vmem:[#allocation2 + $0xa] sm:$0xff]  ;;  %v951_v25 = vld [vmem:[#allocation2 + $0x12] sm:$0xff]  ;;  %v903_v28 = vpack.c.bf16 %v900_v23, %v899_v22  ;;  %1227 = vmatpush.bf16.msra.mxu2 %v4169_v58 }
  0xb1   : > { %v1001_v26 = vld [vmem:[#allocation2 + $0xb] sm:$0xff]  ;;  %v1002_v27 = vld [vmem:[#allocation2 + $0x13] sm:$0xff]  ;;  %v954_v29 = vpack.c.bf16 %v951_v25, %v950_v24  ;;  %1287 = vmatpush.bf16.msra.mxu3 %v4172_v60 }
  0xb2   : > { %v1005_v30 = vpack.c.bf16 %v1002_v27, %v1001_v26  ;;  %v901_v31 = vld [vmem:[#allocation2 + $0x29] sm:$0xff]  ;;  %v902_v32 = vld [vmem:[#allocation2 + $0x31] sm:$0xff] }
  0xb3   : > { %v952_v33 = vld [vmem:[#allocation2 + $0x2a] sm:$0xff]  ;;  %v953_v34 = vld [vmem:[#allocation2 + $0x32] sm:$0xff]  ;;  %v904_v37 = vpack.c.bf16 %v902_v32, %v901_v31 }
  0xb4   : > { %v1003_v35 = vld [vmem:[#allocation2 + $0x2b] sm:$0xff]  ;;  %v1004_v36 = vld [vmem:[#allocation2 + $0x33] sm:$0xff]  ;;  %v955_v38 = vpack.c.bf16 %v953_v34, %v952_v33  ;;  %1228 = vmatpush.bf16.msra.mxu2 %v4168_v0 }
  0xb5   : > { %v1006_v39 = vpack.c.bf16 %v1004_v36, %v1003_v35  ;;  %v4165_v63 = vld [vmem:[%s4521_s27 + $0x18] sm:$0xff]  ;;  %1288 = vmatpush.bf16.msra.mxu3 %v4171_v1  ;;  %v4174_v32 = vld [vmem:[%s4521_s27 + $0x60] sm:$0xff] }
  0xb6   : > { %1168 = vmatpush.bf16.msrb.mxu1 %v4165_v63 }
  0xba   : > { %3392 = vmatmul.msk.bf16.gmra.mxu1 %vm687_vm4, %v701_v18 }
  0xbb   : > { %3401 = vmatmul.msk.bf16.gmra.mxu2 %vm687_vm4, %v751_v19 }
  0xbc   : > { %3410 = vmatmul.msk.bf16.gmra.mxu3 %vm687_vm4, %v802_v20 }
  0xbd   : > { %3419 = vmatmul.msk.bf16.gmra.mxu0 %vm687_vm4, %v853_v21 }
  0xca   : > { %3427 = vmatmul.msk.bf16.vlgmr.msra.gmra.mxu1 %vm687_vm4, %v903_v28 }
  0xcb   : > { %3436 = vmatmul.msk.bf16.vlgmr.msrb.gmra.mxu2 %vm687_vm4, %v954_v29  ;;  %v4175_v29 = vld [vmem:[%s4521_s27 + $0x68] sm:$0xff]  ;;  %s3380_s27 = sshll.u32 %s4919_s26, 1 }
  0xcc   : > { %3445 = vmatmul.msk.bf16.vlgmr.msrb.gmra.mxu3 %vm687_vm4, %v1005_v30  ;;  %1347 = vmatpush.bf16.msrb.mxu0 %v4175_v29 }
  0xd0   : > { %1348 = vmatpush.bf16.msrb.mxu0 %v4174_v32  ;;  %v4180_v32 = vld [vmem:[%s4565_s30 + $0x18] sm:$0xff] }
  0xda   : > { %3428 = vmatmul.msk.bf16.gmra.mxu1 %vm687_vm4, %v904_v37 }
  0xdb   : > { %3437 = vmatmul.msk.bf16.gmra.mxu2 %vm687_vm4, %v955_v38 }
  0xdc   : > { %3446 = vmatmul.msk.bf16.gmra.mxu3 %vm687_vm4, %v1006_v39 }
 0x127   : > { %v732_v40 = vpop.f32.mrf.mxu1 }
 0x128   : > { %v742_v55 = vadd.f32 %v4339_v51, %v732_v40 }
 0x12a   : > { %v885_v61 = vpop.f32.mrf.mxu0 }
 0x12e   : > { %v783_v41 = vpop.f32.mrf.mxu2 }
 0x12f   : > { %v834_v42 = vpop.f32.mrf.mxu3  ;;  %v734_v43 = vpop.f32.mrf.mxu1  ;;  %v793_v59 = vadd.f32 %v783_v41, %v742_v55 }
 0x130   : > { %v743_v6 = vadd.f32 %v4339_v51, %v734_v43 }
 0x131   : > { %v844_v3 = vadd.f32 %v834_v42, %v793_v59 }
 0x132   : > { %v887_v11 = vpop.f32.mrf.mxu0 }
 0x133   : > { %v895_v8 = vadd.f32 %v885_v61, %v844_v3 }
 0x136   : > { %v785_v45 = vpop.f32.mrf.mxu2 }
 0x137   : > { %v836_v46 = vpop.f32.mrf.mxu3  ;;  %v737_v47 = vpop.f32.mrf.mxu1  ;;  %v794_v7 = vadd.f32 %v785_v45, %v743_v6 }
 0x138   : > { %v744_v17 = vadd.f32 %v4339_v51, %v737_v47 }
 0x139   : > { %v845_v13 = vadd.f32 %v836_v46, %v794_v7 }
 0x13a   : > { %v890_v27 = vpop.f32.mrf.mxu0 }
 0x13b   : > { %v896_v21 = vadd.f32 %v887_v11, %v845_v13 }
 0x13e   : > { %v788_v52 = vpop.f32.mrf.mxu2 }
 0x13f   : > { %v839_v53 = vpop.f32.mrf.mxu3  ;;  %v739_v54 = vpop.f32.mrf.mxu1  ;;  %v795_v19 = vadd.f32 %v788_v52, %v744_v17 }
 0x140   : > { %v745_v30 = vadd.f32 %v4339_v51, %v739_v54 }
 0x141   : > { %v846_v24 = vadd.f32 %v839_v53, %v795_v19  ;;  %v3567_v19 = vld [vmem:[%s4565_s30 + $0x44] sm:$0xf] }
 0x142   : > { %v892_v42 = vpop.f32.mrf.mxu0 }
 0x143   : > { %v897_v35 = vadd.f32 %v890_v27, %v846_v24 }
 0x146   : > { %v790_v2 = vpop.f32.mrf.mxu2 }
 0x147   : > { %v841_v4 = vpop.f32.mrf.mxu3  ;;  %v936_v5 = vpop.f32.mrf.mxu1  ;;  %v796_v33 = vadd.f32 %v790_v2, %v745_v30 }
 0x148   : > { %v946_v9 = vadd.f32 %v936_v5, %v895_v8 }
 0x149   : > { %v847_v38 = vadd.f32 %v841_v4, %v796_v33  ;;  %v4184_v33 = vld [vmem:[%s4565_s30 + $0x3c] sm:$0xff] }
 0x14b   : > { %v898_v45 = vadd.f32 %v892_v42, %v847_v38  ;;  %v4178_v42 = vld [vmem:[%s4565_s30 + $0x8] sm:$0xff] }
 0x14e   : > { %v987_v12 = vpop.f32.mrf.mxu2 }
 0x14f   : > { %v997_v14 = vadd.f32 %v987_v12, %v946_v9  ;;  %v1038_v15 = vpop.f32.mrf.mxu3  ;;  %v938_v16 = vpop.f32.mrf.mxu1 }
 0x150   : > { %v947_v22 = vadd.f32 %v938_v16, %v896_v21  ;;  %v3594_v21 = vld [vmem:[%s4565_s30 + $0x68] sm:$0xf] }
 0x151   : > { %v1048_v18 = vadd.f32 %v1038_v15, %v997_v14  ;;  %v1558_v24 = vunpack.c.l.b16 %v3594_v21 }
 0x153   : > { %v1052_v20 = vmax.f32 %v1048_v18, 0.0  ;;  %v1563_v27 = vpack.c.b16 %v1558_v24, %v1558_v24 }
 0x155   : > { %1057 = vst.msk [vmem:[#allocation2 + $0x8] sm:$0xff] %vm1056_vm5, %v1052_v20  ;;  %v1390_v20 = vld [vmem:[%s4565_s30 + $0x20] sm:$0xf]  ;;  %v1575_v30 = vsel %vm653_vm0, %v1563_v27, 0 }
 0x156   : > { %v989_v23 = vpop.f32.mrf.mxu2  ;;  %1580 = vmatpush.bf16.msrb.mxu3 %v1575_v30 }
 0x157   : > { %v998_v25 = vadd.f32 %v989_v23, %v947_v22  ;;  %v1040_v26 = vpop.f32.mrf.mxu3  ;;  %v941_v28 = vpop.f32.mrf.mxu1  ;;  %v1483_v22 = vunpack.c.l.b16 %v3567_v19  ;;  %v1408_v23 = vunpack.c.l.b16 %v1390_v20 }
 0x158   : > { %v948_v36 = vadd.f32 %v941_v28, %v897_v35  ;;  %v4179_v35 = vld [vmem:[%s4565_s30 + $0x10] sm:$0xff] }
 0x159   : > { %v1049_v31 = vadd.f32 %v1040_v26, %v998_v25  ;;  %v1488_v25 = vpack.c.b16 %v1483_v22, %v1483_v22  ;;  %v1413_v26 = vpack.c.b16 %v1408_v23, %v1408_v23 }
 0x15b   : > { %v1053_v34 = vmax.f32 %v1049_v31, 0.0  ;;  %v1500_v28 = vsel %vm653_vm0, %v1488_v25, 0  ;;  %v1425_v29 = vsel %vm653_vm0, %v1413_v26, 0 }
 0x15c   : > { %v1065_v46 = vld [vmem:[#allocation2 + $0x6] sm:$0xff]  ;;  %1505 = vmatpush.bf16.msrb.mxu2 %v1500_v28  ;;  %1430 = vmatpush.bf16.msra.mxu1 %v1425_v29 }
 0x15d   : > { %1058 = vst.msk [vmem:[#allocation2 + $0x10] sm:$0xff] %vm1056_vm5, %v1053_v34  ;;  %v1124_v47 = vld [vmem:[#allocation2 + $0x7] sm:$0xff]  ;;  %v4188_v34 = vld [vmem:[%s4565_s30 + $0x60] sm:$0xff] }
 0x15e   : > { %v992_v37 = vpop.f32.mrf.mxu2  ;;  %v1184_v48 = vld [vmem:[#allocation2 + $0x8] sm:$0xff]  ;;  %1581 = vmatpush.bf16.msrb.mxu3 %v4188_v34 }
 0x15f   : > { %v999_v39 = vadd.f32 %v992_v37, %v948_v36  ;;  %v1043_v40 = vpop.f32.mrf.mxu3  ;;  %v943_v43 = vpop.f32.mrf.mxu1  ;;  %v4183_v36 = vld [vmem:[%s4565_s30 + $0x34] sm:$0xff] }
 0x160   : > { %v949_v52 = vadd.f32 %v943_v43, %v898_v45  ;;  %1431 = vmatpush.bf16.msra.mxu1 %v4180_v32  ;;  %1506 = vmatpush.bf16.msrb.mxu2 %v4184_v33  ;;  %v4187_v37 = vld [vmem:[%s4565_s30 + $0x58] sm:$0xff]  ;;  %v4182_v43 = vld [vmem:[%s4565_s30 + $0x2c] sm:$0xff] }
 0x161   : > { %v1050_v41 = vadd.f32 %v1043_v40, %v999_v39  ;;  %v4340_v39 = vld [vmem:[%s594_s21] ss:$0 sm:$0xff] }
 0x162   : > { %1582 = vmatpush.bf16.msrb.mxu3 %v4187_v37 }
 0x163   : > { %v1054_v44 = vmax.f32 %v1050_v41, 0.0 }
 0x164   : > { %v1066_v49 = vld [vmem:[#allocation2 + $0xe] sm:$0xff]  ;;  %1432 = vmatpush.bf16.msra.mxu1 %v4179_v35  ;;  %1507 = vmatpush.bf16.msrb.mxu2 %v4183_v36 }
 0x165   : > { %v1125_v50 = vld [vmem:[#allocation2 + $0xf] sm:$0xff]  ;;  %v1069_v53 = vpack.c.bf16 %v1066_v49, %v1065_v46  ;;  %1059 = vst.msk [vmem:[#allocation2 + $0x28] sm:$0xff] %vm1056_vm5, %v1054_v44  ;;  %v4177_v46 = vld [vmem:[%s4565_s30] sm:$0xff] }
 0x166   : > { %v1185_v51 = vld [vmem:[#allocation2 + $0x10] sm:$0xff]  ;;  %v1128_v54 = vpack.c.bf16 %v1125_v50, %v1124_v47  ;;  %v994_v58 = vpop.f32.mrf.mxu2  ;;  %v4186_v44 = vld [vmem:[%s4565_s30 + $0x50] sm:$0xff]  ;;  %v4181_v47 = vld [vmem:[%s4565_s30 + $0x24] sm:$0xff] }
 0x167   : > { %v1188_v55 = vpack.c.bf16 %v1185_v51, %v1184_v48  ;;  %v1244_v56 = vld [vmem:[#allocation2 + $0x9] sm:$0xff]  ;;  %v1245_v57 = vld [vmem:[#allocation2 + $0x11] sm:$0xff]  ;;  %v1000_v60 = vadd.f32 %v994_v58, %v949_v52  ;;  %3459 = vmatmul.msk.bf16.vlgmr.msra.gmra.mxu0 %vm1056_vm5, %v1069_v53  ;;  %v1045_v61 = vpop.f32.mrf.mxu3  ;;  %1583 = vmatpush.bf16.msrb.mxu3 %v4186_v44  ;;  %v4185_v48 = vld [vmem:[%s4565_s30 + $0x48] sm:$0xff]  ;;  %s4327_s30 = smul.u32 48, %s4919_s26 }
 0x168   : > { %v1248_v59 = vpack.c.bf16 %v1245_v57, %v1244_v56  ;;  %3479 = vmatmul.msk.bf16.vlgmr.msrb.gmra.mxu1 %vm1056_vm5, %v1128_v54  ;;  %v1304_v12 = vld [vmem:[#allocation2 + $0xa] sm:$0xff]  ;;  %v1305_v13 = vld [vmem:[#allocation2 + $0x12] sm:$0xff]  ;;  %1508 = vmatpush.bf16.msrb.mxu2 %v4182_v43 }
 0x169   : > { %3499 = vmatmul.msk.bf16.vlgmr.msra.gmra.mxu2 %vm1056_vm5, %v1188_v55  ;;  %v1051_v62 = vadd.f32 %v1045_v61, %v1000_v60  ;;  %v1308_v14 = vpack.c.bf16 %v1305_v13, %v1304_v12  ;;  %1433 = vmatpush.bf16.msra.mxu1 %v4178_v42  ;;  %v4341_v42 = vld [vmem:[%s602_s16] ss:$0 sm:$0xff]  ;;  %s610_s16 = scalar_lea.vmem %s4914_s10, %s4919_s26  ;;  %s4879_s21 = scalar_lea.vmem %s4915_s11, %s4327_s30 }
 0x16a   : > { %3519 = vmatmul.msk.bf16.vlgmr.msra.gmra.mxu3 %vm1056_vm5, %v1248_v59 }
 0x16b   : > { %v1055_v63 = vmax.f32 %v1051_v62, 0.0  ;;  %1584 = vmatpush.bf16.msrb.mxu3 %v4185_v48 }
 0x16c   : > { %v1067_v0 = vld [vmem:[#allocation2 + $0x26] sm:$0xff]  ;;  %1509 = vmatpush.bf16.msrb.mxu2 %v4181_v47 }
 0x16d   : > { %1060 = vst.msk [vmem:[#allocation2 + $0x30] sm:$0xff] %vm1056_vm5, %v1055_v63  ;;  %v1126_v1 = vld [vmem:[#allocation2 + $0x27] sm:$0xff]  ;;  %1434 = vmatpush.bf16.msra.mxu1 %v4177_v46 }
 0x16e   : > { %v1186_v2 = vld [vmem:[#allocation2 + $0x28] sm:$0xff] }
 0x174   : > { %v1068_v3 = vld [vmem:[#allocation2 + $0x2e] sm:$0xff] }
 0x175   : > { %v1127_v4 = vld [vmem:[#allocation2 + $0x2f] sm:$0xff]  ;;  %v1070_v6 = vpack.c.bf16 %v1068_v3, %v1067_v0 }
 0x176   : > { %v1187_v5 = vld [vmem:[#allocation2 + $0x30] sm:$0xff]  ;;  %v1129_v7 = vpack.c.bf16 %v1127_v4, %v1126_v1 }
 0x177   : > { %v1189_v8 = vpack.c.bf16 %v1187_v5, %v1186_v2  ;;  %v1246_v9 = vld [vmem:[#allocation2 + $0x29] sm:$0xff]  ;;  %v1247_v10 = vld [vmem:[#allocation2 + $0x31] sm:$0xff]  ;;  %3460 = vmatmul.msk.bf16.gmra.mxu0 %vm1056_vm5, %v1070_v6 }
 0x178   : > { %v1249_v11 = vpack.c.bf16 %v1247_v10, %v1246_v9  ;;  %3480 = vmatmul.msk.bf16.gmra.mxu1 %vm1056_vm5, %v1129_v7  ;;  %v1306_v15 = vld [vmem:[#allocation2 + $0x2a] sm:$0xff]  ;;  %v1307_v16 = vld [vmem:[#allocation2 + $0x32] sm:$0xff] }
 0x179   : > { %3500 = vmatmul.msk.bf16.gmra.mxu2 %vm1056_vm5, %v1189_v8  ;;  %v1309_v17 = vpack.c.bf16 %v1307_v16, %v1306_v15 }
 0x17a   : > { %3520 = vmatmul.msk.bf16.gmra.mxu3 %vm1056_vm5, %v1249_v11 }
 0x187   : > { %3539 = vmatmul.msk.bf16.vlgmr.msrb.gmra.mxu0 %vm1056_vm5, %v1308_v14 }
 0x197   : > { %3540 = vmatmul.msk.bf16.gmra.mxu0 %vm1056_vm5, %v1309_v17 }
 0x1e4   : > { %v1110_v18 = vpop.f32.mrf.mxu0 }
 0x1e5   : > { %v1170_v40 = vpop.f32.mrf.mxu1  ;;  %v1120_v45 = vadd.f32 %v4340_v39, %v1110_v18 }
 0x1e7   : > { %v1180_v51 = vadd.f32 %v1170_v40, %v1120_v45 }
 0x1ec   : > { %v1112_v31 = vpop.f32.mrf.mxu0  ;;  %v1230_v41 = vpop.f32.mrf.mxu2 }
 0x1ed   : > { %v1290_v49 = vpop.f32.mrf.mxu3  ;;  %v1240_v52 = vadd.f32 %v1230_v41, %v1180_v51  ;;  %v1172_v53 = vpop.f32.mrf.mxu1  ;;  %v1121_v55 = vadd.f32 %v4340_v39, %v1112_v31 }
 0x1ef   : > { %v1300_v56 = vadd.f32 %v1290_v49, %v1240_v52  ;;  %v1181_v58 = vadd.f32 %v1172_v53, %v1121_v55 }
 0x1f4   : > { %v1115_v38 = vpop.f32.mrf.mxu0  ;;  %v1232_v54 = vpop.f32.mrf.mxu2 }
 0x1f5   : > { %v1292_v60 = vpop.f32.mrf.mxu3  ;;  %v1241_v61 = vadd.f32 %v1232_v54, %v1181_v58  ;;  %v1122_v63 = vadd.f32 %v4340_v39, %v1115_v38  ;;  %v1175_v0 = vpop.f32.mrf.mxu1 }
 0x1f7   : > { %v1301_v2 = vadd.f32 %v1292_v60, %v1241_v61  ;;  %v1182_v4 = vadd.f32 %v1175_v0, %v1122_v63  ;;  %v4196_v60 = vld [vmem:[%s4615_s14 + $0x38] sm:$0xff] }
 0x1f8   : > { %v4204_v61 = vld [vmem:[%s4615_s14 + $0x78] sm:$0xff]  ;;  %2919 = vmatpush.bf16.msra.mxu0 %v4196_v60 }
 0x1f9   : > { %v4220_v0 = vld [vmem:[%s4615_s14 + $0xf8] sm:$0xff]  ;;  %2932 = vmatpush.bf16.msrb.mxu1 %v4204_v61  ;;  %v4207_v61 = vld [vmem:[%s4615_s14 + $0x90] sm:$0xff] }
 0x1fa   : > { %2958 = vmatpush.bf16.msra.mxu3 %v4220_v0 }
 0x1fc   : > { %v1117_v50 = vpop.f32.mrf.mxu0  ;;  %v1235_v1 = vpop.f32.mrf.mxu2 }
 0x1fd   : > { %v1242_v6 = vadd.f32 %v1235_v1, %v1182_v4  ;;  %v1295_v8 = vpop.f32.mrf.mxu3  ;;  %v1123_v9 = vadd.f32 %v4340_v39, %v1117_v50  ;;  %v1177_v11 = vpop.f32.mrf.mxu1 }
 0x1ff   : > { %v1302_v10 = vadd.f32 %v1295_v8, %v1242_v6  ;;  %v1183_v14 = vadd.f32 %v1177_v11, %v1123_v9  ;;  %v4195_v6 = vld [vmem:[%s4615_s14 + $0x30] sm:$0xff] }
 0x200   : > { %v4211_v11 = vld [vmem:[%s4615_s14 + $0xb0] sm:$0xff]  ;;  %2920 = vmatpush.bf16.msra.mxu0 %v4195_v6  ;;  %v4214_v6 = vld [vmem:[%s4615_s14 + $0xc8] sm:$0xff] }
 0x204   : > { %v1350_v57 = vpop.f32.mrf.mxu0  ;;  %v1237_v12 = vpop.f32.mrf.mxu2 }
 0x205   : > { %v1360_v59 = vadd.f32 %v1350_v57, %v1300_v56  ;;  %v1243_v16 = vadd.f32 %v1237_v12, %v1183_v14  ;;  %v1297_v26 = vpop.f32.mrf.mxu3  ;;  %v4219_v12 = vld [vmem:[%s4615_s14 + $0xf0] sm:$0xff] }
 0x206   : > { %2959 = vmatpush.bf16.msra.mxu3 %v4219_v12  ;;  %v4205_v12 = vld [vmem:[%s4615_s14 + $0x80] sm:$0xff] }
 0x207   : > { %v1364_v62 = vmax.f32 %v1360_v59, 0.0  ;;  %v1303_v28 = vadd.f32 %v1297_v26, %v1243_v16 }
 0x209   : > { %1368 = vst.msk [vmem:[#allocation2 + $0x8] sm:$0xff] %vm624_vm3, %v1364_v62  ;;  %v4212_v62 = vld [vmem:[%s4615_s14 + $0xb8] sm:$0xff] }
 0x20a   : > { %2945 = vmatpush.bf16.msra.mxu2 %v4212_v62  ;;  %v4215_v62 = vld [vmem:[%s4615_s14 + $0xd0] sm:$0xff] }
 0x20c   : > { %v1352_v3 = vpop.f32.mrf.mxu0 }
 0x20d   : > { %v1361_v5 = vadd.f32 %v1352_v3, %v1301_v2 }
 0x20e   : > { %2946 = vmatpush.bf16.msra.mxu2 %v4211_v11 }
 0x20f   : > { %v1365_v7 = vmax.f32 %v1361_v5, 0.0 }
 0x210   : > { %v1376_v18 = vld [vmem:[#allocation2 + $0x7] sm:$0xff] }
 0x211   : > { %1369 = vst.msk [vmem:[#allocation2 + $0x10] sm:$0xff] %vm624_vm3, %v1365_v7  ;;  %v1450_v19 = vld [vmem:[#allocation2 + $0x8] sm:$0xff] }
 0x212   : > { %v4203_v7 = vld [vmem:[%s4615_s14 + $0x70] sm:$0xff] }
 0x213   : > { %2933 = vmatpush.bf16.msrb.mxu1 %v4203_v7 }
 0x214   : > { %v1355_v13 = vpop.f32.mrf.mxu0 }
 0x215   : > { %v1362_v15 = vadd.f32 %v1355_v13, %v1302_v10 }
 0x217   : > { %v1366_v17 = vmax.f32 %v1362_v15, 0.0 }
 0x218   : > { %v1377_v20 = vld [vmem:[#allocation2 + $0xf] sm:$0xff] }
 0x219   : > { %v1451_v21 = vld [vmem:[#allocation2 + $0x10] sm:$0xff]  ;;  %1370 = vst.msk [vmem:[#allocation2 + $0x28] sm:$0xff] %vm624_vm3, %v1366_v17  ;;  %v1380_v23 = vpack.c.bf16 %v1377_v20, %v1376_v18 }
 0x21a   : > { %v1525_v22 = vld [vmem:[#allocation2 + $0x9] sm:$0xff]  ;;  %v1454_v24 = vpack.c.bf16 %v1451_v21, %v1450_v19  ;;  %v1526_v25 = vld [vmem:[#allocation2 + $0x11] sm:$0xff] }
 0x21b   : > { %v1529_v27 = vpack.c.bf16 %v1526_v25, %v1525_v22  ;;  %3557 = vmatmul.msk.bf16.vlgmr.msra.gmra.mxu1 %vm624_vm3, %v1380_v23  ;;  %v4194_v22 = vld [vmem:[%s4615_s14 + $0x28] sm:$0xff] }
 0x21c   : > { %3584 = vmatmul.msk.bf16.vlgmr.msrb.gmra.mxu2 %vm624_vm3, %v1454_v24  ;;  %v1357_v29 = vpop.f32.mrf.mxu0  ;;  %v4202_v23 = vld [vmem:[%s4615_s14 + $0x68] sm:$0xff]  ;;  %2921 = vmatpush.bf16.msra.mxu0 %v4194_v22  ;;  %v4243_v22 = vld [vmem:[%s4615_s14 + $0x1b0] sm:$0xff] }
 0x21d   : > { %3611 = vmatmul.msk.bf16.vlgmr.msrb.gmra.mxu3 %vm624_vm3, %v1529_v27  ;;  %v1363_v30 = vadd.f32 %v1357_v29, %v1303_v28  ;;  %v4210_v24 = vld [vmem:[%s4615_s14 + $0xa8] sm:$0xff]  ;;  %2934 = vmatpush.bf16.msrb.mxu1 %v4202_v23  ;;  %v4251_v23 = vld [vmem:[%s4615_s14 + $0x1f0] sm:$0xff] }
 0x21e   : > { %v4218_v27 = vld [vmem:[%s4615_s14 + $0xe8] sm:$0xff]  ;;  %2947 = vmatpush.bf16.msra.mxu2 %v4210_v24 }
 0x21f   : > { %v1367_v31 = vmax.f32 %v1363_v30, 0.0  ;;  %2960 = vmatpush.bf16.msra.mxu3 %v4218_v27 }
 0x220   : > { %v1378_v32 = vld [vmem:[#allocation2 + $0x27] sm:$0xff] }
 0x221   : > { %1371 = vst.msk [vmem:[#allocation2 + $0x30] sm:$0xff] %vm624_vm3, %v1367_v31  ;;  %v1452_v33 = vld [vmem:[#allocation2 + $0x28] sm:$0xff] }
 0x228   : > { %v1379_v34 = vld [vmem:[#allocation2 + $0x2f] sm:$0xff] }
 0x229   : > { %v1453_v35 = vld [vmem:[#allocation2 + $0x30] sm:$0xff]  ;;  %v1381_v37 = vpack.c.bf16 %v1379_v34, %v1378_v32  ;;  %v4193_v32 = vld [vmem:[%s4615_s14 + $0x20] sm:$0xff] }
 0x22a   : > { %v1527_v36 = vld [vmem:[#allocation2 + $0x29] sm:$0xff]  ;;  %v1455_v38 = vpack.c.bf16 %v1453_v35, %v1452_v33  ;;  %v1528_v39 = vld [vmem:[#allocation2 + $0x31] sm:$0xff]  ;;  %2922 = vmatpush.bf16.msra.mxu0 %v4193_v32  ;;  %v4234_v32 = vld [vmem:[%s4615_s14 + $0x168] sm:$0xff] }
 0x22b   : > { %v1530_v40 = vpack.c.bf16 %v1528_v39, %v1527_v36  ;;  %3558 = vmatmul.msk.bf16.gmra.mxu1 %vm624_vm3, %v1381_v37  ;;  %v4201_v33 = vld [vmem:[%s4615_s14 + $0x60] sm:$0xff] }
 0x22c   : > { %3585 = vmatmul.msk.bf16.gmra.mxu2 %vm624_vm3, %v1455_v38  ;;  %2935 = vmatpush.bf16.msrb.mxu1 %v4201_v33  ;;  %v4209_v38 = vld [vmem:[%s4615_s14 + $0xa0] sm:$0xff]  ;;  %v4242_v33 = vld [vmem:[%s4615_s14 + $0x1a8] sm:$0xff] }
 0x22d   : > { %3612 = vmatmul.msk.bf16.gmra.mxu3 %vm624_vm3, %v1530_v40  ;;  %v4217_v39 = vld [vmem:[%s4615_s14 + $0xe0] sm:$0xff]  ;;  %2948 = vmatpush.bf16.msra.mxu2 %v4209_v38 }
 0x22e   : > { %2961 = vmatpush.bf16.msra.mxu3 %v4217_v39  ;;  %v4225_v38 = vld [vmem:[%s4615_s14 + $0x120] sm:$0xff] }
 0x22f   : > { %v4233_v39 = vld [vmem:[%s4615_s14 + $0x160] sm:$0xff] }
 0x298   : > { %v1436_v41 = vpop.f32.mrf.mxu1 }
 0x299   : > { %v1446_v43 = vadd.f32 %v4341_v42, %v1436_v41 }
 0x29f   : > { %v1511_v44 = vpop.f32.mrf.mxu2 }
 0x2a0   : > { %v1521_v45 = vadd.f32 %v1511_v44, %v1446_v43  ;;  %v1586_v46 = vpop.f32.mrf.mxu3  ;;  %v1438_v47 = vpop.f32.mrf.mxu1  ;;  %v4192_v43 = vld [vmem:[%s4615_s14 + $0x18] sm:$0xff] }
 0x2a1   : > { %v1447_v54 = vadd.f32 %v4341_v42, %v1438_v47  ;;  %v4200_v44 = vld [vmem:[%s4615_s14 + $0x58] sm:$0xff]  ;;  %2923 = vmatpush.bf16.msra.mxu0 %v4192_v43 }
 0x2a2   : > { %v1596_v48 = vadd.f32 %v1586_v46, %v1521_v45  ;;  %v4208_v45 = vld [vmem:[%s4615_s14 + $0x98] sm:$0xff]  ;;  %2936 = vmatpush.bf16.msrb.mxu1 %v4200_v44 }
 0x2a3   : > { %2949 = vmatpush.bf16.msra.mxu2 %v4208_v45  ;;  %v4224_v45 = vld [vmem:[%s4615_s14 + $0x118] sm:$0xff] }
 0x2a4   : > { %v4605_v49 = vmax.f32 %v1596_v48, 0.0 }
 0x2a6   : > { %1630 = vst.sshfl [vmem:[#allocation1] sm:$0xff pattern:$0x73625140] %v4605_v49  ;;  %v1621_v2 = vrot.slane %v4605_v49, 1 }
 0x2a7   : > { %v1513_v50 = vpop.f32.mrf.mxu2  ;;  %2950 = vmatpush.bf16.msra.mxu2 %v4207_v61  ;;  %v4222_v61 = vld [vmem:[%s4615_s14 + $0x108] sm:$0xff] }
 0x2a8   : > { %v1588_v51 = vpop.f32.mrf.mxu3  ;;  %v1441_v52 = vpop.f32.mrf.mxu1  ;;  %v1522_v57 = vadd.f32 %v1513_v50, %v1447_v54  ;;  %v4216_v50 = vld [vmem:[%s4615_s14 + $0xd8] sm:$0xff] }
 0x2a9   : > { %v1448_v55 = vadd.f32 %v4341_v42, %v1441_v52  ;;  %2962 = vmatpush.bf16.msra.mxu3 %v4216_v50 }
 0x2aa   : > { %v1597_v3 = vadd.f32 %v1588_v51, %v1522_v57 }
 0x2ac   : > { %v4637_v15 = vmax.f32 %v1597_v3, 0.0  ;;  %v4206_v3 = vld [vmem:[%s4615_s14 + $0x88] sm:$0xff] }
 0x2ad   : > { %v4609_v53 = vld [vmem:[#allocation1 + $0x1] ss:$4 sm:$0xff]  ;;  %2963 = vmatpush.bf16.msra.mxu3 %v4215_v62  ;;  %2951 = vmatpush.bf16.msra.mxu2 %v4206_v3 }
 0x2ae   : > { %1645 = vst.sshfl [vmem:[#allocation1] sm:$0xff pattern:$0x73625140] %v4605_v49  ;;  %v1731_v29 = vrot.slane %v4637_v15, 1  ;;  %v4230_v62 = vld [vmem:[%s4615_s14 + $0x148] sm:$0xff] }
 0x2af   : > { %v1516_v56 = vpop.f32.mrf.mxu2 }
 0x2b0   : > { %v1523_v58 = vadd.f32 %v1516_v56, %v1448_v55  ;;  %v1591_v59 = vpop.f32.mrf.mxu3  ;;  %v1443_v1 = vpop.f32.mrf.mxu1 }
 0x2b1   : > { %v1449_v10 = vadd.f32 %v4341_v42, %v1443_v1  ;;  %v4190_v1 = vld [vmem:[%s4615_s14 + $0x8] sm:$0xff]  ;;  %2964 = vmatpush.bf16.msra.mxu3 %v4214_v6  ;;  %2952 = vmatpush.bf16.msra.mxu2 %v4205_v12  ;;  %v4229_v6 = vld [vmem:[%s4615_s14 + $0x140] sm:$0xff] }
 0x2b2   : > { %v1598_v63 = vadd.f32 %v1591_v59, %v1523_v58  ;;  %v4191_v58 = vld [vmem:[%s4615_s14 + $0x10] sm:$0xff] }
 0x2b3   : > { %v4199_v59 = vld [vmem:[%s4615_s14 + $0x50] sm:$0xff]  ;;  %2924 = vmatpush.bf16.msra.mxu0 %v4191_v58 }
 0x2b4   : > { %v4622_v4 = vmax.f32 %v1598_v63, 0.0  ;;  %2937 = vmatpush.bf16.msrb.mxu1 %v4199_v59 }
 0x2b5   : > { %v4624_v5 = vld [vmem:[#allocation1 + $0x1] ss:$4 sm:$0xff] }
 0x2b6   : > { %1660 = vst.sshfl [vmem:[#allocation1] sm:$0xff pattern:$0x73625140] %v4605_v49  ;;  %v1610_v8 = vrot.slane %v4622_v4, 7  ;;  %v1624_v9 = vsel %vm1611_vm6, %v4622_v4, %v1621_v2  ;;  %v1651_v56 = vrot.slane %v4624_v5, 1  ;;  %v4198_v2 = vld [vmem:[%s4615_s14 + $0x48] sm:$0xff] }
 0x2b7   : > { %v1625_v13 = vsel %vm1613_vm7, %v4622_v4, %v1624_v9  ;;  %1633 = vst.sshfl [vmem:[#allocation1 + $0x20] sm:$0xff pattern:$0x73625140] %v4622_v4  ;;  %v1518_v14 = vpop.f32.mrf.mxu2  ;;  %2925 = vmatpush.bf16.msra.mxu0 %v4190_v1  ;;  %v4189_v9 = vld [vmem:[%s4615_s14] sm:$0xff] }
 0x2b8   : > { %v1612_v16 = vsel %vm1611_vm6, %v1610_v8, %v4605_v49  ;;  %v1626_v17 = vsel %vm1615_vm8, %v4622_v4, %v1625_v13  ;;  %v1524_v18 = vadd.f32 %v1518_v14, %v1449_v10  ;;  %v1593_v21 = vpop.f32.mrf.mxu3  ;;  %2938 = vmatpush.bf16.msrb.mxu1 %v4198_v2  ;;  %v4197_v10 = vld [vmem:[%s4615_s14 + $0x40] sm:$0xff]  ;;  %v4228_v14 = vld [vmem:[%s4615_s14 + $0x138] sm:$0xff] }
 0x2b9   : > { %v1614_v19 = vsel %vm1613_vm7, %v1610_v8, %v1612_v16  ;;  %v1627_v20 = vsel %vm1617_vm9, %v4622_v4, %v1626_v17  ;;  %v4213_v13 = vld [vmem:[%s4615_s14 + $0xc0] sm:$0xff]  ;;  %v4236_v16 = vld [vmem:[%s4615_s14 + $0x178] sm:$0xff] }
 0x2ba   : > { %v1616_v25 = vsel %vm1615_vm8, %v1610_v8, %v1614_v19  ;;  %1629 = vst [vmem:[#allocation3 + $0x2] sm:$0x3] %v1627_v20  ;;  %v1599_v26 = vadd.f32 %v1593_v21, %v1524_v18  ;;  %v4244_v17 = vld [vmem:[%s4615_s14 + $0x1b8] sm:$0xff]  ;;  %2965 = vmatpush.bf16.msra.mxu3 %v4213_v13  ;;  %v4235_v20 = vld [vmem:[%s4615_s14 + $0x170] sm:$0xff] }
 0x2bb   : > { %v1618_v28 = vsel %vm1617_vm9, %v1610_v8, %v1616_v25  ;;  %2926 = vmatpush.bf16.msra.mxu0 %v4189_v9  ;;  %v4252_v18 = vld [vmem:[%s4615_s14 + $0x1f8] sm:$0xff]  ;;  %2997 = vmatpush.bf16.msrb.mxu2 %v4244_v17  ;;  %v4245_v9 = vld [vmem:[%s4615_s14 + $0x1c0] sm:$0xff] }
 0x2bc   : > { %1620 = vst [vmem:[#allocation3] sm:$0x3] %v1618_v28  ;;  %v4653_v30 = vmax.f32 %v1599_v26, 0.0  ;;  %2939 = vmatpush.bf16.msrb.mxu1 %v4197_v10 }
 0x2bd   : > { %v4655_v31 = vld [vmem:[#allocation1 + $0x2] ss:$4 sm:$0xff] }
 0x2be   : > { %1675 = vst.sshfl [vmem:[#allocation1] sm:$0xff pattern:$0x73625140] %v4605_v49  ;;  %v1635_v34 = vld [vmem:[#allocation1 + $0x21] ss:$4 sm:$0xff]  ;;  %v1724_v35 = vrot.slane %v4653_v30, 7  ;;  %v1734_v36 = vsel %vm1611_vm6, %v4653_v30, %v1731_v29  ;;  %3010 = vmatpush.bf16.msrb.mxu3 %v4252_v18 }
 0x2bf   : > { %1648 = vst.sshfl [vmem:[#allocation1 + $0x20] sm:$0xff pattern:$0x73625140] %v4622_v4  ;;  %v1735_v37 = vsel %vm1613_vm7, %v4653_v30, %v1734_v36  ;;  %v1638_v40 = vrot.slane %v1635_v34, 7  ;;  %2971 = vmatpush.bf16.msrb.mxu0 %v4228_v14  ;;  %2998 = vmatpush.bf16.msrb.mxu2 %v4243_v22 }
 0x2c0   : > { %v1725_v41 = vsel %vm1611_vm6, %v1724_v35, %v4637_v15  ;;  %v1736_v42 = vsel %vm1615_vm8, %v4653_v30, %v1735_v37  ;;  %2984 = vmatpush.bf16.msra.mxu1 %v4236_v16 }
 0x2c1   : > { %v1639_v46 = vsel %vm1611_vm6, %v1638_v40, %v4609_v53  ;;  %v1726_v47 = vsel %vm1613_vm7, %v1724_v35, %v1725_v41  ;;  %v1737_v48 = vsel %vm1617_vm9, %v4653_v30, %v1736_v42  ;;  %v4241_v41 = vld [vmem:[%s4615_s14 + $0x1a0] sm:$0xff] }
 0x2c2   : > { %v1640_v51 = vsel %vm1613_vm7, %v1638_v40, %v1639_v46  ;;  %v1727_v52 = vsel %vm1615_vm8, %v1724_v35, %v1726_v47  ;;  %1739 = vst [vmem:[#allocation3 + $0x12] sm:$0x3] %v1737_v48  ;;  %3011 = vmatpush.bf16.msrb.mxu3 %v4251_v23  ;;  %v4249_v42 = vld [vmem:[%s4615_s14 + $0x1e0] sm:$0xff]  ;;  %v4232_v46 = vld [vmem:[%s4615_s14 + $0x158] sm:$0xff] }
 0x2c3   : > { %v1641_v54 = vsel %vm1615_vm8, %v1638_v40, %v1640_v51  ;;  %v1728_v53 = vsel %vm1617_vm9, %v1724_v35, %v1727_v52  ;;  %v4250_v35 = vld [vmem:[%s4615_s14 + $0x1e8] sm:$0xff]  ;;  %2999 = vmatpush.bf16.msrb.mxu2 %v4242_v33  ;;  %v4240_v47 = vld [vmem:[%s4615_s14 + $0x198] sm:$0xff]  ;;  %v4223_v51 = vld [vmem:[%s4615_s14 + $0x110] sm:$0xff] }
 0x2c4   : > { %v1642_v55 = vsel %vm1617_vm9, %v1638_v40, %v1641_v54  ;;  %1730 = vst [vmem:[#allocation3 + $0x10] sm:$0x3] %v1728_v53  ;;  %2985 = vmatpush.bf16.msra.mxu1 %v4235_v20  ;;  %v4248_v48 = vld [vmem:[%s4615_s14 + $0x1d8] sm:$0xff]  ;;  %v4231_v52 = vld [vmem:[%s4615_s14 + $0x150] sm:$0xff] }
 0x2c5   : > { %v4687_v57 = vld [vmem:[#allocation1 + $0x2] ss:$4 sm:$0xff]  ;;  %1644 = vst [vmem:[#allocation3 + $0x4] sm:$0x3] %v1642_v55 }
 0x2c6   : > { %1690 = vst.sshfl [vmem:[#allocation1] sm:$0xff pattern:$0x73625140] %v4605_v49  ;;  %v1650_v60 = vld [vmem:[#allocation1 + $0x21] ss:$4 sm:$0xff]  ;;  %v1681_v26 = vrot.slane %v4687_v57, 1  ;;  %3012 = vmatpush.bf16.msrb.mxu3 %v4250_v35 }
 0x2c7   : > { %1663 = vst.sshfl [vmem:[#allocation1 + $0x20] sm:$0xff pattern:$0x73625140] %v4622_v4  ;;  %v1654_v63 = vsel %vm1611_vm6, %v1650_v60, %v1651_v56  ;;  %3000 = vmatpush.bf16.msrb.mxu2 %v4241_v41  ;;  %v4239_v53 = vld [vmem:[%s4615_s14 + $0x190] sm:$0xff]  ;;  %v4260_v35 = vld [vmem:[%s4615_s14 + $0x238] sm:$0xff] }
 0x2c8   : > { %v1655_v0 = vsel %vm1613_vm7, %v1650_v60, %v1654_v63  ;;  %2986 = vmatpush.bf16.msra.mxu1 %v4234_v32  ;;  %v4238_v63 = vld [vmem:[%s4615_s14 + $0x188] sm:$0xff] }
 0x2c9   : > { %v1656_v5 = vsel %vm1615_vm8, %v1650_v60, %v1655_v0  ;;  %v4246_v0 = vld [vmem:[%s4615_s14 + $0x1c8] sm:$0xff] }
 0x2ca   : > { %v1657_v7 = vsel %vm1617_vm9, %v1650_v60, %v1656_v5  ;;  %3013 = vmatpush.bf16.msrb.mxu3 %v4249_v42  ;;  %v4221_v5 = vld [vmem:[%s4615_s14 + $0x100] sm:$0xff] }
 0x2cb   : > { %1659 = vst [vmem:[#allocation3 + $0x6] sm:$0x3] %v1657_v7  ;;  %3001 = vmatpush.bf16.msrb.mxu2 %v4240_v47 }
 0x2cc   : > { %2987 = vmatpush.bf16.msra.mxu1 %v4233_v39 }
 0x2cd   : > { %v4707_v8 = vld [vmem:[#allocation1 + $0x3] ss:$4 sm:$0xff] }
 0x2ce   : > { %1705 = vst.sshfl [vmem:[#allocation1] sm:$0xff pattern:$0x73625140] %v4605_v49  ;;  %v1665_v11 = vld [vmem:[#allocation1 + $0x22] ss:$4 sm:$0xff]  ;;  %3014 = vmatpush.bf16.msrb.mxu3 %v4248_v48 }
 0x2cf   : > { %1678 = vst.sshfl [vmem:[#allocation1 + $0x20] sm:$0xff pattern:$0x73625140] %v4622_v4  ;;  %v1668_v19 = vrot.slane %v1665_v11, 7  ;;  %v4227_v49 = vld [vmem:[%s4615_s14 + $0x130] sm:$0xff]  ;;  %3002 = vmatpush.bf16.msrb.mxu2 %v4239_v53 }
 0x2d0   : > { %2972 = vmatpush.bf16.msrb.mxu0 %v4227_v49  ;;  %2988 = vmatpush.bf16.msra.mxu1 %v4232_v46  ;;  %v4276_v46 = vld [vmem:[%s4615_s14 + $0x2b8] sm:$0xff]  ;;  %v4275_v53 = vld [vmem:[%s4615_s14 + $0x2b0] sm:$0xff] }
 0x2d1   : > { %v1669_v21 = vsel %vm1611_vm6, %v1668_v19, %v4655_v31  ;;  %v4226_v31 = vld [vmem:[%s4615_s14 + $0x128] sm:$0xff] }
 0x2d2   : > { %v1670_v24 = vsel %vm1613_vm7, %v1668_v19, %v1669_v21 }
 0x2d3   : > { %v1671_v25 = vsel %vm1615_vm8, %v1668_v19, %v1670_v24  ;;  %3003 = vmatpush.bf16.msrb.mxu2 %v4238_v63 }
 0x2d4   : > { %v1672_v28 = vsel %vm1617_vm9, %v1668_v19, %v1671_v25  ;;  %2973 = vmatpush.bf16.msrb.mxu0 %v4226_v31  ;;  %2989 = vmatpush.bf16.msra.mxu1 %v4231_v52  ;;  %v4259_v52 = vld [vmem:[%s4615_s14 + $0x230] sm:$0xff] }
 0x2d5   : > { %v4728_v27 = vld [vmem:[#allocation1 + $0x3] ss:$4 sm:$0xff]  ;;  %1674 = vst [vmem:[#allocation3 + $0x8] sm:$0x3] %v1672_v28 }
 0x2d6   : > { %1740 = vst.sshfl [vmem:[#allocation1] sm:$0xff pattern:$0x73625140] %v4637_v15  ;;  %v1680_v29 = vld [vmem:[#allocation1 + $0x22] ss:$4 sm:$0xff]  ;;  %v1711_v57 = vrot.slane %v4728_v27, 1 }
 0x2d7   : > { %1693 = vst.sshfl [vmem:[#allocation1 + $0x20] sm:$0xff pattern:$0x73625140] %v4622_v4  ;;  %v1684_v34 = vsel %vm1611_vm6, %v1680_v29, %v1681_v26  ;;  %v1830_v26 = vld [vmem:[#allocation3] sm:$0xff] }
 0x2d8   : > { %v1685_v36 = vsel %vm1613_vm7, %v1680_v29, %v1684_v34  ;;  %2974 = vmatpush.bf16.msrb.mxu0 %v4225_v38  ;;  %2990 = vmatpush.bf16.msra.mxu1 %v4230_v62  ;;  %v4282_v62 = vld [vmem:[%s4615_s14 + $0x2e8] sm:$0xff] }
 0x2d9   : > { %v1686_v37 = vsel %vm1615_vm8, %v1680_v29, %v1685_v36  ;;  %v4268_v36 = vld [vmem:[%s4615_s14 + $0x278] sm:$0xff] }
 0x2da   : > { %v1687_v40 = vsel %vm1617_vm9, %v1680_v29, %v1686_v37 }
 0x2db   : > { %1689 = vst [vmem:[#allocation3 + $0xa] sm:$0x3] %v1687_v40 }
 0x2dc   : > { %2975 = vmatpush.bf16.msrb.mxu0 %v4224_v45  ;;  %2991 = vmatpush.bf16.msra.mxu1 %v4229_v6 }
 0x2dd   : > { %v1742_v43 = vld [vmem:[#allocation1 + $0x1] ss:$4 sm:$0xff] }
 0x2de   : > { %1755 = vst.sshfl [vmem:[#allocation1] sm:$0xff pattern:$0x73625140] %v4637_v15  ;;  %v1695_v44 = vld [vmem:[#allocation1 + $0x23] ss:$4 sm:$0xff] }
 0x2df   : > { %1708 = vst.sshfl [vmem:[#allocation1 + $0x20] sm:$0xff pattern:$0x73625140] %v4622_v4  ;;  %v1698_v50 = vrot.slane %v1695_v44, 7  ;;  %v4247_v4 = vld [vmem:[%s4615_s14 + $0x1d0] sm:$0xff] }
 0x2e0   : > { %2976 = vmatpush.bf16.msrb.mxu0 %v4223_v51  ;;  %3015 = vmatpush.bf16.msrb.mxu3 %v4247_v4  ;;  %v4283_v4 = vld [vmem:[%s4615_s14 + $0x2f0] sm:$0xff] }
 0x2e1   : > { %v1699_v54 = vsel %vm1611_vm6, %v1698_v50, %v4707_v8  ;;  %v4237_v8 = vld [vmem:[%s4615_s14 + $0x180] sm:$0xff] }
 0x2e2   : > { %v1700_v55 = vsel %vm1613_vm7, %v1698_v50, %v1699_v54  ;;  %3004 = vmatpush.bf16.msrb.mxu2 %v4237_v8  ;;  %v4267_v54 = vld [vmem:[%s4615_s14 + $0x270] sm:$0xff] }
 0x2e3   : > { %v1701_v56 = vsel %vm1615_vm8, %v1698_v50, %v1700_v55 }
 0x2e4   : > { %v1702_v59 = vsel %vm1617_vm9, %v1698_v50, %v1701_v56  ;;  %2977 = vmatpush.bf16.msrb.mxu0 %v4222_v61  ;;  %3016 = vmatpush.bf16.msrb.mxu3 %v4246_v0  ;;  %v4284_v50 = vld [vmem:[%s4615_s14 + $0x2f8] sm:$0xff] }
 0x2e5   : > { %v1757_v58 = vld [vmem:[#allocation1 + $0x1] ss:$4 sm:$0xff]  ;;  %1704 = vst [vmem:[#allocation3 + $0xc] sm:$0x3] %v1702_v59 }
 0x2e6   : > { %1770 = vst.sshfl [vmem:[#allocation1] sm:$0xff pattern:$0x73625140] %v4637_v15  ;;  %v1710_v60 = vld [vmem:[#allocation1 + $0x23] ss:$4 sm:$0xff]  ;;  %v1761_v19 = vrot.slane %v1757_v58, 1 }
 0x2e7   : > { %1743 = vst.sshfl [vmem:[#allocation1 + $0x20] sm:$0xff pattern:$0x73625140] %v4653_v30  ;;  %v1714_v1 = vsel %vm1611_vm6, %v1710_v60, %v1711_v57  ;;  %v4258_v58 = vld [vmem:[%s4615_s14 + $0x228] sm:$0xff] }
 0x2e8   : > { %v1715_v2 = vsel %vm1613_vm7, %v1710_v60, %v1714_v1  ;;  %2978 = vmatpush.bf16.msrb.mxu0 %v4221_v5  ;;  %3017 = vmatpush.bf16.msrb.mxu3 %v4245_v9  ;;  %v4266_v59 = vld [vmem:[%s4615_s14 + $0x268] sm:$0xff]  ;;  %v4257_v1 = vld [vmem:[%s4615_s14 + $0x220] sm:$0xff]  ;;  %v4256_v9 = vld [vmem:[%s4615_s14 + $0x218] sm:$0xff] }
 0x2e9   : > { %v1716_v3 = vsel %vm1615_vm8, %v1710_v60, %v1715_v2  ;;  %v4273_v5 = vld [vmem:[%s4615_s14 + $0x2a0] sm:$0xff] }
 0x2ea   : > { %v1717_v7 = vsel %vm1617_vm9, %v1710_v60, %v1716_v3  ;;  %v4274_v60 = vld [vmem:[%s4615_s14 + $0x2a8] sm:$0xff]  ;;  %v4265_v3 = vld [vmem:[%s4615_s14 + $0x260] sm:$0xff] }
 0x2eb   : > { %1719 = vst [vmem:[#allocation3 + $0xe] sm:$0x3] %v1717_v7  ;;  %v4281_v7 = vld [vmem:[%s4615_s14 + $0x2e0] sm:$0xff] }
 0x2ed   : > { %v1772_v10 = vld [vmem:[#allocation1 + $0x2] ss:$4 sm:$0xff] }
 0x2ee   : > { %1785 = vst.sshfl [vmem:[#allocation1] sm:$0xff pattern:$0x73625140] %v4637_v15  ;;  %v1745_v11 = vld [vmem:[#allocation1 + $0x21] ss:$4 sm:$0xff] }
 0x2ef   : > { %1758 = vst.sshfl [vmem:[#allocation1 + $0x20] sm:$0xff pattern:$0x73625140] %v4653_v30  ;;  %v1748_v12 = vrot.slane %v1745_v11, 7 }
 0x2f1   : > { %v1749_v13 = vsel %vm1611_vm6, %v1748_v12, %v1742_v43 }
 0x2f2   : > { %v1750_v14 = vsel %vm1613_vm7, %v1748_v12, %v1749_v13  ;;  %v1831_v56 = vld [vmem:[#allocation3 + $0x8] sm:$0xff] }
 0x2f3   : > { %v1751_v16 = vsel %vm1615_vm8, %v1748_v12, %v1750_v14 }
 0x2f4   : > { %v1752_v17 = vsel %vm1617_vm9, %v1748_v12, %v1751_v16 }
 0x2f5   : > { %v1787_v18 = vld [vmem:[#allocation1 + $0x2] ss:$4 sm:$0xff]  ;;  %1754 = vst [vmem:[#allocation3 + $0x14] sm:$0x3] %v1752_v17 }
 0x2f6   : > { %1800 = vst.sshfl [vmem:[#allocation1] sm:$0xff pattern:$0x73625140] %v4637_v15  ;;  %v1760_v49 = vld [vmem:[#allocation1 + $0x21] ss:$4 sm:$0xff]  ;;  %v1791_v33 = vrot.slane %v1787_v18, 1 }
 0x2f7   : > { %1773 = vst.sshfl [vmem:[#allocation1 + $0x20] sm:$0xff pattern:$0x73625140] %v4653_v30  ;;  %v1764_v20 = vsel %vm1611_vm6, %v1760_v49, %v1761_v19 }
 0x2f8   : > { %v1765_v21 = vsel %vm1613_vm7, %v1760_v49, %v1764_v20 }
 0x2f9   : > { %v1766_v22 = vsel %vm1615_vm8, %v1760_v49, %v1765_v21  ;;  %v4264_v21 = vld [vmem:[%s4615_s14 + $0x258] sm:$0xff] }
 0x2fa   : > { %v1767_v23 = vsel %vm1617_vm9, %v1760_v49, %v1766_v22  ;;  %v4272_v22 = vld [vmem:[%s4615_s14 + $0x298] sm:$0xff] }
 0x2fb   : > { %1769 = vst [vmem:[#allocation3 + $0x16] sm:$0x3] %v1767_v23 }
 0x2fd   : > { %v1802_v24 = vld [vmem:[#allocation1 + $0x3] ss:$4 sm:$0xff] }
 0x2fe   : > { %v1775_v25 = vld [vmem:[#allocation1 + $0x22] ss:$4 sm:$0xff]  ;;  %1815 = vst.sshfl [vmem:[#allocation1] sm:$0xff pattern:$0x73625140] %v4637_v15 }
 0x2ff   : > { %1788 = vst.sshfl [vmem:[#allocation1 + $0x20] sm:$0xff pattern:$0x73625140] %v4653_v30  ;;  %v1778_v27 = vrot.slane %v1775_v25, 7  ;;  %v4255_v25 = vld [vmem:[%s4615_s14 + $0x210] sm:$0xff] }
 0x300   : > { %1838 = vst [vmem:[#allocation1] ss:$4 sm:$0xff] %v1830_v26  ;;  %v4263_v26 = vld [vmem:[%s4615_s14 + $0x250] sm:$0xff] }
 0x301   : > { %v1779_v28 = vsel %vm1611_vm6, %v1778_v27, %v1772_v10 }
 0x302   : > { %v1780_v29 = vsel %vm1613_vm7, %v1778_v27, %v1779_v28  ;;  %v1832_v44 = vld [vmem:[#allocation3 + $0x10] sm:$0xff]  ;;  %v4279_v28 = vld [vmem:[%s4615_s14 + $0x2d0] sm:$0xff] }
 0x303   : > { %v1781_v31 = vsel %vm1615_vm8, %v1778_v27, %v1780_v29  ;;  %v4254_v29 = vld [vmem:[%s4615_s14 + $0x208] sm:$0xff] }
 0x304   : > { %v1782_v32 = vsel %vm1617_vm9, %v1778_v27, %v1781_v31  ;;  %v4271_v27 = vld [vmem:[%s4615_s14 + $0x290] sm:$0xff]  ;;  %v4262_v31 = vld [vmem:[%s4615_s14 + $0x248] sm:$0xff] }
 0x305   : > { %1784 = vst [vmem:[#allocation3 + $0x18] sm:$0x3] %v1782_v32  ;;  %v1817_v63 = vld [vmem:[#allocation1 + $0x3] ss:$4 sm:$0xff] }
 0x306   : > { %v1790_v34 = vld [vmem:[#allocation1 + $0x22] ss:$4 sm:$0xff]  ;;  %v1821_v6 = vrot.slane %v1817_v63, 1 }
 0x307   : > { %1803 = vst.sshfl [vmem:[#allocation1 + $0x20] sm:$0xff pattern:$0x73625140] %v4653_v30  ;;  %v1841_v15 = vld.sshfl [vmem:[#allocation1] sm:$0xff pattern:$0x73625140]  ;;  %v1794_v37 = vsel %vm1611_vm6, %v1790_v34, %v1791_v33 }
 0x308   : > { %v1875_v38 = vpack.c.bf16 %v1841_v15, %v1841_v15  ;;  %v1842_v39 = vld.sshfl [vmem:[#allocation1 + $0x8] sm:$0xff pattern:$0x73625140]  ;;  %v1843_v40 = vld.sshfl [vmem:[#allocation1 + $0x10] sm:$0xff pattern:$0x73625140]  ;;  %v1795_v41 = vsel %vm1613_vm7, %v1790_v34, %v1794_v37 }
 0x309   : > { %v1876_v42 = vpack.c.bf16 %v1842_v39, %v1842_v39  ;;  %v1877_v43 = vpack.c.bf16 %v1843_v40, %v1843_v40  ;;  %v1844_v45 = vld.sshfl [vmem:[#allocation1 + $0x18] sm:$0xff pattern:$0x73625140]  ;;  %v1796_v47 = vsel %vm1615_vm8, %v1790_v34, %v1795_v41  ;;  %v4270_v32 = vld [vmem:[%s4615_s14 + $0x288] sm:$0xff]  ;;  %v4261_v15 = vld [vmem:[%s4615_s14 + $0x240] sm:$0xff] }
 0x30a   : > { %2927 = vmatmul.bf16.vlgmr.msra.gmra.mxu0 %v1875_v38  ;;  %1849 = vst [vmem:[#allocation1] ss:$4 sm:$0xff] %v1832_v44  ;;  %v1878_v48 = vpack.c.bf16 %v1844_v45, %v1844_v45  ;;  %v1797_v51 = vsel %vm1617_vm9, %v1790_v34, %v1796_v47  ;;  %v4278_v34 = vld [vmem:[%s4615_s14 + $0x2c8] sm:$0xff]  ;;  %v4277_v37 = vld [vmem:[%s4615_s14 + $0x2c0] sm:$0xff]  ;;  %v4292_v38 = vld [vmem:[%s4615_s14 + $0x338] sm:$0xff] }
 0x30b   : > { %2940 = vmatmul.bf16.vlgmr.msrb.gmra.mxu1 %v1876_v42  ;;  %2953 = vmatmul.bf16.vlgmr.msra.gmra.mxu2 %v1877_v43  ;;  %1799 = vst [vmem:[#allocation3 + $0x1a] sm:$0x3] %v1797_v51  ;;  %v4300_v39 = vld [vmem:[%s4615_s14 + $0x378] sm:$0xff]  ;;  %v4291_v47 = vld [vmem:[%s4615_s14 + $0x330] sm:$0xff] }
 0x30c   : > { %2966 = vmatmul.bf16.vlgmr.msra.gmra.mxu3 %v1878_v48  ;;  %3023 = vmatpush.bf16.msra.mxu0 %v4260_v35  ;;  %v4253_v35 = vld [vmem:[%s4615_s14 + $0x200] sm:$0xff]  ;;  %v4308_v40 = vld [vmem:[%s4615_s14 + $0x3b8] sm:$0xff]  ;;  %v4299_v51 = vld [vmem:[%s4615_s14 + $0x370] sm:$0xff] }
 0x30d   : > { %3036 = vmatpush.bf16.msrb.mxu1 %v4268_v36  ;;  %3049 = vmatpush.bf16.msra.mxu2 %v4276_v46  ;;  %v4269_v36 = vld [vmem:[%s4615_s14 + $0x280] sm:$0xff]  ;;  %v4316_v41 = vld [vmem:[%s4615_s14 + $0x3f8] sm:$0xff] }
 0x30e   : > { %3062 = vmatpush.bf16.msra.mxu3 %v4284_v50  ;;  %v1805_v55 = vld [vmem:[#allocation1 + $0x23] ss:$4 sm:$0xff] }
 0x30f   : > { %1818 = vst.sshfl [vmem:[#allocation1 + $0x20] sm:$0xff pattern:$0x73625140] %v4653_v30  ;;  %v1808_v57 = vrot.slane %v1805_v55, 7  ;;  %v4298_v55 = vld [vmem:[%s4615_s14 + $0x368] sm:$0xff]  ;;  %v4304_v63 = vld [vmem:[%s4615_s14 + $0x398] sm:$0xff] }
 0x310   : > { %3024 = vmatpush.bf16.msra.mxu0 %v4259_v52  ;;  %1840 = vst [vmem:[#allocation1 + $0x20] ss:$4 sm:$0xff] %v1831_v56  ;;  %v4307_v52 = vld [vmem:[%s4615_s14 + $0x3b0] sm:$0xff]  ;;  %v4306_v56 = vld [vmem:[%s4615_s14 + $0x3a8] sm:$0xff] }
 0x311   : > { %3037 = vmatpush.bf16.msrb.mxu1 %v4267_v54  ;;  %3050 = vmatpush.bf16.msra.mxu2 %v4275_v53  ;;  %v1809_v61 = vsel %vm1611_vm6, %v1808_v57, %v1802_v24  ;;  %v4280_v24 = vld [vmem:[%s4615_s14 + $0x2d8] sm:$0xff]  ;;  %v1851_v42 = vld.sshfl [vmem:[#allocation1] sm:$0xff pattern:$0x73625140]  ;;  %v4315_v53 = vld [vmem:[%s4615_s14 + $0x3f0] sm:$0xff] }
 0x312   : > { %3063 = vmatpush.bf16.msra.mxu3 %v4283_v4  ;;  %v1810_v30 = vsel %vm1613_vm7, %v1808_v57, %v1809_v61  ;;  %v1852_v43 = vld.sshfl [vmem:[#allocation1 + $0x8] sm:$0xff pattern:$0x73625140]  ;;  %v1853_v44 = vld.sshfl [vmem:[#allocation1 + $0x10] sm:$0xff pattern:$0x73625140]  ;;  %v1883_v46 = vpack.c.bf16 %v1851_v42, %v1851_v42 }
 0x313   : > { %v1811_v0 = vsel %vm1615_vm8, %v1808_v57, %v1810_v30  ;;  %v1854_v45 = vld.sshfl [vmem:[#allocation1 + $0x18] sm:$0xff pattern:$0x73625140]  ;;  %v1884_v48 = vpack.c.bf16 %v1852_v43, %v1852_v43  ;;  %v1885_v50 = vpack.c.bf16 %v1853_v44, %v1853_v44  ;;  %v4290_v4 = vld [vmem:[%s4615_s14 + $0x328] sm:$0xff]  ;;  %v4313_v61 = vld [vmem:[%s4615_s14 + $0x3e0] sm:$0xff] }
 0x314   : > { %3025 = vmatpush.bf16.msra.mxu0 %v4258_v58  ;;  %v1812_v2 = vsel %vm1617_vm9, %v1808_v57, %v1811_v0  ;;  %v1886_v54 = vpack.c.bf16 %v1854_v45, %v1854_v45  ;;  %v4314_v57 = vld [vmem:[%s4615_s14 + $0x3e8] sm:$0xff]  ;;  %v4289_v58 = vld [vmem:[%s4615_s14 + $0x320] sm:$0xff]  ;;  %v4296_v30 = vld [vmem:[%s4615_s14 + $0x358] sm:$0xff] }
 0x315   : > { %3038 = vmatpush.bf16.msrb.mxu1 %v4266_v59  ;;  %3051 = vmatpush.bf16.msra.mxu2 %v4274_v60  ;;  %1814 = vst [vmem:[#allocation3 + $0x1c] sm:$0x3] %v1812_v2  ;;  %v4297_v59 = vld [vmem:[%s4615_s14 + $0x360] sm:$0xff]  ;;  %v4312_v0 = vld [vmem:[%s4615_s14 + $0x3d8] sm:$0xff]  ;;  %v4295_v2 = vld [vmem:[%s4615_s14 + $0x350] sm:$0xff] }
 0x316   : > { %3064 = vmatpush.bf16.msra.mxu3 %v4282_v62  ;;  %v1820_v8 = vld [vmem:[#allocation1 + $0x23] ss:$4 sm:$0xff] }
 0x317   : > { %v1845_v10 = vld.sshfl [vmem:[#allocation1 + $0x20] sm:$0xff pattern:$0x73625140]  ;;  %v1846_v11 = vld.sshfl [vmem:[#allocation1 + $0x28] sm:$0xff pattern:$0x73625140]  ;;  %v1824_v12 = vsel %vm1611_vm6, %v1820_v8, %v1821_v6 }
 0x318   : > { %3026 = vmatpush.bf16.msra.mxu0 %v4257_v1  ;;  %v1879_v13 = vpack.c.bf16 %v1845_v10, %v1845_v10  ;;  %v1880_v14 = vpack.c.bf16 %v1846_v11, %v1846_v11  ;;  %v1847_v16 = vld.sshfl [vmem:[#allocation1 + $0x30] sm:$0xff pattern:$0x73625140]  ;;  %v1825_v17 = vsel %vm1613_vm7, %v1820_v8, %v1824_v12  ;;  %v1848_v18 = vld.sshfl [vmem:[#allocation1 + $0x38] sm:$0xff pattern:$0x73625140] }
 0x319   : > { %3039 = vmatpush.bf16.msrb.mxu1 %v4265_v3  ;;  %3052 = vmatpush.bf16.msra.mxu2 %v4273_v5  ;;  %v1881_v19 = vpack.c.bf16 %v1847_v16, %v1847_v16  ;;  %v1826_v49 = vsel %vm1615_vm8, %v1820_v8, %v1825_v17  ;;  %v1882_v20 = vpack.c.bf16 %v1848_v18, %v1848_v18  ;;  %v4305_v60 = vld [vmem:[%s4615_s14 + $0x3a0] sm:$0xff]  ;;  %v4288_v62 = vld [vmem:[%s4615_s14 + $0x318] sm:$0xff]  ;;  %v4287_v1 = vld [vmem:[%s4615_s14 + $0x310] sm:$0xff] }
 0x31a   : > { %3065 = vmatpush.bf16.msra.mxu3 %v4281_v7  ;;  %2979 = vmatmul.bf16.vlgmr.msrb.gmra.mxu0 %v1879_v13  ;;  %v1827_v23 = vsel %vm1617_vm9, %v1820_v8, %v1826_v49  ;;  %v4303_v3 = vld [vmem:[%s4615_s14 + $0x390] sm:$0xff]  ;;  %v4286_v6 = vld [vmem:[%s4615_s14 + $0x308] sm:$0xff]  ;;  %v4285_v10 = vld [vmem:[%s4615_s14 + $0x300] sm:$0xff] }
 0x31b   : > { %2992 = vmatmul.bf16.vlgmr.msra.gmra.mxu1 %v1880_v14  ;;  %3005 = vmatmul.bf16.vlgmr.msrb.gmra.mxu2 %v1881_v19  ;;  %1829 = vst [vmem:[#allocation3 + $0x1e] sm:$0x3] %v1827_v23  ;;  %v4311_v5 = vld [vmem:[%s4615_s14 + $0x3d0] sm:$0xff]  ;;  %v4294_v7 = vld [vmem:[%s4615_s14 + $0x348] sm:$0xff]  ;;  %v4293_v11 = vld [vmem:[%s4615_s14 + $0x340] sm:$0xff] }
 0x31c   : > { %3018 = vmatmul.bf16.vlgmr.msrb.gmra.mxu3 %v1882_v20  ;;  %3027 = vmatpush.bf16.msra.mxu0 %v4256_v9  ;;  %v4302_v8 = vld [vmem:[%s4615_s14 + $0x388] sm:$0xff]  ;;  %v4301_v12 = vld [vmem:[%s4615_s14 + $0x380] sm:$0xff]  ;;  %v4319_v45 = vld [vmem:[%s4879_s21 + $0x10] sm:$0xff] }
 0x31d   : > { %3040 = vmatpush.bf16.msrb.mxu1 %v4264_v21  ;;  %3053 = vmatpush.bf16.msra.mxu2 %v4272_v22  ;;  %v4310_v9 = vld [vmem:[%s4615_s14 + $0x3c8] sm:$0xff]  ;;  %v4309_v13 = vld [vmem:[%s4615_s14 + $0x3c0] sm:$0xff] }
 0x31e   : > { %3066 = vmatpush.bf16.msra.mxu3 %v4280_v24 }
 0x320   : > { %3028 = vmatpush.bf16.msra.mxu0 %v4255_v25 }
 0x321   : > { %3041 = vmatpush.bf16.msrb.mxu1 %v4263_v26  ;;  %3054 = vmatpush.bf16.msra.mxu2 %v4271_v27 }
 0x322   : > { %v1833_v33 = vld [vmem:[#allocation3 + $0x18] sm:$0xff]  ;;  %3067 = vmatpush.bf16.msra.mxu3 %v4279_v28 }
 0x323   : > { %1850 = vst [vmem:[#allocation1 + $0x20] ss:$4 sm:$0xff] %v1833_v33  ;;  %v4322_v33 = vld [vmem:[%s4879_s21 + $0x28] sm:$0xff] }
 0x324   : > { %3029 = vmatpush.bf16.msra.mxu0 %v4254_v29 }
 0x325   : > { %3042 = vmatpush.bf16.msrb.mxu1 %v4262_v31  ;;  %3055 = vmatpush.bf16.msra.mxu2 %v4270_v32 }
 0x326   : > { %3068 = vmatpush.bf16.msra.mxu3 %v4278_v34  ;;  %v4321_v34 = vld [vmem:[%s4879_s21 + $0x20] sm:$0xff] }
 0x328   : > { %3030 = vmatpush.bf16.msra.mxu0 %v4253_v35 }
 0x329   : > { %3043 = vmatpush.bf16.msrb.mxu1 %v4261_v15  ;;  %3056 = vmatpush.bf16.msra.mxu2 %v4269_v36 }
 0x32a   : > { %3069 = vmatpush.bf16.msra.mxu3 %v4277_v37  ;;  %v1855_v14 = vld.sshfl [vmem:[#allocation1 + $0x20] sm:$0xff pattern:$0x73625140]  ;;  %v1856_v16 = vld.sshfl [vmem:[#allocation1 + $0x28] sm:$0xff pattern:$0x73625140] }
 0x32b   : > { %3031 = vmatmul.bf16.vlgmr.msra.gmra.mxu0 %v1883_v46  ;;  %v1857_v17 = vld.sshfl [vmem:[#allocation1 + $0x30] sm:$0xff pattern:$0x73625140]  ;;  %v1858_v18 = vld.sshfl [vmem:[#allocation1 + $0x38] sm:$0xff pattern:$0x73625140]  ;;  %v1887_v19 = vpack.c.bf16 %v1855_v14, %v1855_v14  ;;  %v1888_v49 = vpack.c.bf16 %v1856_v16, %v1856_v16 }
 0x32c   : > { %3075 = vmatpush.bf16.msrb.mxu0 %v4292_v38  ;;  %3044 = vmatmul.bf16.vlgmr.msrb.gmra.mxu1 %v1884_v48  ;;  %v1889_v20 = vpack.c.bf16 %v1857_v17, %v1857_v17  ;;  %v1890_v21 = vpack.c.bf16 %v1858_v18, %v1858_v18  ;;  %v4342_v37 = vld [vmem:[%s610_s16] ss:$0 sm:$0xff]  ;;  %s622_s16 = scalar_lea.vmem %s4917_s13, %s3380_s27 }
 0x32d   : > { %3088 = vmatpush.bf16.msra.mxu1 %v4300_v39  ;;  %3101 = vmatpush.bf16.msrb.mxu2 %v4308_v40  ;;  %v4343_v16 = vld [vmem:[%s618_s19] ss:$0 sm:$0xff] }
 0x32e   : > { %3114 = vmatpush.bf16.msrb.mxu3 %v4316_v41  ;;  %3057 = vmatmul.bf16.vlgmr.msra.gmra.mxu2 %v1885_v50  ;;  %v4320_v41 = vld [vmem:[%s4879_s21 + $0x18] sm:$0xff]  ;;  %v4318_v50 = vld [vmem:[%s4879_s21 + $0x8] sm:$0xff] }
 0x32f   : > { %3070 = vmatmul.bf16.vlgmr.msra.gmra.mxu3 %v1886_v54 }
 0x330   : > { %3076 = vmatpush.bf16.msrb.mxu0 %v4291_v47 }
 0x331   : > { %3089 = vmatpush.bf16.msra.mxu1 %v4299_v51  ;;  %3102 = vmatpush.bf16.msrb.mxu2 %v4307_v52 }
 0x332   : > { %3115 = vmatpush.bf16.msrb.mxu3 %v4315_v53 }
 0x334   : > { %3077 = vmatpush.bf16.msrb.mxu0 %v4290_v4 }
 0x335   : > { %3090 = vmatpush.bf16.msra.mxu1 %v4298_v55  ;;  %3103 = vmatpush.bf16.msrb.mxu2 %v4306_v56  ;;  %v4317_v55 = vld [vmem:[%s4879_s21] sm:$0xff] }
 0x336   : > { %3116 = vmatpush.bf16.msrb.mxu3 %v4314_v57 }
 0x338   : > { %3078 = vmatpush.bf16.msrb.mxu0 %v4289_v58 }
 0x339   : > { %3091 = vmatpush.bf16.msra.mxu1 %v4297_v59  ;;  %3104 = vmatpush.bf16.msrb.mxu2 %v4305_v60 }
 0x33a   : > { %3117 = vmatpush.bf16.msrb.mxu3 %v4313_v61 }
 0x33c   : > { %3079 = vmatpush.bf16.msrb.mxu0 %v4288_v62 }
 0x33d   : > { %3092 = vmatpush.bf16.msra.mxu1 %v4296_v30  ;;  %3105 = vmatpush.bf16.msrb.mxu2 %v4304_v63 }
 0x33e   : > { %3118 = vmatpush.bf16.msrb.mxu3 %v4312_v0 }
 0x340   : > { %3080 = vmatpush.bf16.msrb.mxu0 %v4287_v1 }
 0x341   : > { %3093 = vmatpush.bf16.msra.mxu1 %v4295_v2  ;;  %3106 = vmatpush.bf16.msrb.mxu2 %v4303_v3 }
 0x342   : > { %3119 = vmatpush.bf16.msrb.mxu3 %v4311_v5 }
 0x344   : > { %3081 = vmatpush.bf16.msrb.mxu0 %v4286_v6 }
 0x345   : > { %3094 = vmatpush.bf16.msra.mxu1 %v4294_v7  ;;  %3107 = vmatpush.bf16.msrb.mxu2 %v4302_v8 }
 0x346   : > { %3120 = vmatpush.bf16.msrb.mxu3 %v4310_v9 }
 0x348   : > { %3082 = vmatpush.bf16.msrb.mxu0 %v4285_v10 }
 0x349   : > { %3095 = vmatpush.bf16.msra.mxu1 %v4293_v11  ;;  %3108 = vmatpush.bf16.msrb.mxu2 %v4301_v12 }
 0x34a   : > { %3121 = vmatpush.bf16.msrb.mxu3 %v4309_v13 }
 0x34b   : > { %3083 = vmatmul.bf16.vlgmr.msrb.gmra.mxu0 %v1887_v19 }
 0x34c   : > { %3096 = vmatmul.bf16.vlgmr.msra.gmra.mxu1 %v1888_v49  ;;  %3109 = vmatmul.bf16.vlgmr.msrb.gmra.mxu2 %v1889_v20 }
 0x34d   : > { %3122 = vmatmul.bf16.vlgmr.msrb.gmra.mxu3 %v1890_v21  ;;  %3187 = vmatpush.bf16.msra.mxu0 %v4322_v33 }
 0x351   : > { %3188 = vmatpush.bf16.msra.mxu0 %v4321_v34 }
 0x355   : > { %3189 = vmatpush.bf16.msra.mxu0 %v4320_v41 }
 0x359   : > { %3190 = vmatpush.bf16.msra.mxu0 %v4319_v45 }
 0x35d   : > { %3191 = vmatpush.bf16.msra.mxu0 %v4318_v50 }
 0x361   : > { %3192 = vmatpush.bf16.msra.mxu0 %v4317_v55 }
 0x387   : > { %v2928_v22 = vpop.f32.mrf.mxu0 }
 0x388   : > { %v2941_v23 = vpop.f32.mrf.mxu1  ;;  %v2929_v39 = vadd.f32 %v4342_v37, %v2928_v22 }
 0x38a   : > { %v2942_v43 = vadd.f32 %v2941_v23, %v2929_v39 }
 0x38e   : > { %v2954_v24 = vpop.f32.mrf.mxu2 }
 0x38f   : > { %v2967_v25 = vpop.f32.mrf.mxu3  ;;  %v2930_v26 = vpop.f32.mrf.mxu0  ;;  %v2955_v46 = vadd.f32 %v2954_v24, %v2942_v43 }
 0x390   : > { %v2943_v27 = vpop.f32.mrf.mxu1 }
 0x391   : > { %v2968_v48 = vadd.f32 %v2967_v25, %v2955_v46 }
 0x396   : > { %v2956_v28 = vpop.f32.mrf.mxu2 }
 0x397   : > { %v2969_v29 = vpop.f32.mrf.mxu3  ;;  %v2980_v31 = vpop.f32.mrf.mxu0 }
 0x398   : > { %v2993_v32 = vpop.f32.mrf.mxu1  ;;  %v2981_v51 = vadd.f32 %v2980_v31, %v2968_v48 }
 0x39a   : > { %v2994_v56 = vadd.f32 %v2993_v32, %v2981_v51 }
 0x39e   : > { %v3006_v35 = vpop.f32.mrf.mxu2 }
 0x39f   : > { %v3019_v15 = vpop.f32.mrf.mxu3  ;;  %v2982_v36 = vpop.f32.mrf.mxu0  ;;  %v3007_v57 = vadd.f32 %v3006_v35, %v2994_v56 }
 0x3a0   : > { %v2995_v38 = vpop.f32.mrf.mxu1 }
 0x3a1   : > { %v3020_v60 = vadd.f32 %v3019_v15, %v3007_v57 }
 0x3a6   : > { %v3008_v40 = vpop.f32.mrf.mxu2 }
 0x3a7   : > { %v3021_v42 = vpop.f32.mrf.mxu3 }
 0x3a8   : > { %v3032_v44 = vpop.f32.mrf.mxu0 }
 0x3a9   : > { %v3045_v47 = vpop.f32.mrf.mxu1  ;;  %v3033_v61 = vadd.f32 %v3032_v44, %v3020_v60 }
 0x3ab   : > { %v3046_v62 = vadd.f32 %v3045_v47, %v3033_v61 }
 0x3b0   : > { %v3034_v53 = vpop.f32.mrf.mxu0 }
 0x3b1   : > { %v3058_v52 = vpop.f32.mrf.mxu2  ;;  %v3047_v4 = vpop.f32.mrf.mxu1 }
 0x3b2   : > { %v3071_v54 = vpop.f32.mrf.mxu3  ;;  %v3059_v30 = vadd.f32 %v3058_v52, %v3046_v62 }
 0x3b4   : > { %v3072_v63 = vadd.f32 %v3071_v54, %v3059_v30 }
 0x3b9   : > { %v3060_v58 = vpop.f32.mrf.mxu2 }
 0x3ba   : > { %v3073_v59 = vpop.f32.mrf.mxu3 }
 0x3c8   : > { %v3084_v0 = vpop.f32.mrf.mxu0 }
 0x3c9   : > { %v3097_v1 = vpop.f32.mrf.mxu1  ;;  %v3085_v2 = vadd.f32 %v3084_v0, %v3072_v63 }
 0x3cb   : > { %v3098_v3 = vadd.f32 %v3097_v1, %v3085_v2 }
 0x3cf   : > { %v3110_v5 = vpop.f32.mrf.mxu2 }
 0x3d0   : > { %v3111_v6 = vadd.f32 %v3110_v5, %v3098_v3  ;;  %v3123_v7 = vpop.f32.mrf.mxu3  ;;  %v3086_v8 = vpop.f32.mrf.mxu0 }
 0x3d1   : > { %v3099_v9 = vpop.f32.mrf.mxu1 }
 0x3d2   : > { %v3124_v10 = vadd.f32 %v3123_v7, %v3111_v6 }
 0x3d4   : > { %v3127_v11 = vmax.f32 %v3124_v10, 0.0 }
 0x3d6   : > { %v3128_v12 = vpack.c.bf16 %v3127_v11, %v3127_v11 }
 0x3d7   : > { %v3112_v13 = vpop.f32.mrf.mxu2 }
 0x3d8   : > { %v3125_v14 = vpop.f32.mrf.mxu3  ;;  %4149 = vmatmul.msk.bf16.vlgmr.msra.gmra.mxu0 %vm3181_vm10, %v3128_v12 }
 0x455   : > { %v3194_v17 = vpop.f32.mrf.mxu0 }
 0x456   : > { %v3195_v18 = vadd.f32 %v4343_v16, %v3194_v17 }
 0x458   : > { %3199 = vst.msk [vmem:[%s622_s16] sm:$0x3] %vm3198_vm11, %v3195_v18 }
 0x45d   : > { %v3196_v19 = vpop.f32.mrf.mxu0 }
 0x45e PF: > { %s23_s25 = sadd.s32 1, %s4350_s25  }
 0x45f   : > { %p20_p4 = scmp.ge.s32.totalorder %s23_s25, 5  }
 0x461   :  { %22 = sbr.rel (!%p20_p4) target bundleno = 1 (0x1), region = 172 }

// kernel: generator_forward.3
= control target key start
LH: loop header
LB: loop body
LE: loop exit
PB: predicated region body
PF: predicated region fallthrough
CT: control target
= control target key end

     0   :  { %vm106_vm0 = vcmask 1040384   ;;  %vm107_vm1 = vcmask 1041408   ;;  %vm41_vm2 = vcmask 326656   ;;  %v6616_v1 = vmov 65535   ;;  %s9468_s1 = inlined_call_operand.vmem [shape: bf16[9,3,30], index: 1, kind: input, shape index: {}]   ;;  %s9469_s0 = inlined_call_operand.vmem [shape: f32[2,35,3], index: 0, kind: input, shape index: {}]   ;;  %s9470_s2 = inlined_call_operand.vmem [shape: f32[1,30], index: 2, kind: input, shape index: {}]   ;;  %s9471_s3 = inlined_call_operand.vmem [shape: bf16[7,30,40], index: 3, kind: input, shape index: {}]   ;;  %s9472_s4 = inlined_call_operand.vmem [shape: f32[1,40], index: 4, kind: input, shape index: {}]   ;;  %s9473_s5 = inlined_call_operand.vmem [shape: bf16[5,40,64], index: 5, kind: input, shape index: {}]   ;;  %s9474_s6 = inlined_call_operand.vmem [shape: f32[1,64], index: 6, kind: input, shape index: {}]   ;;  %s9475_s7 = inlined_call_operand.vmem [shape: bf16[2240,175], index: 7, kind: input, shape index: {}]   ;;  %s9476_s8 = inlined_call_operand.vmem [shape: f32[1,175], index: 8, kind: input, shape index: {}]   ;;  %s9477_s9 = inlined_call_operand.vmem [shape: bf16[175,1], index: 9, kind: input, shape index: {}]   ;;  %s9478_s10 = inlined_call_operand.<no memory space> [shape: f32[1,1], index: 10, kind: input, shape index: {}]   ;;  %s9479_s11 = inlined_call_operand.vmem [shape: f32[2,1], index: 11, kind: output, shape index: {}]  }
   0x1   :  { %v90_v0 = vld [vmem:[%s9468_s1] sm:$0x3]  ;;  %v108_v2 = vsel %vm106_vm0, 4294967295, %v6616_v1  ;;  %v4884_v3 = vld [vmem:[%s9468_s1 + $0x4] sm:$0x3]  ;;  %v6617_v7 = vmov 0.0  }
   0x2   :  { %v6686_v4 = vsel %vm107_vm1, %v108_v2, 0  ;;  %v4878_v5 = vld [vmem:[%s9468_s1 + $0x2] sm:$0x3]  ;;  %v4890_v6 = vld [vmem:[%s9468_s1 + $0x6] sm:$0x3]  ;;  %42 = vst.msk [vmem:[#allocation2] sm:$0xff] %vm41_vm2, %v6617_v7 }
   0x3   :  { %v111_v8 = vand.u32 %v6686_v4, %v90_v0  ;;  %v269_v9 = vand.u32 %v4884_v3, %v6686_v4  ;;  %v190_v10 = vand.u32 %v4878_v5, %v6686_v4  ;;  %v348_v11 = vand.u32 %v4890_v6, %v6686_v4  ;;  %v49_v12 = vld [vmem:[%s9469_s0] sm:$0xff]  ;;  %v50_v13 = vld [vmem:[%s9469_s0 + $0x8] sm:$0xff]  ;;  %43 = vst.msk [vmem:[#allocation2 + $0x38] sm:$0xff] %vm41_vm2, %v6617_v7  ;;  %v51_v14 = vld [vmem:[%s9469_s0 + $0x10] sm:$0xff] }
   0x4   :  { %vm59_vm3 = vcmask 23552   ;;  %44 = vst.msk [vmem:[#allocation2 + $0x2b] sm:$0xff] %vm41_vm2, %v6617_v7  ;;  %v52_v15 = vld [vmem:[%s9469_s0 + $0x18] sm:$0xff]  ;;  %v53_v16 = vld [vmem:[%s9469_s0 + $0x20] sm:$0x7]  ;;  %vm64_vm4 = vcmask 18432  }
   0x5   :  { %120 = vmatpush.bf16.msra.mxu0 %v111_v8  ;;  %278 = vmatpush.bf16.msra.mxu2 %v269_v9  ;;  %60 = vst.msk [vmem:[#allocation2 + $0x8] sm:$0xff] %vm59_vm3, %v49_v12  ;;  %v54_v17 = vld [vmem:[%s9469_s0 + $0x28] sm:$0xff]  ;;  %v55_v30 = vld [vmem:[%s9469_s0 + $0x30] sm:$0xff]  ;;  %v56_v31 = vld [vmem:[%s9469_s0 + $0x38] sm:$0xff]  ;;  %vm45_vm5 = vcmask 323584   ;;  %vm860_vm6 = vcmask 1046528  }
   0x6   :  { %199 = vmatpush.bf16.msra.mxu1 %v190_v10  ;;  %357 = vmatpush.bf16.msra.mxu3 %v348_v11  ;;  %61 = vst.msk [vmem:[#allocation2 + $0x10] sm:$0xff] %vm59_vm3, %v50_v13  ;;  %v4896_v44 = vld [vmem:[%s9468_s1 + $0x8] sm:$0x3]  ;;  %v57_v45 = vld [vmem:[%s9469_s0 + $0x40] sm:$0xff]  ;;  %v4908_v60 = vld [vmem:[%s9468_s1 + $0xc] sm:$0x3] }
   0x7   :  { %47 = vst.msk [vmem:[#allocation2 + $0x63] sm:$0xff] %vm41_vm2, %v6617_v7  ;;  %v58_v46 = vld [vmem:[%s9469_s0 + $0x48] sm:$0x7]  ;;  %v427_v47 = vand.u32 %v4896_v44, %v6686_v4  ;;  %v4914_v62 = vld [vmem:[%s9468_s1 + $0xe] sm:$0x3]  ;;  %v585_v63 = vand.u32 %v4908_v60, %v6686_v4  ;;  %vm799_vm7 = vcmask 244736  }
   0x8   :  { %62 = vst.msk [vmem:[#allocation2 + $0x18] sm:$0xff] %vm59_vm3, %v51_v14  ;;  %v4902_v61 = vld [vmem:[%s9468_s1 + $0xa] sm:$0x3]  ;;  %v664_v2 = vand.u32 %v4914_v62, %v6686_v4  ;;  %vm804_vm8 = vcmask 239616   ;;  %vm1541_vm9 = vcmask 1043456   ;;  %vm1480_vm10 = vcmask 321536  }
   0x9   :  { %63 = vst.msk [vmem:[#allocation2 + $0x20] sm:$0xff] %vm59_vm3, %v52_v15  ;;  %436 = vmatpush.bf16.msrb.mxu0 %v427_v47  ;;  %v506_v0 = vand.u32 %v4902_v61, %v6686_v4  ;;  %594 = vmatpush.bf16.msrb.mxu2 %v585_v63  ;;  %vm1998_vm11 = vcmask 1041409   ;;  %vm2000_vm12 = vcmask 1043459   ;;  %vm2002_vm13 = vcmask 1045509  }
   0xa   :  { %65 = vst.msk [vmem:[#allocation2 + $0x28] sm:$0x7] %vm64_vm4, %v53_v16  ;;  %673 = vmatpush.bf16.msrb.mxu3 %v664_v2  ;;  %vm2004_vm14 = vcmask 1047559   ;;  %vm2007_vm15 = vcmask 517120   ;;  %vm2019_vm0 = vcmask 1041920   ;;  %vm4264_vm1 = vcmask 523264  }
   0xb   :  { %66 = vst.msk [vmem:[#allocation2 + $0x40] sm:$0xff] %vm59_vm3, %v54_v17  ;;  %515 = vmatpush.bf16.msrb.mxu1 %v506_v0  ;;  %v6818_v2 = vld [vmem:[#allocation2 + $0x2b] sm:$0xff] }
   0xc   :  { %v75_v18 = vld [vmem:[#allocation2 + $0x4] sm:$0xff]  ;;  %67 = vst.msk [vmem:[#allocation2 + $0x48] sm:$0xff] %vm59_vm3, %v55_v30 }
   0xd   :  { %v236_v19 = vld [vmem:[#allocation2 + $0x6] sm:$0xff]  ;;  %v237_v22 = vld [vmem:[#allocation2 + $0xe] sm:$0xff]  ;;  %68 = vst.msk [vmem:[#allocation2 + $0x50] sm:$0xff] %vm59_vm3, %v56_v31 }
   0xe   :  { %v157_v20 = vld [vmem:[#allocation2 + $0x5] sm:$0xff]  ;;  %v158_v23 = vld [vmem:[#allocation2 + $0xd] sm:$0xff]  ;;  %v246_v25 = vpack.c.bf16 %v237_v22, %v236_v19  ;;  %69 = vst.msk [vmem:[#allocation2 + $0x58] sm:$0xff] %vm59_vm3, %v57_v45 }
   0xf   :  { %v6730_v21 = vld [vmem:[#allocation2 + $0xc] sm:$0xff]  ;;  %v167_v26 = vpack.c.bf16 %v158_v23, %v157_v20  ;;  %v6745_v32 = vld [vmem:[#allocation2 + $0x14] sm:$0xff]  ;;  %70 = vst.msk [vmem:[#allocation2 + $0x60] sm:$0x7] %vm64_vm4, %v58_v46  ;;  %vm4867_vm4 = vcmask 1024  }
  0x10   :  { %v85_v24 = vpack.c.bf16 %v6730_v21, %v75_v18  ;;  %v315_v27 = vld [vmem:[#allocation2 + $0x7] sm:$0xff]  ;;  %v316_v28 = vld [vmem:[#allocation2 + $0xf] sm:$0xff]  ;;  %4885 = vmatmul.msk.bf16.vlgmr.msra.gmra.mxu2 %vm59_vm3, %v246_v25  ;;  %v6747_v34 = vld [vmem:[#allocation2 + $0x1c] sm:$0xff]  ;;  %46 = vst.msk [vmem:[#allocation2 + $0x33] sm:$0x1f] %vm45_vm5, %v6617_v7 }
  0x11   :  { %v325_v29 = vpack.c.bf16 %v316_v28, %v315_v27  ;;  %4879 = vmatmul.msk.bf16.vlgmr.msra.gmra.mxu1 %vm59_vm3, %v167_v26  ;;  %v238_v33 = vld [vmem:[#allocation2 + $0x16] sm:$0xff]  ;;  %v239_v35 = vld [vmem:[#allocation2 + $0x1e] sm:$0xff]  ;;  %v86_v40 = vpack.c.bf16 %v6747_v34, %v6745_v32  ;;  %v240_v50 = vld [vmem:[#allocation2 + $0x26] sm:$0xff]  ;;  %48 = vst.msk [vmem:[#allocation2 + $0x6b] sm:$0x1f] %vm45_vm5, %v6617_v7 }
  0x12   :  { %4873 = vmatmul.msk.bf16.vlgmr.msra.gmra.mxu0 %vm59_vm3, %v85_v24  ;;  %v159_v36 = vld [vmem:[#allocation2 + $0x15] sm:$0xff]  ;;  %v160_v37 = vld [vmem:[#allocation2 + $0x1d] sm:$0xff]  ;;  %v247_v41 = vpack.c.bf16 %v239_v35, %v238_v33  ;;  %v161_v52 = vld [vmem:[#allocation2 + $0x25] sm:$0xff] }
  0x13   :  { %4891 = vmatmul.msk.bf16.vlgmr.msra.gmra.mxu3 %vm59_vm3, %v325_v29  ;;  %v317_v38 = vld [vmem:[#allocation2 + $0x17] sm:$0xff]  ;;  %v318_v39 = vld [vmem:[#allocation2 + $0x1f] sm:$0xff]  ;;  %v168_v42 = vpack.c.bf16 %v160_v37, %v159_v36  ;;  %v319_v54 = vld [vmem:[#allocation2 + $0x27] sm:$0xff] }
  0x14   :  { %v326_v43 = vpack.c.bf16 %v318_v39, %v317_v38  ;;  %v6767_v48 = vld [vmem:[#allocation2 + $0x24] sm:$0xff]  ;;  %v80_v49 = vld [vmem:[#allocation2 + $0x3c] sm:$0xff]  ;;  %v6788_v5 = vld [vmem:[#allocation2 + $0x4c] sm:$0xff] }
  0x15   :  { %v241_v51 = vld [vmem:[#allocation2 + $0x3e] sm:$0xff]  ;;  %v87_v56 = vpack.c.bf16 %v80_v49, %v6767_v48  ;;  %v242_v6 = vld [vmem:[#allocation2 + $0x46] sm:$0xff]  ;;  %v243_v8 = vld [vmem:[#allocation2 + $0x4e] sm:$0xff] }
  0x16   :  { %v162_v53 = vld [vmem:[#allocation2 + $0x3d] sm:$0xff]  ;;  %v248_v57 = vpack.c.bf16 %v241_v51, %v240_v50  ;;  %v163_v9 = vld [vmem:[#allocation2 + $0x45] sm:$0xff]  ;;  %v164_v10 = vld [vmem:[#allocation2 + $0x4d] sm:$0xff]  ;;  %v249_v14 = vpack.c.bf16 %v243_v8, %v242_v6 }
  0x17   :  { %v320_v55 = vld [vmem:[#allocation2 + $0x3f] sm:$0xff]  ;;  %v169_v58 = vpack.c.bf16 %v162_v53, %v161_v52  ;;  %v321_v11 = vld [vmem:[#allocation2 + $0x47] sm:$0xff]  ;;  %v322_v12 = vld [vmem:[#allocation2 + $0x4f] sm:$0xff]  ;;  %v170_v15 = vpack.c.bf16 %v164_v10, %v163_v9 }
  0x18   :  { %v327_v59 = vpack.c.bf16 %v320_v55, %v319_v54  ;;  %v6786_v3 = vld [vmem:[#allocation2 + $0x44] sm:$0xff]  ;;  %v328_v16 = vpack.c.bf16 %v322_v12, %v321_v11  ;;  %v6796_v17 = vld [vmem:[#allocation2 + $0x54] sm:$0xff]  ;;  %v6798_v18 = vld [vmem:[#allocation2 + $0x5c] sm:$0xff] }
  0x19   :  { %v88_v13 = vpack.c.bf16 %v6788_v5, %v6786_v3  ;;  %v244_v19 = vld [vmem:[#allocation2 + $0x56] sm:$0xff]  ;;  %v245_v20 = vld [vmem:[#allocation2 + $0x5e] sm:$0xff]  ;;  %v89_v26 = vpack.c.bf16 %v6798_v18, %v6796_v17  ;;  %v394_v30 = vld [vmem:[#allocation2 + $0x8] sm:$0xff] }
  0x1a   :  { %v165_v22 = vld [vmem:[#allocation2 + $0x55] sm:$0xff]  ;;  %v166_v23 = vld [vmem:[#allocation2 + $0x5d] sm:$0xff]  ;;  %v250_v27 = vpack.c.bf16 %v245_v20, %v244_v19  ;;  %v552_v33 = vld [vmem:[#allocation2 + $0xa] sm:$0xff] }
  0x1b   :  { %v323_v24 = vld [vmem:[#allocation2 + $0x57] sm:$0xff]  ;;  %v324_v25 = vld [vmem:[#allocation2 + $0x5f] sm:$0xff]  ;;  %v171_v28 = vpack.c.bf16 %v166_v23, %v165_v22  ;;  %v473_v36 = vld [vmem:[#allocation2 + $0x9] sm:$0xff] }
  0x1c   :  { %v329_v29 = vpack.c.bf16 %v324_v25, %v323_v24  ;;  %v395_v31 = vld [vmem:[#allocation2 + $0x10] sm:$0xff]  ;;  %v396_v44 = vld [vmem:[#allocation2 + $0x18] sm:$0xff]  ;;  %v397_v45 = vld [vmem:[#allocation2 + $0x20] sm:$0xff] }
  0x1d   :  { %v553_v35 = vld [vmem:[#allocation2 + $0x12] sm:$0xff]  ;;  %v554_v46 = vld [vmem:[#allocation2 + $0x1a] sm:$0xff]  ;;  %v555_v47 = vld [vmem:[#allocation2 + $0x22] sm:$0xff]  ;;  %v405_v53 = vpack.c.bf16 %v397_v45, %v396_v44 }
  0x1e   :  { %v474_v37 = vld [vmem:[#allocation2 + $0x11] sm:$0xff]  ;;  %v475_v49 = vld [vmem:[#allocation2 + $0x19] sm:$0xff]  ;;  %v476_v50 = vld [vmem:[#allocation2 + $0x21] sm:$0xff]  ;;  %v563_v54 = vpack.c.bf16 %v555_v47, %v554_v46 }
  0x1f   :  { %v631_v38 = vld [vmem:[#allocation2 + $0xb] sm:$0xff]  ;;  %v632_v39 = vld [vmem:[#allocation2 + $0x13] sm:$0xff]  ;;  %v633_v51 = vld [vmem:[#allocation2 + $0x1b] sm:$0xff]  ;;  %v484_v55 = vpack.c.bf16 %v476_v50, %v475_v49 }
  0x20   :  { %4886 = vmatmul.msk.bf16.gmra.mxu2 %vm59_vm3, %v247_v41  ;;  %v562_v41 = vpack.c.bf16 %v553_v35, %v552_v33  ;;  %v634_v52 = vld [vmem:[#allocation2 + $0x23] sm:$0xff]  ;;  %v480_v19 = vld [vmem:[#allocation2 + $0x51] sm:$0xff]  ;;  %v639_v45 = vld [vmem:[#allocation2 + $0x5b] sm:$0xff] }
  0x21   :  { %4880 = vmatmul.msk.bf16.gmra.mxu1 %vm59_vm3, %v168_v42  ;;  %v483_v42 = vpack.c.bf16 %v474_v37, %v473_v36  ;;  %v399_v60 = vld [vmem:[#allocation2 + $0x40] sm:$0xff]  ;;  %v556_v61 = vld [vmem:[#allocation2 + $0x2a] sm:$0xff]  ;;  %v638_v22 = vld [vmem:[#allocation2 + $0x53] sm:$0xff] }
  0x22   :  { %4874 = vmatmul.msk.bf16.gmra.mxu0 %vm59_vm3, %v86_v40  ;;  %v404_v40 = vpack.c.bf16 %v395_v31, %v394_v30  ;;  %v557_v62 = vld [vmem:[#allocation2 + $0x42] sm:$0xff]  ;;  %v637_v20 = vld [vmem:[#allocation2 + $0x4b] sm:$0xff] }
  0x23   :  { %4892 = vmatmul.msk.bf16.gmra.mxu3 %vm59_vm3, %v326_v43  ;;  %v641_v43 = vpack.c.bf16 %v632_v39, %v631_v38  ;;  %v477_v63 = vld [vmem:[#allocation2 + $0x29] sm:$0xff]  ;;  %v478_v0 = vld [vmem:[#allocation2 + $0x41] sm:$0xff]  ;;  %v564_v9 = vpack.c.bf16 %v557_v62, %v556_v61  ;;  %v402_v39 = vld [vmem:[#allocation2 + $0x58] sm:$0xff] }
  0x24   :  { %v636_v6 = vld [vmem:[#allocation2 + $0x43] sm:$0xff]  ;;  %v485_v10 = vpack.c.bf16 %v478_v0, %v477_v63 }
  0x25   :  { %v643_v11 = vpack.c.bf16 %v636_v6, %v6818_v2  ;;  %v400_v12 = vld [vmem:[#allocation2 + $0x48] sm:$0xff] }
  0x26   :  { %v482_v44 = vld [vmem:[#allocation2 + $0x61] sm:$0xff] }
  0x27   :  { %v6841_v46 = vld [vmem:[#allocation2 + $0x63] sm:$0xff] }
  0x30   :  { %4887 = vmatmul.msk.bf16.gmra.mxu2 %vm59_vm3, %v248_v57  ;;  %v4920_v57 = vld [vmem:[%s9468_s1 + $0x10] sm:$0x3] }
  0x31   :  { %4881 = vmatmul.msk.bf16.gmra.mxu1 %vm59_vm3, %v169_v58  ;;  %v743_v58 = vand.u32 %v4920_v57, %v6686_v4  ;;  %v6828_v4 = vld [vmem:[%s9470_s2] ss:$0 sm:$0xff] }
  0x32   :  { %4875 = vmatmul.msk.bf16.gmra.mxu0 %vm59_vm3, %v87_v56  ;;  %v642_v56 = vpack.c.bf16 %v634_v52, %v633_v51 }
  0x33   :  { %4893 = vmatmul.msk.bf16.gmra.mxu3 %vm59_vm3, %v327_v59  ;;  %752 = vmatpush.bf16.msra.mxu0 %v743_v58  ;;  %v398_v59 = vld [vmem:[#allocation2 + $0x28] sm:$0xff] }
  0x34   :  { %v406_v8 = vpack.c.bf16 %v399_v60, %v398_v59 }
  0x40   :  { %4888 = vmatmul.msk.bf16.gmra.mxu2 %vm59_vm3, %v249_v14  ;;  %v558_v14 = vld [vmem:[#allocation2 + $0x4a] sm:$0xff] }
  0x41   :  { %4882 = vmatmul.msk.bf16.gmra.mxu1 %vm59_vm3, %v170_v15  ;;  %v559_v15 = vld [vmem:[#allocation2 + $0x52] sm:$0xff] }
  0x42   :  { %4876 = vmatmul.msk.bf16.gmra.mxu0 %vm59_vm3, %v88_v13  ;;  %v401_v13 = vld [vmem:[#allocation2 + $0x50] sm:$0xff]  ;;  %v565_v24 = vpack.c.bf16 %v559_v15, %v558_v14 }
  0x43   :  { %4894 = vmatmul.msk.bf16.gmra.mxu3 %vm59_vm3, %v328_v16  ;;  %v479_v16 = vld [vmem:[#allocation2 + $0x49] sm:$0xff]  ;;  %v407_v23 = vpack.c.bf16 %v401_v13, %v400_v12 }
  0x50   :  { %4889 = vmatmul.msk.bf16.gmra.mxu2 %vm59_vm3, %v250_v27  ;;  %v644_v27 = vpack.c.bf16 %v638_v22, %v637_v20 }
  0x51   :  { %4883 = vmatmul.msk.bf16.gmra.mxu1 %vm59_vm3, %v171_v28 }
  0x52   :  { %4877 = vmatmul.msk.bf16.gmra.mxu0 %vm59_vm3, %v89_v26  ;;  %v486_v26 = vpack.c.bf16 %v480_v19, %v479_v16 }
  0x53   :  { %4895 = vmatmul.msk.bf16.gmra.mxu3 %vm59_vm3, %v329_v29 }
  0x60   :  { %4909 = vmatmul.msk.bf16.vlgmr.msrb.gmra.mxu2 %vm59_vm3, %v562_v41  ;;  %v560_v41 = vld [vmem:[#allocation2 + $0x5a] sm:$0xff] }
  0x61   :  { %4903 = vmatmul.msk.bf16.vlgmr.msrb.gmra.mxu1 %vm59_vm3, %v483_v42  ;;  %v561_v42 = vld [vmem:[#allocation2 + $0x62] sm:$0xff] }
  0x62   :  { %4897 = vmatmul.msk.bf16.vlgmr.msrb.gmra.mxu0 %vm59_vm3, %v404_v40  ;;  %v403_v40 = vld [vmem:[#allocation2 + $0x60] sm:$0xff]  ;;  %v566_v51 = vpack.c.bf16 %v561_v42, %v560_v41 }
  0x63   :  { %4915 = vmatmul.msk.bf16.vlgmr.msrb.gmra.mxu3 %vm59_vm3, %v641_v43  ;;  %v481_v43 = vld [vmem:[#allocation2 + $0x59] sm:$0xff]  ;;  %v408_v50 = vpack.c.bf16 %v403_v40, %v402_v39 }
  0x70   :  { %4910 = vmatmul.msk.bf16.gmra.mxu2 %vm59_vm3, %v563_v54  ;;  %v645_v54 = vpack.c.bf16 %v6841_v46, %v639_v45 }
  0x71   :  { %4904 = vmatmul.msk.bf16.gmra.mxu1 %vm59_vm3, %v484_v55 }
  0x72   :  { %4898 = vmatmul.msk.bf16.gmra.mxu0 %vm59_vm3, %v405_v53  ;;  %v487_v53 = vpack.c.bf16 %v482_v44, %v481_v43 }
  0x73   :  { %4916 = vmatmul.msk.bf16.gmra.mxu3 %vm59_vm3, %v642_v56 }
  0x80   :  { %4911 = vmatmul.msk.bf16.gmra.mxu2 %vm59_vm3, %v564_v9 }
  0x81   :  { %4905 = vmatmul.msk.bf16.gmra.mxu1 %vm59_vm3, %v485_v10 }
  0x82   :  { %4899 = vmatmul.msk.bf16.gmra.mxu0 %vm59_vm3, %v406_v8  ;;  %v720_v8 = vpack.c.bf16 %v6745_v32, %v6730_v21  ;;  %v721_v21 = vpack.c.bf16 %v6767_v48, %v6747_v34 }
  0x83   :  { %4917 = vmatmul.msk.bf16.gmra.mxu3 %vm59_vm3, %v643_v11 }
  0x8e   :  { %v201_v29 = vpop.f32.mrf.mxu1 }
  0x8f   :  { %v122_v25 = vpop.f32.mrf.mxu0 }
  0x90   :  { %v147_v28 = vadd.f32 %v6828_v4, %v122_v25  ;;  %4912 = vmatmul.msk.bf16.gmra.mxu2 %vm59_vm3, %v565_v24 }
  0x91   :  { %4906 = vmatmul.msk.bf16.gmra.mxu1 %vm59_vm3, %v486_v26 }
  0x92   :  { %v226_v30 = vadd.f32 %v201_v29, %v147_v28  ;;  %4900 = vmatmul.msk.bf16.gmra.mxu0 %vm59_vm3, %v407_v23 }
  0x93   :  { %4918 = vmatmul.msk.bf16.gmra.mxu3 %vm59_vm3, %v644_v27  ;;  %v280_v31 = vpop.f32.mrf.mxu2 }
  0x94   :  { %v305_v33 = vadd.f32 %v280_v31, %v226_v30 }
  0x96   :  { %v359_v35 = vpop.f32.mrf.mxu3  ;;  %v6839_v38 = vpop.f32.mrf.mxu1 }
  0x97   :  { %v6835_v36 = vpop.f32.mrf.mxu0  ;;  %v6837_v37 = vadd.f32 %v359_v35, %v305_v33  ;;  %v714_v33 = vld [vmem:[#allocation2 + $0x2c] sm:$0xff] }
  0x98   :  { %v722_v34 = vpack.c.bf16 %v6786_v3, %v714_v33 }
  0x9b   :  { %v6843_v47 = vpop.f32.mrf.mxu2 }
  0x9e   :  { %v6845_v49 = vpop.f32.mrf.mxu3  ;;  %v206_v56 = vpop.f32.mrf.mxu1 }
  0x9f   :  { %v127_v52 = vpop.f32.mrf.mxu0 }
  0xa0   :  { %v149_v55 = vadd.f32 %v6828_v4, %v127_v52  ;;  %4913 = vmatmul.msk.bf16.gmra.mxu2 %vm59_vm3, %v566_v51  ;;  %v723_v52 = vpack.c.bf16 %v6796_v17, %v6788_v5 }
  0xa1   :  { %4907 = vmatmul.msk.bf16.gmra.mxu1 %vm59_vm3, %v487_v53 }
  0xa2   :  { %v228_v57 = vadd.f32 %v206_v56, %v149_v55  ;;  %4901 = vmatmul.msk.bf16.gmra.mxu0 %vm59_vm3, %v408_v50  ;;  %v719_v55 = vld [vmem:[#allocation2 + $0x64] sm:$0xff] }
  0xa3   :  { %4919 = vmatmul.msk.bf16.gmra.mxu3 %vm59_vm3, %v645_v54  ;;  %v285_v58 = vpop.f32.mrf.mxu2  ;;  %v724_v56 = vpack.c.bf16 %v719_v55, %v6798_v18  ;;  %v6296_v18 = vld [vmem:[%s9471_s3 + $0x18] sm:$0x70]  ;;  %v6297_v55 = vld [vmem:[%s9471_s3 + $0x20] sm:$0xff] }
  0xa4   :  { %v307_v59 = vadd.f32 %v285_v58, %v228_v57 }
  0xa6   :  { %v364_v60 = vpop.f32.mrf.mxu3  ;;  %v6855_v63 = vpop.f32.mrf.mxu1 }
  0xa7   :  { %v6853_v61 = vpop.f32.mrf.mxu0  ;;  %v386_v62 = vadd.f32 %v364_v60, %v307_v59 }
  0xab   :  { %v6859_v0 = vpop.f32.mrf.mxu2 }
  0xae   :  { %v6861_v6 = vpop.f32.mrf.mxu3  ;;  %v211_v11 = vpop.f32.mrf.mxu1 }
  0xaf   :  { %v132_v9 = vpop.f32.mrf.mxu0 }
  0xb0   :  { %v151_v10 = vadd.f32 %v6828_v4, %v132_v9 }
  0xb2   :  { %v230_v12 = vadd.f32 %v211_v11, %v151_v10  ;;  %4921 = vmatmul.msk.bf16.vlgmr.msra.gmra.mxu0 %vm59_vm3, %v720_v8  ;;  %v4966_v10 = vld [vmem:[%s9471_s3 + $0x28] sm:$0xf]  ;;  %v6298_v11 = vld [vmem:[%s9471_s3 + $0x28] sm:$0x70] }
  0xb3   :  { %v290_v13 = vpop.f32.mrf.mxu2 }
  0xb4   :  { %v309_v14 = vadd.f32 %v290_v13, %v230_v12  ;;  %v4967_v12 = vor.u32 %v6298_v11, %v4966_v10 }
  0xb6   :  { %v369_v15 = vpop.f32.mrf.mxu3  ;;  %v6869_v19 = vpop.f32.mrf.mxu1 }
  0xb7   :  { %v6867_v16 = vpop.f32.mrf.mxu0  ;;  %v388_v7 = vadd.f32 %v369_v15, %v309_v14  ;;  %v1048_v14 = vsel %vm860_vm6, %v4967_v12, 0  ;;  %v4932_v15 = vld [vmem:[%s9471_s3 + $0x8] sm:$0xf] }
  0xb8   :  { %1056 = vmatpush.bf16.msra.mxu3 %v1048_v14 }
  0xbb   :  { %v6871_v20 = vpop.f32.mrf.mxu2 }
  0xbc   :  { %1057 = vmatpush.bf16.msra.mxu3 %v6297_v55 }
  0xbe   :  { %v6873_v22 = vpop.f32.mrf.mxu3  ;;  %v216_v24 = vpop.f32.mrf.mxu1 }
  0xbf   :  { %v137_v32 = vpop.f32.mrf.mxu0 }
  0xc0   :  { %v153_v23 = vadd.f32 %v6828_v4, %v137_v32 }
  0xc2   :  { %v232_v25 = vadd.f32 %v216_v24, %v153_v23  ;;  %4922 = vmatmul.msk.bf16.gmra.mxu0 %vm59_vm3, %v721_v21 }
  0xc3   :  { %v295_v26 = vpop.f32.mrf.mxu2 }
  0xc4   :  { %v311_v27 = vadd.f32 %v295_v26, %v232_v25 }
  0xc6   :  { %v374_v28 = vpop.f32.mrf.mxu3  ;;  %v6881_v31 = vpop.f32.mrf.mxu1 }
  0xc7   :  { %v6879_v29 = vpop.f32.mrf.mxu0  ;;  %v390_v30 = vadd.f32 %v374_v28, %v311_v27 }
  0xcb   :  { %v6883_v35 = vpop.f32.mrf.mxu2 }
  0xce   :  { %v6885_v39 = vpop.f32.mrf.mxu3  ;;  %v221_v41 = vpop.f32.mrf.mxu1 }
  0xcf   :  { %v142_v48 = vpop.f32.mrf.mxu0 }
  0xd0   :  { %v155_v40 = vadd.f32 %v6828_v4, %v142_v48  ;;  %v6300_v48 = vld [vmem:[%s9471_s3 + $0x38] sm:$0x70] }
  0xd2   :  { %v234_v42 = vadd.f32 %v221_v41, %v155_v40  ;;  %4923 = vmatmul.msk.bf16.gmra.mxu0 %vm59_vm3, %v722_v34  ;;  %v4983_v34 = vld [vmem:[%s9471_s3 + $0x38] sm:$0xf] }
  0xd3   :  { %v300_v43 = vpop.f32.mrf.mxu2  ;;  %v4984_v40 = vor.u32 %v6300_v48, %v4983_v34 }
  0xd4   :  { %v313_v44 = vadd.f32 %v300_v43, %v234_v42 }
  0xd6   :  { %v379_v45 = vpop.f32.mrf.mxu3  ;;  %v6908_v17 = vpop.f32.mrf.mxu1 }
  0xd7   :  { %v6890_v50 = vpop.f32.mrf.mxu0  ;;  %v392_v51 = vadd.f32 %v379_v45, %v313_v44  ;;  %v148_v44 = vadd.f32 %v6828_v4, %v6835_v36 }
  0xd9   :  { %v227_v36 = vadd.f32 %v6839_v38, %v148_v44  ;;  %v150_v38 = vadd.f32 %v6828_v4, %v6853_v61 }
  0xde   :  { %v6932_v21 = vpop.f32.mrf.mxu3  ;;  %v517_v26 = vpop.f32.mrf.mxu1 }
  0xdf   :  { %v438_v53 = vpop.f32.mrf.mxu0 }
  0xe0   :  { %v463_v54 = vadd.f32 %v438_v53, %v6837_v37  ;;  %v4949_v37 = vld [vmem:[%s9471_s3 + $0x18] sm:$0xf]  ;;  %v6295_v53 = vld [vmem:[%s9471_s3 + $0x10] sm:$0xff] }
  0xe1   :  { %v4950_v9 = vor.u32 %v6296_v18, %v4949_v37 }
  0xe2   :  { %4924 = vmatmul.msk.bf16.gmra.mxu0 %vm59_vm3, %v723_v52  ;;  %v6293_v52 = vld [vmem:[%s9471_s3] sm:$0xff]  ;;  %v542_v18 = vadd.f32 %v517_v26, %v463_v54  ;;  %v229_v54 = vadd.f32 %v6855_v63, %v150_v38 }
  0xe3   :  { %v955_v13 = vsel %vm860_vm6, %v4950_v9, 0 }
  0xe4   :  { %963 = vmatpush.bf16.msra.mxu2 %v955_v13 }
  0xe6   :  { %v675_v33 = vpop.f32.mrf.mxu3  ;;  %v519_v41 = vpop.f32.mrf.mxu1 }
  0xe7   :  { %v6896_v3 = vpop.f32.mrf.mxu0 }
  0xe8   :  { %964 = vmatpush.bf16.msra.mxu2 %v6295_v53 }
  0xef   :  { %v443_v57 = vpop.f32.mrf.mxu0 }
  0xf0   :  { %v6899_v58 = vadd.f32 %v443_v57, %v386_v62  ;;  %v6916_v62 = vpop.f32.mrf.mxu2  ;;  %v677_v57 = vpop.f32.mrf.mxu3 }
  0xf2   :  { %4925 = vmatmul.msk.bf16.gmra.mxu0 %vm59_vm3, %v724_v56  ;;  %v6299_v56 = vld [vmem:[%s9471_s3 + $0x30] sm:$0xff]  ;;  %vm4831_vm3 = vcmask 384000  }
  0xf7   :  { %v6902_v59 = vpop.f32.mrf.mxu0 }
  0xf8   :  { %v596_v27 = vpop.f32.mrf.mxu2  ;;  %v680_v13 = vpop.f32.mrf.mxu3 }
  0xf9   :  { %v621_v11 = vadd.f32 %v596_v27, %v542_v18 }
  0xfb   :  { %v700_v14 = vadd.f32 %v675_v33, %v621_v11 }
  0xff   :  { %v448_v60 = vpop.f32.mrf.mxu0 }
 0x100   :  { %v6904_v8 = vadd.f32 %v448_v60, %v388_v7  ;;  %v6294_v7 = vld [vmem:[%s9471_s3 + $0x8] sm:$0x70]  ;;  %v598_v42 = vpop.f32.mrf.mxu2  ;;  %v522_v60 = vpop.f32.mrf.mxu1 }
 0x101   :  { %v4933_v23 = vor.u32 %v6294_v7, %v4932_v15  ;;  %v682_v26 = vpop.f32.mrf.mxu3  ;;  %v544_v33 = vadd.f32 %v522_v60, %v6899_v58 }
 0x103   :  { %v862_v25 = vsel %vm860_vm6, %v4933_v23, 0 }
 0x104   :  { %870 = vmatpush.bf16.msra.mxu1 %v862_v25 }
 0x107   :  { %v6906_v5 = vpop.f32.mrf.mxu0 }
 0x108   :  { %871 = vmatpush.bf16.msra.mxu1 %v6293_v52  ;;  %v601_v9 = vpop.f32.mrf.mxu2  ;;  %v524_v23 = vpop.f32.mrf.mxu1 }
 0x109   :  { %v685_v55 = vpop.f32.mrf.mxu3 }
 0x10f   :  { %v453_v32 = vpop.f32.mrf.mxu0 }
 0x110   :  { %v6934_v24 = vadd.f32 %v453_v32, %v390_v30  ;;  %v1141_v30 = vsel %vm860_vm6, %v4984_v40, 0  ;;  %v603_v34 = vpop.f32.mrf.mxu2  ;;  %v623_v40 = vadd.f32 %v601_v9, %v544_v33 }
 0x111   :  { %1149 = vmatpush.bf16.msrb.mxu0 %v1141_v30  ;;  %v527_v30 = vpop.f32.mrf.mxu1 }
 0x115   :  { %1150 = vmatpush.bf16.msrb.mxu0 %v6299_v56 }
 0x117   :  { %v6937_v28 = vpop.f32.mrf.mxu0 }
 0x118   :  { %v606_v63 = vpop.f32.mrf.mxu2 }
 0x11f   :  { %v458_v43 = vpop.f32.mrf.mxu0 }
 0x120   :  { %v6948_v45 = vadd.f32 %v458_v43, %v392_v51  ;;  %v306_v51 = vadd.f32 %v6843_v47, %v227_v36  ;;  %v702_v43 = vadd.f32 %v680_v13, %v623_v40  ;;  %v529_v13 = vpop.f32.mrf.mxu1 }
 0x122   :  { %v385_v10 = vadd.f32 %v6845_v49, %v306_v51  ;;  %v308_v49 = vadd.f32 %v6859_v0, %v229_v54  ;;  %v152_v0 = vadd.f32 %v6828_v4, %v6867_v16  ;;  %v687_v54 = vpop.f32.mrf.mxu3 }
 0x124   :  { %v464_v12 = vadd.f32 %v6896_v3, %v385_v10  ;;  %v387_v61 = vadd.f32 %v6861_v6, %v308_v49 }
 0x126   :  { %v543_v7 = vadd.f32 %v519_v41, %v464_v12 }
 0x127   :  { %v6964_v37 = vpop.f32.mrf.mxu0 }
 0x128   :  { %v622_v47 = vadd.f32 %v598_v42, %v543_v7  ;;  %v466_v42 = vadd.f32 %v6902_v59, %v387_v61  ;;  %v231_v59 = vadd.f32 %v6869_v19, %v152_v0  ;;  %v608_v7 = vpop.f32.mrf.mxu2 }
 0x12a   :  { %v701_v3 = vadd.f32 %v677_v57, %v622_v47  ;;  %v545_v52 = vadd.f32 %v524_v23, %v466_v42 }
 0x12c   :  { %v624_v58 = vadd.f32 %v603_v34, %v545_v52 }
 0x12e   :  { %v703_v38 = vadd.f32 %v682_v26, %v624_v58 }
 0x12f   :  { %v754_v15 = vpop.f32.mrf.mxu0 }
 0x130   :  { %v779_v32 = vadd.f32 %v754_v15, %v700_v14  ;;  %v310_v15 = vadd.f32 %v6871_v20, %v231_v59  ;;  %v611_v61 = vpop.f32.mrf.mxu2 }
 0x132   :  { %v789_v25 = vmax.f32 %v779_v32, 0.0  ;;  %v546_v32 = vadd.f32 %v527_v30, %v6904_v8  ;;  %v389_v47 = vadd.f32 %v6873_v22, %v310_v15 }
 0x134   :  { %800 = vst.msk [vmem:[#allocation2 + $0x8] sm:$0xff] %vm799_vm7, %v789_v25  ;;  %v625_v25 = vadd.f32 %v606_v63, %v546_v32  ;;  %v468_v20 = vadd.f32 %v6906_v5, %v389_v47  ;;  %v156_v32 = vadd.f32 %v6828_v4, %v6890_v50 }
 0x136   :  { %v704_v49 = vadd.f32 %v685_v55, %v625_v25  ;;  %v547_v33 = vadd.f32 %v529_v13, %v468_v20 }
 0x137   :  { %v756_v27 = vpop.f32.mrf.mxu0 }
 0x138   :  { %v780_v48 = vadd.f32 %v756_v27, %v701_v3  ;;  %v532_v3 = vpop.f32.mrf.mxu1  ;;  %v154_v27 = vadd.f32 %v6828_v4, %v6879_v29  ;;  %v626_v8 = vadd.f32 %v608_v7, %v547_v33  ;;  %v690_v29 = vpop.f32.mrf.mxu3  ;;  %v235_v4 = vadd.f32 %v6908_v17, %v156_v32 }
 0x13a   :  { %v790_v41 = vmax.f32 %v780_v48, 0.0 }
 0x13b   :  { %v815_v57 = vld [vmem:[#allocation2 + $0x5] sm:$0xff] }
 0x13c   :  { %801 = vst.msk [vmem:[#allocation2 + $0x10] sm:$0xff] %vm799_vm7, %v790_v41  ;;  %v908_v6 = vld [vmem:[#allocation2 + $0x6] sm:$0xff] }
 0x13d   :  { %v1001_v36 = vld [vmem:[#allocation2 + $0x7] sm:$0xff] }
 0x13e   :  { %v1094_v12 = vld [vmem:[#allocation2 + $0x8] sm:$0xff] }
 0x13f   :  { %v759_v44 = vpop.f32.mrf.mxu0 }
 0x140   :  { %v781_v53 = vadd.f32 %v759_v44, %v702_v43  ;;  %v233_v43 = vadd.f32 %v6881_v31, %v154_v27  ;;  %v692_v15 = vpop.f32.mrf.mxu3 }
 0x142   :  { %v791_v56 = vmax.f32 %v781_v53, 0.0 }
 0x143   :  { %v816_v51 = vld [vmem:[#allocation2 + $0xd] sm:$0xff] }
 0x144   :  { %v909_v60 = vld [vmem:[#allocation2 + $0xe] sm:$0xff]  ;;  %v825_v9 = vpack.c.bf16 %v816_v51, %v815_v57  ;;  %802 = vst.msk [vmem:[#allocation2 + $0x18] sm:$0xff] %vm799_vm7, %v791_v56  ;;  %v312_v56 = vadd.f32 %v6883_v35, %v233_v43  ;;  %v705_v57 = vadd.f32 %v687_v54, %v626_v8  ;;  %v534_v51 = vpop.f32.mrf.mxu1  ;;  %v6301_v43 = vld [vmem:[%s9471_s3 + $0x40] sm:$0xff] }
 0x145   :  { %v1002_v18 = vld [vmem:[#allocation2 + $0xf] sm:$0xff]  ;;  %v918_v10 = vpack.c.bf16 %v909_v60, %v908_v6  ;;  %v548_v6 = vadd.f32 %v532_v3, %v6934_v24 }
 0x146   :  { %v1011_v11 = vpack.c.bf16 %v1002_v18, %v1001_v36  ;;  %v1095_v16 = vld [vmem:[#allocation2 + $0x10] sm:$0xff]  ;;  %4934 = vmatmul.msk.bf16.vlgmr.msra.gmra.mxu1 %vm799_vm7, %v825_v9  ;;  %v391_v60 = vadd.f32 %v6885_v39, %v312_v56  ;;  %v613_v9 = vpop.f32.mrf.mxu2  ;;  %v5034_v39 = vld [vmem:[%s9471_s3 + $0x68] sm:$0xf] }
 0x147   :  { %v1104_v14 = vpack.c.bf16 %v1095_v16, %v1094_v12  ;;  %4951 = vmatmul.msk.bf16.vlgmr.msra.gmra.mxu2 %vm799_vm7, %v918_v10  ;;  %v761_v19 = vpop.f32.mrf.mxu0  ;;  %v627_v18 = vadd.f32 %v611_v61, %v548_v6  ;;  %v5017_v10 = vld [vmem:[%s9471_s3 + $0x58] sm:$0xf]  ;;  %v6306_v12 = vld [vmem:[%s9471_s3 + $0x68] sm:$0x70] }
 0x148   :  { %4968 = vmatmul.msk.bf16.vlgmr.msra.gmra.mxu3 %vm799_vm7, %v1011_v11  ;;  %v782_v23 = vadd.f32 %v761_v19, %v703_v38  ;;  %v470_v35 = vadd.f32 %v6937_v28, %v391_v60  ;;  %v6304_v11 = vld [vmem:[%s9471_s3 + $0x58] sm:$0x70]  ;;  %v5000_v28 = vld [vmem:[%s9471_s3 + $0x48] sm:$0xf]  ;;  %v5035_v13 = vor.u32 %v6306_v12, %v5034_v39 }
 0x149   :  { %4985 = vmatmul.msk.bf16.vlgmr.msrb.gmra.mxu0 %vm799_vm7, %v1104_v14  ;;  %v5018_v24 = vor.u32 %v6304_v11, %v5017_v10  ;;  %v706_v16 = vadd.f32 %v690_v29, %v627_v18  ;;  %v6302_v14 = vld [vmem:[%s9471_s3 + $0x48] sm:$0x70] }
 0x14a   :  { %v792_v34 = vmax.f32 %v782_v23, 0.0  ;;  %v5001_v19 = vor.u32 %v6302_v14, %v5000_v28  ;;  %v549_v23 = vadd.f32 %v534_v51, %v470_v35  ;;  %v1420_v25 = vsel %vm860_vm6, %v5035_v13, 0 }
 0x14b   :  { %v817_v22 = vld [vmem:[#allocation2 + $0x15] sm:$0xff]  ;;  %v1327_v7 = vsel %vm860_vm6, %v5018_v24, 0  ;;  %1428 = vmatpush.bf16.msrb.mxu3 %v1420_v25 }
 0x14c   :  { %803 = vst.msk [vmem:[#allocation2 + $0x20] sm:$0xff] %vm799_vm7, %v792_v34  ;;  %v910_v41 = vld [vmem:[#allocation2 + $0x16] sm:$0xff]  ;;  %1335 = vmatpush.bf16.msrb.mxu2 %v1327_v7  ;;  %v1234_v34 = vsel %vm860_vm6, %v5001_v19, 0  ;;  %v628_v54 = vadd.f32 %v613_v9, %v549_v23  ;;  %v537_v27 = vpop.f32.mrf.mxu1 }
 0x14d   :  { %v1003_v30 = vld [vmem:[#allocation2 + $0x17] sm:$0xff]  ;;  %1242 = vmatpush.bf16.msrb.mxu1 %v1234_v34 }
 0x14e   :  { %v1096_v53 = vld [vmem:[#allocation2 + $0x18] sm:$0xff] }
 0x14f   :  { %v764_v26 = vpop.f32.mrf.mxu0 }
 0x150   :  { %v783_v48 = vadd.f32 %v764_v26, %v704_v49 }
 0x151   :  { %1243 = vmatpush.bf16.msrb.mxu1 %v6301_v43 }
 0x152   :  { %v793_v40 = vmax.f32 %v783_v48, 0.0 }
 0x153   :  { %v818_v42 = vld [vmem:[#allocation2 + $0x1d] sm:$0xff] }
 0x154   :  { %v911_v63 = vld [vmem:[#allocation2 + $0x1e] sm:$0xff]  ;;  %v826_v44 = vpack.c.bf16 %v818_v42, %v817_v22  ;;  %805 = vst.msk [vmem:[#allocation2 + $0x28] sm:$0x7] %vm804_vm8, %v793_v40 }
 0x155   :  { %v1004_v5 = vld [vmem:[#allocation2 + $0x1f] sm:$0xff]  ;;  %v919_v0 = vpack.c.bf16 %v911_v63, %v910_v41  ;;  %v314_v63 = vadd.f32 %v6916_v62, %v235_v4  ;;  %v1187_v4 = vld [vmem:[#allocation2 + $0x9] sm:$0xff] }
 0x156   :  { %v1012_v52 = vpack.c.bf16 %v1004_v5, %v1003_v30  ;;  %v1097_v55 = vld [vmem:[#allocation2 + $0x20] sm:$0xff]  ;;  %4935 = vmatmul.msk.bf16.gmra.mxu1 %vm799_vm7, %v826_v44  ;;  %v616_v30 = vpop.f32.mrf.mxu2  ;;  %v707_v5 = vadd.f32 %v692_v15, %v628_v54  ;;  %v6303_v44 = vld [vmem:[%s9471_s3 + $0x50] sm:$0xff]  ;;  %v6305_v62 = vld [vmem:[%s9471_s3 + $0x60] sm:$0xff] }
 0x157   :  { %v1105_v58 = vpack.c.bf16 %v1097_v55, %v1096_v53  ;;  %4952 = vmatmul.msk.bf16.gmra.mxu2 %vm799_vm7, %v919_v0  ;;  %v766_v31 = vpop.f32.mrf.mxu0  ;;  %v550_v0 = vadd.f32 %v537_v27, %v6948_v45  ;;  %v695_v53 = vpop.f32.mrf.mxu3  ;;  %v393_v55 = vadd.f32 %v6932_v21, %v314_v63  ;;  %1429 = vmatpush.bf16.msrb.mxu3 %v6305_v62  ;;  %v1375_v62 = vld [vmem:[#allocation2 + $0x1b] sm:$0xff] }
 0x158   :  { %4969 = vmatmul.msk.bf16.gmra.mxu3 %vm799_vm7, %v1012_v52  ;;  %v784_v36 = vadd.f32 %v766_v31, %v705_v57  ;;  %1336 = vmatpush.bf16.msrb.mxu2 %v6303_v44  ;;  %v539_v57 = vpop.f32.mrf.mxu1 }
 0x159   :  { %4986 = vmatmul.msk.bf16.gmra.mxu0 %vm799_vm7, %v1105_v58  ;;  %v629_v29 = vadd.f32 %v616_v30, %v550_v0  ;;  %v472_v56 = vadd.f32 %v6964_v37, %v393_v55 }
 0x15a   :  { %v794_v59 = vmax.f32 %v784_v36, 0.0 }
 0x15b   :  { %v819_v49 = vld [vmem:[#allocation2 + $0x25] sm:$0xff]  ;;  %v708_v31 = vadd.f32 %v695_v53, %v629_v29  ;;  %v551_v51 = vadd.f32 %v539_v57, %v472_v56 }
 0x15c   :  { %806 = vst.msk [vmem:[#allocation2 + $0x40] sm:$0xff] %vm799_vm7, %v794_v59  ;;  %v912_v3 = vld [vmem:[#allocation2 + $0x26] sm:$0xff] }
 0x15d   :  { %v1005_v26 = vld [vmem:[#allocation2 + $0x27] sm:$0xff] }
 0x15e   :  { %v1098_v22 = vld [vmem:[#allocation2 + $0x28] sm:$0xff]  ;;  %v618_v6 = vpop.f32.mrf.mxu2 }
 0x15f   :  { %v769_v38 = vpop.f32.mrf.mxu0  ;;  %v630_v45 = vadd.f32 %v618_v6, %v551_v51  ;;  %v697_v10 = vpop.f32.mrf.mxu3  ;;  %v1190_v30 = vld [vmem:[#allocation2 + $0x21] sm:$0xff]  ;;  %v1191_v29 = vld [vmem:[#allocation2 + $0x29] sm:$0xff] }
 0x160   :  { %v785_v47 = vadd.f32 %v769_v38, %v706_v16  ;;  %v1376_v63 = vld [vmem:[#allocation2 + $0x23] sm:$0xff] }
 0x161   :  { %v709_v14 = vadd.f32 %v697_v10, %v630_v45  ;;  %v1384_v0 = vpack.c.bf16 %v1376_v63, %v1375_v62 }
 0x162   :  { %v795_v20 = vmax.f32 %v785_v47, 0.0 }
 0x163   :  { %v820_v33 = vld [vmem:[#allocation2 + $0x3d] sm:$0xff] }
 0x164   :  { %v913_v48 = vld [vmem:[#allocation2 + $0x3e] sm:$0xff]  ;;  %807 = vst.msk [vmem:[#allocation2 + $0x48] sm:$0xff] %vm799_vm7, %v795_v20  ;;  %v827_v50 = vpack.c.bf16 %v820_v33, %v819_v49  ;;  %v1188_v33 = vld [vmem:[#allocation2 + $0x11] sm:$0xff] }
 0x165   :  { %v1006_v61 = vld [vmem:[#allocation2 + $0x3f] sm:$0xff]  ;;  %v920_v8 = vpack.c.bf16 %v913_v48, %v912_v3  ;;  %v1281_v48 = vld [vmem:[#allocation2 + $0x12] sm:$0xff] }
 0x166   :  { %v1013_v40 = vpack.c.bf16 %v1006_v61, %v1005_v26  ;;  %v1099_v41 = vld [vmem:[#allocation2 + $0x40] sm:$0xff]  ;;  %4936 = vmatmul.msk.bf16.gmra.mxu1 %vm799_vm7, %v827_v50  ;;  %v1374_v61 = vld [vmem:[#allocation2 + $0x13] sm:$0xff]  ;;  %v1280_v50 = vld [vmem:[#allocation2 + $0xa] sm:$0xff] }
 0x167   :  { %v1106_v42 = vpack.c.bf16 %v1099_v41, %v1098_v22  ;;  %4953 = vmatmul.msk.bf16.gmra.mxu2 %vm799_vm7, %v920_v8  ;;  %v771_v17 = vpop.f32.mrf.mxu0  ;;  %v1197_v8 = vpack.c.bf16 %v1188_v33, %v1187_v4  ;;  %v1373_v22 = vld [vmem:[#allocation2 + $0xb] sm:$0xff] }
 0x168   :  { %4970 = vmatmul.msk.bf16.gmra.mxu3 %vm799_vm7, %v1013_v40  ;;  %v786_v52 = vadd.f32 %v771_v17, %v707_v5  ;;  %v1290_v40 = vpack.c.bf16 %v1281_v48, %v1280_v50  ;;  %v1383_v41 = vpack.c.bf16 %v1374_v61, %v1373_v22  ;;  %v1189_v5 = vld [vmem:[#allocation2 + $0x19] sm:$0xff] }
 0x169   :  { %4987 = vmatmul.msk.bf16.gmra.mxu0 %vm799_vm7, %v1106_v42  ;;  %v1283_v42 = vld [vmem:[#allocation2 + $0x22] sm:$0xff]  ;;  %v1282_v17 = vld [vmem:[#allocation2 + $0x1a] sm:$0xff]  ;;  %v1198_v43 = vpack.c.bf16 %v1190_v30, %v1189_v5 }
 0x16a   :  { %v796_v58 = vmax.f32 %v786_v52, 0.0  ;;  %v1291_v44 = vpack.c.bf16 %v1283_v42, %v1282_v17  ;;  %v1510_v30 = vld [vmem:[%s9473_s5 + $0x10] sm:$0xf] }
 0x16b   :  { %v821_v59 = vld [vmem:[#allocation2 + $0x45] sm:$0xff]  ;;  %v1520_v42 = vunpack.c.l.b16 %v1510_v30 }
 0x16c   :  { %808 = vst.msk [vmem:[#allocation2 + $0x50] sm:$0xff] %vm799_vm7, %v796_v58  ;;  %v914_v9 = vld [vmem:[#allocation2 + $0x46] sm:$0xff] }
 0x16d   :  { %v1007_v35 = vld [vmem:[#allocation2 + $0x47] sm:$0xff]  ;;  %v1523_v63 = vpack.c.b16 %v1520_v42, %v1520_v42 }
 0x16e   :  { %v1100_v28 = vld [vmem:[#allocation2 + $0x48] sm:$0xff] }
 0x16f   :  { %v774_v36 = vpop.f32.mrf.mxu0  ;;  %v1192_v52 = vld [vmem:[#allocation2 + $0x41] sm:$0xff]  ;;  %v1284_v58 = vld [vmem:[#allocation2 + $0x2a] sm:$0xff] }
 0x170   :  { %v787_v60 = vadd.f32 %v774_v36, %v708_v31  ;;  %v1285_v53 = vld [vmem:[#allocation2 + $0x42] sm:$0xff]  ;;  %v1199_v56 = vpack.c.bf16 %v1192_v52, %v1191_v29 }
 0x171   :  { %v1378_v55 = vld [vmem:[#allocation2 + $0x43] sm:$0xff]  ;;  %v1292_v57 = vpack.c.bf16 %v1285_v53, %v1284_v58 }
 0x172   :  { %v797_v18 = vmax.f32 %v787_v60, 0.0  ;;  %v1385_v31 = vpack.c.bf16 %v1378_v55, %v6818_v2 }
 0x173   :  { %v822_v21 = vld [vmem:[#allocation2 + $0x4d] sm:$0xff] }
 0x174   :  { %v915_v11 = vld [vmem:[#allocation2 + $0x4e] sm:$0xff]  ;;  %809 = vst.msk [vmem:[#allocation2 + $0x58] sm:$0xff] %vm799_vm7, %v797_v18  ;;  %v828_v37 = vpack.c.bf16 %v822_v21, %v821_v59  ;;  %v7069_v59 = vld [vmem:[%s9472_s4] ss:$0 sm:$0xff] }
 0x175   :  { %v1008_v24 = vld [vmem:[#allocation2 + $0x4f] sm:$0xff]  ;;  %v921_v39 = vpack.c.bf16 %v915_v11, %v914_v9 }
 0x176   :  { %v1014_v12 = vpack.c.bf16 %v1008_v24, %v1007_v35  ;;  %v1101_v16 = vld [vmem:[#allocation2 + $0x50] sm:$0xff]  ;;  %4937 = vmatmul.msk.bf16.gmra.mxu1 %vm799_vm7, %v828_v37 }
 0x177   :  { %v1107_v13 = vpack.c.bf16 %v1101_v16, %v1100_v28  ;;  %4954 = vmatmul.msk.bf16.gmra.mxu2 %vm799_vm7, %v921_v39  ;;  %v776_v15 = vpop.f32.mrf.mxu0  ;;  %v1193_v45 = vld [vmem:[#allocation2 + $0x49] sm:$0xff] }
 0x178   :  { %4971 = vmatmul.msk.bf16.gmra.mxu3 %vm799_vm7, %v1014_v12  ;;  %v788_v38 = vadd.f32 %v776_v15, %v709_v14  ;;  %v1286_v18 = vld [vmem:[#allocation2 + $0x4a] sm:$0xff] }
 0x179   :  { %4988 = vmatmul.msk.bf16.gmra.mxu0 %vm799_vm7, %v1107_v13  ;;  %v1379_v2 = vld [vmem:[#allocation2 + $0x4b] sm:$0xff] }
 0x17a   :  { %v798_v7 = vmax.f32 %v788_v38, 0.0 }
 0x17b   :  { %v823_v19 = vld [vmem:[#allocation2 + $0x55] sm:$0xff] }
 0x17c   :  { %810 = vst.msk [vmem:[#allocation2 + $0x60] sm:$0x7] %vm804_vm8, %v798_v7  ;;  %v916_v32 = vld [vmem:[#allocation2 + $0x56] sm:$0xff] }
 0x17d   :  { %v1009_v23 = vld [vmem:[#allocation2 + $0x57] sm:$0xff] }
 0x17e   :  { %v1102_v3 = vld [vmem:[#allocation2 + $0x58] sm:$0xff] }
 0x17f   :  { %v1194_v6 = vld [vmem:[#allocation2 + $0x51] sm:$0xff] }
 0x180   :  { %v1287_v36 = vld [vmem:[#allocation2 + $0x52] sm:$0xff]  ;;  %v1200_v9 = vpack.c.bf16 %v1194_v6, %v1193_v45 }
 0x181   :  { %v1380_v51 = vld [vmem:[#allocation2 + $0x53] sm:$0xff]  ;;  %v1293_v35 = vpack.c.bf16 %v1287_v36, %v1286_v18 }
 0x182   :  { %v1386_v10 = vpack.c.bf16 %v1380_v51, %v1379_v2 }
 0x183   :  { %v824_v47 = vld [vmem:[#allocation2 + $0x5d] sm:$0xff] }
 0x184   :  { %v917_v25 = vld [vmem:[#allocation2 + $0x5e] sm:$0xff]  ;;  %v829_v54 = vpack.c.bf16 %v824_v47, %v823_v19 }
 0x185   :  { %v1010_v34 = vld [vmem:[#allocation2 + $0x5f] sm:$0xff]  ;;  %v922_v20 = vpack.c.bf16 %v917_v25, %v916_v32 }
 0x186   :  { %v1015_v49 = vpack.c.bf16 %v1010_v34, %v1009_v23  ;;  %v1103_v26 = vld [vmem:[#allocation2 + $0x60] sm:$0xff]  ;;  %4938 = vmatmul.msk.bf16.gmra.mxu1 %vm799_vm7, %v829_v54 }
 0x187   :  { %v1108_v27 = vpack.c.bf16 %v1103_v26, %v1102_v3  ;;  %4955 = vmatmul.msk.bf16.gmra.mxu2 %vm799_vm7, %v922_v20  ;;  %v1195_v28 = vld [vmem:[#allocation2 + $0x59] sm:$0xff]  ;;  %v1196_v13 = vld [vmem:[#allocation2 + $0x61] sm:$0xff] }
 0x188   :  { %4972 = vmatmul.msk.bf16.gmra.mxu3 %vm799_vm7, %v1015_v49  ;;  %v1288_v14 = vld [vmem:[#allocation2 + $0x5a] sm:$0xff]  ;;  %v1289_v15 = vld [vmem:[#allocation2 + $0x62] sm:$0xff]  ;;  %v1201_v32 = vpack.c.bf16 %v1196_v13, %v1195_v28 }
 0x189   :  { %4989 = vmatmul.msk.bf16.gmra.mxu0 %vm799_vm7, %v1108_v27  ;;  %v1381_v7 = vld [vmem:[#allocation2 + $0x5b] sm:$0xff]  ;;  %v1294_v23 = vpack.c.bf16 %v1289_v15, %v1288_v14  ;;  %v6312_v28 = vld [vmem:[%s9473_s5 + $0x30] sm:$0xff]  ;;  %v5094_v13 = vld [vmem:[%s9473_s5 + $0x4c] sm:$0xf] }
 0x18a   :  { %v1387_v47 = vpack.c.bf16 %v6841_v46, %v1381_v7  ;;  %v1815_v14 = vunpack.c.l.b16 %v5094_v13  ;;  %v6307_v15 = vld [vmem:[%s9473_s5] sm:$0xff]  ;;  %v6309_v7 = vld [vmem:[%s9473_s5 + $0x14] sm:$0xff] }
 0x196   :  { %5002 = vmatmul.msk.bf16.vlgmr.msrb.gmra.mxu1 %vm799_vm7, %v1197_v8 }
 0x197   :  { %5019 = vmatmul.msk.bf16.vlgmr.msrb.gmra.mxu2 %vm799_vm7, %v1290_v40 }
 0x198   :  { %5036 = vmatmul.msk.bf16.vlgmr.msrb.gmra.mxu3 %vm799_vm7, %v1383_v41 }
 0x1a6   :  { %5003 = vmatmul.msk.bf16.gmra.mxu1 %vm799_vm7, %v1198_v43  ;;  %v1543_v43 = vsel %vm1541_vm9, %v1523_v63, 0 }
 0x1a7   :  { %5020 = vmatmul.msk.bf16.gmra.mxu2 %vm799_vm7, %v1291_v44  ;;  %1550 = vmatpush.bf16.msra.mxu0 %v1543_v43 }
 0x1a8   :  { %5037 = vmatmul.msk.bf16.gmra.mxu3 %vm799_vm7, %v1384_v0 }
 0x1b6   :  { %5004 = vmatmul.msk.bf16.gmra.mxu1 %vm799_vm7, %v1199_v56  ;;  %v5058_v56 = vld [vmem:[%s9473_s5 + $0x24] sm:$0xf] }
 0x1b7   :  { %5021 = vmatmul.msk.bf16.gmra.mxu2 %vm799_vm7, %v1292_v57  ;;  %v5076_v57 = vld [vmem:[%s9473_s5 + $0x38] sm:$0xf] }
 0x1b8   :  { %5038 = vmatmul.msk.bf16.gmra.mxu3 %vm799_vm7, %v1385_v31  ;;  %v1619_v31 = vunpack.c.l.b16 %v5058_v56  ;;  %v1717_v6 = vunpack.c.l.b16 %v5076_v57 }
 0x1ba   :  { %v1622_v51 = vpack.c.b16 %v1619_v31, %v1619_v31 }
 0x1c3   :  { %v873_v60 = vpop.f32.mrf.mxu1 }
 0x1c4   :  { %v898_v21 = vadd.f32 %v7069_v59, %v873_v60  ;;  %v1720_v60 = vpack.c.b16 %v1717_v6, %v1717_v6 }
 0x1c6   :  { %5005 = vmatmul.msk.bf16.gmra.mxu1 %vm799_vm7, %v1200_v9  ;;  %v1152_v55 = vpop.f32.mrf.mxu0  ;;  %v1739_v2 = vsel %vm1541_vm9, %v1720_v60, 0 }
 0x1c7   :  { %5022 = vmatmul.msk.bf16.gmra.mxu2 %vm799_vm7, %v1293_v35  ;;  %v1641_v35 = vsel %vm1541_vm9, %v1622_v51, 0 }
 0x1c8   :  { %5039 = vmatmul.msk.bf16.gmra.mxu3 %vm799_vm7, %v1386_v10  ;;  %1648 = vmatpush.bf16.msra.mxu1 %v1641_v35 }
 0x1c9   :  { %1746 = vmatpush.bf16.msra.mxu2 %v1739_v2 }
 0x1ca   :  { %v966_v11 = vpop.f32.mrf.mxu2 }
 0x1cb   :  { %v991_v24 = vadd.f32 %v966_v11, %v898_v21  ;;  %v1059_v37 = vpop.f32.mrf.mxu3  ;;  %v7075_v39 = vpop.f32.mrf.mxu1 }
 0x1cd   :  { %v7077_v12 = vadd.f32 %v1059_v37, %v991_v24  ;;  %v6308_v24 = vld [vmem:[%s9473_s5 + $0x8] sm:$0xff]  ;;  %v6310_v37 = vld [vmem:[%s9473_s5 + $0x1c] sm:$0xff]  ;;  %1747 = vmatpush.bf16.msra.mxu2 %v6312_v28 }
 0x1ce   :  { %v1154_v21 = vpop.f32.mrf.mxu0  ;;  %1551 = vmatpush.bf16.msra.mxu0 %v6308_v24  ;;  %1649 = vmatpush.bf16.msra.mxu1 %v6310_v37 }
 0x1d2   :  { %v7079_v16 = vpop.f32.mrf.mxu2  ;;  %1552 = vmatpush.bf16.msra.mxu0 %v6307_v15  ;;  %1650 = vmatpush.bf16.msra.mxu1 %v6309_v7 }
 0x1d3   :  { %v7081_v38 = vpop.f32.mrf.mxu3  ;;  %v878_v19 = vpop.f32.mrf.mxu1 }
 0x1d4   :  { %v900_v25 = vadd.f32 %v7069_v59, %v878_v19  ;;  %v6311_v19 = vld [vmem:[%s9473_s5 + $0x28] sm:$0xff] }
 0x1d5   :  { %1748 = vmatpush.bf16.msra.mxu2 %v6311_v19 }
 0x1d6   :  { %5006 = vmatmul.msk.bf16.gmra.mxu1 %vm799_vm7, %v1201_v32 }
 0x1d7   :  { %5023 = vmatmul.msk.bf16.gmra.mxu2 %vm799_vm7, %v1294_v23  ;;  %v1818_v23 = vpack.c.b16 %v1815_v14, %v1815_v14 }
 0x1d8   :  { %5040 = vmatmul.msk.bf16.gmra.mxu3 %vm799_vm7, %v1387_v47 }
 0x1da   :  { %v971_v34 = vpop.f32.mrf.mxu2 }
 0x1db   :  { %v993_v54 = vadd.f32 %v971_v34, %v900_v25  ;;  %v1064_v20 = vpop.f32.mrf.mxu3  ;;  %v7088_v49 = vpop.f32.mrf.mxu1  ;;  %v1837_v34 = vsel %vm1541_vm9, %v1818_v23, 0 }
 0x1dc   :  { %1844 = vmatpush.bf16.msra.mxu3 %v1837_v34  ;;  %v901_v56 = vadd.f32 %v7069_v59, %v7088_v49 }
 0x1dd   :  { %v7090_v3 = vadd.f32 %v1064_v20, %v993_v54  ;;  %v899_v54 = vadd.f32 %v7069_v59, %v7075_v39  ;;  %v6314_v20 = vld [vmem:[%s9473_s5 + $0x44] sm:$0xff] }
 0x1e0   :  { %1845 = vmatpush.bf16.msra.mxu3 %v6314_v20 }
 0x1e2   :  { %v7092_v26 = vpop.f32.mrf.mxu2 }
 0x1e3   :  { %v7094_v27 = vpop.f32.mrf.mxu3  ;;  %v883_v46 = vpop.f32.mrf.mxu1 }
 0x1e4   :  { %v902_v33 = vadd.f32 %v7069_v59, %v883_v46  ;;  %v992_v46 = vadd.f32 %v7079_v16, %v899_v54 }
 0x1e6   :  { %v1085_v39 = vadd.f32 %v7081_v38, %v992_v46  ;;  %v994_v38 = vadd.f32 %v7092_v26, %v901_v56 }
 0x1e8   :  { %v1178_v43 = vadd.f32 %v1154_v21, %v1085_v39  ;;  %v1087_v60 = vadd.f32 %v7094_v27, %v994_v38 }
 0x1ea   :  { %v976_v48 = vpop.f32.mrf.mxu2 }
 0x1eb   :  { %v995_v61 = vadd.f32 %v976_v48, %v902_v33  ;;  %v1069_v4 = vpop.f32.mrf.mxu3  ;;  %v7097_v50 = vpop.f32.mrf.mxu1  ;;  %v1177_v48 = vadd.f32 %v1152_v55, %v7077_v12 }
 0x1ec   :  { %v1157_v33 = vpop.f32.mrf.mxu0  ;;  %v903_v54 = vadd.f32 %v7069_v59, %v7097_v50 }
 0x1ed   :  { %v7099_v8 = vadd.f32 %v1069_v4, %v995_v61  ;;  %v6313_v4 = vld [vmem:[%s9473_s5 + $0x3c] sm:$0xff]  ;;  %v1179_v6 = vadd.f32 %v1157_v33, %v7090_v3 }
 0x1ee   :  { %1846 = vmatpush.bf16.msra.mxu3 %v6313_v4 }
 0x1f2   :  { %v7101_v40 = vpop.f32.mrf.mxu2 }
 0x1f3   :  { %v7103_v22 = vpop.f32.mrf.mxu3  ;;  %v888_v41 = vpop.f32.mrf.mxu1  ;;  %v996_v33 = vadd.f32 %v7101_v40, %v903_v54 }
 0x1f4   :  { %v904_v5 = vadd.f32 %v7069_v59, %v888_v41  ;;  %v1159_v16 = vpop.f32.mrf.mxu0 }
 0x1f5   :  { %v1180_v24 = vadd.f32 %v1159_v16, %v1087_v60 }
 0x1fa   :  { %v981_v17 = vpop.f32.mrf.mxu2 }
 0x1fb   :  { %v997_v44 = vadd.f32 %v981_v17, %v904_v5  ;;  %v1074_v62 = vpop.f32.mrf.mxu3  ;;  %v7110_v0 = vpop.f32.mrf.mxu1 }
 0x1fd   :  { %v7112_v52 = vadd.f32 %v1074_v62, %v997_v44 }
 0x202   :  { %v7114_v53 = vpop.f32.mrf.mxu2 }
 0x203   :  { %v7116_v29 = vpop.f32.mrf.mxu3  ;;  %v893_v58 = vpop.f32.mrf.mxu1 }
 0x204   :  { %v906_v36 = vadd.f32 %v7069_v59, %v893_v58 }
 0x20a   :  { %v986_v45 = vpop.f32.mrf.mxu2 }
 0x20b   :  { %v999_v18 = vadd.f32 %v986_v45, %v906_v36  ;;  %v1079_v9 = vpop.f32.mrf.mxu3  ;;  %v7127_v10 = vpop.f32.mrf.mxu1 }
 0x20c   :  { %v1162_v45 = vpop.f32.mrf.mxu0 }
 0x20d   :  { %v7129_v11 = vadd.f32 %v1079_v9, %v999_v18 }
 0x212   :  { %v7152_v32 = vpop.f32.mrf.mxu2 }
 0x213   :  { %v7154_v47 = vpop.f32.mrf.mxu3  ;;  %v1245_v25 = vpop.f32.mrf.mxu1 }
 0x214   :  { %v1270_v61 = vadd.f32 %v1245_v25, %v1177_v48  ;;  %v1164_v20 = vpop.f32.mrf.mxu0 }
 0x21a   :  { %v1338_v41 = vpop.f32.mrf.mxu2 }
 0x21b   :  { %v1363_v30 = vadd.f32 %v1338_v41, %v1270_v61  ;;  %v1431_v42 = vpop.f32.mrf.mxu3  ;;  %v1247_v63 = vpop.f32.mrf.mxu1  ;;  %v1181_v61 = vadd.f32 %v1162_v45, %v7099_v8  ;;  %v905_v45 = vadd.f32 %v7069_v59, %v7110_v0 }
 0x21c   :  { %v1271_v12 = vadd.f32 %v1247_v63, %v1178_v43  ;;  %v1089_v63 = vadd.f32 %v7103_v22, %v996_v33  ;;  %v1167_v40 = vpop.f32.mrf.mxu0 }
 0x21d   :  { %v1456_v5 = vadd.f32 %v1431_v42, %v1363_v30 }
 0x21f   :  { %v1466_v17 = vmax.f32 %v1456_v5, 0.0 }
 0x221   :  { %1476 = vst.msk [vmem:[#allocation2 + $0x8] sm:$0xff] %vm41_vm2, %v1466_v17 }
 0x222   :  { %v1340_v44 = vpop.f32.mrf.mxu2 }
 0x223   :  { %v1364_v62 = vadd.f32 %v1340_v44, %v1271_v12  ;;  %v1433_v55 = vpop.f32.mrf.mxu3  ;;  %v1250_v58 = vpop.f32.mrf.mxu1  ;;  %v1182_v12 = vadd.f32 %v1164_v20, %v1089_v63  ;;  %v907_v63 = vadd.f32 %v7069_v59, %v7127_v10  ;;  %v6316_v10 = vld [vmem:[%s9473_s5 + $0x58] sm:$0xff] }
 0x224   :  { %v1272_v36 = vadd.f32 %v1250_v58, %v1179_v6 }
 0x225   :  { %v1457_v57 = vadd.f32 %v1433_v55, %v1364_v62 }
 0x227   :  { %v1467_v31 = vmax.f32 %v1457_v57, 0.0 }
 0x228   :  { %v1491_v49 = vld [vmem:[#allocation2 + $0x6] sm:$0xff] }
 0x229   :  { %1477 = vst.msk [vmem:[#allocation2 + $0x10] sm:$0xff] %vm41_vm2, %v1467_v31  ;;  %v1589_v37 = vld [vmem:[#allocation2 + $0x7] sm:$0xff] }
 0x22a   :  { %v1343_v51 = vpop.f32.mrf.mxu2  ;;  %v1687_v28 = vld [vmem:[#allocation2 + $0x8] sm:$0xff] }
 0x22b   :  { %v1365_v18 = vadd.f32 %v1343_v51, %v1272_v36  ;;  %v1436_v9 = vpop.f32.mrf.mxu3  ;;  %v1252_v35 = vpop.f32.mrf.mxu1 }
 0x22c   :  { %v1273_v3 = vadd.f32 %v1252_v35, %v1180_v24 }
 0x22d   :  { %v1458_v2 = vadd.f32 %v1436_v9, %v1365_v18  ;;  %v998_v9 = vadd.f32 %v7114_v53, %v905_v45 }
 0x22f   :  { %v1468_v21 = vmax.f32 %v1458_v2, 0.0  ;;  %v1183_v2 = vadd.f32 %v1167_v40, %v7112_v52  ;;  %v1091_v0 = vadd.f32 %v7116_v29, %v998_v9 }
 0x230   :  { %v1492_v26 = vld [vmem:[#allocation2 + $0xe] sm:$0xff] }
 0x231   :  { %v1590_v13 = vld [vmem:[#allocation2 + $0xf] sm:$0xff]  ;;  %1478 = vst.msk [vmem:[#allocation2 + $0x18] sm:$0xff] %vm41_vm2, %v1468_v21  ;;  %v1501_v15 = vpack.c.bf16 %v1492_v26, %v1491_v49  ;;  %v1169_v49 = vpop.f32.mrf.mxu0  ;;  %v5112_v26 = vld [vmem:[%s9473_s5 + $0x60] sm:$0xf] }
 0x232   :  { %v1688_v14 = vld [vmem:[#allocation2 + $0x10] sm:$0xff]  ;;  %v1599_v7 = vpack.c.bf16 %v1590_v13, %v1589_v37  ;;  %v1345_v27 = vpop.f32.mrf.mxu2 }
 0x233   :  { %v1697_v19 = vpack.c.bf16 %v1688_v14, %v1687_v28  ;;  %v1366_v23 = vadd.f32 %v1345_v27, %v1273_v3  ;;  %v1438_v25 = vpop.f32.mrf.mxu3  ;;  %5049 = vmatmul.msk.bf16.vlgmr.msra.gmra.mxu0 %vm41_vm2, %v1501_v15  ;;  %v1255_v34 = vpop.f32.mrf.mxu1  ;;  %v1785_v4 = vld [vmem:[#allocation2 + $0x9] sm:$0xff]  ;;  %v1913_v14 = vunpack.c.l.b16 %v5112_v26 }
 0x234   :  { %5067 = vmatmul.msk.bf16.vlgmr.msra.gmra.mxu1 %vm41_vm2, %v1599_v7  ;;  %v1274_v39 = vadd.f32 %v1255_v34, %v1181_v61 }
 0x235   :  { %5085 = vmatmul.msk.bf16.vlgmr.msra.gmra.mxu2 %vm41_vm2, %v1697_v19  ;;  %v1459_v46 = vadd.f32 %v1438_v25, %v1366_v23  ;;  %v1916_v15 = vpack.c.b16 %v1913_v14, %v1913_v14  ;;  %v1184_v23 = vadd.f32 %v1169_v49, %v1091_v0 }
 0x237   :  { %v1469_v48 = vmax.f32 %v1459_v46, 0.0  ;;  %v1935_v19 = vsel %vm1541_vm9, %v1916_v15, 0 }
 0x238   :  { %v1786_v41 = vld [vmem:[#allocation2 + $0x11] sm:$0xff]  ;;  %1942 = vmatpush.bf16.msrb.mxu0 %v1935_v19 }
 0x239   :  { %1479 = vst.msk [vmem:[#allocation2 + $0x20] sm:$0xff] %vm41_vm2, %v1469_v48  ;;  %v1795_v30 = vpack.c.bf16 %v1786_v41, %v1785_v4  ;;  %v1493_v8 = vld [vmem:[#allocation2 + $0x16] sm:$0xff] }
 0x23a   :  { %v1348_v42 = vpop.f32.mrf.mxu2  ;;  %v1591_v44 = vld [vmem:[#allocation2 + $0x17] sm:$0xff] }
 0x23b   :  { %v1367_v5 = vadd.f32 %v1348_v42, %v1274_v39  ;;  %v1441_v17 = vpop.f32.mrf.mxu3  ;;  %5103 = vmatmul.msk.bf16.vlgmr.msra.gmra.mxu3 %vm41_vm2, %v1795_v30  ;;  %v1257_v50 = vpop.f32.mrf.mxu1  ;;  %v1689_v62 = vld [vmem:[#allocation2 + $0x18] sm:$0xff] }
 0x23c   :  { %v1275_v57 = vadd.f32 %v1257_v50, %v1182_v12  ;;  %v1172_v39 = vpop.f32.mrf.mxu0  ;;  %v1000_v50 = vadd.f32 %v7152_v32, %v907_v63  ;;  %1943 = vmatpush.bf16.msrb.mxu0 %v6316_v10 }
 0x23d   :  { %v1460_v43 = vadd.f32 %v1441_v17, %v1367_v5  ;;  %v1185_v40 = vadd.f32 %v1172_v39, %v7129_v11 }
 0x23f   :  { %v1470_v16 = vmax.f32 %v1460_v43, 0.0 }
 0x240   :  { %v1494_v55 = vld [vmem:[#allocation2 + $0x1e] sm:$0xff] }
 0x241   :  { %v1592_v58 = vld [vmem:[#allocation2 + $0x1f] sm:$0xff]  ;;  %v1502_v38 = vpack.c.bf16 %v1494_v55, %v1493_v8  ;;  %1481 = vst.msk [vmem:[#allocation2 + $0x28] sm:$0x7] %vm1480_vm10, %v1470_v16 }
 0x242   :  { %v1690_v56 = vld [vmem:[#allocation2 + $0x20] sm:$0xff]  ;;  %v1600_v31 = vpack.c.bf16 %v1592_v58, %v1591_v44  ;;  %v1350_v6 = vpop.f32.mrf.mxu2 }
 0x243   :  { %v1698_v22 = vpack.c.bf16 %v1690_v56, %v1689_v62  ;;  %v1368_v36 = vadd.f32 %v1350_v6, %v1275_v57  ;;  %v1443_v51 = vpop.f32.mrf.mxu3  ;;  %5050 = vmatmul.msk.bf16.gmra.mxu0 %vm41_vm2, %v1502_v38  ;;  %v1260_v60 = vpop.f32.mrf.mxu1  ;;  %v1787_v21 = vld [vmem:[#allocation2 + $0x19] sm:$0xff]  ;;  %v1093_v62 = vadd.f32 %v7154_v47, %v1000_v50  ;;  %v6315_v57 = vld [vmem:[%s9473_s5 + $0x50] sm:$0xff] }
 0x244   :  { %5068 = vmatmul.msk.bf16.gmra.mxu1 %vm41_vm2, %v1600_v31  ;;  %v1276_v37 = vadd.f32 %v1260_v60, %v1183_v2  ;;  %v1174_v32 = vpop.f32.mrf.mxu0  ;;  %1944 = vmatpush.bf16.msrb.mxu0 %v6315_v57 }
 0x245   :  { %5086 = vmatmul.msk.bf16.gmra.mxu2 %vm41_vm2, %v1698_v22  ;;  %v1461_v18 = vadd.f32 %v1443_v51, %v1368_v36  ;;  %v1186_v38 = vadd.f32 %v1174_v32, %v1093_v62 }
 0x247   :  { %v1471_v35 = vmax.f32 %v1461_v18, 0.0 }
 0x248   :  { %v1788_v24 = vld [vmem:[#allocation2 + $0x21] sm:$0xff]  ;;  %v1789_v16 = vld [vmem:[#allocation2 + $0x29] sm:$0xff] }
 0x249   :  { %1482 = vst.msk [vmem:[#allocation2 + $0x40] sm:$0xff] %vm41_vm2, %v1471_v35  ;;  %v1796_v28 = vpack.c.bf16 %v1788_v24, %v1787_v21  ;;  %v1495_v25 = vld [vmem:[#allocation2 + $0x26] sm:$0xff] }
 0x24a   :  { %v1353_v13 = vpop.f32.mrf.mxu2  ;;  %v1593_v34 = vld [vmem:[#allocation2 + $0x27] sm:$0xff] }
 0x24b   :  { %v1369_v3 = vadd.f32 %v1353_v13, %v1276_v37  ;;  %v1446_v53 = vpop.f32.mrf.mxu3  ;;  %5104 = vmatmul.msk.bf16.gmra.mxu3 %vm41_vm2, %v1796_v28  ;;  %v1262_v52 = vpop.f32.mrf.mxu1  ;;  %v1691_v54 = vld [vmem:[#allocation2 + $0x28] sm:$0xff] }
 0x24c   :  { %v1277_v29 = vadd.f32 %v1262_v52, %v1184_v23 }
 0x24d   :  { %v1462_v7 = vadd.f32 %v1446_v53, %v1369_v3 }
 0x24f   :  { %v1472_v27 = vmax.f32 %v1462_v7, 0.0 }
 0x250   :  { %v1496_v20 = vld [vmem:[#allocation2 + $0x3e] sm:$0xff] }
 0x251   :  { %v1594_v46 = vld [vmem:[#allocation2 + $0x3f] sm:$0xff]  ;;  %1483 = vst.msk [vmem:[#allocation2 + $0x48] sm:$0xff] %vm41_vm2, %v1472_v27  ;;  %v1503_v48 = vpack.c.bf16 %v1496_v20, %v1495_v25  ;;  %v1883_v20 = vld [vmem:[#allocation2 + $0xa] sm:$0xff] }
 0x252   :  { %v1692_v33 = vld [vmem:[#allocation2 + $0x40] sm:$0xff]  ;;  %v1601_v61 = vpack.c.bf16 %v1594_v46, %v1593_v34  ;;  %v1355_v41 = vpop.f32.mrf.mxu2 }
 0x253   :  { %v1699_v4 = vpack.c.bf16 %v1692_v33, %v1691_v54  ;;  %v1370_v30 = vadd.f32 %v1355_v41, %v1277_v29  ;;  %v1448_v42 = vpop.f32.mrf.mxu3  ;;  %5051 = vmatmul.msk.bf16.gmra.mxu0 %vm41_vm2, %v1503_v48  ;;  %v1265_v5 = vpop.f32.mrf.mxu1  ;;  %v1884_v54 = vld [vmem:[#allocation2 + $0x12] sm:$0xff]  ;;  %v1886_v33 = vld [vmem:[#allocation2 + $0x22] sm:$0xff]  ;;  %v1885_v29 = vld [vmem:[#allocation2 + $0x1a] sm:$0xff] }
 0x254   :  { %5069 = vmatmul.msk.bf16.gmra.mxu1 %vm41_vm2, %v1601_v61  ;;  %v1278_v8 = vadd.f32 %v1265_v5, %v1185_v40  ;;  %v1893_v46 = vpack.c.bf16 %v1884_v54, %v1883_v20  ;;  %v1894_v48 = vpack.c.bf16 %v1886_v33, %v1885_v29 }
 0x255   :  { %5087 = vmatmul.msk.bf16.gmra.mxu2 %vm41_vm2, %v1699_v4  ;;  %v1463_v17 = vadd.f32 %v1448_v42, %v1370_v30  ;;  %v1887_v4 = vld [vmem:[#allocation2 + $0x2a] sm:$0xff] }
 0x257   :  { %v1473_v43 = vmax.f32 %v1463_v17, 0.0 }
 0x258   :  { %v1790_v12 = vld [vmem:[#allocation2 + $0x41] sm:$0xff] }
 0x259   :  { %1484 = vst.msk [vmem:[#allocation2 + $0x50] sm:$0xff] %vm41_vm2, %v1473_v43  ;;  %v1797_v44 = vpack.c.bf16 %v1790_v12, %v1789_v16  ;;  %v1497_v47 = vld [vmem:[#allocation2 + $0x46] sm:$0xff] }
 0x25a   :  { %v1358_v55 = vpop.f32.mrf.mxu2  ;;  %v1595_v22 = vld [vmem:[#allocation2 + $0x47] sm:$0xff] }
 0x25b   :  { %v1371_v58 = vadd.f32 %v1358_v55, %v1278_v8  ;;  %v1451_v59 = vpop.f32.mrf.mxu3  ;;  %5105 = vmatmul.msk.bf16.gmra.mxu3 %vm41_vm2, %v1797_v44  ;;  %v1267_v11 = vpop.f32.mrf.mxu1  ;;  %v1693_v6 = vld [vmem:[#allocation2 + $0x48] sm:$0xff] }
 0x25c   :  { %v1279_v36 = vadd.f32 %v1267_v11, %v1186_v38  ;;  %v1888_v61 = vld [vmem:[#allocation2 + $0x42] sm:$0xff]  ;;  %v7246_v11 = vld [vmem:[%s9474_s6] ss:$0 sm:$0xff]  ;;  %s6618_s6 = smov 64  }
 0x25d   :  { %v1464_v56 = vadd.f32 %v1451_v59, %v1371_v58  ;;  %v1895_v41 = vpack.c.bf16 %v1888_v61, %v1887_v4 }
 0x25f   :  { %v1474_v31 = vmax.f32 %v1464_v56, 0.0 }
 0x260   :  { %v1498_v51 = vld [vmem:[#allocation2 + $0x4e] sm:$0xff] }
 0x261   :  { %v1596_v60 = vld [vmem:[#allocation2 + $0x4f] sm:$0xff]  ;;  %1485 = vst.msk [vmem:[#allocation2 + $0x58] sm:$0xff] %vm41_vm2, %v1474_v31  ;;  %v1504_v18 = vpack.c.bf16 %v1498_v51, %v1497_v47 }
 0x262   :  { %v1694_v45 = vld [vmem:[#allocation2 + $0x50] sm:$0xff]  ;;  %v1602_v9 = vpack.c.bf16 %v1596_v60, %v1595_v22  ;;  %v1360_v2 = vpop.f32.mrf.mxu2 }
 0x263   :  { %v1700_v35 = vpack.c.bf16 %v1694_v45, %v1693_v6  ;;  %v1372_v21 = vadd.f32 %v1360_v2, %v1279_v36  ;;  %5052 = vmatmul.msk.bf16.gmra.mxu0 %vm41_vm2, %v1504_v18  ;;  %v1453_v24 = vpop.f32.mrf.mxu3  ;;  %v1791_v28 = vld [vmem:[#allocation2 + $0x49] sm:$0xff] }
 0x264   :  { %5070 = vmatmul.msk.bf16.gmra.mxu1 %vm41_vm2, %v1602_v9  ;;  %v1889_v42 = vld [vmem:[#allocation2 + $0x4a] sm:$0xff] }
 0x265   :  { %5088 = vmatmul.msk.bf16.gmra.mxu2 %vm41_vm2, %v1700_v35  ;;  %v1465_v49 = vadd.f32 %v1453_v24, %v1372_v21 }
 0x267   :  { %v1475_v37 = vmax.f32 %v1465_v49, 0.0 }
 0x268   :  { %v1792_v26 = vld [vmem:[#allocation2 + $0x51] sm:$0xff] }
 0x269   :  { %1486 = vst.msk [vmem:[#allocation2 + $0x60] sm:$0x7] %vm1480_vm10, %v1475_v37  ;;  %v1798_v13 = vpack.c.bf16 %v1792_v26, %v1791_v28  ;;  %v1499_v14 = vld [vmem:[#allocation2 + $0x56] sm:$0xff] }
 0x26a   :  { %v1597_v0 = vld [vmem:[#allocation2 + $0x57] sm:$0xff] }
 0x26b   :  { %5106 = vmatmul.msk.bf16.gmra.mxu3 %vm41_vm2, %v1798_v13  ;;  %v1695_v3 = vld [vmem:[#allocation2 + $0x58] sm:$0xff] }
 0x26c   :  { %v1890_v39 = vld [vmem:[#allocation2 + $0x52] sm:$0xff] }
 0x26d   :  { %v1896_v63 = vpack.c.bf16 %v1890_v39, %v1889_v42 }
 0x270   :  { %v1500_v53 = vld [vmem:[#allocation2 + $0x5e] sm:$0xff] }
 0x271   :  { %v1598_v52 = vld [vmem:[#allocation2 + $0x5f] sm:$0xff]  ;;  %v1505_v7 = vpack.c.bf16 %v1500_v53, %v1499_v14 }
 0x272   :  { %v1696_v15 = vld [vmem:[#allocation2 + $0x60] sm:$0xff]  ;;  %v1603_v19 = vpack.c.bf16 %v1598_v52, %v1597_v0 }
 0x273   :  { %v1701_v27 = vpack.c.bf16 %v1696_v15, %v1695_v3  ;;  %5053 = vmatmul.msk.bf16.gmra.mxu0 %vm41_vm2, %v1505_v7  ;;  %v1793_v23 = vld [vmem:[#allocation2 + $0x59] sm:$0xff]  ;;  %v1794_v25 = vld [vmem:[#allocation2 + $0x61] sm:$0xff] }
 0x274   :  { %5071 = vmatmul.msk.bf16.gmra.mxu1 %vm41_vm2, %v1603_v19  ;;  %v1799_v34 = vpack.c.bf16 %v1794_v25, %v1793_v23  ;;  %v1891_v17 = vld [vmem:[#allocation2 + $0x5a] sm:$0xff]  ;;  %v1892_v50 = vld [vmem:[#allocation2 + $0x62] sm:$0xff] }
 0x275   :  { %5089 = vmatmul.msk.bf16.gmra.mxu2 %vm41_vm2, %v1701_v27  ;;  %v1897_v40 = vpack.c.bf16 %v1892_v50, %v1891_v17 }
 0x27b   :  { %5107 = vmatmul.msk.bf16.gmra.mxu3 %vm41_vm2, %v1799_v34 }
 0x283   :  { %5121 = vmatmul.msk.bf16.vlgmr.msrb.gmra.mxu0 %vm41_vm2, %v1893_v46 }
 0x293   :  { %5122 = vmatmul.msk.bf16.gmra.mxu0 %vm41_vm2, %v1894_v48 }
 0x2a3   :  { %5123 = vmatmul.msk.bf16.gmra.mxu0 %vm41_vm2, %v1895_v41 }
 0x2b0   :  { %v1554_v30 = vpop.f32.mrf.mxu0 }
 0x2b1   :  { %v1652_v62 = vpop.f32.mrf.mxu1  ;;  %v1579_v38 = vadd.f32 %v7246_v11, %v1554_v30 }
 0x2b3   :  { %5124 = vmatmul.msk.bf16.gmra.mxu0 %vm41_vm2, %v1896_v63  ;;  %v1677_v47 = vadd.f32 %v1652_v62, %v1579_v38 }
 0x2b8   :  { %v1556_v5 = vpop.f32.mrf.mxu0  ;;  %v1750_v55 = vpop.f32.mrf.mxu2 }
 0x2b9   :  { %v1654_v32 = vpop.f32.mrf.mxu1  ;;  %v1775_v36 = vadd.f32 %v1750_v55, %v1677_v47  ;;  %v1580_v27 = vadd.f32 %v7246_v11, %v1556_v5 }
 0x2bb   :  { %v1678_v20 = vadd.f32 %v1654_v32, %v1580_v27 }
 0x2be   :  { %v1848_v59 = vpop.f32.mrf.mxu3 }
 0x2bf   :  { %v1873_v60 = vadd.f32 %v1848_v59, %v1775_v36 }
 0x2c0   :  { %v7232_v43 = vpop.f32.mrf.mxu0  ;;  %v1752_v56 = vpop.f32.mrf.mxu2 }
 0x2c1   :  { %v7251_v22 = vpop.f32.mrf.mxu1  ;;  %v1776_v48 = vadd.f32 %v1752_v56, %v1678_v20  ;;  %v1581_v62 = vadd.f32 %v7246_v11, %v7232_v43 }
 0x2c3   :  { %5125 = vmatmul.msk.bf16.gmra.mxu0 %vm41_vm2, %v1897_v40  ;;  %vm4835_vm2 = vcmask 1047552  }
 0x2c6   :  { %v1850_v57 = vpop.f32.mrf.mxu3 }
 0x2c7   :  { %v1874_v41 = vadd.f32 %v1850_v57, %v1776_v48 }
 0x2c8   :  { %v7235_v16 = vpop.f32.mrf.mxu0  ;;  %v7253_v6 = vpop.f32.mrf.mxu2 }
 0x2c9   :  { %v7257_v35 = vpop.f32.mrf.mxu1 }
 0x2ce   :  { %v7255_v51 = vpop.f32.mrf.mxu3 }
 0x2d0   :  { %v7237_v12 = vpop.f32.mrf.mxu0  ;;  %v7259_v2 = vpop.f32.mrf.mxu2 }
 0x2d1   :  { %v7265_v37 = vpop.f32.mrf.mxu1 }
 0x2d6   :  { %v7261_v21 = vpop.f32.mrf.mxu3 }
 0x2d8   :  { %v1566_v8 = vpop.f32.mrf.mxu0  ;;  %v7267_v28 = vpop.f32.mrf.mxu2 }
 0x2d9   :  { %v1664_v3 = vpop.f32.mrf.mxu1  ;;  %v1584_v7 = vadd.f32 %v7246_v11, %v1566_v8 }
 0x2db   :  { %v1682_v23 = vadd.f32 %v1664_v3, %v1584_v7 }
 0x2de   :  { %v7271_v13 = vpop.f32.mrf.mxu3 }
 0x2e0   :  { %v1569_v44 = vpop.f32.mrf.mxu0  ;;  %v1762_v53 = vpop.f32.mrf.mxu2 }
 0x2e1   :  { %v1667_v25 = vpop.f32.mrf.mxu1  ;;  %v1780_v46 = vadd.f32 %v1762_v53, %v1682_v23  ;;  %v1585_v33 = vadd.f32 %v7246_v11, %v1569_v44 }
 0x2e3   :  { %v1683_v30 = vadd.f32 %v1667_v25, %v1585_v33 }
 0x2e6   :  { %v1860_v52 = vpop.f32.mrf.mxu3 }
 0x2e7   :  { %v1878_v61 = vadd.f32 %v1860_v52, %v1780_v46 }
 0x2e8   :  { %v7239_v58 = vpop.f32.mrf.mxu0  ;;  %v1765_v34 = vpop.f32.mrf.mxu2 }
 0x2e9   :  { %v1781_v50 = vadd.f32 %v1765_v34, %v1683_v30  ;;  %v1669_v40 = vpop.f32.mrf.mxu1  ;;  %v1586_v55 = vadd.f32 %v7246_v11, %v7239_v58 }
 0x2eb   :  { %v1684_v53 = vadd.f32 %v1669_v40, %v1586_v55 }
 0x2ee   :  { %v1863_v29 = vpop.f32.mrf.mxu3 }
 0x2ef   :  { %v1879_v56 = vadd.f32 %v1863_v29, %v1781_v50 }
 0x2f0   :  { %v7241_v10 = vpop.f32.mrf.mxu0  ;;  %v1767_v59 = vpop.f32.mrf.mxu2 }
 0x2f1   :  { %v1782_v23 = vadd.f32 %v1767_v59, %v1684_v53  ;;  %v1587_v29 = vadd.f32 %v7246_v11, %v7241_v10  ;;  %v1672_v48 = vpop.f32.mrf.mxu1 }
 0x2f6   :  { %v1865_v36 = vpop.f32.mrf.mxu3 }
 0x2f8   :  { %v7249_v31 = vpop.f32.mrf.mxu0 }
 0x2fe   :  { %v1868_v40 = vpop.f32.mrf.mxu3 }
 0x300   :  { %v1946_v45 = vpop.f32.mrf.mxu0 }
 0x301   :  { %v1971_v18 = vadd.f32 %v1946_v45, %v1873_v60 }
 0x303   :  { %v1981_v9 = vmax.f32 %v1971_v18, 0.0 }
 0x305   :  { %2021 = vst.sshfl [vmem:[#allocation1] sm:$0xff pattern:$0x73625140] %v1981_v9  ;;  %v2009_v5 = vrot.slane %v1981_v9, 1 }
 0x308   :  { %v1948_v24 = vpop.f32.mrf.mxu0 }
 0x309   :  { %v1972_v42 = vadd.f32 %v1948_v24, %v1874_v41  ;;  %v1679_v24 = vadd.f32 %v7251_v22, %v1581_v62 }
 0x30b   :  { %v7300_v57 = vmax.f32 %v1972_v42, 0.0  ;;  %v1777_v7 = vadd.f32 %v7253_v6, %v1679_v24  ;;  %v1582_v6 = vadd.f32 %v7246_v11, %v7235_v16 }
 0x30c   :  { %v7263_v49 = vld [vmem:[#allocation1 + $0x1] ss:$4 sm:$0xff] }
 0x30d   :  { %2036 = vst.sshfl [vmem:[#allocation1] sm:$0xff pattern:$0x73625140] %v1981_v9  ;;  %v2128_v52 = vrot.slane %v7300_v57, 1  ;;  %v1875_v34 = vadd.f32 %v7255_v51, %v1777_v7  ;;  %v1770_v51 = vpop.f32.mrf.mxu2  ;;  %v1680_v59 = vadd.f32 %v7257_v35, %v1582_v6  ;;  %v1583_v35 = vadd.f32 %v7246_v11, %v7237_v12 }
 0x310   :  { %v7269_v26 = vpop.f32.mrf.mxu0 }
 0x311   :  { %v1973_v41 = vadd.f32 %v7269_v26, %v1875_v34 }
 0x314   :  { %v7273_v14 = vld [vmem:[#allocation1 + $0x1] ss:$4 sm:$0xff] }
 0x315   :  { %2053 = vst.sshfl [vmem:[#allocation1] sm:$0xff pattern:$0x73625140] %v1981_v9 }
 0x318   :  { %v7275_v0 = vpop.f32.mrf.mxu0 }
 0x31c   :  { %v7277_v15 = vld [vmem:[#allocation1 + $0x2] ss:$4 sm:$0xff] }
 0x31d   :  { %2068 = vst.sshfl [vmem:[#allocation1] sm:$0xff pattern:$0x73625140] %v1981_v9 }
 0x320   :  { %v7280_v19 = vpop.f32.mrf.mxu0 }
 0x324   :  { %v7283_v54 = vld [vmem:[#allocation1 + $0x2] ss:$4 sm:$0xff] }
 0x325   :  { %2085 = vst.sshfl [vmem:[#allocation1] sm:$0xff pattern:$0x73625140] %v1981_v9 }
 0x328   :  { %v1958_v4 = vpop.f32.mrf.mxu0 }
 0x329   :  { %v1976_v39 = vadd.f32 %v1958_v4, %v1878_v61  ;;  %v1880_v61 = vadd.f32 %v1865_v36, %v1782_v23  ;;  %v1674_v23 = vpop.f32.mrf.mxu1 }
 0x32b   :  { %v7286_v63 = vmax.f32 %v1976_v39, 0.0 }
 0x32c   :  { %v7288_v17 = vld [vmem:[#allocation1 + $0x3] ss:$4 sm:$0xff] }
 0x32d   :  { %2100 = vst.sshfl [vmem:[#allocation1] sm:$0xff pattern:$0x73625140] %v1981_v9  ;;  %v2012_v8 = vsel %vm1998_vm11, %v7286_v63, %v2009_v5  ;;  %v1997_v44 = vrot.slane %v7286_v63, 7 }
 0x32e   :  { %2024 = vst.sshfl [vmem:[#allocation1 + $0x20] sm:$0xff pattern:$0x73625140] %v7286_v63  ;;  %v2013_v32 = vsel %vm2000_vm12, %v7286_v63, %v2012_v8 }
 0x32f   :  { %v2014_v38 = vsel %vm2002_vm13, %v7286_v63, %v2013_v32  ;;  %v1999_v47 = vsel %vm1998_vm11, %v1997_v44, %v1981_v9  ;;  %v7351_v32 = vmax.f32 %v1973_v41, 0.0 }
 0x330   :  { %v1961_v60 = vpop.f32.mrf.mxu0  ;;  %v2015_v43 = vsel %vm2004_vm14, %v7286_v63, %v2014_v38  ;;  %v2001_v58 = vsel %vm2000_vm12, %v1997_v44, %v1999_v47 }
 0x331   :  { %v1977_v45 = vadd.f32 %v1961_v60, %v1879_v56  ;;  %2016 = vrot.lane.b32.xlu0 %v2015_v43, %s6618_s6  ;;  %v2003_v18 = vsel %vm2002_vm13, %v1997_v44, %v2001_v58  ;;  %v2042_v56 = vrot.slane %v7273_v14, 1  ;;  %v1778_v43 = vadd.f32 %v7259_v2, %v1680_v59 }
 0x332   :  { %v2005_v3 = vsel %vm2004_vm14, %v1997_v44, %v2003_v18  ;;  %v1685_v44 = vadd.f32 %v1672_v48, %v1587_v29  ;;  %v1588_v14 = vadd.f32 %v7246_v11, %v7249_v31  ;;  %v1681_v31 = vadd.f32 %v7265_v37, %v1583_v35 }
 0x333   :  { %v7312_v9 = vmax.f32 %v1977_v45, 0.0  ;;  %2008 = vst.msk [vmem:[#allocation3] sm:$0x3] %vm2007_vm15, %v2005_v3  ;;  %v1876_v2 = vadd.f32 %v7261_v21, %v1778_v43 }
 0x334   :  { %v7317_v27 = vld [vmem:[#allocation1 + $0x3] ss:$4 sm:$0xff]  ;;  %v1783_v47 = vadd.f32 %v1770_v51, %v1685_v44  ;;  %v1686_v34 = vadd.f32 %v1674_v23, %v1588_v14 }
 0x335   :  { %2139 = vst.sshfl [vmem:[#allocation1] sm:$0xff pattern:$0x73625140] %v7300_v57  ;;  %v2026_v25 = vld [vmem:[#allocation1 + $0x21] ss:$4 sm:$0xff]  ;;  %v2131_v22 = vsel %vm1998_vm11, %v7312_v9, %v2128_v52  ;;  %v2121_v46 = vrot.slane %v7312_v9, 7 }
 0x336   :  { %2039 = vst.sshfl [vmem:[#allocation1 + $0x20] sm:$0xff pattern:$0x73625140] %v7286_v63  ;;  %v2132_v20 = vsel %vm2000_vm12, %v7312_v9, %v2131_v22  ;;  %v2029_v33 = vrot.slane %v2026_v25, 7  ;;  %v1881_v45 = vadd.f32 %v1868_v40, %v1783_v47  ;;  %v1772_v25 = vpop.f32.mrf.mxu2  ;;  %v1974_v22 = vadd.f32 %v7275_v0, %v1876_v2 }
 0x337   :  { %v2133_v4 = vsel %vm2002_vm13, %v7312_v9, %v2132_v20  ;;  %v2122_v42 = vsel %vm1998_vm11, %v2121_v46, %v7300_v57  ;;  %v1784_v29 = vadd.f32 %v1772_v25, %v1686_v34 }
 0x338   :  { %v1963_v39 = vpop.f32.mrf.mxu0  ;;  %v2134_v30 = vsel %vm2004_vm14, %v7312_v9, %v2133_v4  ;;  %v2030_v16 = vsel %vm1998_vm11, %v2029_v33, %v7263_v49  ;;  %v2123_v10 = vsel %vm2000_vm12, %v2121_v46, %v2122_v42  ;;  %v7386_v48 = vmax.f32 %v1974_v22, 0.0 }
 0x339   :  { %v1978_v5 = vadd.f32 %v1963_v39, %v1880_v61  ;;  %2135 = vrot.lane.b32.xlu2 %v2134_v30, %s6618_s6  ;;  %v2031_v50 = vsel %vm2000_vm12, %v2029_v33, %v2030_v16  ;;  %v2124_v26 = vsel %vm2002_vm13, %v2121_v46, %v2123_v10 }
 0x33a   :  { %v2032_v8 = vsel %vm2002_vm13, %v2029_v33, %v2031_v50  ;;  %v2125_v55 = vsel %vm2004_vm14, %v2121_v46, %v2124_v26  ;;  %v1779_v46 = vadd.f32 %v7267_v28, %v1681_v31 }
 0x33b   :  { %v7345_v62 = vmax.f32 %v1978_v5, 0.0  ;;  %2127 = vst.msk [vmem:[#allocation3 + $0x8] sm:$0x3] %vm2007_vm15, %v2125_v55  ;;  %v2033_v38 = vsel %vm2004_vm14, %v2029_v33, %v2032_v8  ;;  %v1870_v33 = vpop.f32.mrf.mxu3 }
 0x33c   :  { %v7349_v49 = vld [vmem:[#allocation1 + $0x1] ss:$4 sm:$0xff]  ;;  %2035 = vst.msk [vmem:[#allocation3 + $0x2] sm:$0x3] %vm2007_vm15, %v2033_v38  ;;  %v1877_v0 = vadd.f32 %v7271_v13, %v1779_v46  ;;  %v1882_v51 = vadd.f32 %v1870_v33, %v1784_v29 }
 0x33d   :  { %2154 = vst.sshfl [vmem:[#allocation1] sm:$0xff pattern:$0x73625140] %v7300_v57  ;;  %v2041_v36 = vld [vmem:[#allocation1 + $0x21] ss:$4 sm:$0xff]  ;;  %v2239_v60 = vrot.slane %v7345_v62, 7 }
 0x33e   :  { %2056 = vst.sshfl [vmem:[#allocation1 + $0x20] sm:$0xff pattern:$0x73625140] %v7286_v63  ;;  %v2045_v58 = vsel %vm1998_vm11, %v2041_v36, %v2042_v56  ;;  %v1975_v41 = vadd.f32 %v7280_v19, %v1877_v0 }
 0x33f   :  { %v2046_v18 = vsel %vm2000_vm12, %v2041_v36, %v2045_v58  ;;  %v2240_v24 = vsel %vm1998_vm11, %v2239_v60, %v7351_v32 }
 0x340   :  { %v1966_v3 = vpop.f32.mrf.mxu0  ;;  %v2047_v12 = vsel %vm2002_vm13, %v2041_v36, %v2046_v18  ;;  %v2241_v53 = vsel %vm2000_vm12, %v2239_v60, %v2240_v24  ;;  %v7404_v26 = vmax.f32 %v1975_v41, 0.0 }
 0x341   :  { %v1979_v52 = vadd.f32 %v1966_v3, %v1881_v45  ;;  %v2048_v7 = vsel %vm2004_vm14, %v2041_v36, %v2047_v12  ;;  %v2242_v11 = vsel %vm2002_vm13, %v2239_v60, %v2241_v53  ;;  %v2106_v12 = vrot.slane %v7317_v27, 1 }
 0x342   :  { %2049 = vrot.lane.b32.xlu0 %v2048_v7, %s6618_s6  ;;  %v2243_v21 = vsel %vm2004_vm14, %v2239_v60, %v2242_v11 }
 0x343   :  { %v7378_v20 = vmax.f32 %v1979_v52, 0.0  ;;  %2245 = vst.msk [vmem:[#allocation3 + $0x10] sm:$0x3] %vm2007_vm15, %v2243_v21 }
 0x344   :  { %v7382_v6 = vld [vmem:[#allocation1 + $0x1] ss:$4 sm:$0xff] }
 0x345   :  { %2171 = vst.sshfl [vmem:[#allocation1] sm:$0xff pattern:$0x73625140] %v7300_v57  ;;  %v2058_v37 = vld [vmem:[#allocation1 + $0x22] ss:$4 sm:$0xff]  ;;  %v2357_v4 = vrot.slane %v7378_v20, 7 }
 0x346   :  { %2071 = vst.sshfl [vmem:[#allocation1 + $0x20] sm:$0xff pattern:$0x73625140] %v7286_v63  ;;  %v2061_v61 = vrot.slane %v2058_v37, 7  ;;  %v2160_v21 = vrot.slane %v7382_v6, 1 }
 0x347   :  { %v2358_v30 = vsel %vm1998_vm11, %v2357_v4, %v7386_v48 }
 0x348   :  { %v1968_v28 = vpop.f32.mrf.mxu0  ;;  %v2062_v39 = vsel %vm1998_vm11, %v2061_v61, %v7277_v15  ;;  %v2359_v16 = vsel %vm2000_vm12, %v2357_v4, %v2358_v30  ;;  %v2074_v15 = vrot.slane %v7283_v54, 1 }
 0x349   :  { %v1980_v42 = vadd.f32 %v1968_v28, %v1882_v51  ;;  %v2063_v13 = vsel %vm2000_vm12, %v2061_v61, %v2062_v39  ;;  %v2360_v10 = vsel %vm2002_vm13, %v2357_v4, %v2359_v16 }
 0x34a   :  { %v2064_v5 = vsel %vm2002_vm13, %v2061_v61, %v2063_v13  ;;  %v2361_v8 = vsel %vm2004_vm14, %v2357_v4, %v2360_v10 }
 0x34b   :  { %v7399_v50 = vmax.f32 %v1980_v42, 0.0  ;;  %v2065_v19 = vsel %vm2004_vm14, %v2061_v61, %v2064_v5  ;;  %2363 = vst.msk [vmem:[#allocation3 + $0x18] sm:$0x3] %vm2007_vm15, %v2361_v8 }
 0x34c   :  { %v7402_v40 = vld [vmem:[#allocation1 + $0x2] ss:$4 sm:$0xff]  ;;  %2067 = vst.msk [vmem:[#allocation3 + $0x4] sm:$0x3] %vm2007_vm15, %v2065_v19 }
 0x34d   :  { %2186 = vst.sshfl [vmem:[#allocation1] sm:$0xff pattern:$0x73625140] %v7300_v57  ;;  %v2073_v44 = vld [vmem:[#allocation1 + $0x22] ss:$4 sm:$0xff]  ;;  %v2475_v55 = vrot.slane %v7399_v50, 7 }
 0x34e   :  { %2088 = vst.sshfl [vmem:[#allocation1 + $0x20] sm:$0xff pattern:$0x73625140] %v7286_v63  ;;  %v2077_v59 = vsel %vm1998_vm11, %v2073_v44, %v2074_v15 }
 0x34f   :  { %v2078_v56 = vsel %vm2000_vm12, %v2073_v44, %v2077_v59  ;;  %v2476_v54 = vsel %vm1998_vm11, %v2475_v55, %v7404_v26 }
 0x350   :  { %v2079_v38 = vsel %vm2002_vm13, %v2073_v44, %v2078_v56  ;;  %v2477_v47 = vsel %vm2000_vm12, %v2475_v55, %v2476_v54 }
 0x351   :  { %v2080_v36 = vsel %vm2004_vm14, %v2073_v44, %v2079_v38  ;;  %v2478_v60 = vsel %vm2002_vm13, %v2475_v55, %v2477_v47 }
 0x352   :  { %2081 = vrot.lane.b32.xlu1 %v2080_v36, %s6618_s6  ;;  %v2479_v43 = vsel %vm2004_vm14, %v2475_v55, %v2478_v60 }
 0x353   :  { %2481 = vst.msk [vmem:[#allocation3 + $0x20] sm:$0x3] %vm2007_vm15, %v2479_v43 }
 0x354   :  { %v7424_v35 = vld [vmem:[#allocation1 + $0x2] ss:$4 sm:$0xff] }
 0x355   :  { %2203 = vst.sshfl [vmem:[#allocation1] sm:$0xff pattern:$0x73625140] %v7300_v57  ;;  %v2090_v58 = vld [vmem:[#allocation1 + $0x23] ss:$4 sm:$0xff]  ;;  %v2192_v5 = vrot.slane %v7424_v35, 1 }
 0x356   :  { %2103 = vst.sshfl [vmem:[#allocation1 + $0x20] sm:$0xff pattern:$0x73625140] %v7286_v63  ;;  %v2093_v14 = vrot.slane %v2090_v58, 7 }
 0x358   :  { %v2094_v45 = vsel %vm1998_vm11, %v2093_v14, %v7288_v17 }
 0x359   :  { %v2095_v18 = vsel %vm2000_vm12, %v2093_v14, %v2094_v45 }
 0x35a   :  { %v2096_v24 = vsel %vm2002_vm13, %v2093_v14, %v2095_v18 }
 0x35b   :  { %v2097_v2 = vsel %vm2004_vm14, %v2093_v14, %v2096_v24 }
 0x35c   :  { %v7433_v3 = vld [vmem:[#allocation1 + $0x3] ss:$4 sm:$0xff]  ;;  %2099 = vst.msk [vmem:[#allocation3 + $0x6] sm:$0x3] %vm2007_vm15, %v2097_v2 }
 0x35d   :  { %2218 = vst.sshfl [vmem:[#allocation1] sm:$0xff pattern:$0x73625140] %v7300_v57  ;;  %v2105_v53 = vld [vmem:[#allocation1 + $0x23] ss:$4 sm:$0xff] }
 0x35e   :  { %2142 = vst.sshfl [vmem:[#allocation1 + $0x20] sm:$0xff pattern:$0x73625140] %v7312_v9  ;;  %v2109_v63 = vsel %vm1998_vm11, %v2105_v53, %v2106_v12 }
 0x35f   :  { %v2110_v17 = vsel %vm2000_vm12, %v2105_v53, %v2109_v63  ;;  %v6330_v63 = vld [vmem:[%s9475_s7 + $0x64] sm:$0xf0] }
 0x360   :  { %v2111_v52 = vsel %vm2002_vm13, %v2105_v53, %v2110_v17  ;;  %v5248_v17 = vld [vmem:[%s9475_s7 + $0xf0] sm:$0xf] }
 0x361   :  { %v2112_v7 = vsel %vm2004_vm14, %v2105_v53, %v2111_v52  ;;  %v5176_v53 = vld [vmem:[%s9475_s7 + $0x60] sm:$0xf]  ;;  %v6348_v52 = vld [vmem:[%s9475_s7 + $0xf4] sm:$0xf0] }
 0x362   :  { %2113 = vrot.lane.b32.xlu1 %v2112_v7, %s6618_s6  ;;  %v5177_v7 = vor.u32 %v6330_v63, %v5176_v53  ;;  %v6342_v53 = vld [vmem:[%s9475_s7 + $0xc4] sm:$0xf0] }
 0x364   :  { %v2220_v11 = vld [vmem:[#allocation1 + $0x3] ss:$4 sm:$0xff] }
 0x365   :  { %v2144_v31 = vld [vmem:[#allocation1 + $0x21] ss:$4 sm:$0xff]  ;;  %2257 = vst.sshfl [vmem:[#allocation1] sm:$0xff pattern:$0x73625140] %v7351_v32  ;;  %v2224_v60 = vrot.slane %v2220_v11, 1  ;;  %v5249_v11 = vor.u32 %v6348_v52, %v5248_v17 }
 0x366   :  { %2157 = vst.sshfl [vmem:[#allocation1 + $0x20] sm:$0xff pattern:$0x73625140] %v7312_v9  ;;  %v2147_v57 = vrot.slane %v2144_v31, 7 }
 0x367   :  { %4281 = vmatpush.bf16.msrb.mxu2 %v5249_v11  ;;  %v5296_v11 = vld [vmem:[%s9475_s7 + $0x150] sm:$0xf] }
 0x368   :  { %v2148_v27 = vsel %vm1998_vm11, %v2147_v57, %v7349_v49  ;;  %v2246_v49 = vrot.slane %v7351_v32, 1 }
 0x369   :  { %v2149_v23 = vsel %vm2000_vm12, %v2147_v57, %v2148_v27 }
 0x36a   :  { %v2150_v25 = vsel %vm2002_vm13, %v2147_v57, %v2149_v23  ;;  %v2249_v6 = vsel %vm1998_vm11, %v7345_v62, %v2246_v49 }
 0x36b   :  { %v2151_v22 = vsel %vm2004_vm14, %v2147_v57, %v2150_v25  ;;  %v2250_v61 = vsel %vm2000_vm12, %v7345_v62, %v2249_v6 }
 0x36c   :  { %v7452_v34 = vld [vmem:[#allocation1 + $0x1] ss:$4 sm:$0xff]  ;;  %2153 = vst.msk [vmem:[#allocation3 + $0xa] sm:$0x3] %vm2007_vm15, %v2151_v22  ;;  %v2251_v41 = vsel %vm2002_vm13, %v7345_v62, %v2250_v61 }
 0x36d   :  { %v2159_v46 = vld [vmem:[#allocation1 + $0x21] ss:$4 sm:$0xff]  ;;  %2272 = vst.sshfl [vmem:[#allocation1] sm:$0xff pattern:$0x73625140] %v7351_v32  ;;  %v2252_v30 = vsel %vm2004_vm14, %v7345_v62, %v2251_v41 }
 0x36e   :  { %2174 = vst.sshfl [vmem:[#allocation1 + $0x20] sm:$0xff pattern:$0x73625140] %v7312_v9  ;;  %v2163_v33 = vsel %vm1998_vm11, %v2159_v46, %v2160_v21 }
 0x36f   :  { %v2164_v29 = vsel %vm2000_vm12, %v2159_v46, %v2163_v33  ;;  %v2364_v33 = vrot.slane %v7386_v48, 1 }
 0x370   :  { %v2165_v37 = vsel %vm2002_vm13, %v2159_v46, %v2164_v29 }
 0x371   :  { %v2166_v0 = vsel %vm2004_vm14, %v2159_v46, %v2165_v37  ;;  %v2367_v37 = vsel %vm1998_vm11, %v7378_v20, %v2364_v33 }
 0x372   :  { %2167 = vrot.lane.b32.xlu2 %v2166_v0, %s6618_s6  ;;  %v2368_v61 = vsel %vm2000_vm12, %v7378_v20, %v2367_v37  ;;  %v5136_v37 = vld [vmem:[%s9475_s7 + $0x10] sm:$0xf] }
 0x374   :  { %v7467_v4 = vld [vmem:[#allocation1 + $0x1] ss:$4 sm:$0xff] }
 0x375   :  { %v2176_v51 = vld [vmem:[#allocation1 + $0x22] ss:$4 sm:$0xff]  ;;  %2289 = vst.sshfl [vmem:[#allocation1] sm:$0xff pattern:$0x73625140] %v7351_v32  ;;  %v2278_v23 = vrot.slane %v7467_v4, 1 }
 0x376   :  { %2189 = vst.sshfl [vmem:[#allocation1 + $0x20] sm:$0xff pattern:$0x73625140] %v7312_v9  ;;  %v2179_v28 = vrot.slane %v2176_v51, 7  ;;  %v5168_v4 = vld [vmem:[%s9475_s7 + $0x50] sm:$0xf] }
 0x377   :  { %v6328_v51 = vld [vmem:[%s9475_s7 + $0x54] sm:$0xf0] }
 0x378   :  { %v2180_v39 = vsel %vm1998_vm11, %v2179_v28, %v7402_v40  ;;  %v5169_v41 = vor.u32 %v6328_v51, %v5168_v4  ;;  %v5288_v4 = vld [vmem:[%s9475_s7 + $0x140] sm:$0xf]  ;;  %v6358_v51 = vld [vmem:[%s9475_s7 + $0x144] sm:$0xf0] }
 0x379   :  { %v2181_v42 = vsel %vm2000_vm12, %v2179_v28, %v2180_v39  ;;  %v5240_v39 = vld [vmem:[%s9475_s7 + $0xe0] sm:$0xf] }
 0x37a   :  { %2253 = vrot.lane.b32.xlu2 %v2252_v30, %s6618_s6  ;;  %v2182_v13 = vsel %vm2002_vm13, %v2179_v28, %v2181_v42  ;;  %v6346_v30 = vld [vmem:[%s9475_s7 + $0xe4] sm:$0xf0]  ;;  %v2369_v42 = vsel %vm2002_vm13, %v7378_v20, %v2368_v61 }
 0x37b   :  { %v2183_v16 = vsel %vm2004_vm14, %v2179_v28, %v2182_v13  ;;  %v5241_v13 = vor.u32 %v6346_v30, %v5240_v39 }
 0x37c   :  { %v7482_v10 = vld [vmem:[#allocation1 + $0x2] ss:$4 sm:$0xff]  ;;  %2185 = vst.msk [vmem:[#allocation3 + $0xc] sm:$0x3] %vm2007_vm15, %v2183_v16 }
 0x37d   :  { %v2191_v19 = vld [vmem:[#allocation1 + $0x22] ss:$4 sm:$0xff]  ;;  %2304 = vst.sshfl [vmem:[#allocation1] sm:$0xff pattern:$0x73625140] %v7351_v32  ;;  %4282 = vmatpush.bf16.msrb.mxu2 %v5241_v13 }
 0x37e   :  { %2206 = vst.sshfl [vmem:[#allocation1 + $0x20] sm:$0xff pattern:$0x73625140] %v7312_v9  ;;  %v2195_v40 = vsel %vm1998_vm11, %v2191_v19, %v2192_v5  ;;  %v5160_v16 = vld [vmem:[%s9475_s7 + $0x40] sm:$0xf] }
 0x37f   :  { %v2196_v15 = vsel %vm2000_vm12, %v2191_v19, %v2195_v40  ;;  %v5312_v40 = vld [vmem:[%s9475_s7 + $0x170] sm:$0xf]  ;;  %v5128_v13 = vld [vmem:[%s9475_s7] sm:$0xf] }
 0x380   :  { %v2197_v8 = vsel %vm2002_vm13, %v2191_v19, %v2196_v15  ;;  %v6364_v15 = vld [vmem:[%s9475_s7 + $0x174] sm:$0xf0] }
 0x381   :  { %v2198_v44 = vsel %vm2004_vm14, %v2191_v19, %v2197_v8  ;;  %v6326_v19 = vld [vmem:[%s9475_s7 + $0x44] sm:$0xf0] }
 0x382   :  { %2199 = vrot.lane.b32.xlu0 %v2198_v44, %s6618_s6  ;;  %v5161_v8 = vor.u32 %v6326_v19, %v5160_v16  ;;  %v5313_v44 = vor.u32 %v6364_v15, %v5312_v40  ;;  %v6318_v16 = vld [vmem:[%s9475_s7 + $0x4] sm:$0xf0]  ;;  %v5280_v19 = vld [vmem:[%s9475_s7 + $0x130] sm:$0xf] }
 0x384   :  { %v7492_v55 = vld [vmem:[#allocation1 + $0x2] ss:$4 sm:$0xff]  ;;  %4294 = vmatpush.bf16.msrb.mxu3 %v5313_v44 }
 0x385   :  { %v2208_v59 = vld [vmem:[#allocation1 + $0x23] ss:$4 sm:$0xff]  ;;  %2321 = vst.sshfl [vmem:[#allocation1] sm:$0xff pattern:$0x73625140] %v7351_v32 }
 0x386   :  { %2221 = vst.sshfl [vmem:[#allocation1 + $0x20] sm:$0xff pattern:$0x73625140] %v7312_v9  ;;  %v2211_v56 = vrot.slane %v2208_v59, 7  ;;  %v5232_v59 = vld [vmem:[%s9475_s7 + $0xd0] sm:$0xf] }
 0x387   :  { %v5200_v44 = vld [vmem:[%s9475_s7 + $0x90] sm:$0xf] }
 0x388   :  { %v2212_v54 = vsel %vm1998_vm11, %v2211_v56, %v7433_v3  ;;  %v6332_v3 = vld [vmem:[%s9475_s7 + $0x74] sm:$0xf0] }
 0x389   :  { %v2213_v38 = vsel %vm2000_vm12, %v2211_v56, %v2212_v54  ;;  %v5152_v54 = vld [vmem:[%s9475_s7 + $0x30] sm:$0xf] }
 0x38a   :  { %v2214_v47 = vsel %vm2002_vm13, %v2211_v56, %v2213_v38 }
 0x38b   :  { %v2215_v36 = vsel %vm2004_vm14, %v2211_v56, %v2214_v47  ;;  %v6344_v56 = vld [vmem:[%s9475_s7 + $0xd4] sm:$0xf0]  ;;  %v2370_v47 = vsel %vm2004_vm14, %v7378_v20, %v2369_v42 }
 0x38c   :  { %v7501_v43 = vld [vmem:[#allocation1 + $0x3] ss:$4 sm:$0xff]  ;;  %2217 = vst.msk [vmem:[#allocation3 + $0xe] sm:$0x3] %vm2007_vm15, %v2215_v36  ;;  %v5233_v36 = vor.u32 %v6344_v56, %v5232_v59 }
 0x38d   :  { %v2223_v35 = vld [vmem:[#allocation1 + $0x23] ss:$4 sm:$0xff]  ;;  %2336 = vst.sshfl [vmem:[#allocation1] sm:$0xff pattern:$0x73625140] %v7351_v32 }
 0x38e   :  { %v2227_v9 = vsel %vm1998_vm11, %v2223_v35, %v2224_v60  ;;  %2260 = vst.sshfl [vmem:[#allocation1 + $0x20] sm:$0xff pattern:$0x73625140] %v7345_v62  ;;  %v5184_v32 = vld [vmem:[%s9475_s7 + $0x70] sm:$0xf]  ;;  %4283 = vmatpush.bf16.msrb.mxu2 %v5233_v36 }
 0x38f   :  { %v2228_v58 = vsel %vm2000_vm12, %v2223_v35, %v2227_v9  ;;  %v5185_v12 = vor.u32 %v6332_v3, %v5184_v32  ;;  %v6324_v60 = vld [vmem:[%s9475_s7 + $0x34] sm:$0xf0]  ;;  %v6362_v9 = vld [vmem:[%s9475_s7 + $0x164] sm:$0xf0]  ;;  %v2310_v32 = vrot.slane %v7492_v55, 1 }
 0x390   :  { %v2229_v14 = vsel %vm2002_vm13, %v2223_v35, %v2228_v58  ;;  %v5144_v55 = vld [vmem:[%s9475_s7 + $0x20] sm:$0xf]  ;;  %v6336_v59 = vld [vmem:[%s9475_s7 + $0x94] sm:$0xf0] }
 0x391   :  { %v2230_v45 = vsel %vm2004_vm14, %v2223_v35, %v2229_v14  ;;  %4268 = vmatpush.bf16.msrb.mxu1 %v5185_v12  ;;  %v5304_v35 = vld [vmem:[%s9475_s7 + $0x160] sm:$0xf] }
 0x392   :  { %2231 = vrot.lane.b32.xlu1 %v2230_v45, %s6618_s6  ;;  %v5224_v12 = vld [vmem:[%s9475_s7 + $0xc0] sm:$0xf] }
 0x393   :  { %v2136_v18 = vpop.permute.xlu2 %2135  ;;  %v5225_v17 = vor.u32 %v6342_v53, %v5224_v12  ;;  %v5368_v36 = vld [vmem:[%s9475_s7 + $0x1e0] sm:$0xf]  ;;  %v5440_v12 = vld [vmem:[%s9475_s7 + $0x270] sm:$0xf]  ;;  %v6396_v53 = vld [vmem:[%s9475_s7 + $0x274] sm:$0xf0] }
 0x394   :  { %2138 = vst.msk [vmem:[#allocation3 + $0x8] sm:$0x3] %vm2019_vm0, %v2136_v18  ;;  %v7512_v24 = vld [vmem:[#allocation1 + $0x3] ss:$4 sm:$0xff]  ;;  %v5305_v18 = vor.u32 %v6362_v9, %v5304_v35 }
 0x395   :  { %v2262_v2 = vld [vmem:[#allocation1 + $0x21] ss:$4 sm:$0xff]  ;;  %2375 = vst.sshfl [vmem:[#allocation1] sm:$0xff pattern:$0x73625140] %v7386_v48  ;;  %4269 = vmatpush.bf16.msrb.mxu1 %v5177_v7  ;;  %4284 = vmatpush.bf16.msrb.mxu2 %v5225_v17  ;;  %v2342_v30 = vrot.slane %v7512_v24, 1 }
 0x396   :  { %2275 = vst.sshfl [vmem:[#allocation1 + $0x20] sm:$0xff pattern:$0x73625140] %v7345_v62  ;;  %v2265_v31 = vrot.slane %v2262_v2, 7  ;;  %4295 = vmatpush.bf16.msrb.mxu3 %v5305_v18  ;;  %v6322_v7 = vld [vmem:[%s9475_s7 + $0x24] sm:$0xf0] }
 0x397   :  { %v5376_v24 = vld [vmem:[%s9475_s7 + $0x1f0] sm:$0xf]  ;;  %v6378_v35 = vld [vmem:[%s9475_s7 + $0x1e4] sm:$0xf0]  ;;  %v5192_v9 = vld [vmem:[%s9475_s7 + $0x80] sm:$0xf] }
 0x398   :  { %v2266_v57 = vsel %vm1998_vm11, %v2265_v31, %v7452_v34  ;;  %v6334_v18 = vld [vmem:[%s9475_s7 + $0x84] sm:$0xf0] }
 0x399   :  { %v2267_v27 = vsel %vm2000_vm12, %v2265_v31, %v2266_v57  ;;  %4270 = vmatpush.bf16.msrb.mxu1 %v5169_v41  ;;  %v5208_v41 = vld [vmem:[%s9475_s7 + $0xa0] sm:$0xf] }
 0x39a   :  { %v2268_v25 = vsel %vm2002_vm13, %v2265_v31, %v2267_v27  ;;  %v5145_v27 = vor.u32 %v6322_v7, %v5144_v55  ;;  %v5441_v55 = vor.u32 %v6396_v53, %v5440_v12  ;;  %v5360_v7 = vld [vmem:[%s9475_s7 + $0x1d0] sm:$0xf] }
 0x39b   :  { %v2269_v21 = vsel %vm2004_vm14, %v2265_v31, %v2268_v25  ;;  %v6360_v31 = vld [vmem:[%s9475_s7 + $0x154] sm:$0xf0]  ;;  %v5216_v25 = vld [vmem:[%s9475_s7 + $0xb0] sm:$0xf] }
 0x39c   :  { %v7544_v29 = vld [vmem:[#allocation1 + $0x1] ss:$4 sm:$0xff]  ;;  %2271 = vst.msk [vmem:[#allocation3 + $0x12] sm:$0x3] %vm2007_vm15, %v2269_v21 }
 0x39d   :  { %v2277_v22 = vld [vmem:[#allocation1 + $0x21] ss:$4 sm:$0xff]  ;;  %2390 = vst.sshfl [vmem:[#allocation1] sm:$0xff pattern:$0x73625140] %v7386_v48  ;;  %4271 = vmatpush.bf16.msrb.mxu1 %v5161_v8 }
 0x39e   :  { %v2281_v46 = vsel %vm1998_vm11, %v2277_v22, %v2278_v23  ;;  %2292 = vst.sshfl [vmem:[#allocation1 + $0x20] sm:$0xff pattern:$0x73625140] %v7345_v62  ;;  %v5297_v23 = vor.u32 %v6360_v31, %v5296_v11  ;;  %v6380_v8 = vld [vmem:[%s9475_s7 + $0x1f4] sm:$0xf0] }
 0x39f   :  { %v2282_v49 = vsel %vm2000_vm12, %v2277_v22, %v2281_v46  ;;  %v5377_v56 = vor.u32 %v6380_v8, %v5376_v24  ;;  %v6376_v11 = vld [vmem:[%s9475_s7 + $0x1d4] sm:$0xf0] }
 0x3a0   :  { %v2283_v34 = vsel %vm2002_vm13, %v2277_v22, %v2282_v49  ;;  %4296 = vmatpush.bf16.msrb.mxu3 %v5297_v23  ;;  %v6394_v23 = vld [vmem:[%s9475_s7 + $0x264] sm:$0xf0] }
 0x3a1   :  { %v2284_v6 = vsel %vm2004_vm14, %v2277_v22, %v2283_v34  ;;  %v6340_v22 = vld [vmem:[%s9475_s7 + $0xb4] sm:$0xf0] }
 0x3a2   :  { %2285 = vrot.lane.b32.xlu0 %v2284_v6, %s6618_s6  ;;  %v5217_v46 = vor.u32 %v6340_v22, %v5216_v25  ;;  %v6320_v6 = vld [vmem:[%s9475_s7 + $0x14] sm:$0xf0] }
 0x3a3   :  { %v2017_v0 = vpop.permute.xlu0 %2016  ;;  %v5137_v61 = vor.u32 %v6320_v6, %v5136_v37  ;;  %v5256_v37 = vld [vmem:[%s9475_s7 + $0x100] sm:$0xf] }
 0x3a4   :  { %2020 = vst.msk [vmem:[#allocation3] sm:$0x3] %vm2019_vm0, %v2017_v0  ;;  %v7607_v14 = vld [vmem:[#allocation1 + $0x1] ss:$4 sm:$0xff]  ;;  %4285 = vmatpush.bf16.msrb.mxu2 %v5217_v46 }
 0x3a5   :  { %v2294_v28 = vld [vmem:[#allocation1 + $0x22] ss:$4 sm:$0xff]  ;;  %2407 = vst.sshfl [vmem:[#allocation1] sm:$0xff pattern:$0x73625140] %v7386_v48  ;;  %v2396_v24 = vrot.slane %v7607_v14, 1 }
 0x3a6   :  { %2307 = vst.sshfl [vmem:[#allocation1 + $0x20] sm:$0xff pattern:$0x73625140] %v7345_v62  ;;  %v2297_v5 = vrot.slane %v2294_v28, 7  ;;  %v5289_v28 = vor.u32 %v6358_v51, %v5288_v4  ;;  %v6374_v4 = vld [vmem:[%s9475_s7 + $0x1c4] sm:$0xf0] }
 0x3a8   :  { %v2298_v38 = vsel %vm1998_vm11, %v2297_v5, %v7482_v10  ;;  %v5153_v10 = vor.u32 %v6324_v60, %v5152_v54  ;;  %4297 = vmatpush.bf16.msrb.mxu3 %v5289_v28  ;;  %v5201_v54 = vor.u32 %v6336_v59, %v5200_v44  ;;  %v5424_v28 = vld [vmem:[%s9475_s7 + $0x250] sm:$0xf]  ;;  %v5336_v44 = vld [vmem:[%s9475_s7 + $0x1a0] sm:$0xf] }
 0x3a9   :  { %v2299_v58 = vsel %vm2000_vm12, %v2297_v5, %v2298_v38  ;;  %v5272_v38 = vld [vmem:[%s9475_s7 + $0x120] sm:$0xf]  ;;  %v5408_v59 = vld [vmem:[%s9475_s7 + $0x230] sm:$0xf] }
 0x3aa   :  { %2371 = vrot.lane.b32.xlu0 %v2370_v47, %s6618_s6  ;;  %v2300_v45 = vsel %vm2002_vm13, %v2297_v5, %v2299_v58  ;;  %4272 = vmatpush.bf16.msrb.mxu1 %v5153_v10  ;;  %v6354_v47 = vld [vmem:[%s9475_s7 + $0x124] sm:$0xf0] }
 0x3ab   :  { %v2301_v2 = vsel %vm2004_vm14, %v2297_v5, %v2300_v45  ;;  %v5129_v5 = vor.u32 %v6318_v16, %v5128_v13  ;;  %v5273_v45 = vor.u32 %v6354_v47, %v5272_v38  ;;  %v6372_v16 = vld [vmem:[%s9475_s7 + $0x1b4] sm:$0xf0]  ;;  %v2482_v38 = vrot.slane %v7404_v26, 1 }
 0x3ac   :  { %2303 = vst.msk [vmem:[#allocation3 + $0x14] sm:$0x3] %vm2007_vm15, %v2301_v2  ;;  %v7644_v33 = vld [vmem:[#allocation1 + $0x2] ss:$4 sm:$0xff] }
 0x3ad   :  { %v2309_v3 = vld [vmem:[#allocation1 + $0x22] ss:$4 sm:$0xff]  ;;  %2422 = vst.sshfl [vmem:[#allocation1] sm:$0xff pattern:$0x73625140] %v7386_v48 }
 0x3ae   :  { %v2313_v63 = vsel %vm1998_vm11, %v2309_v3, %v2310_v32  ;;  %2324 = vst.sshfl [vmem:[#allocation1 + $0x20] sm:$0xff pattern:$0x73625140] %v7345_v62  ;;  %4273 = vmatpush.bf16.msrb.mxu1 %v5145_v27  ;;  %v5369_v32 = vor.u32 %v6378_v35, %v5368_v36  ;;  %v5432_v27 = vld [vmem:[%s9475_s7 + $0x260] sm:$0xf] }
 0x3af   :  { %v2314_v52 = vsel %vm2000_vm12, %v2309_v3, %v2313_v63  ;;  %v5264_v63 = vld [vmem:[%s9475_s7 + $0x110] sm:$0xf] }
 0x3b0   :  { %v2315_v57 = vsel %vm2002_vm13, %v2309_v3, %v2314_v52  ;;  %v6352_v52 = vld [vmem:[%s9475_s7 + $0x114] sm:$0xf0] }
 0x3b1   :  { %v2316_v21 = vsel %vm2004_vm14, %v2309_v3, %v2315_v57  ;;  %v5193_v3 = vor.u32 %v6334_v18, %v5192_v9  ;;  %v5265_v22 = vor.u32 %v6352_v52, %v5264_v63  ;;  %v2485_v9 = vsel %vm1998_vm11, %v7399_v50, %v2482_v38  ;;  %v5320_v52 = vld [vmem:[%s9475_s7 + $0x180] sm:$0xf] }
 0x3b2   :  { %2317 = vrot.lane.b32.xlu1 %v2316_v21, %s6618_s6  ;;  %4274 = vmatpush.bf16.msrb.mxu1 %v5137_v61  ;;  %v5361_v21 = vor.u32 %v6376_v11, %v5360_v7  ;;  %v5352_v61 = vld [vmem:[%s9475_s7 + $0x1c0] sm:$0xf]  ;;  %v2486_v12 = vsel %vm2000_vm12, %v7399_v50, %v2485_v9  ;;  %v6366_v7 = vld [vmem:[%s9475_s7 + $0x184] sm:$0xf0] }
 0x3b4   :  { %v2050_v49 = vpop.permute.xlu0 %2049  ;;  %v7744_v25 = vld [vmem:[#allocation1 + $0x2] ss:$4 sm:$0xff] }
 0x3b5   :  { %2052 = vst.msk [vmem:[#allocation3 + $0x2] sm:$0x3] %vm2019_vm0, %v2050_v49  ;;  %v2326_v34 = vld [vmem:[#allocation1 + $0x23] ss:$4 sm:$0xff]  ;;  %v5433_v49 = vor.u32 %v6394_v23, %v5432_v27  ;;  %v5321_v23 = vor.u32 %v6366_v7, %v5320_v52 }
 0x3b6   :  { %2339 = vst.sshfl [vmem:[#allocation1 + $0x20] sm:$0xff pattern:$0x73625140] %v7345_v62  ;;  %v2329_v0 = vrot.slane %v2326_v34, 7  ;;  %v6338_v62 = vld [vmem:[%s9475_s7 + $0xa4] sm:$0xf0]  ;;  %4275 = vmatpush.bf16.msrb.mxu1 %v5129_v5 }
 0x3b7   :  { %v5209_v42 = vor.u32 %v6338_v62, %v5208_v41  ;;  %2439 = vst.sshfl [vmem:[#allocation1] sm:$0xff pattern:$0x73625140] %v7386_v48  ;;  %v5353_v41 = vor.u32 %v6374_v4, %v5352_v61  ;;  %v6392_v62 = vld [vmem:[%s9475_s7 + $0x254] sm:$0xf0] }
 0x3b8   :  { %v2330_v39 = vsel %vm1998_vm11, %v2329_v0, %v7501_v43  ;;  %v6356_v43 = vld [vmem:[%s9475_s7 + $0x134] sm:$0xf0]  ;;  %v5425_v13 = vor.u32 %v6392_v62, %v5424_v28  ;;  %v5416_v5 = vld [vmem:[%s9475_s7 + $0x240] sm:$0xf]  ;;  %v6410_v4 = vld [vmem:[%s9475_s7 + $0x2e4] sm:$0xf0] }
 0x3b9   :  { %v2331_v40 = vsel %vm2000_vm12, %v2329_v0, %v2330_v39  ;;  %4286 = vmatpush.bf16.msrb.mxu2 %v5209_v42  ;;  %v5281_v15 = vor.u32 %v6356_v43, %v5280_v19  ;;  %v5344_v39 = vld [vmem:[%s9475_s7 + $0x1b0] sm:$0xf]  ;;  %v2428_v62 = vrot.slane %v7744_v25, 1 }
 0x3ba   :  { %v2332_v58 = vsel %vm2002_vm13, %v2329_v0, %v2331_v40  ;;  %4307 = vmatpush.bf16.msra.mxu1 %v5377_v56  ;;  %v5345_v40 = vor.u32 %v6372_v16, %v5344_v39 }
 0x3bb   :  { %4298 = vmatpush.bf16.msrb.mxu3 %v5281_v15  ;;  %v2333_v31 = vsel %vm2004_vm14, %v2329_v0, %v2332_v58  ;;  %v6350_v0 = vld [vmem:[%s9475_s7 + $0x104] sm:$0xf0] }
 0x3bc   :  { %2335 = vst.msk [vmem:[#allocation3 + $0x16] sm:$0x3] %vm2007_vm15, %v2333_v31  ;;  %v5257_v51 = vor.u32 %v6350_v0, %v5256_v37  ;;  %v2487_v31 = vsel %vm2002_vm13, %v7399_v50, %v2486_v12  ;;  %v6382_v0 = vld [vmem:[%s9475_s7 + $0x204] sm:$0xf0] }
 0x3bd   :  { %v2341_v60 = vld [vmem:[#allocation1 + $0x23] ss:$4 sm:$0xff]  ;;  %4287 = vmatpush.bf16.msrb.mxu2 %v5201_v54  ;;  %v2488_v37 = vsel %vm2004_vm14, %v7399_v50, %v2487_v31 }
 0x3be   :  { %v2345_v10 = vsel %vm1998_vm11, %v2341_v60, %v2342_v30  ;;  %2378 = vst.sshfl [vmem:[#allocation1 + $0x20] sm:$0xff pattern:$0x73625140] %v7378_v20  ;;  %4308 = vmatpush.bf16.msra.mxu1 %v5369_v32  ;;  %v7774_v42 = vld [vmem:[#allocation1 + $0x3] ss:$4 sm:$0xff] }
 0x3bf   :  { %v2346_v2 = vsel %vm2000_vm12, %v2341_v60, %v2345_v10  ;;  %4299 = vmatpush.bf16.msrb.mxu3 %v5273_v45  ;;  %2454 = vst.sshfl [vmem:[#allocation1] sm:$0xff pattern:$0x73625140] %v7386_v48  ;;  %v6370_v48 = vld [vmem:[%s9475_s7 + $0x1a4] sm:$0xf0] }
 0x3c0   :  { %v2347_v17 = vsel %vm2002_vm13, %v2341_v60, %v2346_v2  ;;  %v6388_v54 = vld [vmem:[%s9475_s7 + $0x234] sm:$0xf0]  ;;  %v5328_v10 = vld [vmem:[%s9475_s7 + $0x190] sm:$0xf]  ;;  %v5400_v32 = vld [vmem:[%s9475_s7 + $0x220] sm:$0xf] }
 0x3c1   :  { %v2348_v57 = vsel %vm2004_vm14, %v2341_v60, %v2347_v17  ;;  %4288 = vmatpush.bf16.msrb.mxu2 %v5193_v3  ;;  %v5337_v60 = vor.u32 %v6370_v48, %v5336_v44  ;;  %v5409_v58 = vor.u32 %v6388_v54, %v5408_v59  ;;  %v6368_v45 = vld [vmem:[%s9475_s7 + $0x194] sm:$0xf0]  ;;  %v6386_v3 = vld [vmem:[%s9475_s7 + $0x224] sm:$0xf0]  ;;  %v5632_v48 = vld [vmem:[%s9475_s7 + $0x3f0] sm:$0xf] }
 0x3c2   :  { %2349 = vrot.lane.b32.xlu2 %v2348_v57, %s6618_s6  ;;  %4309 = vmatpush.bf16.msra.mxu1 %v5361_v21  ;;  %v5329_v53 = vor.u32 %v6368_v45, %v5328_v10  ;;  %v6384_v57 = vld [vmem:[%s9475_s7 + $0x214] sm:$0xf0]  ;;  %v6426_v54 = vld [vmem:[%s9475_s7 + $0x364] sm:$0xf0] }
 0x3c3   :  { %4300 = vmatpush.bf16.msrb.mxu3 %v5265_v22  ;;  %v5504_v22 = vld [vmem:[%s9475_s7 + $0x2f0] sm:$0xf]  ;;  %v6412_v21 = vld [vmem:[%s9475_s7 + $0x2f4] sm:$0xf0]  ;;  %v6422_v31 = vld [vmem:[%s9475_s7 + $0x344] sm:$0xf0] }
 0x3c4   :  { %v2082_v46 = vpop.permute.xlu1 %2081  ;;  %v6428_v44 = vld [vmem:[%s9475_s7 + $0x374] sm:$0xf0] }
 0x3c5   :  { %4320 = vmatpush.bf16.msra.mxu2 %v5441_v55  ;;  %v2380_v34 = vld [vmem:[#allocation1 + $0x21] ss:$4 sm:$0xff]  ;;  %2084 = vst.msk [vmem:[#allocation3 + $0x4] sm:$0x3] %vm2019_vm0, %v2082_v46  ;;  %v5401_v55 = vor.u32 %v6386_v3, %v5400_v32 }
 0x3c6   :  { %2393 = vst.sshfl [vmem:[#allocation1 + $0x20] sm:$0xff pattern:$0x73625140] %v7378_v20  ;;  %v2383_v6 = vrot.slane %v2380_v34, 7  ;;  %4310 = vmatpush.bf16.msra.mxu1 %v5353_v41  ;;  %v7818_v2 = vld [vmem:[#allocation1 + $0x3] ss:$4 sm:$0xff] }
 0x3c7   :  { %4301 = vmatpush.bf16.msrb.mxu3 %v5257_v51  ;;  %2493 = vst.sshfl [vmem:[#allocation1] sm:$0xff pattern:$0x73625140] %v7404_v26  ;;  %v5392_v26 = vld [vmem:[%s9475_s7 + $0x210] sm:$0xf]  ;;  %v2460_v7 = vrot.slane %v7818_v2, 1 }
 0x3c8   :  { %v2384_v30 = vsel %vm1998_vm11, %v2383_v6, %v7544_v29  ;;  %v6390_v29 = vld [vmem:[%s9475_s7 + $0x244] sm:$0xf0]  ;;  %v5393_v46 = vor.u32 %v6384_v57, %v5392_v26  ;;  %v6444_v59 = vld [vmem:[%s9475_s7 + $0x3f4] sm:$0xf0]  ;;  %v5544_v26 = vld [vmem:[%s9475_s7 + $0x340] sm:$0xf] }
 0x3c9   :  { %4321 = vmatpush.bf16.msra.mxu2 %v5433_v49  ;;  %v2385_v19 = vsel %vm2000_vm12, %v2383_v6, %v2384_v30  ;;  %v5417_v8 = vor.u32 %v6390_v29, %v5416_v5  ;;  %v5505_v49 = vor.u32 %v6412_v21, %v5504_v22  ;;  %v5488_v30 = vld [vmem:[%s9475_s7 + $0x2d0] sm:$0xf]  ;;  %v5633_v45 = vor.u32 %v6444_v59, %v5632_v48  ;;  %v6442_v32 = vld [vmem:[%s9475_s7 + $0x3e4] sm:$0xf0] }
 0x3ca   :  { %v2386_v43 = vsel %vm2002_vm13, %v2383_v6, %v2385_v19  ;;  %4311 = vmatpush.bf16.msra.mxu1 %v5345_v40  ;;  %v6406_v40 = vld [vmem:[%s9475_s7 + $0x2c4] sm:$0xf0]  ;;  %v5472_v21 = vld [vmem:[%s9475_s7 + $0x2b0] sm:$0xf] }
 0x3cb   :  { %v2387_v56 = vsel %vm2004_vm14, %v2383_v6, %v2386_v43  ;;  %v5384_v6 = vld [vmem:[%s9475_s7 + $0x200] sm:$0xf]  ;;  %4333 = vmatpush.bf16.msra.mxu3 %v5505_v49  ;;  %v6404_v49 = vld [vmem:[%s9475_s7 + $0x2b4] sm:$0xf0] }
 0x3cc   :  { %v2168_v15 = vpop.permute.xlu2 %2167  ;;  %2389 = vst.msk [vmem:[#allocation3 + $0x1a] sm:$0x3] %vm2007_vm15, %v2387_v56  ;;  %v5385_v39 = vor.u32 %v6382_v0, %v5384_v6  ;;  %v5480_v43 = vld [vmem:[%s9475_s7 + $0x2c0] sm:$0xf]  ;;  %v5545_v6 = vor.u32 %v6422_v31, %v5544_v26  ;;  %v5473_v0 = vor.u32 %v6404_v49, %v5472_v21  ;;  %v6458_v31 = vld [vmem:[%s9475_s7 + $0x464] sm:$0xf0] }
 0x3cd   :  { %4322 = vmatpush.bf16.msra.mxu2 %v5425_v13  ;;  %2170 = vst.msk [vmem:[#allocation3 + $0xa] sm:$0x3] %vm2019_vm0, %v2168_v15  ;;  %v2395_v14 = vld [vmem:[#allocation1 + $0x21] ss:$4 sm:$0xff]  ;;  %v5481_v56 = vor.u32 %v6406_v40, %v5480_v43 }
 0x3ce   :  { %v2399_v47 = vsel %vm1998_vm11, %v2395_v14, %v2396_v24  ;;  %2410 = vst.sshfl [vmem:[#allocation1 + $0x20] sm:$0xff pattern:$0x73625140] %v7378_v20  ;;  %4312 = vmatpush.bf16.msra.mxu1 %v5337_v60  ;;  %v6408_v13 = vld [vmem:[%s9475_s7 + $0x2d4] sm:$0xf0] }
 0x3cf   :  { %v2400_v36 = vsel %vm2000_vm12, %v2395_v14, %v2399_v47  ;;  %v5489_v19 = vor.u32 %v6408_v13, %v5488_v30  ;;  %v5624_v60 = vld [vmem:[%s9475_s7 + $0x3e0] sm:$0xf]  ;;  %v5456_v13 = vld [vmem:[%s9475_s7 + $0x290] sm:$0xf]  ;;  %v6418_v40 = vld [vmem:[%s9475_s7 + $0x324] sm:$0xf0] }
 0x3d0   :  { %v2401_v35 = vsel %vm2002_vm13, %v2395_v14, %v2400_v36  ;;  %v2495_v48 = vld [vmem:[#allocation1 + $0x1] ss:$4 sm:$0xff] }
 0x3d1   :  { %4323 = vmatpush.bf16.msra.mxu2 %v5417_v8  ;;  %v2402_v18 = vsel %vm2004_vm14, %v2395_v14, %v2401_v35  ;;  %v5568_v8 = vld [vmem:[%s9475_s7 + $0x370] sm:$0xf]  ;;  %v5560_v14 = vld [vmem:[%s9475_s7 + $0x360] sm:$0xf] }
 0x3d2   :  { %2403 = vrot.lane.b32.xlu1 %v2402_v18, %s6618_s6  ;;  %4313 = vmatpush.bf16.msra.mxu1 %v5329_v53  ;;  %v5569_v36 = vor.u32 %v6428_v44, %v5568_v8  ;;  %v5561_v12 = vor.u32 %v6426_v54, %v5560_v14  ;;  %v5625_v53 = vor.u32 %v6442_v32, %v5624_v60  ;;  %v6434_v8 = vld [vmem:[%s9475_s7 + $0x3a4] sm:$0xf0]  ;;  %v5696_v60 = vld [vmem:[%s9475_s7 + $0x470] sm:$0xf]  ;;  %v6476_v32 = vld [vmem:[%s9475_s7 + $0x4f4] sm:$0xf0] }
 0x3d3   :  { %v6398_v14 = vld [vmem:[%s9475_s7 + $0x284] sm:$0xf0]  ;;  %v5824_v49 = vld [vmem:[%s9475_s7 + $0x570] sm:$0xf] }
 0x3d4   :  { %v2114_v63 = vpop.permute.xlu1 %2113  ;;  %v2254_v17 = vpop.permute.xlu2 %2253 }
 0x3d5   :  { %4324 = vmatpush.bf16.msra.mxu2 %v5409_v58  ;;  %v2412_v11 = vld [vmem:[#allocation1 + $0x22] ss:$4 sm:$0xff]  ;;  %2116 = vst.msk [vmem:[#allocation3 + $0x6] sm:$0x3] %vm2019_vm0, %v2114_v63 }
 0x3d6   :  { %2425 = vst.sshfl [vmem:[#allocation1 + $0x20] sm:$0xff pattern:$0x73625140] %v7378_v20  ;;  %v2415_v27 = vrot.slane %v2412_v11, 7  ;;  %4314 = vmatpush.bf16.msra.mxu1 %v5321_v23  ;;  %v6424_v63 = vld [vmem:[%s9475_s7 + $0x354] sm:$0xf0] }
 0x3d7   :  { %2256 = vst.msk [vmem:[#allocation3 + $0x10] sm:$0x3] %vm2019_vm0, %v2254_v17  ;;  %v5616_v17 = vld [vmem:[%s9475_s7 + $0x3d0] sm:$0xf]  ;;  %v5608_v23 = vld [vmem:[%s9475_s7 + $0x3c0] sm:$0xf] }
 0x3d8   :  { %v2416_v34 = vsel %vm1998_vm11, %v2415_v27, %v7644_v33  ;;  %v5496_v33 = vld [vmem:[%s9475_s7 + $0x2e0] sm:$0xf] }
 0x3d9   :  { %4325 = vmatpush.bf16.msra.mxu2 %v5401_v55  ;;  %v2417_v61 = vsel %vm2000_vm12, %v2415_v27, %v2416_v34  ;;  %v5497_v51 = vor.u32 %v6410_v4, %v5496_v33  ;;  %v6440_v55 = vld [vmem:[%s9475_s7 + $0x3d4] sm:$0xf0] }
 0x3da   :  { %2489 = vrot.lane.b32.xlu1 %v2488_v37, %s6618_s6  ;;  %v2418_v41 = vsel %vm2002_vm13, %v2415_v27, %v2417_v61 }
 0x3db   :  { %4334 = vmatpush.bf16.msra.mxu3 %v5497_v51  ;;  %v2419_v25 = vsel %vm2004_vm14, %v2415_v27, %v2418_v41  ;;  %v5617_v27 = vor.u32 %v6440_v55, %v5616_v17  ;;  %v5536_v51 = vld [vmem:[%s9475_s7 + $0x330] sm:$0xf]  ;;  %v6420_v41 = vld [vmem:[%s9475_s7 + $0x334] sm:$0xf0]  ;;  %v5512_v55 = vld [vmem:[%s9475_s7 + $0x300] sm:$0xf] }
 0x3dc   :  { %v2508_v28 = vld [vmem:[#allocation3] sm:$0xff]  ;;  %2421 = vst.msk [vmem:[#allocation3 + $0x1c] sm:$0x3] %vm2007_vm15, %v2419_v25  ;;  %v5537_v25 = vor.u32 %v6420_v41, %v5536_v51 }
 0x3dd   :  { %4326 = vmatpush.bf16.msra.mxu2 %v5393_v46  ;;  %v2427_v16 = vld [vmem:[#allocation1 + $0x22] ss:$4 sm:$0xff]  ;;  %2518 = vst [vmem:[#allocation1] ss:$4 sm:$0xff] %v2508_v28 }
 0x3de   :  { %v2431_v5 = vsel %vm1998_vm11, %v2427_v16, %v2428_v62  ;;  %2442 = vst.sshfl [vmem:[#allocation1 + $0x20] sm:$0xff pattern:$0x73625140] %v7378_v20  ;;  %v6402_v28 = vld [vmem:[%s9475_s7 + $0x2a4] sm:$0xf0] }
 0x3df   :  { %v2432_v29 = vsel %vm2000_vm12, %v2427_v16, %v2431_v5  ;;  %4335 = vmatpush.bf16.msra.mxu3 %v5489_v19  ;;  %v5600_v62 = vld [vmem:[%s9475_s7 + $0x3b0] sm:$0xf] }
 0x3e0   :  { %v2433_v24 = vsel %vm2002_vm13, %v2427_v16, %v2432_v29  ;;  %v5528_v29 = vld [vmem:[%s9475_s7 + $0x320] sm:$0xf] }
 0x3e1   :  { %4327 = vmatpush.bf16.msra.mxu2 %v5385_v39  ;;  %v2434_v15 = vsel %vm2004_vm14, %v2427_v16, %v2433_v24  ;;  %v6436_v39 = vld [vmem:[%s9475_s7 + $0x3b4] sm:$0xf0] }
 0x3e2   :  { %2435 = vrot.lane.b32.xlu2 %v2434_v15, %s6618_s6  ;;  %v6400_v16 = vld [vmem:[%s9475_s7 + $0x294] sm:$0xf0]  ;;  %v5601_v24 = vor.u32 %v6436_v39, %v5600_v62  ;;  %v5592_v15 = vld [vmem:[%s9475_s7 + $0x3a0] sm:$0xf]  ;;  %v6490_v62 = vld [vmem:[%s9475_s7 + $0x564] sm:$0xf0] }
 0x3e3   :  { %4336 = vmatpush.bf16.msra.mxu3 %v5481_v56  ;;  %v5457_v44 = vor.u32 %v6400_v16, %v5456_v13  ;;  %v5448_v56 = vld [vmem:[%s9475_s7 + $0x280] sm:$0xf] }
 0x3e4   :  { %v2521_v38 = vld.sshfl [vmem:[#allocation1] sm:$0xff pattern:$0x73625140]  ;;  %v2522_v47 = vld.sshfl [vmem:[#allocation1 + $0x8] sm:$0xff pattern:$0x73625140] }
 0x3e5   :  { %v2444_v35 = vld [vmem:[#allocation1 + $0x23] ss:$4 sm:$0xff]  ;;  %v7914_v9 = vpack.c.bf16 %v2521_v38, %v2521_v38  ;;  %v7916_v58 = vpack.c.bf16 %v2522_v47, %v2522_v47  ;;  %v5529_v38 = vor.u32 %v6418_v40, %v5528_v29 }
 0x3e6   :  { %v2523_v10 = vld.sshfl [vmem:[#allocation1 + $0x10] sm:$0xff pattern:$0x73625140]  ;;  %2457 = vst.sshfl [vmem:[#allocation1 + $0x20] sm:$0xff pattern:$0x73625140] %v7378_v20 }
 0x3e7   :  { %v7919_v18 = vpack.c.bf16 %v2523_v10, %v2523_v10  ;;  %4276 = vmatmul.bf16.vlgmr.msrb.gmra.mxu1 %v7914_v9  ;;  %4289 = vmatmul.bf16.vlgmr.msrb.gmra.mxu2 %v7916_v58  ;;  %v2447_v3 = vrot.slane %v2444_v35, 7  ;;  %v5552_v20 = vld [vmem:[%s9475_s7 + $0x350] sm:$0xf]  ;;  %v2524_v37 = vld.sshfl [vmem:[#allocation1 + $0x18] sm:$0xff pattern:$0x73625140]  ;;  %v5593_v35 = vor.u32 %v6434_v8, %v5592_v15 }
 0x3e8   :  { %4346 = vmatpush.bf16.msrb.mxu1 %v5569_v36  ;;  %4359 = vmatpush.bf16.msrb.mxu2 %v5633_v45  ;;  %v5553_v11 = vor.u32 %v6424_v63, %v5552_v20  ;;  %v7997_v43 = vpack.c.bf16 %v2524_v37, %v2524_v37  ;;  %v5520_v47 = vld [vmem:[%s9475_s7 + $0x310] sm:$0xf]  ;;  %v6416_v36 = vld [vmem:[%s9475_s7 + $0x314] sm:$0xf0]  ;;  %v5449_v20 = vor.u32 %v6398_v14, %v5448_v56  ;;  %v5736_v39 = vld [vmem:[%s9475_s7 + $0x4c0] sm:$0xf] }
 0x3e9   :  { %4302 = vmatmul.bf16.vlgmr.msrb.gmra.mxu3 %v7919_v18  ;;  %v2448_v52 = vsel %vm1998_vm11, %v2447_v3, %v7774_v42  ;;  %v6438_v42 = vld [vmem:[%s9475_s7 + $0x3c4] sm:$0xf0]  ;;  %v6460_v10 = vld [vmem:[%s9475_s7 + $0x474] sm:$0xf0]  ;;  %v5760_v45 = vld [vmem:[%s9475_s7 + $0x4f0] sm:$0xf]  ;;  %v5521_v26 = vor.u32 %v6416_v36, %v5520_v47 }
 0x3ea   :  { %v2449_v2 = vsel %vm2000_vm12, %v2447_v3, %v2448_v52  ;;  %v5609_v4 = vor.u32 %v6438_v42, %v5608_v23  ;;  %4337 = vmatpush.bf16.msra.mxu3 %v5473_v0  ;;  %v5761_v63 = vor.u32 %v6476_v32, %v5760_v45  ;;  %v5697_v52 = vor.u32 %v6460_v10, %v5696_v60  ;;  %v6472_v0 = vld [vmem:[%s9475_s7 + $0x4d4] sm:$0xf0]  ;;  %v5664_v14 = vld [vmem:[%s9475_s7 + $0x430] sm:$0xf] }
 0x3eb   :  { %v2450_v61 = vsel %vm2002_vm13, %v2447_v3, %v2449_v2  ;;  %v6414_v2 = vld [vmem:[%s9475_s7 + $0x304] sm:$0xf0]  ;;  %v6488_v40 = vld [vmem:[%s9475_s7 + $0x554] sm:$0xf0]  ;;  %v5792_v60 = vld [vmem:[%s9475_s7 + $0x530] sm:$0xf] }
 0x3ec   :  { %4347 = vmatpush.bf16.msrb.mxu1 %v5561_v12  ;;  %4360 = vmatpush.bf16.msrb.mxu2 %v5625_v53  ;;  %v2451_v5 = vsel %vm2004_vm14, %v2447_v3, %v2450_v61  ;;  %v5584_v12 = vld [vmem:[%s9475_s7 + $0x390] sm:$0xf]  ;;  %v6432_v53 = vld [vmem:[%s9475_s7 + $0x394] sm:$0xf0] }
 0x3ed   :  { %v2459_v57 = vld [vmem:[#allocation1 + $0x23] ss:$4 sm:$0xff]  ;;  %2453 = vst.msk [vmem:[#allocation3 + $0x1e] sm:$0x3] %vm2007_vm15, %v2451_v5  ;;  %4385 = vmatpush.bf16.msra.mxu0 %v5761_v63  ;;  %v5585_v42 = vor.u32 %v6432_v53, %v5584_v12 }
 0x3ee   :  { %v2463_v22 = vsel %vm1998_vm11, %v2459_v57, %v2460_v7  ;;  %2496 = vst.sshfl [vmem:[#allocation1 + $0x20] sm:$0xff pattern:$0x73625140] %v7399_v50  ;;  %v5464_v50 = vld [vmem:[%s9475_s7 + $0x2a0] sm:$0xf] }
 0x3ef   :  { %v2464_v46 = vsel %vm2000_vm12, %v2459_v57, %v2463_v22  ;;  %v5465_v30 = vor.u32 %v6402_v28, %v5464_v50  ;;  %v5688_v7 = vld [vmem:[%s9475_s7 + $0x460] sm:$0xf]  ;;  %v5513_v50 = vor.u32 %v6414_v2, %v5512_v55  ;;  %v5680_v61 = vld [vmem:[%s9475_s7 + $0x450] sm:$0xf]  ;;  %v6468_v36 = vld [vmem:[%s9475_s7 + $0x4b4] sm:$0xf0] }
 0x3f0   :  { %v2465_v34 = vsel %vm2002_vm13, %v2459_v57, %v2464_v46  ;;  %4348 = vmatpush.bf16.msrb.mxu1 %v5553_v11  ;;  %4361 = vmatpush.bf16.msrb.mxu2 %v5617_v27  ;;  %v6474_v27 = vld [vmem:[%s9475_s7 + $0x4e4] sm:$0xf0]  ;;  %v5576_v22 = vld [vmem:[%s9475_s7 + $0x380] sm:$0xf]  ;;  %v5689_v37 = vor.u32 %v6458_v31, %v5688_v7  ;;  %v5888_v10 = vld [vmem:[%s9475_s7 + $0x5f0] sm:$0xf] }
 0x3f1   :  { %v2466_v33 = vsel %vm2004_vm14, %v2459_v57, %v2465_v34  ;;  %4338 = vmatpush.bf16.msra.mxu3 %v5465_v30  ;;  %v5752_v57 = vld [vmem:[%s9475_s7 + $0x4e0] sm:$0xf]  ;;  %v6430_v46 = vld [vmem:[%s9475_s7 + $0x384] sm:$0xf0]  ;;  %v6492_v34 = vld [vmem:[%s9475_s7 + $0x574] sm:$0xf0] }
 0x3f2   :  { %2467 = vrot.lane.b32.xlu0 %v2466_v33, %s6618_s6  ;;  %v5753_v21 = vor.u32 %v6474_v27, %v5752_v57  ;;  %v6456_v33 = vld [vmem:[%s9475_s7 + $0x454] sm:$0xf0]  ;;  %v5577_v51 = vor.u32 %v6430_v46, %v5576_v22  ;;  %v5825_v41 = vor.u32 %v6492_v34, %v5824_v49  ;;  %v5816_v28 = vld [vmem:[%s9475_s7 + $0x560] sm:$0xf]  ;;  %v6470_v30 = vld [vmem:[%s9475_s7 + $0x4c4] sm:$0xf0] }
 0x3f3   :  { %v5681_v13 = vor.u32 %v6456_v33, %v5680_v61  ;;  %v5672_v5 = vld [vmem:[%s9475_s7 + $0x440] sm:$0xf]  ;;  %v5817_v29 = vor.u32 %v6490_v62, %v5816_v28  ;;  %v6508_v45 = vld [vmem:[%s9475_s7 + $0x5f4] sm:$0xf0]  ;;  %v6450_v53 = vld [vmem:[%s9475_s7 + $0x424] sm:$0xf0] }
 0x3f4   :  { %v2200_v19 = vpop.permute.xlu0 %2199  ;;  %4349 = vmatpush.bf16.msrb.mxu1 %v5545_v6  ;;  %4362 = vmatpush.bf16.msrb.mxu2 %v5609_v4  ;;  %v5744_v6 = vld [vmem:[%s9475_s7 + $0x4d0] sm:$0xf]  ;;  %v6466_v63 = vld [vmem:[%s9475_s7 + $0x4a4] sm:$0xf0]  ;;  %v6448_v57 = vld [vmem:[%s9475_s7 + $0x414] sm:$0xf0]  ;;  %v5889_v2 = vor.u32 %v6508_v45, %v5888_v10 }
 0x3f5   :  { %2202 = vst.msk [vmem:[#allocation3 + $0xc] sm:$0x3] %vm2019_vm0, %v2200_v19  ;;  %v2498_v59 = vld [vmem:[#allocation1 + $0x21] ss:$4 sm:$0xff]  ;;  %4339 = vmatpush.bf16.msra.mxu3 %v5457_v44  ;;  %4386 = vmatpush.bf16.msra.mxu0 %v5753_v21  ;;  %v5745_v4 = vor.u32 %v6472_v0, %v5744_v6 }
 0x3f6   :  { %v2501_v54 = vrot.slane %v2498_v59, 7  ;;  %v6454_v19 = vld [vmem:[%s9475_s7 + $0x444] sm:$0xf0]  ;;  %v5800_v44 = vld [vmem:[%s9475_s7 + $0x540] sm:$0xf] }
 0x3f7   :  { %4315 = vmatmul.bf16.vlgmr.msra.gmra.mxu1 %v7997_v43  ;;  %v5673_v15 = vor.u32 %v6454_v19, %v5672_v5  ;;  %v6482_v7 = vld [vmem:[%s9475_s7 + $0x524] sm:$0xf0]  ;;  %v5648_v31 = vld [vmem:[%s9475_s7 + $0x410] sm:$0xf]  ;;  %v6464_v0 = vld [vmem:[%s9475_s7 + $0x494] sm:$0xf0] }
 0x3f8   :  { %4350 = vmatpush.bf16.msrb.mxu1 %v5537_v25  ;;  %4363 = vmatpush.bf16.msrb.mxu2 %v5601_v24  ;;  %v2502_v3 = vsel %vm1998_vm11, %v2501_v54, %v2495_v48  ;;  %v5737_v25 = vor.u32 %v6470_v30, %v5736_v39  ;;  %v5808_v24 = vld [vmem:[%s9475_s7 + $0x550] sm:$0xf]  ;;  %v6486_v48 = vld [vmem:[%s9475_s7 + $0x544] sm:$0xf0]  ;;  %v5649_v34 = vor.u32 %v6448_v57, %v5648_v31  ;;  %v6480_v61 = vld [vmem:[%s9475_s7 + $0x514] sm:$0xf0] }
 0x3f9   :  { %v2503_v17 = vsel %vm2000_vm12, %v2501_v54, %v2502_v3  ;;  %4340 = vmatpush.bf16.msra.mxu3 %v5449_v20  ;;  %4387 = vmatpush.bf16.msra.mxu0 %v5745_v4  ;;  %v5809_v8 = vor.u32 %v6488_v40, %v5808_v24  ;;  %v5801_v56 = vor.u32 %v6486_v48, %v5800_v44  ;;  %v5656_v3 = vld [vmem:[%s9475_s7 + $0x420] sm:$0xf]  ;;  %v5712_v6 = vld [vmem:[%s9475_s7 + $0x490] sm:$0xf]  ;;  %v6446_v39 = vld [vmem:[%s9475_s7 + $0x404] sm:$0xf0] }
 0x3fa   :  { %v2504_v11 = vsel %vm2002_vm13, %v2501_v54, %v2503_v17  ;;  %v5720_v20 = vld [vmem:[%s9475_s7 + $0x4a0] sm:$0xf]  ;;  %v5657_v17 = vor.u32 %v6450_v53, %v5656_v3  ;;  %v5872_v4 = vld [vmem:[%s9475_s7 + $0x5d0] sm:$0xf]  ;;  %v6554_v10 = vld [vmem:[%s9475_s7 + $0x764] sm:$0xf0] }
 0x3fb   :  { %v2505_v23 = vsel %vm2004_vm14, %v2501_v54, %v2504_v11  ;;  %v6452_v54 = vld [vmem:[%s9475_s7 + $0x434] sm:$0xf0]  ;;  %v5721_v55 = vor.u32 %v6466_v63, %v5720_v20  ;;  %v5880_v11 = vld [vmem:[%s9475_s7 + $0x5e0] sm:$0xf]  ;;  %v5952_v48 = vld [vmem:[%s9475_s7 + $0x670] sm:$0xf] }
 0x3fc   :  { %4351 = vmatpush.bf16.msrb.mxu1 %v5529_v38  ;;  %4364 = vmatpush.bf16.msrb.mxu2 %v5593_v35  ;;  %2507 = vst.msk [vmem:[#allocation3 + $0x22] sm:$0x3] %vm2007_vm15, %v2505_v23  ;;  %v5728_v38 = vld [vmem:[%s9475_s7 + $0x4b0] sm:$0xf]  ;;  %v5665_v47 = vor.u32 %v6452_v54, %v5664_v14  ;;  %v6484_v35 = vld [vmem:[%s9475_s7 + $0x534] sm:$0xf0] }
 0x3fd   :  { %4372 = vmatpush.bf16.msrb.mxu3 %v5697_v52  ;;  %4388 = vmatpush.bf16.msra.mxu0 %v5737_v25  ;;  %v5729_v32 = vor.u32 %v6468_v36, %v5728_v38  ;;  %v5793_v12 = vor.u32 %v6484_v35, %v5792_v60  ;;  %v5784_v52 = vld [vmem:[%s9475_s7 + $0x520] sm:$0xf]  ;;  %v6478_v25 = vld [vmem:[%s9475_s7 + $0x504] sm:$0xf0]  ;;  %v6080_v14 = vld [vmem:[%s9475_s7 + $0x770] sm:$0xf] }
 0x3fe   :  { %v5785_v22 = vor.u32 %v6482_v7, %v5784_v52  ;;  %v5640_v28 = vld [vmem:[%s9475_s7 + $0x400] sm:$0xf]  ;;  %v6556_v54 = vld [vmem:[%s9475_s7 + $0x774] sm:$0xf0]  ;;  %v6522_v60 = vld [vmem:[%s9475_s7 + $0x664] sm:$0xf0] }
 0x3ff   :  { %v5704_v30 = vld [vmem:[%s9475_s7 + $0x480] sm:$0xf]  ;;  %v6081_v38 = vor.u32 %v6556_v54, %v6080_v14  ;;  %v5856_v45 = vld [vmem:[%s9475_s7 + $0x5b0] sm:$0xf]  ;;  %v6552_v57 = vld [vmem:[%s9475_s7 + $0x754] sm:$0xf0] }
 0x400   :  { %4352 = vmatpush.bf16.msrb.mxu1 %v5521_v26  ;;  %4365 = vmatpush.bf16.msrb.mxu2 %v5585_v42  ;;  %v6506_v26 = vld [vmem:[%s9475_s7 + $0x5e4] sm:$0xf0]  ;;  %v5768_v19 = vld [vmem:[%s9475_s7 + $0x500] sm:$0xf]  ;;  %v5936_v7 = vld [vmem:[%s9475_s7 + $0x650] sm:$0xf] }
 0x401   :  { %4373 = vmatpush.bf16.msrb.mxu3 %v5689_v37  ;;  %4389 = vmatpush.bf16.msra.mxu0 %v5729_v32  ;;  %v5881_v33 = vor.u32 %v6506_v26, %v5880_v11  ;;  %v5769_v44 = vor.u32 %v6478_v25, %v5768_v19  ;;  %v6072_v35 = vld [vmem:[%s9475_s7 + $0x760] sm:$0xf]  ;;  %v6500_v32 = vld [vmem:[%s9475_s7 + $0x5b4] sm:$0xf0]  ;;  %v6064_v31 = vld [vmem:[%s9475_s7 + $0x750] sm:$0xf] }
 0x402   :  { %v6073_v53 = vor.u32 %v6554_v10, %v6072_v35  ;;  %v5857_v63 = vor.u32 %v6500_v32, %v5856_v45  ;;  %v6520_v11 = vld [vmem:[%s9475_s7 + $0x654] sm:$0xf0]  ;;  %v6128_v19 = vld [vmem:[%s9475_s7 + $0x7d0] sm:$0xf]  ;;  %v5912_v45 = vld [vmem:[%s9475_s7 + $0x620] sm:$0xf] }
 0x403   :  { %v5937_v26 = vor.u32 %v6520_v11, %v5936_v7  ;;  %v6568_v25 = vld [vmem:[%s9475_s7 + $0x7d4] sm:$0xf0]  ;;  %v6016_v14 = vld [vmem:[%s9475_s7 + $0x6f0] sm:$0xf]  ;;  %v6546_v7 = vld [vmem:[%s9475_s7 + $0x724] sm:$0xf0] }
 0x404   :  { %v2232_v16 = vpop.permute.xlu1 %2231  ;;  %4353 = vmatpush.bf16.msrb.mxu1 %v5513_v50  ;;  %4366 = vmatpush.bf16.msrb.mxu2 %v5577_v51  ;;  %v5776_v50 = vld [vmem:[%s9475_s7 + $0x510] sm:$0xf]  ;;  %v6504_v51 = vld [vmem:[%s9475_s7 + $0x5d4] sm:$0xf0]  ;;  %v6129_v32 = vor.u32 %v6568_v25, %v6128_v19  ;;  %v6562_v19 = vld [vmem:[%s9475_s7 + $0x7a4] sm:$0xf0] }
 0x405   :  { %2234 = vst.msk [vmem:[#allocation3 + $0xe] sm:$0x3] %vm2019_vm0, %v2232_v16  ;;  %4374 = vmatpush.bf16.msrb.mxu3 %v5681_v13  ;;  %4390 = vmatpush.bf16.msra.mxu0 %v5721_v55  ;;  %v5777_v62 = vor.u32 %v6480_v61, %v5776_v50  ;;  %v6462_v13 = vld [vmem:[%s9475_s7 + $0x484] sm:$0xf0]  ;;  %v5641_v16 = vor.u32 %v6446_v39, %v5640_v28  ;;  %v6572_v28 = vld [vmem:[%s9475_s7 + $0x7f4] sm:$0xf0] }
 0x406   :  { %v5705_v5 = vor.u32 %v6462_v13, %v5704_v30  ;;  %v5873_v40 = vor.u32 %v6504_v51, %v5872_v4  ;;  %v6498_v55 = vld [vmem:[%s9475_s7 + $0x5a4] sm:$0xf0]  ;;  %v5832_v4 = vld [vmem:[%s9475_s7 + $0x580] sm:$0xf] }
 0x407   :  { %v6494_v51 = vld [vmem:[%s9475_s7 + $0x584] sm:$0xf0]  ;;  %v6136_v30 = vld [vmem:[%s9475_s7 + $0x7e0] sm:$0xf] }
 0x408   :  { %4398 = vmatpush.bf16.msra.mxu1 %v5825_v41  ;;  %v5713_v41 = vor.u32 %v6464_v0, %v5712_v6  ;;  %v5840_v6 = vld [vmem:[%s9475_s7 + $0x590] sm:$0xf]  ;;  %v6496_v0 = vld [vmem:[%s9475_s7 + $0x594] sm:$0xf0]  ;;  %v6570_v13 = vld [vmem:[%s9475_s7 + $0x7e4] sm:$0xf0] }
 0x409   :  { %4375 = vmatpush.bf16.msrb.mxu3 %v5673_v15  ;;  %v5864_v15 = vld [vmem:[%s9475_s7 + $0x5c0] sm:$0xf] }
 0x40a   :  { %4391 = vmatpush.bf16.msra.mxu0 %v5713_v41  ;;  %v6144_v41 = vld [vmem:[%s9475_s7 + $0x7f0] sm:$0xf] }
 0x40b   :  { %v6145_v39 = vor.u32 %v6572_v28, %v6144_v41  ;;  %v6024_v41 = vld [vmem:[%s9475_s7 + $0x700] sm:$0xf]  ;;  %v6542_v28 = vld [vmem:[%s9475_s7 + $0x704] sm:$0xf0] }
 0x40c   :  { %4399 = vmatpush.bf16.msra.mxu1 %v5817_v29  ;;  %v2509_v59 = vld [vmem:[#allocation3 + $0x8] sm:$0xff] }
 0x40d   :  { %2520 = vst [vmem:[#allocation1 + $0x20] ss:$4 sm:$0xff] %v2509_v59  ;;  %4376 = vmatpush.bf16.msrb.mxu3 %v5665_v47  ;;  %v6524_v59 = vld [vmem:[%s9475_s7 + $0x674] sm:$0xf0]  ;;  %v5944_v47 = vld [vmem:[%s9475_s7 + $0x660] sm:$0xf] }
 0x40e   :  { %4392 = vmatpush.bf16.msra.mxu0 %v5705_v5  ;;  %v5945_v3 = vor.u32 %v6522_v60, %v5944_v47  ;;  %v6048_v47 = vld [vmem:[%s9475_s7 + $0x730] sm:$0xf]  ;;  %v6120_v60 = vld [vmem:[%s9475_s7 + $0x7c0] sm:$0xf] }
 0x410   :  { %4400 = vmatpush.bf16.msra.mxu1 %v5809_v8  ;;  %v6502_v8 = vld [vmem:[%s9475_s7 + $0x5c4] sm:$0xf0] }
 0x411   :  { %4377 = vmatpush.bf16.msrb.mxu3 %v5657_v17  ;;  %v5865_v36 = vor.u32 %v6502_v8, %v5864_v15  ;;  %v5848_v17 = vld [vmem:[%s9475_s7 + $0x5a0] sm:$0xf]  ;;  %v6137_v8 = vor.u32 %v6570_v13, %v6136_v30  ;;  %v6208_v30 = vld [vmem:[%s9475_s7 + $0x870] sm:$0xf]  ;;  %v6588_v13 = vld [vmem:[%s9475_s7 + $0x874] sm:$0xf0] }
 0x414   :  { %4401 = vmatpush.bf16.msra.mxu1 %v5801_v56  ;;  %v2286_v27 = vpop.permute.xlu0 %2285  ;;  %v2525_v23 = vld.sshfl [vmem:[#allocation1 + $0x20] sm:$0xff pattern:$0x73625140]  ;;  %v2526_v42 = vld.sshfl [vmem:[#allocation1 + $0x28] sm:$0xff pattern:$0x73625140]  ;;  %v5953_v56 = vor.u32 %v6524_v59, %v5952_v48 }
 0x415   :  { %2288 = vst.msk [vmem:[#allocation3 + $0x12] sm:$0x3] %vm2019_vm0, %v2286_v27  ;;  %v8173_v21 = vpack.c.bf16 %v2525_v23, %v2525_v23  ;;  %v8175_v46 = vpack.c.bf16 %v2526_v42, %v2526_v42  ;;  %v2527_v49 = vld.sshfl [vmem:[#allocation1 + $0x30] sm:$0xff pattern:$0x73625140]  ;;  %4378 = vmatpush.bf16.msrb.mxu3 %v5649_v34  ;;  %v6065_v27 = vor.u32 %v6552_v57, %v6064_v31 }
 0x416   :  { %v8177_v37 = vpack.c.bf16 %v2527_v49, %v2527_v49  ;;  %v5928_v23 = vld [vmem:[%s9475_s7 + $0x640] sm:$0xf]  ;;  %v6518_v42 = vld [vmem:[%s9475_s7 + $0x644] sm:$0xf0]  ;;  %v5920_v59 = vld [vmem:[%s9475_s7 + $0x630] sm:$0xf] }
 0x417   :  { %4328 = vmatmul.bf16.vlgmr.msra.gmra.mxu2 %v8173_v21  ;;  %4341 = vmatmul.bf16.vlgmr.msra.gmra.mxu3 %v8175_v46  ;;  %v6056_v49 = vld [vmem:[%s9475_s7 + $0x740] sm:$0xf]  ;;  %v6550_v34 = vld [vmem:[%s9475_s7 + $0x744] sm:$0xf0]  ;;  %v6512_v31 = vld [vmem:[%s9475_s7 + $0x614] sm:$0xf0] }
 0x418   :  { %4402 = vmatpush.bf16.msra.mxu1 %v5793_v12  ;;  %4411 = vmatpush.bf16.msra.mxu2 %v5889_v2  ;;  %v2528_v12 = vld.sshfl [vmem:[#allocation1 + $0x38] sm:$0xff pattern:$0x73625140]  ;;  %v5849_v2 = vor.u32 %v6498_v55, %v5848_v17  ;;  %v6057_v50 = vor.u32 %v6550_v34, %v6056_v49  ;;  %v6040_v55 = vld [vmem:[%s9475_s7 + $0x720] sm:$0xf] }
 0x419   :  { %4354 = vmatmul.bf16.vlgmr.msrb.gmra.mxu1 %v8177_v37  ;;  %4379 = vmatpush.bf16.msrb.mxu3 %v5641_v16  ;;  %v8263_v52 = vpack.c.bf16 %v2528_v12, %v2528_v12  ;;  %v6008_v12 = vld [vmem:[%s9475_s7 + $0x6e0] sm:$0xf]  ;;  %v6041_v11 = vor.u32 %v6546_v7, %v6040_v55  ;;  %v6544_v34 = vld [vmem:[%s9475_s7 + $0x714] sm:$0xf0]  ;;  %v6343_v55 = vld [vmem:[%s9475_s7 + $0xd4] sm:$0xf] }
 0x41a   :  { %v5234_v7 = vld [vmem:[%s9475_s7 + $0xd8] sm:$0xf0] }
 0x41c   :  { %4403 = vmatpush.bf16.msra.mxu1 %v5785_v22  ;;  %v2350_v29 = vpop.permute.xlu2 %2349  ;;  %v2372_v24 = vpop.permute.xlu0 %2371  ;;  %4412 = vmatpush.bf16.msra.mxu2 %v5881_v33  ;;  %v5929_v22 = vor.u32 %v6518_v42, %v5928_v23  ;;  %v5841_v33 = vor.u32 %v6496_v0, %v5840_v6  ;;  %v6536_v23 = vld [vmem:[%s9475_s7 + $0x6d4] sm:$0xf0]  ;;  %v6032_v42 = vld [vmem:[%s9475_s7 + $0x710] sm:$0xf] }
 0x41d   :  { %2352 = vst.msk [vmem:[#allocation3 + $0x16] sm:$0x3] %vm2019_vm0, %v2350_v29  ;;  %4424 = vmatpush.bf16.msra.mxu3 %v5953_v56  ;;  %v6516_v56 = vld [vmem:[%s9475_s7 + $0x634] sm:$0xf0] }
 0x41e   :  { %2374 = vst.msk [vmem:[#allocation3 + $0x18] sm:$0x3] %vm2019_vm0, %v2372_v24  ;;  %v5921_v54 = vor.u32 %v6516_v56, %v5920_v59  ;;  %v6564_v6 = vld [vmem:[%s9475_s7 + $0x7b4] sm:$0xf0]  ;;  %v5984_v56 = vld [vmem:[%s9475_s7 + $0x6b0] sm:$0xf] }
 0x420   :  { %4404 = vmatpush.bf16.msra.mxu1 %v5777_v62  ;;  %4413 = vmatpush.bf16.msra.mxu2 %v5873_v40  ;;  %v5833_v62 = vor.u32 %v6494_v51, %v5832_v4  ;;  %v5992_v4 = vld [vmem:[%s9475_s7 + $0x6c0] sm:$0xf]  ;;  %v6534_v51 = vld [vmem:[%s9475_s7 + $0x6c4] sm:$0xf0] }
 0x421   :  { %4425 = vmatpush.bf16.msra.mxu3 %v5945_v3  ;;  %v6514_v3 = vld [vmem:[%s9475_s7 + $0x624] sm:$0xf0]  ;;  %v5993_v25 = vor.u32 %v6534_v51, %v5992_v4  ;;  %v6341_v4 = vld [vmem:[%s9475_s7 + $0xc4] sm:$0xf] }
 0x422   :  { %v6361_v51 = vld [vmem:[%s9475_s7 + $0x164] sm:$0xf] }
 0x424   :  { %4405 = vmatpush.bf16.msra.mxu1 %v5769_v44  ;;  %v2318_v20 = vpop.permute.xlu1 %2317  ;;  %4414 = vmatpush.bf16.msra.mxu2 %v5865_v36  ;;  %v6548_v36 = vld [vmem:[%s9475_s7 + $0x734] sm:$0xf0] }
 0x425   :  { %2320 = vst.msk [vmem:[#allocation3 + $0x14] sm:$0x3] %vm2019_vm0, %v2318_v20  ;;  %4426 = vmatpush.bf16.msra.mxu3 %v5937_v26  ;;  %v6049_v10 = vor.u32 %v6548_v36, %v6048_v47  ;;  %v6566_v20 = vld [vmem:[%s9475_s7 + $0x7c4] sm:$0xf0]  ;;  %v5904_v26 = vld [vmem:[%s9475_s7 + $0x610] sm:$0xf] }
 0x426   :  { %v5905_v49 = vor.u32 %v6512_v31, %v5904_v26  ;;  %v6586_v47 = vld [vmem:[%s9475_s7 + $0x864] sm:$0xf0]  ;;  %v6345_v36 = vld [vmem:[%s9475_s7 + $0xe4] sm:$0xf]  ;;  %v6088_v26 = vld [vmem:[%s9475_s7 + $0x780] sm:$0xf] }
 0x427   :  { %4367 = vmatmul.bf16.vlgmr.msrb.gmra.mxu2 %v8263_v52  ;;  %v6558_v31 = vld [vmem:[%s9475_s7 + $0x784] sm:$0xf0] }
 0x428   :  { %4450 = vmatpush.bf16.msrb.mxu1 %v6081_v38  ;;  %4415 = vmatpush.bf16.msra.mxu2 %v5857_v63  ;;  %v6540_v38 = vld [vmem:[%s9475_s7 + $0x6f4] sm:$0xf0]  ;;  %v5913_v63 = vor.u32 %v6514_v3, %v5912_v45 }
 0x429   :  { %4427 = vmatpush.bf16.msra.mxu3 %v5929_v22  ;;  %v6017_v35 = vor.u32 %v6540_v38, %v6016_v14  ;;  %v6112_v22 = vld [vmem:[%s9475_s7 + $0x7b0] sm:$0xf]  ;;  %v6532_v14 = vld [vmem:[%s9475_s7 + $0x6b4] sm:$0xf0] }
 0x42a   :  { %v6560_v45 = vld [vmem:[%s9475_s7 + $0x794] sm:$0xf0] }
 0x42b   :  { %4437 = vmatpush.bf16.msrb.mxu0 %v6017_v35 }
 0x42c   :  { %4451 = vmatpush.bf16.msrb.mxu1 %v6073_v53  ;;  %v2510_v61 = vld [vmem:[#allocation3 + $0x10] sm:$0xff]  ;;  %4416 = vmatpush.bf16.msra.mxu2 %v5849_v2  ;;  %v6121_v2 = vor.u32 %v6566_v20, %v6120_v60 }
 0x42d   :  { %2529 = vst [vmem:[#allocation1] ss:$4 sm:$0xff] %v2510_v61  ;;  %4428 = vmatpush.bf16.msra.mxu3 %v5921_v54  ;;  %v6538_v53 = vld [vmem:[%s9475_s7 + $0x6e4] sm:$0xf0]  ;;  %v5896_v61 = vld [vmem:[%s9475_s7 + $0x600] sm:$0xf] }
 0x42e   :  { %v6009_v17 = vor.u32 %v6538_v53, %v6008_v12  ;;  %v6200_v54 = vld [vmem:[%s9475_s7 + $0x860] sm:$0xf]  ;;  %v5242_v60 = vld [vmem:[%s9475_s7 + $0xe8] sm:$0xf0]  ;;  %v6530_v20 = vld [vmem:[%s9475_s7 + $0x6a4] sm:$0xf0] }
 0x42f   :  { %v6201_v3 = vor.u32 %v6586_v47, %v6200_v54  ;;  %v5245_v12 = vor.u32 %v6345_v36, %v5242_v60  ;;  %v5976_v53 = vld [vmem:[%s9475_s7 + $0x6a0] sm:$0xf]  ;;  %v6578_v36 = vld [vmem:[%s9475_s7 + $0x824] sm:$0xf0] }
 0x430   :  { %4452 = vmatpush.bf16.msrb.mxu1 %v6065_v27  ;;  %4417 = vmatpush.bf16.msra.mxu2 %v5841_v33  ;;  %v6000_v27 = vld [vmem:[%s9475_s7 + $0x6d0] sm:$0xf]  ;;  %v6510_v33 = vld [vmem:[%s9475_s7 + $0x604] sm:$0xf0]  ;;  %v6168_v47 = vld [vmem:[%s9475_s7 + $0x820] sm:$0xf] }
 0x431   :  { %4429 = vmatpush.bf16.msra.mxu3 %v5913_v63  ;;  %4438 = vmatpush.bf16.msrb.mxu0 %v6009_v17  ;;  %v6001_v0 = vor.u32 %v6536_v23, %v6000_v27  ;;  %v6192_v63 = vld [vmem:[%s9475_s7 + $0x850] sm:$0xf]  ;;  %v6584_v17 = vld [vmem:[%s9475_s7 + $0x854] sm:$0xf0]  ;;  %v6363_v27 = vld [vmem:[%s9475_s7 + $0x174] sm:$0xf] }
 0x432   :  { %v5314_v23 = vld [vmem:[%s9475_s7 + $0x178] sm:$0xf0] }
 0x434   :  { %4453 = vmatpush.bf16.msrb.mxu1 %v6057_v50  ;;  %4418 = vmatpush.bf16.msra.mxu2 %v5833_v62  ;;  %v2531_v16 = vld.sshfl [vmem:[#allocation1] sm:$0xff pattern:$0x73625140]  ;;  %v2532_v5 = vld.sshfl [vmem:[#allocation1 + $0x8] sm:$0xff pattern:$0x73625140]  ;;  %v6033_v50 = vor.u32 %v6544_v34, %v6032_v42  ;;  %v6113_v62 = vor.u32 %v6564_v6, %v6112_v22  ;;  %v6193_v42 = vor.u32 %v6584_v17, %v6192_v63 }
 0x435   :  { %v8320_v29 = vpack.c.bf16 %v2531_v16, %v2531_v16  ;;  %v8322_v24 = vpack.c.bf16 %v2532_v5, %v2532_v5  ;;  %v2533_v40 = vld.sshfl [vmem:[#allocation1 + $0x10] sm:$0xff pattern:$0x73625140]  ;;  %v2534_v15 = vld.sshfl [vmem:[#allocation1 + $0x18] sm:$0xff pattern:$0x73625140]  ;;  %4430 = vmatpush.bf16.msra.mxu3 %v5905_v49  ;;  %4439 = vmatpush.bf16.msrb.mxu0 %v6001_v0  ;;  %v6089_v49 = vor.u32 %v6558_v31, %v6088_v26 }
 0x436   :  { %v8324_v44 = vpack.c.bf16 %v2533_v40, %v2533_v40  ;;  %v8326_v48 = vpack.c.bf16 %v2534_v15, %v2534_v15  ;;  %v6347_v16 = vld [vmem:[%s9475_s7 + $0xf4] sm:$0xf]  ;;  %v6104_v5 = vld [vmem:[%s9475_s7 + $0x7a0] sm:$0xf]  ;;  %v6025_v40 = vor.u32 %v6542_v28, %v6024_v41  ;;  %v5250_v15 = vld [vmem:[%s9475_s7 + $0xf8] sm:$0xf0]  ;;  %v5317_v0 = vor.u32 %v6363_v27, %v5314_v23 }
 0x437   :  { %4380 = vmatmul.bf16.vlgmr.msrb.gmra.mxu3 %v8320_v29  ;;  %4393 = vmatmul.bf16.vlgmr.msra.gmra.mxu0 %v8322_v24  ;;  %v5253_v59 = vor.u32 %v6347_v16, %v5250_v15  ;;  %v6105_v35 = vor.u32 %v6562_v19, %v6104_v5  ;;  %v5968_v34 = vld [vmem:[%s9475_s7 + $0x690] sm:$0xf]  ;;  %v6528_v6 = vld [vmem:[%s9475_s7 + $0x694] sm:$0xf0]  ;;  %v5306_v41 = vld [vmem:[%s9475_s7 + $0x168] sm:$0xf0]  ;;  %v6169_v63 = vor.u32 %v6578_v36, %v6168_v47 }
 0x438   :  { %4463 = vmatpush.bf16.msrb.mxu2 %v6145_v39  ;;  %4406 = vmatmul.bf16.vlgmr.msra.gmra.mxu1 %v8324_v44  ;;  %v5897_v39 = vor.u32 %v6510_v33, %v5896_v61  ;;  %v6184_v61 = vld [vmem:[%s9475_s7 + $0x840] sm:$0xf]  ;;  %v6582_v33 = vld [vmem:[%s9475_s7 + $0x844] sm:$0xf0]  ;;  %v6176_v16 = vld [vmem:[%s9475_s7 + $0x830] sm:$0xf] }
 0x439   :  { %4419 = vmatmul.bf16.vlgmr.msra.gmra.mxu2 %v8326_v48  ;;  %4454 = vmatpush.bf16.msrb.mxu1 %v6049_v10  ;;  %v6096_v10 = vld [vmem:[%s9475_s7 + $0x790] sm:$0xf]  ;;  %v6185_v28 = vor.u32 %v6582_v33, %v6184_v61  ;;  %v6580_v5 = vld [vmem:[%s9475_s7 + $0x834] sm:$0xf0]  ;;  %v6359_v15 = vld [vmem:[%s9475_s7 + $0x154] sm:$0xf] }
 0x43a   :  { %4431 = vmatpush.bf16.msra.mxu3 %v5897_v39  ;;  %4440 = vmatpush.bf16.msrb.mxu0 %v5993_v25  ;;  %v6240_v19 = vld [vmem:[%s9475_s7 + $0x8b0] sm:$0xf]  ;;  %v6596_v25 = vld [vmem:[%s9475_s7 + $0x8b4] sm:$0xf0]  ;;  %v6177_v54 = vor.u32 %v6580_v5, %v6176_v16  ;;  %v5202_v27 = vld [vmem:[%s9475_s7 + $0x98] sm:$0xf0] }
 0x43b   :  { %v6224_v26 = vld [vmem:[%s9475_s7 + $0x890] sm:$0xf]  ;;  %v6592_v31 = vld [vmem:[%s9475_s7 + $0x894] sm:$0xf0]  ;;  %v6590_v61 = vld [vmem:[%s9475_s7 + $0x884] sm:$0xf0] }
 0x43c   :  { %4464 = vmatpush.bf16.msrb.mxu2 %v6137_v8  ;;  %v2436_v57 = vpop.permute.xlu2 %2435  ;;  %v6209_v8 = vor.u32 %v6588_v13, %v6208_v30  ;;  %v5960_v30 = vld [vmem:[%s9475_s7 + $0x680] sm:$0xf]  ;;  %v6526_v13 = vld [vmem:[%s9475_s7 + $0x684] sm:$0xf0]  ;;  %v6333_v33 = vld [vmem:[%s9475_s7 + $0x84] sm:$0xf] }
 0x43d   :  { %2438 = vst.msk [vmem:[#allocation3 + $0x1c] sm:$0x3] %vm2019_vm0, %v2436_v57  ;;  %4455 = vmatpush.bf16.msrb.mxu1 %v6041_v11  ;;  %v6097_v11 = vor.u32 %v6560_v45, %v6096_v10  ;;  %v5977_v57 = vor.u32 %v6530_v20, %v5976_v53  ;;  %v6232_v10 = vld [vmem:[%s9475_s7 + $0x8a0] sm:$0xf]  ;;  %v6594_v45 = vld [vmem:[%s9475_s7 + $0x8a4] sm:$0xf0] }
 0x43e   :  { %4476 = vmatpush.bf16.msrb.mxu3 %v6209_v8  ;;  %v5961_v8 = vor.u32 %v6526_v13, %v5960_v30  ;;  %v6357_v53 = vld [vmem:[%s9475_s7 + $0x144] sm:$0xf]  ;;  %v5290_v20 = vld [vmem:[%s9475_s7 + $0x148] sm:$0xf0]  ;;  %v6233_v17 = vor.u32 %v6594_v45, %v6232_v10  ;;  %v2858_v13 = vld [vmem:[%s9476_s8] sm:$0x3] }
 0x43f   :  { %v5293_v23 = vor.u32 %v6357_v53, %v5290_v20  ;;  %v6351_v5 = vld [vmem:[%s9475_s7 + $0x114] sm:$0xf]  ;;  %v5378_v53 = vld [vmem:[%s9475_s7 + $0x1f8] sm:$0xf0] }
 0x440   :  { %4465 = vmatpush.bf16.msrb.mxu2 %v6129_v32  ;;  %v5985_v32 = vor.u32 %v6532_v14, %v5984_v56  ;;  %v5218_v56 = vld [vmem:[%s9475_s7 + $0xb8] sm:$0xf0]  ;;  %v6331_v45 = vld [vmem:[%s9475_s7 + $0x74] sm:$0xf] }
 0x441   :  { %4456 = vmatpush.bf16.msrb.mxu1 %v6033_v50  ;;  %v5969_v50 = vor.u32 %v6528_v6, %v5968_v34  ;;  %v5298_v14 = vld [vmem:[%s9475_s7 + $0x158] sm:$0xf0]  ;;  %v6152_v34 = vld [vmem:[%s9475_s7 + $0x800] sm:$0xf]  ;;  %v6411_v20 = vld [vmem:[%s9475_s7 + $0x2f4] sm:$0xf] }
 0x442   :  { %4441 = vmatpush.bf16.msrb.mxu0 %v5985_v32  ;;  %4477 = vmatpush.bf16.msrb.mxu3 %v6201_v3  ;;  %v6337_v32 = vld [vmem:[%s9475_s7 + $0xa4] sm:$0xf]  ;;  %v5210_v3 = vld [vmem:[%s9475_s7 + $0xa8] sm:$0xf0] }
 0x444   :  { %4466 = vmatpush.bf16.msrb.mxu2 %v6121_v2  ;;  %v2404_v38 = vpop.permute.xlu1 %2403  ;;  %v5237_v2 = vor.u32 %v6343_v55, %v5234_v7  ;;  %v6160_v55 = vld [vmem:[%s9475_s7 + $0x810] sm:$0xf]  ;;  %v5213_v7 = vor.u32 %v6337_v32, %v5210_v3  ;;  %v5186_v32 = vld [vmem:[%s9475_s7 + $0x78] sm:$0xf0] }
 0x445   :  { %2406 = vst.msk [vmem:[#allocation3 + $0x1a] sm:$0x3] %vm2019_vm0, %v2404_v38  ;;  %4457 = vmatpush.bf16.msrb.mxu1 %v6025_v40  ;;  %v5309_v40 = vor.u32 %v6361_v51, %v5306_v41  ;;  %v6241_v38 = vor.u32 %v6596_v25, %v6240_v19  ;;  %v6353_v41 = vld [vmem:[%s9475_s7 + $0x124] sm:$0xf]  ;;  %v5266_v19 = vld [vmem:[%s9475_s7 + $0x118] sm:$0xf0] }
 0x446   :  { %4442 = vmatpush.bf16.msrb.mxu0 %v5977_v57  ;;  %4478 = vmatpush.bf16.msrb.mxu3 %v6193_v42  ;;  %v6335_v57 = vld [vmem:[%s9475_s7 + $0x94] sm:$0xf] }
 0x447   :  { %v6355_v42 = vld [vmem:[%s9475_s7 + $0x134] sm:$0xf]  ;;  %v5205_v6 = vor.u32 %v6335_v57, %v5202_v27  ;;  %v5189_v57 = vor.u32 %v6331_v45, %v5186_v32  ;;  %v6329_v27 = vld [vmem:[%s9475_s7 + $0x64] sm:$0xf]  ;;  %v5354_v32 = vld [vmem:[%s9475_s7 + $0x1c8] sm:$0xf0] }
 0x448   :  { %4467 = vmatpush.bf16.msrb.mxu2 %v6113_v62  ;;  %v5226_v62 = vld [vmem:[%s9475_s7 + $0xc8] sm:$0xf0]  ;;  %v6373_v45 = vld [vmem:[%s9475_s7 + $0x1c4] sm:$0xf] }
 0x449   :  { %4515 = vmatpush.bf16.msra.mxu1 %v5253_v59  ;;  %v5229_v39 = vor.u32 %v6341_v4, %v5226_v62  ;;  %v6339_v59 = vld [vmem:[%s9475_s7 + $0xb4] sm:$0xf]  ;;  %v5194_v4 = vld [vmem:[%s9475_s7 + $0x88] sm:$0xf0] }
 0x44a   :  { %4443 = vmatpush.bf16.msrb.mxu0 %v5969_v50  ;;  %4479 = vmatpush.bf16.msrb.mxu3 %v6185_v28  ;;  %v6216_v50 = vld [vmem:[%s9475_s7 + $0x880] sm:$0xf]  ;;  %v5274_v28 = vld [vmem:[%s9475_s7 + $0x128] sm:$0xf0]  ;;  %v5197_v30 = vor.u32 %v6333_v33, %v5194_v4  ;;  %v6377_v4 = vld [vmem:[%s9475_s7 + $0x1e4] sm:$0xf] }
 0x44b   :  { %v5277_v16 = vor.u32 %v6353_v41, %v5274_v28  ;;  %v6409_v41 = vld [vmem:[%s9475_s7 + $0x2e4] sm:$0xf]  ;;  %v5498_v28 = vld [vmem:[%s9475_s7 + $0x2e8] sm:$0xf0] }
 0x44c   :  { %4468 = vmatpush.bf16.msrb.mxu2 %v6105_v35  ;;  %v2490_v22 = vpop.permute.xlu1 %2489  ;;  %v5221_v35 = vor.u32 %v6339_v59, %v5218_v56  ;;  %v6349_v59 = vld [vmem:[%s9475_s7 + $0x104] sm:$0xf]  ;;  %v5258_v56 = vld [vmem:[%s9475_s7 + $0x108] sm:$0xf0] }
 0x44d   :  { %4516 = vmatpush.bf16.msra.mxu1 %v5245_v12  ;;  %2492 = vst.msk [vmem:[#allocation3 + $0x20] sm:$0x3] %vm2019_vm0, %v2490_v22  ;;  %v5301_v12 = vor.u32 %v6359_v15, %v5298_v14  ;;  %v2860_v15 = vperm.slane %v2858_v13, 0 }
 0x44e   :  { %4444 = vmatpush.bf16.msrb.mxu0 %v5961_v8  ;;  %4480 = vmatpush.bf16.msrb.mxu3 %v6177_v54  ;;  %v5269_v8 = vor.u32 %v6351_v5, %v5266_v19  ;;  %v5170_v5 = vld [vmem:[%s9475_s7 + $0x58] sm:$0xf0]  ;;  %v5501_v19 = vor.u32 %v6409_v41, %v5498_v28  ;;  %v6321_v28 = vld [vmem:[%s9475_s7 + $0x24] sm:$0xf] }
 0x450   :  { %4469 = vmatpush.bf16.msrb.mxu2 %v6097_v11  ;;  %v6576_v11 = vld [vmem:[%s9475_s7 + $0x814] sm:$0xf0] }
 0x451   :  { %4517 = vmatpush.bf16.msra.mxu1 %v5237_v2  ;;  %v5282_v2 = vld [vmem:[%s9475_s7 + $0x138] sm:$0xf0]  ;;  %v6161_v22 = vor.u32 %v6576_v11, %v6160_v55  ;;  %v6427_v55 = vld [vmem:[%s9475_s7 + $0x374] sm:$0xf] }
 0x452   :  { %4493 = vmatpush.bf16.msra.mxu0 %v6241_v38  ;;  %4481 = vmatpush.bf16.msrb.mxu3 %v6169_v63  ;;  %v5285_v51 = vor.u32 %v6355_v42, %v5282_v2  ;;  %v5261_v38 = vor.u32 %v6349_v59, %v5258_v56  ;;  %v5490_v59 = vld [vmem:[%s9475_s7 + $0x2d8] sm:$0xf0]  ;;  %v6423_v56 = vld [vmem:[%s9475_s7 + $0x354] sm:$0xf] }
 0x454   :  { %4470 = vmatpush.bf16.msrb.mxu2 %v6089_v49  ;;  %v2512_v60 = vld [vmem:[#allocation3 + $0x20] sm:$0xf]  ;;  %v6225_v49 = vor.u32 %v6592_v31, %v6224_v26 }
 0x455   :  { %4518 = vmatpush.bf16.msra.mxu1 %v5229_v39  ;;  %2539 = vst [vmem:[#allocation1] ss:$4 sm:$0xff] %v2512_v60  ;;  %v6217_v39 = vor.u32 %v6590_v61, %v6216_v50 }
 0x456   :  { %4494 = vmatpush.bf16.msra.mxu0 %v6233_v17  ;;  %4482 = vmatpush.bf16.msrb.mxu3 %v6161_v22  ;;  %v5506_v17 = vld [vmem:[%s9475_s7 + $0x2f8] sm:$0xf0] }
 0x457   :  { %v5509_v61 = vor.u32 %v6411_v20, %v5506_v17  ;;  %v5546_v20 = vld [vmem:[%s9475_s7 + $0x348] sm:$0xf0] }
 0x458   :  { %4528 = vmatpush.bf16.msra.mxu2 %v5317_v0  ;;  %v6574_v0 = vld [vmem:[%s9475_s7 + $0x804] sm:$0xf0] }
 0x459   :  { %4519 = vmatpush.bf16.msra.mxu1 %v5221_v35  ;;  %v6153_v62 = vor.u32 %v6574_v0, %v6152_v34 }
 0x45a   :  { %4495 = vmatpush.bf16.msra.mxu0 %v6225_v49 }
 0x45b   :  { %4483 = vmatpush.bf16.msrb.mxu3 %v6153_v62  ;;  %v6425_v62 = vld [vmem:[%s9475_s7 + $0x364] sm:$0xf] }
 0x45c   :  { %4529 = vmatpush.bf16.msra.mxu2 %v5309_v40  ;;  %v2541_v17 = vld.sshfl [vmem:[#allocation1 + $0x8] sm:$0xff pattern:$0x73625140] }
 0x45d   :  { %4520 = vmatpush.bf16.msra.mxu1 %v5213_v7  ;;  %v5570_v7 = vld [vmem:[%s9475_s7 + $0x378] sm:$0xf0] }
 0x45e   :  { %4496 = vmatpush.bf16.msra.mxu0 %v6217_v39  ;;  %v5573_v33 = vor.u32 %v6427_v55, %v5570_v7  ;;  %v5562_v39 = vld [vmem:[%s9475_s7 + $0x368] sm:$0xf0]  ;;  %v5357_v7 = vor.u32 %v6373_v45, %v5354_v32 }
 0x45f   :  { %v5130_v32 = vld [vmem:[%s9475_s7 + $0x8] sm:$0xf0] }
 0x460   :  { %4530 = vmatpush.bf16.msra.mxu2 %v5301_v12  ;;  %v6379_v12 = vld [vmem:[%s9475_s7 + $0x1f4] sm:$0xf] }
 0x461   :  { %4521 = vmatpush.bf16.msra.mxu1 %v5205_v6  ;;  %v5381_v6 = vor.u32 %v6379_v12, %v5378_v53  ;;  %v5482_v12 = vld [vmem:[%s9475_s7 + $0x2c8] sm:$0xf0]  ;;  %v6421_v53 = vld [vmem:[%s9475_s7 + $0x344] sm:$0xf] }
 0x464   :  { %4531 = vmatpush.bf16.msra.mxu2 %v5293_v23  ;;  %v4277_v25 = vpop.f32.mrf.mxu1  ;;  %v2468_v40 = vpop.permute.xlu0 %2467  ;;  %v5178_v23 = vld [vmem:[%s9475_s7 + $0x68] sm:$0xf0] }
 0x465   :  { %4522 = vmatpush.bf16.msra.mxu1 %v5197_v30  ;;  %2470 = vst.msk [vmem:[#allocation3 + $0x1e] sm:$0x3] %vm2019_vm0, %v2468_v40  ;;  %v4278_v14 = vadd.f32 %v4277_v25, %v2860_v15  ;;  %v5181_v30 = vor.u32 %v6329_v27, %v5178_v23  ;;  %v5565_v25 = vor.u32 %v6425_v62, %v5562_v39  ;;  %v6375_v40 = vld [vmem:[%s9475_s7 + $0x1d4] sm:$0xf]  ;;  %v5362_v15 = vld [vmem:[%s9475_s7 + $0x1d8] sm:$0xf0] }
 0x466   :  { %v6371_v27 = vld [vmem:[%s9475_s7 + $0x1b4] sm:$0xf]  ;;  %v5346_v23 = vld [vmem:[%s9475_s7 + $0x1b8] sm:$0xf0]  ;;  %v5146_v62 = vld [vmem:[%s9475_s7 + $0x28] sm:$0xf0] }
 0x467   :  { %v5349_v41 = vor.u32 %v6371_v27, %v5346_v23  ;;  %v6475_v27 = vld [vmem:[%s9475_s7 + $0x4f4] sm:$0xf] }
 0x468   :  { %4532 = vmatpush.bf16.msra.mxu2 %v5285_v51  ;;  %v5370_v51 = vld [vmem:[%s9475_s7 + $0x1e8] sm:$0xf0] }
 0x469   :  { %v5373_v13 = vor.u32 %v6377_v4, %v5370_v51  ;;  %v8769_v4 = vpack.c.bf16 %v2541_v17, %v2541_v17  ;;  %v5450_v17 = vld [vmem:[%s9475_s7 + $0x288] sm:$0xf0] }
 0x46a   :  { %v4290_v54 = vpop.f32.mrf.mxu2 }
 0x46b   :  { %v4291_v47 = vadd.f32 %v4290_v54, %v4278_v14  ;;  %v5554_v14 = vld [vmem:[%s9475_s7 + $0x358] sm:$0xf0] }
 0x46c   :  { %4533 = vmatpush.bf16.msra.mxu2 %v5277_v16  ;;  %v4303_v36 = vpop.f32.mrf.mxu3  ;;  %v2511_v60 = vld [vmem:[#allocation3 + $0x18] sm:$0xff]  ;;  %v4279_v35 = vpop.f32.mrf.mxu1 }
 0x46d   :  { %2530 = vst [vmem:[#allocation1 + $0x20] ss:$4 sm:$0xff] %v2511_v60  ;;  %v4304_v10 = vadd.f32 %v4303_v36, %v4291_v47  ;;  %v6327_v16 = vld [vmem:[%s9475_s7 + $0x54] sm:$0xf]  ;;  %v5365_v47 = vor.u32 %v6375_v40, %v5362_v15  ;;  %v6325_v36 = vld [vmem:[%s9475_s7 + $0x44] sm:$0xf]  ;;  %v5149_v15 = vor.u32 %v6321_v28, %v5146_v62 }
 0x46e   :  { %v5162_v60 = vld [vmem:[%s9475_s7 + $0x48] sm:$0xf0] }
 0x46f   :  { %v5165_v55 = vor.u32 %v6325_v36, %v5162_v60  ;;  %v5530_v40 = vld [vmem:[%s9475_s7 + $0x328] sm:$0xf0]  ;;  %v6415_v36 = vld [vmem:[%s9475_s7 + $0x314] sm:$0xf]  ;;  %v5522_v60 = vld [vmem:[%s9475_s7 + $0x318] sm:$0xf0] }
 0x470   :  { %4534 = vmatpush.bf16.msra.mxu2 %v5269_v8  ;;  %v6407_v8 = vld [vmem:[%s9475_s7 + $0x2d4] sm:$0xf] }
 0x471   :  { %v5493_v35 = vor.u32 %v6407_v8, %v5490_v59  ;;  %v6319_v59 = vld [vmem:[%s9475_s7 + $0x14] sm:$0xf] }
 0x472   :  { %v4292_v3 = vpop.f32.mrf.mxu2 }
 0x473   :  { %v6405_v3 = vld [vmem:[%s9475_s7 + $0x2c4] sm:$0xf] }
 0x474   :  { %4535 = vmatpush.bf16.msra.mxu2 %v5261_v38  ;;  %v4305_v63 = vpop.f32.mrf.mxu3  ;;  %v4316_v11 = vpop.f32.mrf.mxu1  ;;  %v2535_v26 = vld.sshfl [vmem:[#allocation1 + $0x20] sm:$0xff pattern:$0x73625140]  ;;  %v2536_v31 = vld.sshfl [vmem:[#allocation1 + $0x28] sm:$0xff pattern:$0x73625140]  ;;  %v5173_v38 = vor.u32 %v6327_v16, %v5170_v5 }
 0x475   :  { %v8663_v42 = vadd.f32 %v4316_v11, %v4304_v10  ;;  %v8665_v2 = vpack.c.bf16 %v2535_v26, %v2535_v26  ;;  %v8667_v22 = vpack.c.bf16 %v2536_v31, %v2536_v31  ;;  %v2537_v49 = vld.sshfl [vmem:[#allocation1 + $0x30] sm:$0xff pattern:$0x73625140]  ;;  %v2538_v34 = vld.sshfl [vmem:[#allocation1 + $0x38] sm:$0xff pattern:$0x73625140]  ;;  %v5557_v10 = vor.u32 %v6423_v56, %v5554_v14 }
 0x476   :  { %v8669_v0 = vpack.c.bf16 %v2537_v49, %v2537_v49  ;;  %v8671_v50 = vpack.c.bf16 %v2538_v34, %v2538_v34  ;;  %v2540_v63 = vld.sshfl [vmem:[#allocation1] sm:$0xff pattern:$0x73625140]  ;;  %v6323_v11 = vld [vmem:[%s9475_s7 + $0x34] sm:$0xf]  ;;  %v5485_v31 = vor.u32 %v6405_v3, %v5482_v12 }
 0x477   :  { %4432 = vmatmul.bf16.vlgmr.msra.gmra.mxu3 %v8665_v2  ;;  %4445 = vmatmul.bf16.vlgmr.msrb.gmra.mxu0 %v8667_v22  ;;  %v5154_v26 = vld [vmem:[%s9475_s7 + $0x38] sm:$0xf0]  ;;  %v6403_v49 = vld [vmem:[%s9475_s7 + $0x2b4] sm:$0xf]  ;;  %v5338_v16 = vld [vmem:[%s9475_s7 + $0x1a8] sm:$0xf0] }
 0x478   :  { %4458 = vmatmul.bf16.vlgmr.msrb.gmra.mxu1 %v8669_v0  ;;  %4471 = vmatmul.bf16.vlgmr.msrb.gmra.mxu2 %v8671_v50  ;;  %v5474_v34 = vld [vmem:[%s9475_s7 + $0x2b8] sm:$0xf0]  ;;  %v5157_v51 = vor.u32 %v6323_v11, %v5154_v26  ;;  %v6401_v5 = vld [vmem:[%s9475_s7 + $0x2a4] sm:$0xf]  ;;  %v5322_v12 = vld [vmem:[%s9475_s7 + $0x188] sm:$0xf0] }
 0x479   :  { %4502 = vmatpush.bf16.msrb.mxu0 %v5189_v57  ;;  %4541 = vmatpush.bf16.msra.mxu3 %v5381_v6  ;;  %v5549_v57 = vor.u32 %v6421_v53, %v5546_v20  ;;  %v6419_v6 = vld [vmem:[%s9475_s7 + $0x334] sm:$0xf]  ;;  %v5477_v39 = vor.u32 %v6403_v49, %v5474_v34  ;;  %v5138_v56 = vld [vmem:[%s9475_s7 + $0x18] sm:$0xf0]  ;;  %v6365_v3 = vld [vmem:[%s9475_s7 + $0x184] sm:$0xf]  ;;  %v5525_v20 = vor.u32 %v6415_v36, %v5522_v60 }
 0x47a   :  { %4567 = vmatpush.bf16.msrb.mxu1 %v5509_v61  ;;  %4580 = vmatpush.bf16.msrb.mxu2 %v5573_v33  ;;  %v5538_v61 = vld [vmem:[%s9475_s7 + $0x338] sm:$0xf0]  ;;  %v8767_v33 = vpack.c.bf16 %v2540_v63, %v2540_v63  ;;  %v6397_v63 = vld [vmem:[%s9475_s7 + $0x284] sm:$0xf]  ;;  %v6395_v11 = vld [vmem:[%s9475_s7 + $0x274] sm:$0xf]  ;;  %v5325_v49 = vor.u32 %v6365_v3, %v5322_v12 }
 0x47b   :  { %v5442_v26 = vld [vmem:[%s9475_s7 + $0x278] sm:$0xf0]  ;;  %v6471_v60 = vld [vmem:[%s9475_s7 + $0x4d4] sm:$0xf] }
 0x47c   :  { %v4318_v54 = vpop.f32.mrf.mxu1  ;;  %v5762_v34 = vld [vmem:[%s9475_s7 + $0x4f8] sm:$0xf0]  ;;  %v5445_v28 = vor.u32 %v6395_v11, %v5442_v26  ;;  %v5738_v11 = vld [vmem:[%s9475_s7 + $0x4c8] sm:$0xf0]  ;;  %v6485_v26 = vld [vmem:[%s9475_s7 + $0x544] sm:$0xf] }
 0x47d   :  { %4503 = vmatpush.bf16.msrb.mxu0 %v5181_v30  ;;  %4542 = vmatpush.bf16.msra.mxu3 %v5373_v13  ;;  %v5541_v30 = vor.u32 %v6419_v6, %v5538_v61  ;;  %v6369_v13 = vld [vmem:[%s9475_s7 + $0x1a4] sm:$0xf]  ;;  %v6491_v6 = vld [vmem:[%s9475_s7 + $0x574] sm:$0xf]  ;;  %v5826_v61 = vld [vmem:[%s9475_s7 + $0x578] sm:$0xf0] }
 0x47e   :  { %4568 = vmatpush.bf16.msrb.mxu1 %v5501_v19  ;;  %4581 = vmatpush.bf16.msrb.mxu2 %v5565_v25  ;;  %v5466_v19 = vld [vmem:[%s9475_s7 + $0x2a8] sm:$0xf0]  ;;  %v6417_v25 = vld [vmem:[%s9475_s7 + $0x324] sm:$0xf]  ;;  %v5341_v8 = vor.u32 %v6369_v13, %v5338_v16  ;;  %v5765_v13 = vor.u32 %v6475_v27, %v5762_v34  ;;  %v5829_v16 = vor.u32 %v6491_v6, %v5826_v61  ;;  %v5618_v36 = vld [vmem:[%s9475_s7 + $0x3d8] sm:$0xf0] }
 0x47f   :  { %v5469_v14 = vor.u32 %v6401_v5, %v5466_v19  ;;  %v5533_v54 = vor.u32 %v6417_v25, %v5530_v40  ;;  %v6441_v5 = vld [vmem:[%s9475_s7 + $0x3e4] sm:$0xf]  ;;  %v5626_v19 = vld [vmem:[%s9475_s7 + $0x3e8] sm:$0xf0] }
 0x480   :  { %v6473_v25 = vld [vmem:[%s9475_s7 + $0x4e4] sm:$0xf] }
 0x481   :  { %4504 = vmatpush.bf16.msrb.mxu0 %v5173_v38  ;;  %4543 = vmatpush.bf16.msra.mxu3 %v5365_v47  ;;  %v6399_v38 = vld [vmem:[%s9475_s7 + $0x294] sm:$0xf]  ;;  %v5458_v47 = vld [vmem:[%s9475_s7 + $0x298] sm:$0xf0] }
 0x482   :  { %4569 = vmatpush.bf16.msrb.mxu1 %v5493_v35  ;;  %4582 = vmatpush.bf16.msrb.mxu2 %v5557_v10  ;;  %v6317_v35 = vld [vmem:[%s9475_s7 + $0x4] sm:$0xf]  ;;  %v5141_v10 = vor.u32 %v6319_v59, %v5138_v56  ;;  %v5461_v53 = vor.u32 %v6399_v38, %v5458_v47  ;;  %v5818_v59 = vld [vmem:[%s9475_s7 + $0x568] sm:$0xf0]  ;;  %v6439_v47 = vld [vmem:[%s9475_s7 + $0x3d4] sm:$0xf] }
 0x483   :  { %v5133_v23 = vor.u32 %v6317_v35, %v5130_v32  ;;  %v5746_v35 = vld [vmem:[%s9475_s7 + $0x4d8] sm:$0xf0]  ;;  %v5621_v12 = vor.u32 %v6439_v47, %v5618_v36  ;;  %v6383_v36 = vld [vmem:[%s9475_s7 + $0x214] sm:$0xf] }
 0x485   :  { %4505 = vmatpush.bf16.msrb.mxu0 %v5165_v55  ;;  %4544 = vmatpush.bf16.msra.mxu3 %v5357_v7  ;;  %v6413_v55 = vld [vmem:[%s9475_s7 + $0x304] sm:$0xf]  ;;  %v5514_v7 = vld [vmem:[%s9475_s7 + $0x308] sm:$0xf0] }
 0x486   :  { %4570 = vmatpush.bf16.msrb.mxu1 %v5485_v31  ;;  %4583 = vmatpush.bf16.msrb.mxu2 %v5549_v57  ;;  %v6443_v31 = vld [vmem:[%s9475_s7 + $0x3f4] sm:$0xf]  ;;  %v5634_v57 = vld [vmem:[%s9475_s7 + $0x3f8] sm:$0xf0] }
 0x487   :  { %4484 = vmatmul.bf16.vlgmr.msrb.gmra.mxu3 %v8767_v33  ;;  %6246 = vmatmul.msk.bf16.vlgmr.msra.gmra.mxu0 %vm4264_vm1, %v8769_v4  ;;  %v5637_v62 = vor.u32 %v6443_v31, %v5634_v57  ;;  %v5802_v31 = vld [vmem:[%s9475_s7 + $0x548] sm:$0xf0] }
 0x488   :  { %4523 = vmatmul.bf16.vlgmr.msra.gmra.mxu1 %v7916_v58  ;;  %4536 = vmatmul.bf16.vlgmr.msra.gmra.mxu2 %v7919_v18  ;;  %v6367_v58 = vld [vmem:[%s9475_s7 + $0x194] sm:$0xf]  ;;  %v5330_v18 = vld [vmem:[%s9475_s7 + $0x198] sm:$0xf0]  ;;  %v5805_v61 = vor.u32 %v6485_v26, %v5802_v31  ;;  %v6461_v26 = vld [vmem:[%s9475_s7 + $0x484] sm:$0xf] }
 0x489   :  { %4506 = vmatpush.bf16.msrb.mxu0 %v5157_v51  ;;  %4545 = vmatpush.bf16.msra.mxu3 %v5349_v41  ;;  %v5333_v45 = vor.u32 %v6367_v58, %v5330_v18  ;;  %v5453_v51 = vor.u32 %v6397_v63, %v5450_v17  ;;  %v5517_v41 = vor.u32 %v6413_v55, %v5514_v7  ;;  %v5426_v58 = vld [vmem:[%s9475_s7 + $0x258] sm:$0xf0]  ;;  %v6437_v63 = vld [vmem:[%s9475_s7 + $0x3c4] sm:$0xf]  ;;  %v5706_v31 = vld [vmem:[%s9475_s7 + $0x488] sm:$0xf0] }
 0x48a   :  { %4571 = vmatpush.bf16.msrb.mxu1 %v5477_v39  ;;  %4584 = vmatpush.bf16.msrb.mxu2 %v5541_v30  ;;  %v6393_v39 = vld [vmem:[%s9475_s7 + $0x264] sm:$0xf]  ;;  %v5434_v30 = vld [vmem:[%s9475_s7 + $0x268] sm:$0xf0] }
 0x48b   :  { %v5437_v56 = vor.u32 %v6393_v39, %v5434_v30  ;;  %v6469_v17 = vld [vmem:[%s9475_s7 + $0x4c4] sm:$0xf]  ;;  %v6483_v39 = vld [vmem:[%s9475_s7 + $0x534] sm:$0xf]  ;;  %v5794_v30 = vld [vmem:[%s9475_s7 + $0x538] sm:$0xf0] }
 0x48c   :  { %v5741_v6 = vor.u32 %v6469_v17, %v5738_v11  ;;  %v6429_v17 = vld [vmem:[%s9475_s7 + $0x384] sm:$0xf] }
 0x48d   :  { %4507 = vmatpush.bf16.msrb.mxu0 %v5149_v15  ;;  %4546 = vmatpush.bf16.msra.mxu3 %v5341_v8  ;;  %v5754_v15 = vld [vmem:[%s9475_s7 + $0x4e8] sm:$0xf0]  ;;  %v6489_v8 = vld [vmem:[%s9475_s7 + $0x564] sm:$0xf] }
 0x48e   :  { %4572 = vmatpush.bf16.msrb.mxu1 %v5469_v14  ;;  %4585 = vmatpush.bf16.msrb.mxu2 %v5533_v54  ;;  %v5629_v14 = vor.u32 %v6441_v5, %v5626_v19  ;;  %v6391_v54 = vld [vmem:[%s9475_s7 + $0x254] sm:$0xf]  ;;  %v5757_v18 = vor.u32 %v6473_v25, %v5754_v15  ;;  %v5821_v38 = vor.u32 %v6489_v8, %v5818_v59  ;;  %v6385_v25 = vld [vmem:[%s9475_s7 + $0x224] sm:$0xf] }
 0x48f   :  { %v5429_v3 = vor.u32 %v6391_v54, %v5426_v58  ;;  %v5797_v8 = vor.u32 %v6483_v39, %v5794_v30  ;;  %v6433_v59 = vld [vmem:[%s9475_s7 + $0x3a4] sm:$0xf]  ;;  %v5722_v54 = vld [vmem:[%s9475_s7 + $0x4a8] sm:$0xf0]  ;;  %v6082_v39 = vld [vmem:[%s9475_s7 + $0x778] sm:$0xf0]  ;;  %v5709_v30 = vor.u32 %v6461_v26, %v5706_v31 }
 0x490   :  { %v6481_v58 = vld [vmem:[%s9475_s7 + $0x524] sm:$0xf]  ;;  %v5994_v31 = vld [vmem:[%s9475_s7 + $0x6c8] sm:$0xf0] }
 0x491   :  { %4508 = vmatpush.bf16.msrb.mxu0 %v5141_v10  ;;  %4547 = vmatpush.bf16.msra.mxu3 %v5333_v45  ;;  %v6487_v10 = vld [vmem:[%s9475_s7 + $0x554] sm:$0xf]  ;;  %v5810_v45 = vld [vmem:[%s9475_s7 + $0x558] sm:$0xf0] }
 0x492   :  { %4573 = vmatpush.bf16.msrb.mxu1 %v5461_v53  ;;  %4586 = vmatpush.bf16.msrb.mxu2 %v5525_v20  ;;  %v6389_v53 = vld [vmem:[%s9475_s7 + $0x244] sm:$0xf]  ;;  %v5418_v20 = vld [vmem:[%s9475_s7 + $0x248] sm:$0xf0] }
 0x493   :  { %v5421_v57 = vor.u32 %v6389_v53, %v5418_v20  ;;  %v6381_v20 = vld [vmem:[%s9475_s7 + $0x204] sm:$0xf] }
 0x495   :  { %4509 = vmatpush.bf16.msrb.mxu0 %v5133_v23  ;;  %4548 = vmatpush.bf16.msra.mxu3 %v5325_v49  ;;  %v6387_v23 = vld [vmem:[%s9475_s7 + $0x234] sm:$0xf]  ;;  %v5410_v49 = vld [vmem:[%s9475_s7 + $0x238] sm:$0xf0] }
 0x496   :  { %v4355_v40 = vpop.f32.mrf.mxu1  ;;  %4574 = vmatpush.bf16.msrb.mxu1 %v5453_v51  ;;  %4587 = vmatpush.bf16.msrb.mxu2 %v5517_v41  ;;  %v6435_v51 = vld [vmem:[%s9475_s7 + $0x3b4] sm:$0xf]  ;;  %v5602_v41 = vld [vmem:[%s9475_s7 + $0x3b8] sm:$0xf0]  ;;  %v5413_v5 = vor.u32 %v6387_v23, %v5410_v49 }
 0x497   :  { %v5605_v19 = vor.u32 %v6435_v51, %v5602_v41  ;;  %v6459_v23 = vld [vmem:[%s9475_s7 + $0x474] sm:$0xf]  ;;  %v5698_v49 = vld [vmem:[%s9475_s7 + $0x478] sm:$0xf0] }
 0x498   :  { %4510 = vmatmul.bf16.vlgmr.msrb.gmra.mxu0 %v7914_v9  ;;  %4549 = vmatmul.bf16.vlgmr.msra.gmra.mxu3 %v7997_v43 }
 0x499   :  { %4554 = vmatpush.bf16.msra.mxu0 %v5445_v28  ;;  %4593 = vmatpush.bf16.msrb.mxu3 %v5637_v62  ;;  %v6467_v28 = vld [vmem:[%s9475_s7 + $0x4b4] sm:$0xf]  ;;  %v5730_v62 = vld [vmem:[%s9475_s7 + $0x4b8] sm:$0xf0] }
 0x49a   :  { %4619 = vmatpush.bf16.msra.mxu1 %v5765_v13  ;;  %4632 = vmatpush.bf16.msra.mxu2 %v5829_v16  ;;  %v4329_v32 = vpop.f32.mrf.mxu2  ;;  %v4342_v9 = vpop.f32.mrf.mxu3  ;;  %v5733_v15 = vor.u32 %v6467_v28, %v5730_v62  ;;  %v6018_v28 = vld [vmem:[%s9475_s7 + $0x6f8] sm:$0xf0]  ;;  %v6555_v62 = vld [vmem:[%s9475_s7 + $0x774] sm:$0xf] }
 0x49b   :  { %4575 = vmatmul.bf16.vlgmr.msrb.gmra.mxu1 %v8175_v46  ;;  %4588 = vmatmul.bf16.vlgmr.msrb.gmra.mxu2 %v8177_v37  ;;  %v4330_v43 = vadd.f32 %v4329_v32, %v8663_v42  ;;  %v5749_v46 = vor.u32 %v6471_v60, %v5746_v35  ;;  %v5813_v37 = vor.u32 %v6487_v10, %v5810_v45  ;;  %v5610_v42 = vld [vmem:[%s9475_s7 + $0x3c8] sm:$0xf0]  ;;  %v5394_v60 = vld [vmem:[%s9475_s7 + $0x218] sm:$0xf0]  ;;  %v6431_v45 = vld [vmem:[%s9475_s7 + $0x394] sm:$0xf] }
 0x49c   :  { %v5613_v27 = vor.u32 %v6437_v63, %v5610_v42  ;;  %v5586_v32 = vld [vmem:[%s9475_s7 + $0x398] sm:$0xf0]  ;;  %v5386_v42 = vld [vmem:[%s9475_s7 + $0x208] sm:$0xf0] }
 0x49d   :  { %4555 = vmatpush.bf16.msra.mxu0 %v5437_v56  ;;  %4594 = vmatpush.bf16.msrb.mxu3 %v5629_v14  ;;  %v4343_v55 = vadd.f32 %v4342_v9, %v4330_v43  ;;  %v5594_v56 = vld [vmem:[%s9475_s7 + $0x3a8] sm:$0xf0]  ;;  %v6465_v14 = vld [vmem:[%s9475_s7 + $0x4a4] sm:$0xf]  ;;  %v6463_v9 = vld [vmem:[%s9475_s7 + $0x494] sm:$0xf]  ;;  %v5589_v63 = vor.u32 %v6431_v45, %v5586_v32  ;;  %v5389_v51 = vor.u32 %v6381_v20, %v5386_v42 }
 0x49e   :  { %4620 = vmatpush.bf16.msra.mxu1 %v5757_v18  ;;  %4633 = vmatpush.bf16.msra.mxu2 %v5821_v38  ;;  %v4357_v7 = vpop.f32.mrf.mxu1  ;;  %v5786_v18 = vld [vmem:[%s9475_s7 + $0x528] sm:$0xf0]  ;;  %v5597_v47 = vor.u32 %v6433_v59, %v5594_v56  ;;  %v5725_v35 = vor.u32 %v6465_v14, %v5722_v54  ;;  %v5714_v43 = vld [vmem:[%s9475_s7 + $0x498] sm:$0xf0]  ;;  %v6505_v59 = vld [vmem:[%s9475_s7 + $0x5e4] sm:$0xf] }
 0x49f   :  { %v4356_v34 = vadd.f32 %v4355_v40, %v4343_v55  ;;  %v5402_v40 = vld [vmem:[%s9475_s7 + $0x228] sm:$0xf0]  ;;  %v5789_v10 = vor.u32 %v6481_v58, %v5786_v18  ;;  %v5717_v7 = vor.u32 %v6463_v9, %v5714_v43  ;;  %v6537_v14 = vld [vmem:[%s9475_s7 + $0x6e4] sm:$0xf]  ;;  %v6503_v9 = vld [vmem:[%s9475_s7 + $0x5d4] sm:$0xf] }
 0x4a0   :  { %v5405_v38 = vor.u32 %v6385_v25, %v5402_v40  ;;  %v5578_v55 = vld [vmem:[%s9475_s7 + $0x388] sm:$0xf0]  ;;  %v6553_v58 = vld [vmem:[%s9475_s7 + $0x764] sm:$0xf]  ;;  %v5874_v43 = vld [vmem:[%s9475_s7 + $0x5d8] sm:$0xf0] }
 0x4a1   :  { %4556 = vmatpush.bf16.msra.mxu0 %v5429_v3  ;;  %4595 = vmatpush.bf16.msrb.mxu3 %v5621_v12  ;;  %v6479_v3 = vld [vmem:[%s9475_s7 + $0x514] sm:$0xf]  ;;  %v5778_v12 = vld [vmem:[%s9475_s7 + $0x518] sm:$0xf0]  ;;  %v5581_v41 = vor.u32 %v6429_v17, %v5578_v55  ;;  %v5690_v25 = vld [vmem:[%s9475_s7 + $0x468] sm:$0xf0] }
 0x4a2   :  { %4621 = vmatpush.bf16.msra.mxu1 %v5749_v46  ;;  %4634 = vmatpush.bf16.msra.mxu2 %v5813_v37  ;;  %v4331_v13 = vpop.f32.mrf.mxu2  ;;  %v4344_v16 = vpop.f32.mrf.mxu3  ;;  %v5397_v37 = vor.u32 %v6383_v36, %v5394_v60  ;;  %v5781_v11 = vor.u32 %v6479_v3, %v5778_v12  ;;  %v5882_v56 = vld [vmem:[%s9475_s7 + $0x5e8] sm:$0xf0]  ;;  %v6535_v3 = vld [vmem:[%s9475_s7 + $0x6d4] sm:$0xf]  ;;  %v6002_v12 = vld [vmem:[%s9475_s7 + $0x6d8] sm:$0xf0] }
 0x4a3   :  { %v5701_v16 = vor.u32 %v6459_v23, %v5698_v49  ;;  %v6010_v54 = vld [vmem:[%s9475_s7 + $0x6e8] sm:$0xf0]  ;;  %v5885_v60 = vor.u32 %v6505_v59, %v5882_v56  ;;  %v6066_v20 = vld [vmem:[%s9475_s7 + $0x758] sm:$0xf0]  ;;  %v6005_v42 = vor.u32 %v6535_v3, %v6002_v12  ;;  %v6495_v12 = vld [vmem:[%s9475_s7 + $0x594] sm:$0xf] }
 0x4a4   :  { %v6074_v18 = vld [vmem:[%s9475_s7 + $0x768] sm:$0xf0]  ;;  %v6013_v45 = vor.u32 %v6537_v14, %v6010_v54 }
 0x4a5   :  { %4557 = vmatpush.bf16.msra.mxu0 %v5421_v57  ;;  %4596 = vmatpush.bf16.msrb.mxu3 %v5613_v27  ;;  %v6477_v57 = vld [vmem:[%s9475_s7 + $0x504] sm:$0xf]  ;;  %v5770_v27 = vld [vmem:[%s9475_s7 + $0x508] sm:$0xf0]  ;;  %v6077_v32 = vor.u32 %v6553_v58, %v6074_v18 }
 0x4a6   :  { %4622 = vmatpush.bf16.msra.mxu1 %v5741_v6  ;;  %4635 = vmatpush.bf16.msra.mxu2 %v5805_v61  ;;  %v5890_v6 = vld [vmem:[%s9475_s7 + $0x5f8] sm:$0xf0]  ;;  %v6539_v61 = vld [vmem:[%s9475_s7 + $0x6f4] sm:$0xf]  ;;  %v5773_v13 = vor.u32 %v6477_v57, %v5770_v27  ;;  %v6549_v57 = vld [vmem:[%s9475_s7 + $0x744] sm:$0xf] }
 0x4a7   :  { %v6021_v40 = vor.u32 %v6539_v61, %v6018_v28  ;;  %v6058_v27 = vld [vmem:[%s9475_s7 + $0x748] sm:$0xf0]  ;;  %v6451_v61 = vld [vmem:[%s9475_s7 + $0x434] sm:$0xf]  ;;  %v6497_v58 = vld [vmem:[%s9475_s7 + $0x5a4] sm:$0xf] }
 0x4a8   :  { %v6061_v28 = vor.u32 %v6549_v57, %v6058_v27  ;;  %v5658_v59 = vld [vmem:[%s9475_s7 + $0x428] sm:$0xf0]  ;;  %v6541_v57 = vld [vmem:[%s9475_s7 + $0x704] sm:$0xf] }
 0x4a9   :  { %4558 = vmatpush.bf16.msra.mxu0 %v5413_v5  ;;  %4597 = vmatpush.bf16.msrb.mxu3 %v5605_v19  ;;  %v6457_v19 = vld [vmem:[%s9475_s7 + $0x464] sm:$0xf]  ;;  %v5850_v18 = vld [vmem:[%s9475_s7 + $0x5a8] sm:$0xf0] }
 0x4aa   :  { %4623 = vmatpush.bf16.msra.mxu1 %v5733_v15  ;;  %4636 = vmatpush.bf16.msra.mxu2 %v5797_v8  ;;  %v4368_v53 = vpop.f32.mrf.mxu2  ;;  %v6085_v15 = vor.u32 %v6555_v62, %v6082_v39  ;;  %v5693_v36 = vor.u32 %v6457_v19, %v5690_v25  ;;  %v6499_v62 = vld [vmem:[%s9475_s7 + $0x5b4] sm:$0xf]  ;;  %v5858_v39 = vld [vmem:[%s9475_s7 + $0x5b8] sm:$0xf0]  ;;  %v6026_v27 = vld [vmem:[%s9475_s7 + $0x708] sm:$0xf0] }
 0x4ab   :  { %v9024_v46 = vadd.f32 %v4368_v53, %v4356_v34  ;;  %v6507_v34 = vld [vmem:[%s9475_s7 + $0x5f4] sm:$0xf]  ;;  %v6050_v19 = vld [vmem:[%s9475_s7 + $0x738] sm:$0xf0] }
 0x4ac   :  { %v5893_v5 = vor.u32 %v6507_v34, %v5890_v6  ;;  %v6551_v53 = vld [vmem:[%s9475_s7 + $0x754] sm:$0xf] }
 0x4ad   :  { %4559 = vmatpush.bf16.msra.mxu0 %v5405_v38  ;;  %4598 = vmatpush.bf16.msrb.mxu3 %v5597_v47  ;;  %v6069_v17 = vor.u32 %v6551_v53, %v6066_v20  ;;  %v5842_v53 = vld [vmem:[%s9475_s7 + $0x598] sm:$0xf0]  ;;  %v6527_v20 = vld [vmem:[%s9475_s7 + $0x694] sm:$0xf] }
 0x4ae   :  { %4624 = vmatpush.bf16.msra.mxu1 %v5725_v35  ;;  %4637 = vmatpush.bf16.msra.mxu2 %v5789_v10  ;;  %v6455_v35 = vld [vmem:[%s9475_s7 + $0x454] sm:$0xf]  ;;  %v5682_v10 = vld [vmem:[%s9475_s7 + $0x458] sm:$0xf0] }
 0x4b1   :  { %4560 = vmatpush.bf16.msra.mxu0 %v5397_v37  ;;  %4599 = vmatpush.bf16.msrb.mxu3 %v5589_v63  ;;  %v6453_v37 = vld [vmem:[%s9475_s7 + $0x444] sm:$0xf]  ;;  %v5674_v63 = vld [vmem:[%s9475_s7 + $0x448] sm:$0xf0] }
 0x4b2   :  { %4625 = vmatpush.bf16.msra.mxu1 %v5717_v7  ;;  %4638 = vmatpush.bf16.msra.mxu2 %v5781_v11  ;;  %v4370_v8 = vpop.f32.mrf.mxu2  ;;  %v6533_v7 = vld [vmem:[%s9475_s7 + $0x6c4] sm:$0xf]  ;;  %v5677_v6 = vor.u32 %v6453_v37, %v5674_v63  ;;  %v6034_v37 = vld [vmem:[%s9475_s7 + $0x718] sm:$0xf0] }
 0x4b3   :  { %v6449_v8 = vld [vmem:[%s9475_s7 + $0x424] sm:$0xf] }
 0x4b4   :  { %v4394_v38 = vpop.f32.mrf.mxu0 }
 0x4b5   :  { %4561 = vmatpush.bf16.msra.mxu0 %v5389_v51  ;;  %4600 = vmatpush.bf16.msrb.mxu3 %v5581_v41  ;;  %v4407_v47 = vpop.f32.mrf.mxu1  ;;  %v5666_v51 = vld [vmem:[%s9475_s7 + $0x438] sm:$0xf0]  ;;  %v5997_v41 = vor.u32 %v6533_v7, %v5994_v31  ;;  %v5962_v31 = vld [vmem:[%s9475_s7 + $0x688] sm:$0xf0] }
 0x4b6   :  { %4626 = vmatpush.bf16.msra.mxu1 %v5709_v30  ;;  %4639 = vmatpush.bf16.msra.mxu2 %v5773_v13  ;;  %v6531_v30 = vld [vmem:[%s9475_s7 + $0x6b4] sm:$0xf] }
 0x4b8   :  { %4562 = vmatmul.bf16.vlgmr.msra.gmra.mxu0 %v8173_v21  ;;  %4601 = vmatmul.bf16.vlgmr.msrb.gmra.mxu3 %v8263_v52  ;;  %v5685_v21 = vor.u32 %v6455_v35, %v5682_v10  ;;  %v5877_v52 = vor.u32 %v6503_v9, %v5874_v43  ;;  %v6042_v35 = vld [vmem:[%s9475_s7 + $0x728] sm:$0xf0]  ;;  %v5661_v10 = vor.u32 %v6449_v8, %v5658_v59  ;;  %v5650_v9 = vld [vmem:[%s9475_s7 + $0x418] sm:$0xf0]  ;;  %v6593_v59 = vld [vmem:[%s9475_s7 + $0x8a4] sm:$0xf] }
 0x4b9   :  { %4606 = vmatpush.bf16.msrb.mxu0 %v5701_v16  ;;  %4645 = vmatpush.bf16.msra.mxu3 %v5893_v5  ;;  %v5986_v16 = vld [vmem:[%s9475_s7 + $0x6b8] sm:$0xf0]  ;;  %v6547_v5 = vld [vmem:[%s9475_s7 + $0x734] sm:$0xf] }
 0x4ba   :  { %4671 = vmatpush.bf16.msrb.mxu1 %v6021_v40  ;;  %4684 = vmatpush.bf16.msrb.mxu2 %v6085_v15  ;;  %v4381_v55 = vpop.f32.mrf.mxu3  ;;  %v5669_v40 = vor.u32 %v6451_v61, %v5666_v51  ;;  %v5861_v15 = vor.u32 %v6499_v62, %v5858_v39  ;;  %v5989_v56 = vor.u32 %v6531_v30, %v5986_v16  ;;  %v6595_v39 = vld [vmem:[%s9475_s7 + $0x8b4] sm:$0xf]  ;;  %v6242_v30 = vld [vmem:[%s9475_s7 + $0x8b8] sm:$0xf0]  ;;  %v5946_v16 = vld [vmem:[%s9475_s7 + $0x668] sm:$0xf0] }
 0x4bb   :  { %4627 = vmatmul.bf16.vlgmr.msra.gmra.mxu1 %v8322_v24  ;;  %4640 = vmatmul.bf16.vlgmr.msra.gmra.mxu2 %v8324_v44  ;;  %v6501_v24 = vld [vmem:[%s9475_s7 + $0x5c4] sm:$0xf]  ;;  %v5866_v44 = vld [vmem:[%s9475_s7 + $0x5c8] sm:$0xf0]  ;;  %v4382_v11 = vadd.f32 %v4381_v55, %v9024_v46  ;;  %v6053_v14 = vor.u32 %v6547_v5, %v6050_v19 }
 0x4bc   :  { %v4420_v26 = vpop.f32.mrf.mxu2  ;;  %v4396_v23 = vpop.f32.mrf.mxu0  ;;  %v5869_v46 = vor.u32 %v6501_v24, %v5866_v44  ;;  %v5642_v55 = vld [vmem:[%s9475_s7 + $0x408] sm:$0xf0]  ;;  %v6493_v24 = vld [vmem:[%s9475_s7 + $0x584] sm:$0xf] }
 0x4bd   :  { %4607 = vmatpush.bf16.msrb.mxu0 %v5693_v36  ;;  %4646 = vmatpush.bf16.msra.mxu3 %v5885_v60  ;;  %v4395_v49 = vadd.f32 %v4394_v38, %v4382_v11  ;;  %v4409_v34 = vpop.f32.mrf.mxu1  ;;  %v6529_v38 = vld [vmem:[%s9475_s7 + $0x6a4] sm:$0xf]  ;;  %v5978_v36 = vld [vmem:[%s9475_s7 + $0x6a8] sm:$0xf0]  ;;  %v6523_v23 = vld [vmem:[%s9475_s7 + $0x674] sm:$0xf] }
 0x4be   :  { %4672 = vmatpush.bf16.msrb.mxu1 %v6013_v45  ;;  %4685 = vmatpush.bf16.msrb.mxu2 %v6077_v32  ;;  %v6545_v60 = vld [vmem:[%s9475_s7 + $0x724] sm:$0xf]  ;;  %v5853_v45 = vor.u32 %v6497_v58, %v5850_v18  ;;  %v6447_v32 = vld [vmem:[%s9475_s7 + $0x414] sm:$0xf]  ;;  %v5981_v43 = vor.u32 %v6529_v38, %v5978_v36  ;;  %v5834_v11 = vld [vmem:[%s9475_s7 + $0x588] sm:$0xf0] }
 0x4bf   :  { %v4408_v13 = vadd.f32 %v4407_v47, %v4395_v49  ;;  %v6045_v3 = vor.u32 %v6545_v60, %v6042_v35  ;;  %v5653_v63 = vor.u32 %v6447_v32, %v5650_v9  ;;  %v5954_v49 = vld [vmem:[%s9475_s7 + $0x678] sm:$0xf0]  ;;  %v6571_v34 = vld [vmem:[%s9475_s7 + $0x7f4] sm:$0xf]  ;;  %v5837_v61 = vor.u32 %v6493_v24, %v5834_v11  ;;  %v6569_v5 = vld [vmem:[%s9475_s7 + $0x7e4] sm:$0xf] }
 0x4c0   :  { %v6138_v19 = vld [vmem:[%s9475_s7 + $0x7e8] sm:$0xf0]  ;;  %v6567_v58 = vld [vmem:[%s9475_s7 + $0x7d4] sm:$0xf]  ;;  %v6130_v18 = vld [vmem:[%s9475_s7 + $0x7d8] sm:$0xf0] }
 0x4c1   :  { %4608 = vmatpush.bf16.msrb.mxu0 %v5685_v21  ;;  %4647 = vmatpush.bf16.msra.mxu3 %v5877_v52  ;;  %v9172_v25 = vadd.f32 %v4420_v26, %v4408_v13  ;;  %v5970_v21 = vld [vmem:[%s9475_s7 + $0x698] sm:$0xf0]  ;;  %v6543_v52 = vld [vmem:[%s9475_s7 + $0x714] sm:$0xf]  ;;  %v6525_v26 = vld [vmem:[%s9475_s7 + $0x684] sm:$0xf]  ;;  %v6141_v8 = vor.u32 %v6569_v5, %v6138_v19 }
 0x4c2   :  { %4673 = vmatpush.bf16.msrb.mxu1 %v6005_v42  ;;  %4686 = vmatpush.bf16.msrb.mxu2 %v6069_v17  ;;  %v4383_v54 = vpop.f32.mrf.mxu3  ;;  %v5845_v42 = vor.u32 %v6495_v12, %v5842_v53  ;;  %v6445_v17 = vld [vmem:[%s9475_s7 + $0x404] sm:$0xf]  ;;  %v5973_v44 = vor.u32 %v6527_v20, %v5970_v21  ;;  %v6037_v7 = vor.u32 %v6543_v52, %v6034_v37  ;;  %v6226_v36 = vld [vmem:[%s9475_s7 + $0x898] sm:$0xf0]  ;;  %v6122_v35 = vld [vmem:[%s9475_s7 + $0x7c8] sm:$0xf0] }
 0x4c3   :  { %v5965_v51 = vor.u32 %v6525_v26, %v5962_v31  ;;  %v6521_v13 = vld [vmem:[%s9475_s7 + $0x664] sm:$0xf]  ;;  %v5938_v54 = vld [vmem:[%s9475_s7 + $0x658] sm:$0xf0]  ;;  %v6515_v12 = vld [vmem:[%s9475_s7 + $0x634] sm:$0xf] }
 0x4c4   :  { %v4422_v47 = vpop.f32.mrf.mxu2  ;;  %v6565_v60 = vld [vmem:[%s9475_s7 + $0x7c4] sm:$0xf]  ;;  %v5922_v53 = vld [vmem:[%s9475_s7 + $0x638] sm:$0xf0]  ;;  %v6563_v20 = vld [vmem:[%s9475_s7 + $0x7b4] sm:$0xf] }
 0x4c5   :  { %4609 = vmatpush.bf16.msrb.mxu0 %v5677_v6  ;;  %4648 = vmatpush.bf16.msra.mxu3 %v5869_v46  ;;  %v6146_v6 = vld [vmem:[%s9475_s7 + $0x7f8] sm:$0xf0]  ;;  %v5645_v46 = vor.u32 %v6445_v17, %v5642_v55  ;;  %v6133_v47 = vor.u32 %v6567_v58, %v6130_v18  ;;  %v6589_v32 = vld [vmem:[%s9475_s7 + $0x884] sm:$0xf]  ;;  %v6603_v52 = vld [vmem:[%s9477_s9 + $0x30] sm:$0xff] }
 0x4c6   :  { %4674 = vmatpush.bf16.msrb.mxu1 %v5997_v41  ;;  %4687 = vmatpush.bf16.msrb.mxu2 %v6061_v28  ;;  %v6029_v41 = vor.u32 %v6541_v57, %v6026_v27  ;;  %v5957_v28 = vor.u32 %v6523_v23, %v5954_v49  ;;  %v6149_v62 = vor.u32 %v6571_v34, %v6146_v6  ;;  %v6114_v21 = vld [vmem:[%s9475_s7 + $0x7b8] sm:$0xf0]  ;;  %v6513_v17 = vld [vmem:[%s9475_s7 + $0x624] sm:$0xf]  ;;  %v5914_v55 = vld [vmem:[%s9475_s7 + $0x628] sm:$0xf0] }
 0x4c7   :  { %v6561_v24 = vld [vmem:[%s9475_s7 + $0x7a4] sm:$0xf]  ;;  %v5917_v11 = vor.u32 %v6513_v17, %v5914_v55  ;;  %v6511_v31 = vld [vmem:[%s9475_s7 + $0x614] sm:$0xf]  ;;  %v5906_v57 = vld [vmem:[%s9475_s7 + $0x618] sm:$0xf0] }
 0x4c8   :  { %v6559_v27 = vld [vmem:[%s9475_s7 + $0x794] sm:$0xf]  ;;  %v6098_v23 = vld [vmem:[%s9475_s7 + $0x798] sm:$0xf0]  ;;  %v6601_v49 = vld [vmem:[%s9477_s9 + $0x20] sm:$0xff]  ;;  %v5909_v34 = vor.u32 %v6511_v31, %v5906_v57 }
 0x4c9   :  { %4610 = vmatpush.bf16.msrb.mxu0 %v5669_v40  ;;  %4649 = vmatpush.bf16.msra.mxu3 %v5861_v15  ;;  %v6245_v40 = vor.u32 %v6595_v39, %v6242_v30  ;;  %v5949_v15 = vor.u32 %v6521_v13, %v5946_v16  ;;  %v6101_v6 = vor.u32 %v6559_v27, %v6098_v23  ;;  %v6599_v16 = vld [vmem:[%s9477_s9 + $0x10] sm:$0xff]  ;;  %v6585_v5 = vld [vmem:[%s9475_s7 + $0x864] sm:$0xf]  ;;  %v6202_v19 = vld [vmem:[%s9475_s7 + $0x868] sm:$0xf0] }
 0x4ca   :  { %4675 = vmatpush.bf16.msrb.mxu1 %v5989_v56  ;;  %4688 = vmatpush.bf16.msrb.mxu2 %v6053_v14  ;;  %v6234_v56 = vld [vmem:[%s9475_s7 + $0x8a8] sm:$0xf0]  ;;  %v6519_v14 = vld [vmem:[%s9475_s7 + $0x654] sm:$0xf]  ;;  %v6581_v18 = vld [vmem:[%s9475_s7 + $0x844] sm:$0xf] }
 0x4cb   :  { %v5941_v38 = vor.u32 %v6519_v14, %v5938_v54  ;;  %v6597_v54 = vld [vmem:[%s9477_s9] sm:$0xff] }
 0x4cc   :  { %v6615_v23 = vld [vmem:[%s9476_s8] sm:$0x3] }
 0x4cd   :  { %4611 = vmatpush.bf16.msrb.mxu0 %v5661_v10  ;;  %4650 = vmatpush.bf16.msra.mxu3 %v5853_v45  ;;  %v6604_v10 = vld [vmem:[%s9477_s9 + $0x38] sm:$0xff] }
 0x4ce   :  { %4676 = vmatpush.bf16.msrb.mxu1 %v5981_v43  ;;  %4689 = vmatpush.bf16.msrb.mxu2 %v6045_v3  ;;  %v6125_v43 = vor.u32 %v6565_v60, %v6122_v35  ;;  %v6218_v3 = vld [vmem:[%s9475_s7 + $0x888] sm:$0xf0]  ;;  %v6577_v35 = vld [vmem:[%s9475_s7 + $0x824] sm:$0xf] }
 0x4cf   :  { %v6221_v37 = vor.u32 %v6589_v32, %v6218_v3 }
 0x4d1   :  { %4612 = vmatpush.bf16.msrb.mxu0 %v5653_v63  ;;  %4651 = vmatpush.bf16.msra.mxu3 %v5845_v42  ;;  %v5925_v63 = vor.u32 %v6515_v12, %v5922_v53  ;;  %v6117_v42 = vor.u32 %v6563_v20, %v6114_v21 }
 0x4d2   :  { %4677 = vmatpush.bf16.msrb.mxu1 %v5973_v44  ;;  %4690 = vmatpush.bf16.msrb.mxu2 %v6037_v7  ;;  %v6106_v44 = vld [vmem:[%s9475_s7 + $0x7a8] sm:$0xf0] }
 0x4d3   :  { %v6602_v7 = vld [vmem:[%s9477_s9 + $0x28] sm:$0xff]  ;;  %v6109_v26 = vor.u32 %v6561_v24, %v6106_v44 }
 0x4d5   :  { %4613 = vmatpush.bf16.msrb.mxu0 %v5645_v46  ;;  %4652 = vmatpush.bf16.msra.mxu3 %v5837_v61  ;;  %v6509_v46 = vld [vmem:[%s9475_s7 + $0x604] sm:$0xf]  ;;  %v5898_v61 = vld [vmem:[%s9475_s7 + $0x608] sm:$0xf0] }
 0x4d6   :  { %4678 = vmatpush.bf16.msrb.mxu1 %v5965_v51  ;;  %4691 = vmatpush.bf16.msrb.mxu2 %v6029_v41  ;;  %v6557_v51 = vld [vmem:[%s9475_s7 + $0x784] sm:$0xf]  ;;  %v6600_v41 = vld [vmem:[%s9477_s9 + $0x18] sm:$0xff]  ;;  %v5901_v39 = vor.u32 %v6509_v46, %v5898_v61 }
 0x4d8   :  { %4614 = vmatmul.bf16.vlgmr.msrb.gmra.mxu0 %v8320_v29  ;;  %4653 = vmatmul.bf16.vlgmr.msra.gmra.mxu3 %v8326_v48  ;;  %v6237_v29 = vor.u32 %v6593_v59, %v6234_v56  ;;  %v6591_v48 = vld [vmem:[%s9475_s7 + $0x894] sm:$0xf]  ;;  %v6598_v59 = vld [vmem:[%s9477_s9 + $0x8] sm:$0xff] }
 0x4d9   :  { %4658 = vmatpush.bf16.msra.mxu0 %v5957_v28  ;;  %4697 = vmatpush.bf16.msrb.mxu3 %v6149_v62  ;;  %v6229_v45 = vor.u32 %v6591_v48, %v6226_v36  ;;  %v6587_v28 = vld [vmem:[%s9475_s7 + $0x874] sm:$0xf]  ;;  %v6210_v62 = vld [vmem:[%s9475_s7 + $0x878] sm:$0xf0] }
 0x4da   :  { %4679 = vmatmul.bf16.vlgmr.msrb.gmra.mxu1 %v8667_v22  ;;  %4692 = vmatmul.bf16.vlgmr.msrb.gmra.mxu2 %v8669_v0  ;;  %v6517_v22 = vld [vmem:[%s9475_s7 + $0x644] sm:$0xf]  ;;  %v5930_v0 = vld [vmem:[%s9475_s7 + $0x648] sm:$0xf0]  ;;  %v6213_v13 = vor.u32 %v6587_v28, %v6210_v62  ;;  %v6178_v48 = vld [vmem:[%s9475_s7 + $0x838] sm:$0xf0] }
 0x4db   :  { %4727 = vmatpush.bf16.msra.mxu1 %v6245_v40  ;;  %4841 = vmatpush.bf16.msra.mxu2 %v6604_v10  ;;  %v5933_v9 = vor.u32 %v6517_v22, %v5930_v0  ;;  %v6205_v40 = vor.u32 %v6585_v5, %v6202_v19  ;;  %v6170_v10 = vld [vmem:[%s9475_s7 + $0x828] sm:$0xf0] }
 0x4dd   :  { %4659 = vmatpush.bf16.msra.mxu0 %v5949_v15  ;;  %4698 = vmatpush.bf16.msrb.mxu3 %v6141_v8  ;;  %v6583_v15 = vld [vmem:[%s9475_s7 + $0x854] sm:$0xf]  ;;  %v6194_v8 = vld [vmem:[%s9475_s7 + $0x858] sm:$0xf0] }
 0x4de   :  { %v6197_v56 = vor.u32 %v6583_v15, %v6194_v8 }
 0x4df   :  { %4728 = vmatpush.bf16.msra.mxu1 %v6237_v29  ;;  %4842 = vmatpush.bf16.msra.mxu2 %v6603_v52  ;;  %v6186_v29 = vld [vmem:[%s9475_s7 + $0x848] sm:$0xf0]  ;;  %v6573_v52 = vld [vmem:[%s9475_s7 + $0x804] sm:$0xf] }
 0x4e1   :  { %4660 = vmatpush.bf16.msra.mxu0 %v5941_v38  ;;  %4699 = vmatpush.bf16.msrb.mxu3 %v6133_v47 }
 0x4e3   :  { %4729 = vmatpush.bf16.msra.mxu1 %v6229_v45  ;;  %4843 = vmatpush.bf16.msra.mxu2 %v6602_v7  ;;  %v6173_v45 = vor.u32 %v6577_v35, %v6170_v10 }
 0x4e5   :  { %4661 = vmatpush.bf16.msra.mxu0 %v5933_v9  ;;  %4700 = vmatpush.bf16.msrb.mxu3 %v6125_v43  ;;  %v6575_v9 = vld [vmem:[%s9475_s7 + $0x814] sm:$0xf] }
 0x4e7   :  { %4730 = vmatpush.bf16.msra.mxu1 %v6221_v37  ;;  %4844 = vmatpush.bf16.msra.mxu2 %v6601_v49  ;;  %v6154_v37 = vld [vmem:[%s9475_s7 + $0x808] sm:$0xf0]  ;;  %v2861_v49 = vperm.slane %v6615_v23, 1 }
 0x4e9   :  { %4662 = vmatpush.bf16.msra.mxu0 %v5925_v63  ;;  %4701 = vmatpush.bf16.msrb.mxu3 %v6117_v42  ;;  %v6157_v63 = vor.u32 %v6573_v52, %v6154_v37 }
 0x4ea   :  { %6247 = vmatmul.msk.bf16.vlgmr.msra.gmra.mxu1 %vm4264_vm1, %v8769_v4  ;;  %v6090_v4 = vld [vmem:[%s9475_s7 + $0x788] sm:$0xf0] }
 0x4eb   :  { %v6093_v30 = vor.u32 %v6557_v51, %v6090_v4  ;;  %4845 = vmatpush.bf16.msra.mxu2 %v6600_v41 }
 0x4ed   :  { %4663 = vmatpush.bf16.msra.mxu0 %v5917_v11  ;;  %4702 = vmatpush.bf16.msrb.mxu3 %v6109_v26 }
 0x4ef   :  { %4846 = vmatpush.bf16.msra.mxu2 %v6599_v16 }
 0x4f1   :  { %4664 = vmatpush.bf16.msra.mxu0 %v5909_v34  ;;  %4703 = vmatpush.bf16.msrb.mxu3 %v6101_v6 }
 0x4f3   :  { %4847 = vmatpush.bf16.msra.mxu2 %v6598_v59 }
 0x4f4   :  { %v4446_v14 = vpop.f32.mrf.mxu0 }
 0x4f5   :  { %4665 = vmatpush.bf16.msra.mxu0 %v5901_v39  ;;  %4704 = vmatpush.bf16.msrb.mxu3 %v6093_v30  ;;  %v4459_v58 = vpop.f32.mrf.mxu1 }
 0x4f7   :  { %4848 = vmatpush.bf16.msra.mxu2 %v6597_v54 }
 0x4f8   :  { %4666 = vmatmul.bf16.vlgmr.msra.gmra.mxu0 %v8665_v2  ;;  %4705 = vmatmul.bf16.vlgmr.msrb.gmra.mxu3 %v8671_v50  ;;  %v6189_v2 = vor.u32 %v6581_v18, %v6186_v29  ;;  %v6579_v50 = vld [vmem:[%s9475_s7 + $0x834] sm:$0xf] }
 0x4f9   :  { %4710 = vmatpush.bf16.msrb.mxu0 %v6213_v13  ;;  %v6181_v36 = vor.u32 %v6579_v50, %v6178_v48 }
 0x4fa   :  { %v4433_v38 = vpop.f32.mrf.mxu3 }
 0x4fb   :  { %v4472_v47 = vpop.f32.mrf.mxu2  ;;  %v4434_v0 = vadd.f32 %v4433_v38, %v9172_v25  ;;  %v6162_v25 = vld [vmem:[%s9475_s7 + $0x818] sm:$0xf0] }
 0x4fc   :  { %v4448_v22 = vpop.f32.mrf.mxu0  ;;  %v6165_v12 = vor.u32 %v6575_v9, %v6162_v25  ;;  %v6606_v9 = vld [vmem:[%s9477_s9 + $0x48] sm:$0xff] }
 0x4fd   :  { %4711 = vmatpush.bf16.msrb.mxu0 %v6205_v40  ;;  %v4461_v60 = vpop.f32.mrf.mxu1  ;;  %v4447_v32 = vadd.f32 %v4446_v14, %v4434_v0  ;;  %v6607_v0 = vld [vmem:[%s9477_s9 + $0x50] sm:$0xff] }
 0x4fe   :  { %v4836_v60 = vsel %vm860_vm6, 4294967295, %v6616_v1  ;;  %v16_v1 = vstv %s9478_s10 }
 0x4ff   :  { %v4460_v20 = vadd.f32 %v4459_v58, %v4447_v32  ;;  %v4837_v35 = vsel %vm4835_vm2, %v4836_v60, 0  ;;  %17 = vst [vmem:[#allocation4] sm:$0x1] %v16_v1 }
 0x501   :  { %4712 = vmatpush.bf16.msrb.mxu0 %v6197_v56  ;;  %v4473_v42 = vadd.f32 %v4472_v47, %v4460_v20 }
 0x502   :  { %v4435_v43 = vpop.f32.mrf.mxu3 }
 0x503   :  { %v4474_v3 = vpop.f32.mrf.mxu2 }
 0x504   :  { %v4498_v53 = vpop.f32.mrf.mxu0 }
 0x505   :  { %4713 = vmatpush.bf16.msrb.mxu0 %v6189_v2  ;;  %v4524_v21 = vpop.f32.mrf.mxu1 }
 0x509   :  { %4714 = vmatpush.bf16.msrb.mxu0 %v6181_v36 }
 0x50a   :  { %v4485_v17 = vpop.f32.mrf.mxu3 }
 0x50b   :  { %v4486_v55 = vadd.f32 %v4485_v17, %v4473_v42  ;;  %v4537_v24 = vpop.f32.mrf.mxu2 }
 0x50c   :  { %v4500_v44 = vpop.f32.mrf.mxu0 }
 0x50d   :  { %4715 = vmatpush.bf16.msrb.mxu0 %v6173_v45  ;;  %v4499_v7 = vadd.f32 %v4498_v53, %v4486_v55  ;;  %v4526_v11 = vpop.f32.mrf.mxu1  ;;  %v4839_v45 = vand.u32 %v6607_v0, %v4837_v35 }
 0x50f   :  { %v4736_v26 = vmax.f32 %v4499_v7, 0.0  ;;  %4859 = vmatpush.bf16.msra.mxu3 %v4839_v45 }
 0x511   :  { %4716 = vmatpush.bf16.msrb.mxu0 %v6165_v12  ;;  %v4738_v31 = vpack.c.bf16 %v4736_v26, %v4736_v26  ;;  %v6605_v12 = vld [vmem:[%s9477_s9 + $0x40] sm:$0xff] }
 0x512   :  { %v4487_v57 = vpop.f32.mrf.mxu3 }
 0x513   :  { %v4539_v27 = vpop.f32.mrf.mxu2  ;;  %4849 = vmatmul.bf16.vlgmr.msra.gmra.mxu2 %v4738_v31  ;;  %4860 = vmatpush.bf16.msra.mxu3 %v6606_v9 }
 0x514   :  { %v6614_v27 = vld [vmem:[#allocation4] ss:$0 sm:$0xff] }
 0x515   :  { %4717 = vmatpush.bf16.msrb.mxu0 %v6157_v63  ;;  %v4511_v34 = vpop.f32.mrf.mxu0 }
 0x516   :  { %v4512_v6 = vadd.f32 %v4511_v34, %v2861_v49 }
 0x517   :  { %4861 = vmatpush.bf16.msra.mxu3 %v6605_v12 }
 0x518   :  { %4718 = vmatmul.bf16.vlgmr.msrb.gmra.mxu0 %v8767_v33  ;;  %v4576_v46 = vpop.f32.mrf.mxu1  ;;  %v4525_v61 = vadd.f32 %v4524_v21, %v4512_v6 }
 0x51a   :  { %v4538_v51 = vadd.f32 %v4537_v24, %v4525_v61 }
 0x51b   :  { %v4550_v4 = vpop.f32.mrf.mxu3 }
 0x51c   :  { %v4551_v41 = vadd.f32 %v4550_v4, %v4538_v51 }
 0x51d   :  { %v4513_v62 = vpop.f32.mrf.mxu0 }
 0x51e   :  { %v4589_v28 = vpop.f32.mrf.mxu2 }
 0x520   :  { %v4578_v39 = vpop.f32.mrf.mxu1 }
 0x523   :  { %v4552_v33 = vpop.f32.mrf.mxu3 }
 0x526   :  { %v4591_v30 = vpop.f32.mrf.mxu2 }
 0x535   :  { %v4563_v13 = vpop.f32.mrf.mxu0 }
 0x536   :  { %v4564_v16 = vadd.f32 %v4563_v13, %v4551_v41 }
 0x538   :  { %v4628_v5 = vpop.f32.mrf.mxu1  ;;  %v4577_v19 = vadd.f32 %v4576_v46, %v4564_v16 }
 0x53a   :  { %v4590_v40 = vadd.f32 %v4589_v28, %v4577_v19 }
 0x53b   :  { %v4602_v15 = vpop.f32.mrf.mxu3 }
 0x53c   :  { %v4603_v8 = vadd.f32 %v4602_v15, %v4590_v40 }
 0x53d   :  { %v4565_v56 = vpop.f32.mrf.mxu0 }
 0x53e   :  { %v4641_v59 = vpop.f32.mrf.mxu2 }
 0x540   :  { %v4630_v14 = vpop.f32.mrf.mxu1 }
 0x543   :  { %v4604_v54 = vpop.f32.mrf.mxu3 }
 0x546   :  { %v4643_v58 = vpop.f32.mrf.mxu2 }
 0x555   :  { %v4615_v18 = vpop.f32.mrf.mxu0 }
 0x556   :  { %v4616_v29 = vadd.f32 %v4615_v18, %v4603_v8 }
 0x557   :  { %v4680_v2 = vpop.f32.mrf.mxu1 }
 0x558   :  { %v4629_v50 = vadd.f32 %v4628_v5, %v4616_v29 }
 0x55a   :  { %v4642_v48 = vadd.f32 %v4641_v59, %v4629_v50 }
 0x55b   :  { %v4654_v38 = vpop.f32.mrf.mxu3 }
 0x55c   :  { %v4655_v21 = vadd.f32 %v4654_v38, %v4642_v48 }
 0x55d   :  { %v4693_v47 = vpop.f32.mrf.mxu2  ;;  %v4617_v36 = vpop.f32.mrf.mxu0 }
 0x55f   :  { %v4682_v22 = vpop.f32.mrf.mxu1 }
 0x563   :  { %v4656_v10 = vpop.f32.mrf.mxu3 }
 0x565   :  { %v4695_v32 = vpop.f32.mrf.mxu2 }
 0x567   :  { %v4732_v25 = vpop.f32.mrf.mxu1 }
 0x56f   :  { %v4734_v43 = vpop.f32.mrf.mxu1 }
 0x575   :  { %v4667_v3 = vpop.f32.mrf.mxu0 }
 0x576   :  { %v4668_v37 = vadd.f32 %v4667_v3, %v4655_v21 }
 0x578   :  { %v4681_v63 = vadd.f32 %v4680_v2, %v4668_v37 }
 0x57a   :  { %v4694_v42 = vadd.f32 %v4693_v47, %v4681_v63 }
 0x57b   :  { %v4706_v53 = vpop.f32.mrf.mxu3 }
 0x57c   :  { %v4707_v17 = vadd.f32 %v4706_v53, %v4694_v42 }
 0x57d   :  { %v4669_v20 = vpop.f32.mrf.mxu0 }
 0x583   :  { %v4708_v52 = vpop.f32.mrf.mxu3 }
 0x595   :  { %v4719_v55 = vpop.f32.mrf.mxu0 }
 0x596   :  { %v4720_v24 = vadd.f32 %v4719_v55, %v4707_v17  ;;  %v4850_v31 = vpop.f32.mrf.mxu2 }
 0x597   :  { %v4851_v23 = vadd.f32 %v6614_v27, %v4850_v31 }
 0x598   :  { %v4733_v44 = vadd.f32 %v4732_v25, %v4720_v24 }
 0x59a   :  { %v4737_v7 = vmax.f32 %v4733_v44, 0.0 }
 0x59c   :  { %v4739_v11 = vpack.c.bf16 %v4737_v7, %v4737_v7 }
 0x59d   :  { %v4721_v26 = vpop.f32.mrf.mxu0 }
 0x59e   :  { %6292 = vmatmul.msk.bf16.vlgmr.msra.gmra.mxu3 %vm4831_vm3, %v4739_v11  ;;  %v4852_v57 = vpop.f32.mrf.mxu2 }
 0x621   :  { %v4863_v49 = vpop.f32.mrf.mxu3 }
 0x622   :  { %v4864_v34 = vadd.f32 %v4863_v49, %v4851_v23 }
 0x624   :  { %4868 = vst.msk [vmem:[%s9479_s11] sm:$0x3] %vm4867_vm4, %v4864_v34 }
 0x629   :  { %v4865_v6 = vpop.f32.mrf.mxu3 }

</bundles_post_ra>
